<compile_context>
chip_gen: v7x
topology: tpu7x:2x2x1
jax: 0.10.0
libtpu: 0.0.40
codegen_flags: <defaults>
</compile_context>

<pallas_src>
import functools
import numpy as np
import jax
import jax.numpy as jnp
from jax.experimental import pallas as pl
from jax.experimental.pallas import tpu as pltpu

# Match PyTorch float32 matmul semantics (and keep kernel/reference consistent).
jax.config.update("jax_default_matmul_precision", "highest")

# ------------------------- configuration (small + deterministic) -------------------------
LMAX = 3
MMAX = 2
C = 8                      # sphere_channels
N_NODES = 16
N_EDGES = 600
TE = 128                   # edge tile size (multiple of 128 lanes)
NUM_CORES = 2              # leading "parallel" grid axis (v7x megacore split; harmless on 1-core chips)
D_IN = 8
H = 32
CUTOFF = 6.0
RESCALE = 2.0
NODE_OFFSET = 0
S_FULL = (LMAX + 1) ** 2   # 16
SC = S_FULL * C            # 128  (lane-dense node row)
LN_EPS = 1e-5
# PolynomialEnvelope(exponent=5)
ENV_P = 5
ENV_A = -(ENV_P + 1) * (ENV_P + 2) / 2.0
ENV_B = float(ENV_P * (ENV_P + 2))
ENV_C = -ENV_P * (ENV_P + 1) / 2.0


# ------------------------- CoefficientMapping (to_m / m_size / out_mask) -------------------------
def build_coefficient_mapping(lmax, mmax):
    l_list, m_list = [], []
    for l in range(lmax + 1):
        mm = min(l, mmax)
        for m in range(-mm, mm + 1):
            l_list.append(l)
            m_list.append(m)
    m_arr = np.asarray(m_list)
    num = len(l_list)
    to_m = np.zeros((num, num), dtype=np.float32)
    m_size = []
    offset = 0
    for m in range(mmax + 1):
        idx_r = np.nonzero(m_arr == m)[0]
        for o, i in enumerate(idx_r):
            to_m[o + offset, i] = 1.0
        offset += len(idx_r)
        m_size.append(len(idx_r))
        if m > 0:
            idx_i = np.nonzero(m_arr == -m)[0]
            for o, i in enumerate(idx_i):
                to_m[o + offset, i] = 1.0
            offset += len(idx_i)
    return to_m, m_size


def build_out_mask(lmax, mmax):
    mask = []
    for l in range(lmax + 1):
        for m in range(-l, l + 1):
            mask.append(abs(m) <= mmax)
    return np.asarray(mask)


TO_M, M_SIZE = build_coefficient_mapping(LMAX, MMAX)
OUT_MASK = build_out_mask(LMAX, MMAX)
M0 = M_SIZE[0]                 # m_0_num_coefficients  (= lmax + 1)
M_ALL = TO_M.shape[0]          # m_all_num_coefficents

# Full l-ordered column indices of the m=0 coefficients: wigner_inv[:, :, out_mask] @ to_m[:M0,:].T
# is exactly a gather of these columns (to_m rows are one-hot).
_MASKED_TO_FULL = np.nonzero(OUT_MASK)[0]
_M0_COLS_MASKED = np.argmax(TO_M[:M0, :], axis=1)
M0_FULL_COLS = _MASKED_TO_FULL[_M0_COLS_MASKED]            # (M0,)


def _build_wexp():
    # wig_b[e, a*SC + s*C + c] = wig_flat[e, s*M0 + a]   (broadcast over c; constant 0/1 matrix)
    wexp = np.zeros((S_FULL * M0, M0 * SC), dtype=np.float32)
    for s in range(S_FULL):
        for a in range(M0):
            wexp[s * M0 + a, a * SC + s * C: a * SC + s * C + C] = 1.0
    return wexp


def _build_w3_expand_cols():
    # h_exp[e, a*SC + s*C + c] = h[e, a*C + c]   (x_m0 tiled over s, realized by replicating w3 columns)
    cols = np.zeros(M0 * SC, dtype=np.int32)
    for a in range(M0):
        for s in range(S_FULL):
            cols[a * SC + s * C: a * SC + s * C + C] = np.arange(a * C, (a + 1) * C)
    return cols


WEXP = _build_wexp()
W3_EXPAND_COLS = _build_w3_expand_cols()


# ------------------------- Pallas kernel -------------------------
def _edge_degree_kernel(n_nodes, te, sc, m0,
                        x_edge_ref, dist_ref, wig_ref, dst_ref,       # per-edge-tile VMEM inputs
                        w1_ref, b1_ref, g1_ref, be1_ref,
                        w2_ref, b2_ref, g2_ref, be2_ref,
                        w3e_ref, b3e_ref, wexp_ref,                   # resident parameters
                        out_ref):                                     # (N, SC) per-core partial accumulator
    @pl.when(pl.program_id(1) == 0)
    def _init():
        out_ref[...] = jnp.zeros_like(out_ref)

    def layer_norm(h, g, b):
        mu = jnp.mean(h, axis=-1, keepdims=True)
        var = jnp.mean((h - mu) ** 2, axis=-1, keepdims=True)
        return (h - mu) * jax.lax.rsqrt(var + LN_EPS) * g + b

    def silu(h):
        return h * jax.nn.sigmoid(h)

    # RadialMLP: Linear -> LN -> SiLU -> Linear -> LN -> SiLU -> Linear (expanded).
    h = jnp.dot(x_edge_ref[...], w1_ref[...], preferred_element_type=jnp.float32) + b1_ref[...]
    h = silu(layer_norm(h, g1_ref[...], be1_ref[...]))
    h = jnp.dot(h, w2_ref[...], preferred_element_type=jnp.float32) + b2_ref[...]
    h = silu(layer_norm(h, g2_ref[...], be2_ref[...]))
    h_exp = jnp.dot(h, w3e_ref[...], preferred_element_type=jnp.float32) + b3e_ref[...]   # (TE, M0*SC)

    # Wigner m=0 columns, channel-expanded by a constant 0/1 matmul (no per-edge batched matmul).
    wig_b = jnp.dot(wig_ref[...], wexp_ref[...], preferred_element_type=jnp.float32)      # (TE, M0*SC)

    # emb[e, s*C + c] = sum_a wig_m0[e, s, a] * x_m0[e, a, c]  -> M0 lane-dense VPU FMAs.
    prod = wig_b * h_exp
    emb = prod[:, 0:sc]
    for a in range(1, m0):
        emb = emb + prod[:, a * sc:(a + 1) * sc]                                          # (TE, SC)

    # PolynomialEnvelope(exponent=5) on scaled distance; 1/rescale folded into the same scale.
    d = dist_ref[...] * (1.0 / CUTOFF)                                                    # (TE, 1)
    d2 = d * d
    d5 = d2 * d2 * d
    d6 = d5 * d
    d7 = d6 * d
    env = jnp.where(d < 1.0, 1.0 + ENV_A * d5 + ENV_B * d6 + ENV_C * d7, jnp.zeros_like(d))
    emb = emb * (env * (1.0 / RESCALE))                                                   # (TE, SC)

    # index_add_ scatter as a single MXU matmul: out[n, :] += sum_{e: dst[e]==n} emb[e, :].
    # Padded edges carry dst = -1 and match no node.
    dst_row = dst_ref[...]                                                                # (1, TE) int32
    node_ids = jax.lax.broadcasted_iota(jnp.int32, (n_nodes, te), 0)
    onehot = (node_ids == dst_row).astype(jnp.float32)                                    # (N, TE)
    out_ref[...] = out_ref[...] + jnp.dot(onehot, emb, preferred_element_type=jnp.float32)


# ------------------------- wrapper -------------------------
def edge_degree_embedding(x, x_edge, edge_distance, edge_index, wigner_inv, params,
                          node_offset=0, edge_tile=TE, num_cores=NUM_CORES):
    """Pallas-backed forward pass of EdgeDegreeEmbedding."""
    w1, b1, g1, be1, w2, b2, g2, be2, w3, b3 = params
    N, S, c = x.shape
    E, d_in = x_edge.shape
    sc = S * c
    assert S == S_FULL and c == C
    assert edge_tile % 128 == 0, "edge tile must be a multiple of 128 lanes"

    # ---- glue (in a real model the m=0 wigner columns would be produced upstream) ----
    x_flat = x.reshape(N, sc).astype(jnp.float32)                         # lane-dense nodes (N, 128)
    wig_m0 = wigner_inv[:, :, jnp.asarray(M0_FULL_COLS)]                  # (E, S, M0) column gather
    wig_flat = wig_m0.reshape(E, S * M0).astype(jnp.float32)              # (E, 64) lane-dense
    dst = (edge_index[1] - node_offset).astype(jnp.int32)                 # (E,)
    dist = edge_distance.astype(jnp.float32).reshape(E, 1)                # (E, 1)
    x_edge_f = x_edge.astype(jnp.float32)

    # Expanded last MLP weight + constant wigner channel-expansion matrix.
    cols = jnp.asarray(W3_EXPAND_COLS)
    w3e = w3.astype(jnp.float32)[:, cols]                                 # (H, M0*SC)
    b3e = b3.astype(jnp.float32)[:, cols]                                 # (1, M0*SC)
    wexp = jnp.asarray(WEXP)                                              # (S*M0, M0*SC)

    # Pad edges to a multiple of num_cores * edge_tile; padded edges get dst = -1.
    chunk = num_cores * edge_tile
    e_pad = ((E + chunk - 1) // chunk) * chunk
    pad = e_pad - E
    if pad:
        x_edge_f = jnp.pad(x_edge_f, ((0, pad), (0, 0)))
        dist = jnp.pad(dist, ((0, pad), (0, 0)), constant_values=2.0 * CUTOFF)
        wig_flat = jnp.pad(wig_flat, ((0, pad), (0, 0)))
        dst = jnp.pad(dst, (0, pad), constant_values=-1)
    dst2d = dst.reshape(1, e_pad)

    tiles_per_core = e_pad // chunk
    grid = (num_cores, tiles_per_core)

    def edge_map(core, i):
        return (core * tiles_per_core + i, 0)

    def dst_map(core, i):
        return (0, core * tiles_per_core + i)

    def resident_spec(p):
        zeros = (0,) * p.ndim
        return pl.BlockSpec(p.shape, lambda core, i: zeros)

    param_arrays = [w1.astype(jnp.float32), b1.astype(jnp.float32),
                    g1.astype(jnp.float32), be1.astype(jnp.float32),
                    w2.astype(jnp.float32), b2.astype(jnp.float32),
                    g2.astype(jnp.float32), be2.astype(jnp.float32),
                    w3e, b3e, wexp]
    param_specs = [resident_spec(p) for p in param_arrays]

    in_specs = [
        pl.BlockSpec((edge_tile, d_in), edge_map),          # x_edge tile
        pl.BlockSpec((edge_tile, 1), edge_map),             # edge_distance tile
        pl.BlockSpec((edge_tile, S * M0), edge_map),        # wigner m=0 columns tile (lane-dense)
        pl.BlockSpec((1, edge_tile), dst_map),              # destination node ids tile
    ] + param_specs

    kernel = functools.partial(_edge_degree_kernel, N, edge_tile, sc, M0)

    partials = pl.pallas_call(
        kernel,
        out_shape=jax.ShapeDtypeStruct((num_cores, N, sc), jnp.float32),
        grid=grid,
        in_specs=in_specs,
        out_specs=pl.BlockSpec((None, N, sc), lambda core, i: (core, 0, 0)),
        compiler_params=pltpu.CompilerParams(
            dimension_semantics=("parallel", "arbitrary")),
    )(x_edge_f, dist, wig_flat, dst2d, *param_arrays)

    out_flat = x_flat + jnp.sum(partials, axis=0)
    return out_flat.reshape(N, S, c).astype(x.dtype)


# ------------------------- pure-JAX reference (literal PyTorch order) -------------------------
def reference(x, x_edge, edge_distance, edge_index, wigner_inv, params, to_m, out_mask):
    w1, b1, g1, be1, w2, b2, g2, be2, w3, b3 = params

    def layer_norm(h, g, b):
        mu = h.mean(-1, keepdims=True)
        var = ((h - mu) ** 2).mean(-1, keepdims=True)
        return (h - mu) / jnp.sqrt(var + LN_EPS) * g + b

    silu = lambda h: h * jax.nn.sigmoid(h)

    h = silu(layer_norm(x_edge @ w1 + b1, g1, be1))
    h = silu(layer_norm(h @ w2 + b2, g2, be2))
    h = h @ w3 + b3

    E = x_edge.shape[0]
    x_m0 = h.reshape(E, M0, C)
    pad = jnp.zeros((E, M_ALL - M0, C), h.dtype)
    emb = jnp.concatenate([x_m0, pad], axis=1)
    emb = jnp.einsum('nac,ab->nbc', emb, jnp.asarray(to_m))
    wig_sel = wigner_inv[:, :, np.asarray(out_mask)]
    emb = jnp.einsum('nsa,nac->nsc', wig_sel, emb)

    d = edge_distance / CUTOFF
    env = jnp.where(d < 1.0, 1.0 + ENV_A * d ** 5 + ENV_B * d ** 6 + ENV_C * d ** 7, 0.0)
    emb = emb * env[:, None, None]

    dst = edge_index[1] - NODE_OFFSET
    return x.at[dst].add(emb / RESCALE)


# ------------------------- main -------------------------
if __name__ == "__main__":
    key = jax.random.PRNGKey(0)
    keys = jax.random.split(key, 16)

    # RadialMLP params: edge_channels_list = [D_IN, H, H] + [M0 * C]
    out_dim = M0 * C
    w1 = 0.2 * jax.random.normal(keys[0], (D_IN, H), jnp.float32)
    b1 = 0.1 * jax.random.normal(keys[1], (1, H), jnp.float32)
    g1 = 1.0 + 0.1 * jax.random.normal(keys[2], (1, H), jnp.float32)
    be1 = 0.1 * jax.random.normal(keys[3], (1, H), jnp.float32)
    w2 = 0.2 * jax.random.normal(keys[4], (H, H), jnp.float32)
    b2 = 0.1 * jax.random.normal(keys[5], (1, H), jnp.float32)
    g2 = 1.0 + 0.1 * jax.random.normal(keys[6], (1, H), jnp.float32)
    be2 = 0.1 * jax.random.normal(keys[7], (1, H), jnp.float32)
    w3 = 0.2 * jax.random.normal(keys[8], (H, out_dim), jnp.float32)
    b3 = 0.1 * jax.random.normal(keys[9], (1, out_dim), jnp.float32)
    params = (w1, b1, g1, be1, w2, b2, g2, be2, w3, b3)

    # inputs
    x = jax.random.normal(keys[10], (N_NODES, S_FULL, C), jnp.float32)
    x_edge = jax.random.normal(keys[11], (N_EDGES, D_IN), jnp.float32)
    edge_distance = jax.random.uniform(keys[12], (N_EDGES,), jnp.float32,
                                       minval=0.5, maxval=CUTOFF * 1.2)
    edge_index = jax.random.randint(keys[13], (2, N_EDGES), 0, N_NODES, jnp.int32)
    wigner_inv = 0.5 * jax.random.normal(keys[14], (N_EDGES, S_FULL, S_FULL), jnp.float32)

    out = edge_degree_embedding(x, x_edge, edge_distance, edge_index, wigner_inv,
                                params, node_offset=NODE_OFFSET)
    out = jax.block_until_ready(out)

    ref = jax.block_until_ready(
        reference(x, x_edge, edge_distance, edge_index, wigner_inv, params, TO_M, OUT_MASK))

    np.testing.assert_allclose(np.asarray(out), np.asarray(ref), rtol=2e-4, atol=2e-4)
    print("KERNEL_OK")
</pallas_src>

<mosaic_0001>
module attributes {stable_mosaic.version = 11 : i64} {
  func.func @_edge_degree_kernel(%arg0: i32, %arg1: i32, %arg2: memref<128x8xf32, #tpu.memory_space<vmem>>, %arg3: memref<128x1xf32, #tpu.memory_space<vmem>>, %arg4: memref<128x64xf32, #tpu.memory_space<vmem>>, %arg5: memref<1x128xi32, #tpu.memory_space<vmem>>, %arg6: memref<8x32xf32, #tpu.memory_space<vmem>>, %arg7: memref<1x32xf32, #tpu.memory_space<vmem>>, %arg8: memref<1x32xf32, #tpu.memory_space<vmem>>, %arg9: memref<1x32xf32, #tpu.memory_space<vmem>>, %arg10: memref<32x32xf32, #tpu.memory_space<vmem>>, %arg11: memref<1x32xf32, #tpu.memory_space<vmem>>, %arg12: memref<1x32xf32, #tpu.memory_space<vmem>>, %arg13: memref<1x32xf32, #tpu.memory_space<vmem>>, %arg14: memref<32x512xf32, #tpu.memory_space<vmem>>, %arg15: memref<1x512xf32, #tpu.memory_space<vmem>>, %arg16: memref<64x512xf32, #tpu.memory_space<vmem>>, %arg17: memref<1x16x128xf32, #tpu.memory_space<vmem>>) attributes {dimension_semantics = [#tpu.dimension_semantics<parallel>, #tpu.dimension_semantics<arbitrary>], iteration_bounds = array<i64: 2, 3>, scalar_prefetch = 0 : i64, scratch_operands = 0 : i64, tpu.core_type = #tpu.core_type<tc>, window_params = [{transform_indices = @transform_0, window_bounds = array<i64: 128, 8>}, {transform_indices = @transform_1, window_bounds = array<i64: 128, 1>}, {transform_indices = @transform_2, window_bounds = array<i64: 128, 64>}, {transform_indices = @transform_3, window_bounds = array<i64: 1, 128>}, {pipeline_mode = #tpu.pipeline_mode<synchronous>, transform_indices = @transform_4, window_bounds = array<i64: 8, 32>}, {pipeline_mode = #tpu.pipeline_mode<synchronous>, transform_indices = @transform_5, window_bounds = array<i64: 1, 32>}, {pipeline_mode = #tpu.pipeline_mode<synchronous>, transform_indices = @transform_6, window_bounds = array<i64: 1, 32>}, {pipeline_mode = #tpu.pipeline_mode<synchronous>, transform_indices = @transform_7, window_bounds = array<i64: 1, 32>}, {pipeline_mode = #tpu.pipeline_mode<synchronous>, transform_indices = @transform_8, window_bounds = array<i64: 32, 32>}, {pipeline_mode = #tpu.pipeline_mode<synchronous>, transform_indices = @transform_9, window_bounds = array<i64: 1, 32>}, {pipeline_mode = #tpu.pipeline_mode<synchronous>, transform_indices = @transform_10, window_bounds = array<i64: 1, 32>}, {pipeline_mode = #tpu.pipeline_mode<synchronous>, transform_indices = @transform_11, window_bounds = array<i64: 1, 32>}, {pipeline_mode = #tpu.pipeline_mode<synchronous>, transform_indices = @transform_12, window_bounds = array<i64: 32, 512>}, {pipeline_mode = #tpu.pipeline_mode<synchronous>, transform_indices = @transform_13, window_bounds = array<i64: 1, 512>}, {pipeline_mode = #tpu.pipeline_mode<synchronous>, transform_indices = @transform_14, window_bounds = array<i64: 64, 512>}, {transform_indices = @transform_15, window_bounds = array<i64: 1, 16, 128>}]} {
    %c0_i32 = arith.constant 0 : i32
    %0 = arith.cmpi eq, %arg1, %c0_i32 : i32
    %1 = arith.extui %0 : i1 to i32
    %c0_i32_0 = arith.constant 0 : i32
    %2 = arith.cmpi ne, %1, %c0_i32_0 : i32
    scf.if %2 {
      %cst_60 = arith.constant 0.000000e+00 : f32
      %129 = vector.broadcast %cst_60 : f32 to vector<16x128xf32>
      %c0_61 = arith.constant 0 : index
      %c0_62 = arith.constant 0 : index
      %c0_63 = arith.constant 0 : index
      %130 = vector.load %arg17[%c0_61, %c0_62, %c0_63] : memref<1x16x128xf32, #tpu.memory_space<vmem>>, vector<1x16x128xf32>
      %131 = vector.shape_cast %130 : vector<1x16x128xf32> to vector<16x128xf32>
      %132 = vector.shape_cast %129 : vector<16x128xf32> to vector<1x16x128xf32>
      tpu.vector_store %arg17[%c0_61, %c0_62, %c0_63], %132 {strides = array<i32>} : memref<1x16x128xf32, #tpu.memory_space<vmem>>, vector<1x16x128xf32>,
    } else {
    }
    %c0 = arith.constant 0 : index
    %c0_1 = arith.constant 0 : index
    %3 = vector.load %arg2[%c0, %c0_1] : memref<128x8xf32, #tpu.memory_space<vmem>>, vector<128x8xf32>
    %c0_2 = arith.constant 0 : index
    %c0_3 = arith.constant 0 : index
    %4 = vector.load %arg6[%c0_2, %c0_3] : memref<8x32xf32, #tpu.memory_space<vmem>>, vector<8x32xf32>
    %cst = arith.constant dense<0.000000e+00> : vector<128x32xf32>
    %5 = tpu.matmul %3, %4, %cst {dimension_numbers = #tpu.dot_dimension_numbers<[1], [0], [0], [1], [0, 0, 1, 1], [], []>, precision = #tpu.contract_precision<fp32>} : vector<128x8xf32>, vector<8x32xf32>, vector<128x32xf32> -> vector<128x32xf32>
    %c0_4 = arith.constant 0 : index
    %c0_5 = arith.constant 0 : index
    %6 = vector.load %arg7[%c0_4, %c0_5] : memref<1x32xf32, #tpu.memory_space<vmem>>, vector<1x32xf32>
    %7 = vector.broadcast %6 : vector<1x32xf32> to vector<128x32xf32>
    %8 = arith.addf %5, %7 : vector<128x32xf32>
    %c0_6 = arith.constant 0 : index
    %c0_7 = arith.constant 0 : index
    %9 = vector.load %arg8[%c0_6, %c0_7] : memref<1x32xf32, #tpu.memory_space<vmem>>, vector<1x32xf32>
    %c0_8 = arith.constant 0 : index
    %c0_9 = arith.constant 0 : index
    %10 = vector.load %arg9[%c0_8, %c0_9] : memref<1x32xf32, #tpu.memory_space<vmem>>, vector<1x32xf32>
    %cst_10 = arith.constant dense<0.000000e+00> : vector<128xf32>
    %11 = vector.multi_reduction <add>, %8, %cst_10 [1] : vector<128x32xf32> to vector<128xf32>
    %12 = vector.shape_cast %11 : vector<128xf32> to vector<128x1xf32>
    %cst_11 = arith.constant 3.200000e+01 : f32
    %13 = vector.broadcast %cst_11 : f32 to vector<128x1xf32>
    %14 = arith.divf %12, %13 : vector<128x1xf32>
    %15 = vector.broadcast %14 : vector<128x1xf32> to vector<128x32xf32>
    %16 = arith.subf %8, %15 : vector<128x32xf32>
    %17 = arith.mulf %16, %16 : vector<128x32xf32>
    %cst_12 = arith.constant dense<0.000000e+00> : vector<128xf32>
    %18 = vector.multi_reduction <add>, %17, %cst_12 [1] : vector<128x32xf32> to vector<128xf32>
    %19 = vector.shape_cast %18 : vector<128xf32> to vector<128x1xf32>
    %cst_13 = arith.constant 3.200000e+01 : f32
    %20 = vector.broadcast %cst_13 : f32 to vector<128x1xf32>
    %21 = arith.divf %19, %20 : vector<128x1xf32>
    %22 = vector.broadcast %14 : vector<128x1xf32> to vector<128x32xf32>
    %23 = arith.subf %8, %22 : vector<128x32xf32>
    %cst_14 = arith.constant 9.99999974E-6 : f32
    %24 = vector.broadcast %cst_14 : f32 to vector<128x1xf32>
    %25 = arith.addf %21, %24 : vector<128x1xf32>
    %26 = math.rsqrt %25 : vector<128x1xf32>
    %27 = vector.broadcast %26 : vector<128x1xf32> to vector<128x32xf32>
    %28 = arith.mulf %23, %27 : vector<128x32xf32>
    %29 = vector.broadcast %9 : vector<1x32xf32> to vector<128x32xf32>
    %30 = arith.mulf %28, %29 : vector<128x32xf32>
    %31 = vector.broadcast %10 : vector<1x32xf32> to vector<128x32xf32>
    %32 = arith.addf %30, %31 : vector<128x32xf32>
    %33 = arith.negf %32 : vector<128x32xf32>
    %34 = math.exp %33 : vector<128x32xf32>
    %cst_15 = arith.constant 1.000000e+00 : f32
    %35 = vector.broadcast %cst_15 : f32 to vector<128x32xf32>
    %36 = arith.addf %35, %34 : vector<128x32xf32>
    %37 = arith.divf %35, %36 : vector<128x32xf32>
    %38 = arith.mulf %32, %37 : vector<128x32xf32>
    %c0_16 = arith.constant 0 : index
    %c0_17 = arith.constant 0 : index
    %39 = vector.load %arg10[%c0_16, %c0_17] : memref<32x32xf32, #tpu.memory_space<vmem>>, vector<32x32xf32>
    %cst_18 = arith.constant dense<0.000000e+00> : vector<128x32xf32>
    %40 = tpu.matmul %38, %39, %cst_18 {dimension_numbers = #tpu.dot_dimension_numbers<[1], [0], [0], [1], [0, 0, 1, 1], [], []>, precision = #tpu.contract_precision<fp32>} : vector<128x32xf32>, vector<32x32xf32>, vector<128x32xf32> -> vector<128x32xf32>
    %c0_19 = arith.constant 0 : index
    %c0_20 = arith.constant 0 : index
    %41 = vector.load %arg11[%c0_19, %c0_20] : memref<1x32xf32, #tpu.memory_space<vmem>>, vector<1x32xf32>
    %42 = vector.broadcast %41 : vector<1x32xf32> to vector<128x32xf32>
    %43 = arith.addf %40, %42 : vector<128x32xf32>
    %c0_21 = arith.constant 0 : index
    %c0_22 = arith.constant 0 : index
    %44 = vector.load %arg12[%c0_21, %c0_22] : memref<1x32xf32, #tpu.memory_space<vmem>>, vector<1x32xf32>
    %c0_23 = arith.constant 0 : index
    %c0_24 = arith.constant 0 : index
    %45 = vector.load %arg13[%c0_23, %c0_24] : memref<1x32xf32, #tpu.memory_space<vmem>>, vector<1x32xf32>
    %cst_25 = arith.constant dense<0.000000e+00> : vector<128xf32>
    %46 = vector.multi_reduction <add>, %43, %cst_25 [1] : vector<128x32xf32> to vector<128xf32>
    %47 = vector.shape_cast %46 : vector<128xf32> to vector<128x1xf32>
    %cst_26 = arith.constant 3.200000e+01 : f32
    %48 = vector.broadcast %cst_26 : f32 to vector<128x1xf32>
    %49 = arith.divf %47, %48 : vector<128x1xf32>
    %50 = vector.broadcast %49 : vector<128x1xf32> to vector<128x32xf32>
    %51 = arith.subf %43, %50 : vector<128x32xf32>
    %52 = arith.mulf %51, %51 : vector<128x32xf32>
    %cst_27 = arith.constant dense<0.000000e+00> : vector<128xf32>
    %53 = vector.multi_reduction <add>, %52, %cst_27 [1] : vector<128x32xf32> to vector<128xf32>
    %54 = vector.shape_cast %53 : vector<128xf32> to vector<128x1xf32>
    %cst_28 = arith.constant 3.200000e+01 : f32
    %55 = vector.broadcast %cst_28 : f32 to vector<128x1xf32>
    %56 = arith.divf %54, %55 : vector<128x1xf32>
    %57 = vector.broadcast %49 : vector<128x1xf32> to vector<128x32xf32>
    %58 = arith.subf %43, %57 : vector<128x32xf32>
    %cst_29 = arith.constant 9.99999974E-6 : f32
    %59 = vector.broadcast %cst_29 : f32 to vector<128x1xf32>
    %60 = arith.addf %56, %59 : vector<128x1xf32>
    %61 = math.rsqrt %60 : vector<128x1xf32>
    %62 = vector.broadcast %61 : vector<128x1xf32> to vector<128x32xf32>
    %63 = arith.mulf %58, %62 : vector<128x32xf32>
    %64 = vector.broadcast %44 : vector<1x32xf32> to vector<128x32xf32>
    %65 = arith.mulf %63, %64 : vector<128x32xf32>
    %66 = vector.broadcast %45 : vector<1x32xf32> to vector<128x32xf32>
    %67 = arith.addf %65, %66 : vector<128x32xf32>
    %68 = arith.negf %67 : vector<128x32xf32>
    %69 = math.exp %68 : vector<128x32xf32>
    %cst_30 = arith.constant 1.000000e+00 : f32
    %70 = vector.broadcast %cst_30 : f32 to vector<128x32xf32>
    %71 = arith.addf %70, %69 : vector<128x32xf32>
    %72 = arith.divf %70, %71 : vector<128x32xf32>
    %73 = arith.mulf %67, %72 : vector<128x32xf32>
    %c0_31 = arith.constant 0 : index
    %c0_32 = arith.constant 0 : index
    %74 = vector.load %arg14[%c0_31, %c0_32] : memref<32x512xf32, #tpu.memory_space<vmem>>, vector<32x512xf32>
    %cst_33 = arith.constant dense<0.000000e+00> : vector<128x512xf32>
    %75 = tpu.matmul %73, %74, %cst_33 {dimension_numbers = #tpu.dot_dimension_numbers<[1], [0], [0], [1], [0, 0, 1, 1], [], []>, precision = #tpu.contract_precision<fp32>} : vector<128x32xf32>, vector<32x512xf32>, vector<128x512xf32> -> vector<128x512xf32>
    %c0_34 = arith.constant 0 : index
    %c0_35 = arith.constant 0 : index
    %76 = vector.load %arg15[%c0_34, %c0_35] : memref<1x512xf32, #tpu.memory_space<vmem>>, vector<1x512xf32>
    %77 = vector.broadcast %76 : vector<1x512xf32> to vector<128x512xf32>
    %78 = arith.addf %75, %77 : vector<128x512xf32>
    %c0_36 = arith.constant 0 : index
    %c0_37 = arith.constant 0 : index
    %79 = vector.load %arg4[%c0_36, %c0_37] : memref<128x64xf32, #tpu.memory_space<vmem>>, vector<128x64xf32>
    %c0_38 = arith.constant 0 : index
    %c0_39 = arith.constant 0 : index
    %80 = vector.load %arg16[%c0_38, %c0_39] : memref<64x512xf32, #tpu.memory_space<vmem>>, vector<64x512xf32>
    %cst_40 = arith.constant dense<0.000000e+00> : vector<128x512xf32>
    %81 = tpu.matmul %79, %80, %cst_40 {dimension_numbers = #tpu.dot_dimension_numbers<[1], [0], [0], [1], [0, 0, 1, 1], [], []>, precision = #tpu.contract_precision<fp32>} : vector<128x64xf32>, vector<64x512xf32>, vector<128x512xf32> -> vector<128x512xf32>
    %82 = arith.mulf %81, %78 : vector<128x512xf32>
    %83 = vector.extract_strided_slice %82 {offsets = [0, 0], sizes = [128, 128], strides = [1, 1]} : vector<128x512xf32> to vector<128x128xf32>
    %84 = vector.extract_strided_slice %82 {offsets = [0, 128], sizes = [128, 128], strides = [1, 1]} : vector<128x512xf32> to vector<128x128xf32>
    %85 = arith.addf %83, %84 : vector<128x128xf32>
    %86 = vector.extract_strided_slice %82 {offsets = [0, 256], sizes = [128, 128], strides = [1, 1]} : vector<128x512xf32> to vector<128x128xf32>
    %87 = arith.addf %85, %86 : vector<128x128xf32>
    %88 = vector.extract_strided_slice %82 {offsets = [0, 384], sizes = [128, 128], strides = [1, 1]} : vector<128x512xf32> to vector<128x128xf32>
    %89 = arith.addf %87, %88 : vector<128x128xf32>
    %c0_41 = arith.constant 0 : index
    %c0_42 = arith.constant 0 : index
    %90 = vector.load %arg3[%c0_41, %c0_42] : memref<128x1xf32, #tpu.memory_space<vmem>>, vector<128x1xf32>
    %cst_43 = arith.constant 0.166666672 : f32
    %91 = vector.broadcast %cst_43 : f32 to vector<128x1xf32>
    %92 = arith.mulf %90, %91 : vector<128x1xf32>
    %93 = arith.mulf %92, %92 : vector<128x1xf32>
    %94 = arith.mulf %93, %93 : vector<128x1xf32>
    %95 = arith.mulf %94, %92 : vector<128x1xf32>
    %96 = arith.mulf %95, %92 : vector<128x1xf32>
    %97 = arith.mulf %96, %92 : vector<128x1xf32>
    %cst_44 = arith.constant 1.000000e+00 : f32
    %98 = vector.broadcast %cst_44 : f32 to vector<128x1xf32>
    %99 = arith.cmpf olt, %92, %98 : vector<128x1xf32>
    %cst_45 = arith.constant -2.100000e+01 : f32
    %100 = vector.broadcast %cst_45 : f32 to vector<128x1xf32>
    %101 = arith.mulf %100, %95 : vector<128x1xf32>
    %cst_46 = arith.constant 1.000000e+00 : f32
    %102 = vector.broadcast %cst_46 : f32 to vector<128x1xf32>
    %103 = arith.addf %102, %101 : vector<128x1xf32>
    %cst_47 = arith.constant 3.500000e+01 : f32
    %104 = vector.broadcast %cst_47 : f32 to vector<128x1xf32>
    %105 = arith.mulf %104, %96 : vector<128x1xf32>
    %106 = arith.addf %103, %105 : vector<128x1xf32>
    %cst_48 = arith.constant -1.500000e+01 : f32
    %107 = vector.broadcast %cst_48 : f32 to vector<128x1xf32>
    %108 = arith.mulf %107, %97 : vector<128x1xf32>
    %109 = arith.addf %106, %108 : vector<128x1xf32>
    %cst_49 = arith.constant 0.000000e+00 : f32
    %110 = vector.broadcast %cst_49 : f32 to vector<128x1xf32>
    %111 = arith.select %99, %109, %110 : vector<128x1xi1>, vector<128x1xf32>
    %cst_50 = arith.constant 5.000000e-01 : f32
    %112 = vector.broadcast %cst_50 : f32 to vector<128x1xf32>
    %113 = arith.mulf %111, %112 : vector<128x1xf32>
    %114 = vector.broadcast %113 : vector<128x1xf32> to vector<128x128xf32>
    %115 = arith.mulf %89, %114 : vector<128x128xf32>
    %c0_51 = arith.constant 0 : index
    %c0_52 = arith.constant 0 : index
    %116 = vector.load %arg5[%c0_51, %c0_52] : memref<1x128xi32, #tpu.memory_space<vmem>>, vector<1x128xi32>
    %117 = tpu.iota {dimensions = array<i32: 0>} : vector<16x128xi32>
    %118 = vector.broadcast %116 : vector<1x128xi32> to vector<16x128xi32>
    %119 = arith.cmpi eq, %117, %118 : vector<16x128xi32>
    %120 = arith.extui %119 : vector<16x128xi1> to vector<16x128xi32>
    %121 = arith.sitofp %120 : vector<16x128xi32> to vector<16x128xf32>
    %c0_53 = arith.constant 0 : index
    %c0_54 = arith.constant 0 : index
    %c0_55 = arith.constant 0 : index
    %122 = vector.load %arg17[%c0_53, %c0_54, %c0_55] : memref<1x16x128xf32, #tpu.memory_space<vmem>>, vector<1x16x128xf32>
    %123 = vector.shape_cast %122 : vector<1x16x128xf32> to vector<16x128xf32>
    %cst_56 = arith.constant dense<0.000000e+00> : vector<16x128xf32>
    %124 = tpu.matmul %121, %115, %cst_56 {dimension_numbers = #tpu.dot_dimension_numbers<[1], [0], [0], [1], [0, 0, 1, 1], [], []>, precision = #tpu.contract_precision<fp32>} : vector<16x128xf32>, vector<128x128xf32>, vector<16x128xf32> -> vector<16x128xf32>
    %125 = arith.addf %123, %124 : vector<16x128xf32>
    %c0_57 = arith.constant 0 : index
    %c0_58 = arith.constant 0 : index
    %c0_59 = arith.constant 0 : index
    %126 = vector.load %arg17[%c0_57, %c0_58, %c0_59] : memref<1x16x128xf32, #tpu.memory_space<vmem>>, vector<1x16x128xf32>
    %127 = vector.shape_cast %126 : vector<1x16x128xf32> to vector<16x128xf32>
    %128 = vector.shape_cast %125 : vector<16x128xf32> to vector<1x16x128xf32>
    tpu.vector_store %arg17[%c0_57, %c0_58, %c0_59], %128 {strides = array<i32>} : memref<1x16x128xf32, #tpu.memory_space<vmem>>, vector<1x16x128xf32>,
    return
  }
  func.func @transform_0(%arg0: i32, %arg1: i32) -> (i32, i32) {
    %c3_i32 = arith.constant 3 : i32
    %0 = arith.muli %arg0, %c3_i32 : i32
    %1 = arith.addi %0, %arg1 : i32
    %c0_i32 = arith.constant 0 : i32
    %c0_i32_0 = arith.constant 0 : i32
    return %1, %c0_i32 : i32, i32
  }
  func.func @transform_1(%arg0: i32, %arg1: i32) -> (i32, i32) {
    %c3_i32 = arith.constant 3 : i32
    %0 = arith.muli %arg0, %c3_i32 : i32
    %1 = arith.addi %0, %arg1 : i32
    %c0_i32 = arith.constant 0 : i32
    %c0_i32_0 = arith.constant 0 : i32
    return %1, %c0_i32 : i32, i32
  }
  func.func @transform_2(%arg0: i32, %arg1: i32) -> (i32, i32) {
    %c3_i32 = arith.constant 3 : i32
    %0 = arith.muli %arg0, %c3_i32 : i32
    %1 = arith.addi %0, %arg1 : i32
    %c0_i32 = arith.constant 0 : i32
    %c0_i32_0 = arith.constant 0 : i32
    return %1, %c0_i32 : i32, i32
  }
  func.func @transform_3(%arg0: i32, %arg1: i32) -> (i32, i32) {
    %c3_i32 = arith.constant 3 : i32
    %0 = arith.muli %arg0, %c3_i32 : i32
    %1 = arith.addi %0, %arg1 : i32
    %c0_i32 = arith.constant 0 : i32
    %c0_i32_0 = arith.constant 0 : i32
    return %c0_i32, %1 : i32, i32
  }
  func.func @transform_4(%arg0: i32, %arg1: i32) -> (i32, i32) {
    %c0_i32 = arith.constant 0 : i32
    %c0_i32_0 = arith.constant 0 : i32
    %c0_i32_1 = arith.constant 0 : i32
    return %c0_i32, %c0_i32_0 : i32, i32
  }
  func.func @transform_5(%arg0: i32, %arg1: i32) -> (i32, i32) {
    %c0_i32 = arith.constant 0 : i32
    %c0_i32_0 = arith.constant 0 : i32
    %c0_i32_1 = arith.constant 0 : i32
    return %c0_i32, %c0_i32_0 : i32, i32
  }
  func.func @transform_6(%arg0: i32, %arg1: i32) -> (i32, i32) {
    %c0_i32 = arith.constant 0 : i32
    %c0_i32_0 = arith.constant 0 : i32
    %c0_i32_1 = arith.constant 0 : i32
    return %c0_i32, %c0_i32_0 : i32, i32
  }
  func.func @transform_7(%arg0: i32, %arg1: i32) -> (i32, i32) {
    %c0_i32 = arith.constant 0 : i32
    %c0_i32_0 = arith.constant 0 : i32
    %c0_i32_1 = arith.constant 0 : i32
    return %c0_i32, %c0_i32_0 : i32, i32
  }
  func.func @transform_8(%arg0: i32, %arg1: i32) -> (i32, i32) {
    %c0_i32 = arith.constant 0 : i32
    %c0_i32_0 = arith.constant 0 : i32
    %c0_i32_1 = arith.constant 0 : i32
    return %c0_i32, %c0_i32_0 : i32, i32
  }
  func.func @transform_9(%arg0: i32, %arg1: i32) -> (i32, i32) {
    %c0_i32 = arith.constant 0 : i32
    %c0_i32_0 = arith.constant 0 : i32
    %c0_i32_1 = arith.constant 0 : i32
    return %c0_i32, %c0_i32_0 : i32, i32
  }
  func.func @transform_10(%arg0: i32, %arg1: i32) -> (i32, i32) {
    %c0_i32 = arith.constant 0 : i32
    %c0_i32_0 = arith.constant 0 : i32
    %c0_i32_1 = arith.constant 0 : i32
    return %c0_i32, %c0_i32_0 : i32, i32
  }
  func.func @transform_11(%arg0: i32, %arg1: i32) -> (i32, i32) {
    %c0_i32 = arith.constant 0 : i32
    %c0_i32_0 = arith.constant 0 : i32
    %c0_i32_1 = arith.constant 0 : i32
    return %c0_i32, %c0_i32_0 : i32, i32
  }
  func.func @transform_12(%arg0: i32, %arg1: i32) -> (i32, i32) {
    %c0_i32 = arith.constant 0 : i32
    %c0_i32_0 = arith.constant 0 : i32
    %c0_i32_1 = arith.constant 0 : i32
    return %c0_i32, %c0_i32_0 : i32, i32
  }
  func.func @transform_13(%arg0: i32, %arg1: i32) -> (i32, i32) {
    %c0_i32 = arith.constant 0 : i32
    %c0_i32_0 = arith.constant 0 : i32
    %c0_i32_1 = arith.constant 0 : i32
    return %c0_i32, %c0_i32_0 : i32, i32
  }
  func.func @transform_14(%arg0: i32, %arg1: i32) -> (i32, i32) {
    %c0_i32 = arith.constant 0 : i32
    %c0_i32_0 = arith.constant 0 : i32
    %c0_i32_1 = arith.constant 0 : i32
    return %c0_i32, %c0_i32_0 : i32, i32
  }
  func.func @transform_15(%arg0: i32, %arg1: i32) -> (i32, i32, i32) {
    %c0_i32 = arith.constant 0 : i32
    %c0_i32_0 = arith.constant 0 : i32
    %c0_i32_1 = arith.constant 0 : i32
    return %arg0, %c0_i32, %c0_i32_0 : i32, i32, i32
  }
}

</mosaic_0001>

<bundles_post_ra>
// kernel: tpu_custom_call.1
= control target key start
LH: loop header
LB: loop body
LE: loop exit
PB: predicated region body
PF: predicated region fallthrough
CT: control target
= control target key end

     0   :  { %s17670_s0 = inlined_call_operand.vmem [shape: f32[768,8], index: 0, kind: input, shape index: {}]   ;;  %s17671_s1 = inlined_call_operand.vmem [shape: f32[768,1], index: 1, kind: input, shape index: {}]   ;;  %s17672_s2 = inlined_call_operand.vmem [shape: f32[768,64], index: 2, kind: input, shape index: {}]   ;;  %s17673_s3 = inlined_call_operand.vmem [shape: s32[1,768], index: 3, kind: input, shape index: {}]   ;;  %s17674_s4 = inlined_call_operand.vmem [shape: f32[8,32], index: 4, kind: input, shape index: {}]   ;;  %s17675_s5 = inlined_call_operand.vmem [shape: f32[1,32], index: 5, kind: input, shape index: {}]   ;;  %s17676_s6 = inlined_call_operand.vmem [shape: f32[1,32], index: 6, kind: input, shape index: {}]   ;;  %s17677_s7 = inlined_call_operand.vmem [shape: f32[1,32], index: 7, kind: input, shape index: {}]   ;;  %s17678_s8 = inlined_call_operand.vmem [shape: f32[32,32], index: 8, kind: input, shape index: {}]   ;;  %s17679_s9 = inlined_call_operand.vmem [shape: f32[1,32], index: 9, kind: input, shape index: {}]   ;;  %s17680_s10 = inlined_call_operand.vmem [shape: f32[1,32], index: 10, kind: input, shape index: {}]   ;;  %s17681_s11 = inlined_call_operand.vmem [shape: f32[1,32], index: 11, kind: input, shape index: {}]   ;;  %s17682_s12 = inlined_call_operand.vmem [shape: f32[32,512], index: 12, kind: input, shape index: {}]   ;;  %s17683_s13 = inlined_call_operand.vmem [shape: f32[1,512], index: 13, kind: input, shape index: {}]   ;;  %s17684_s14 = inlined_call_operand.vmem [shape: f32[64,512], index: 14, kind: input, shape index: {}]   ;;  %s17685_s15 = inlined_call_operand.hbm [shape: f32[2,16,128], index: 15, kind: output, shape index: {}]  }
   0x1   :  { %17953 = sst [smem:[#allocation125_spill]] %s17683_s13 }
   0x2   :  { %17954 = sst [smem:[#allocation126_spill]] %s17684_s14 }
   0x3   :  { %17955 = sst [smem:[#allocation127_spill]] %s17685_s15 }
   0x4   :  { %20 = vsyncpa [#allocation3], 0 }
   0x5   :  { %22 = vsyncpa [#allocation3 + $0x1], 0  ;;  %s13348_s18 = smov 0   ;;  %s13350_s19 = smov 0  }
   0x6   :  { %s13352_s20 = smov 0   ;;  %s13354_s21 = smov 0  }
   0x7   :  { %s13356_s22 = smov 0   ;;  %s13358_s23 = smov 0  }
   0x8   :  { %s13360_s24 = smov 0   ;;  %s13362_s25 = smov 0  }
   0x9 LB: > { %17956 = sst [smem:[#allocation5_spill]] %s13231_s18  ;;  %s10505_s26 = sadd.s32 4294967295, %s13259_s25   ;;  %s13259_s25 = sphi %s13362_s25, %s28_s25   ;;  %s13255_s24 = sphi %s13360_s24, %s18569_s24   ;;  %s13251_s23 = sphi %s13358_s23, %s18568_s23   ;;  %s13247_s22 = sphi %s13356_s22, %s18567_s22   ;;  %s13243_s21 = sphi %s13354_s21, %s18566_s21   ;;  %s13239_s20 = sphi %s13352_s20, %s18565_s20   ;;  %s13235_s19 = sphi %s13350_s19, %s18564_s19   ;;  %s13231_s18 = sphi %s13348_s18, %s18563_s18  }
   0xa   : > { %17957 = sst [smem:[#allocation6_spill]] %s13235_s19  ;;  %s10506_s27 = sadd.s32 4294967294, %s13259_s25  }
   0xb   : > { %17958 = sst [smem:[#allocation7_spill]] %s13239_s20  ;;  %s37_s28 = sadd.s32 1, %s13251_s23 }
   0xc   : > { %17959 = sst [smem:[#allocation8_spill]] %s13247_s22  ;;  %p38_p0 = scmp.ge.s32.totalorder %s37_s28, 3 }
   0xd   : > { %17960 = sst [smem:[#allocation9_spill]] %s13251_s23  ;;  %s40_s29 = sadd.s32 1, %s13255_s24 }
   0xe   : > { %17961 = sst [smem:[#allocation10_spill]] %s13255_s24  ;;  %p408_p1 = scmp.ne.s32.totalorder %s13239_s20, %s13235_s19 }
   0xf   : > { %17962 = sst [smem:[#allocation11_spill]] %s13259_s25  ;;  %p409_p2 = scmp.eq.s32.totalorder %s10505_s26, 5 }
  0x10   : > { %s18571_s28 = smov (%p38_p0, %s37_s28), 0  ;;  %s18573_s29 = smov (!%p38_p0, %s40_s29), %s13255_s24 }
  0x11   : > { %17963 = sst [smem:[#allocation12_spill]] %s18571_s28  ;;  %p13397_p3 = por %p409_p2, %p408_p1 }
  0x12   : > { %p414_p4 = scmp.ne.s32.totalorder %s13235_s19, %s13231_s18  ;;  %p42_p5 = scmp.ge.s32.totalorder %s18573_s29, 2 }
  0x13   : > { %s17964_s30 = scalar_select %p13397_p3, 1, 0 }
  0x14   : > { %p415_p6 = scmp.eq.s32.totalorder %s10506_s27, 5  ;;  %p10509_p7 = scmp.ge.s32.totalorder %s13259_s25, 1 }
  0x15   : > { %17965 = sst [smem:[#allocation13_spill]] %s17964_s30  ;;  %p515_p8 = scmp.lt.s32.totalorder %s13259_s25, 7 }
  0x16   : > { %s18575_s29 = smov (%p42_p5, %s18573_s29), 0  ;;  %p13407_p9 = por %p415_p6, %p414_p4 }
  0x17   : > { %17966 = sst [smem:[#allocation14_spill]] %s18575_s29  ;;  %p516_p10 = pnand %p10509_p7, %p515_p8 }
  0x18   : > { %s17967_s16 = scalar_select %p13407_p9, 1, 0 }
  0x19   : > { %s395_s17 = ssub.s32 %s13255_s24, %s18575_s29  ;;  %s398_s26 = sadd.s32 1, %s13239_s20 }
  0x1a   : > { %17968 = sst [smem:[#allocation15_spill]] %s17967_s16  ;;  %p396_p11 = scmp.eq.s32.totalorder %s395_s17, 0 }
  0x1b   : > { %519 = sbr.rel (%p516_p10) target bundleno = 2948 (0xb84), region = 80 }
  0x1c   : > { %s13415_s28 = scalar_select %p396_p11, %s13239_s20, %s398_s26  }
  0x1e   : > { %17969 = sst [smem:[#allocation16_spill]] %s13415_s28 }
  0x22   : > { %s17697_s27 = sand.u32 1, %s13235_s19   ;;  %s584_s23 = smul.u32 3, %s13247_s22 }
  0x23   : > { %s10510_s18 = sshll.u32 %s17697_s27, 4  ;;  %p10517_p0 = scmp.ne.s32.totalorder %s13243_s21, 0 }
  0x24   : > { %s585_s25 = sadd.s32 %s13243_s21, %s584_s23  ;;  %s13443_s14 = scalar_lea.vmem [#allocation2], %s10510_s18  ;;  %v13261_v0 = vmov (!%p10517_p0), 0.0  }
  0x25   : > { %s10511_s15 = sshll.u32 %s585_s25, 4  ;;  %p616_p12 = scmp.lt.s32.totalorder %s585_s25, 5  ;;  %625 = vst [vmem:[%s13443_s14] sm:$0xff] (!%p10517_p0), %v13261_v0  ;;  %626 = vst [vmem:[%s13443_s14 + $0x8] sm:$0xff] (!%p10517_p0), %v13261_v0 }
  0x26   : > { %p587_p13 = scmp.lt.s32.totalorder %s10511_s15, 95  ;;  %624 = sbr.rel (%p10517_p0) target bundleno = 45 (0x2d), region = 84 }
  0x27   : > { %s18577_s25 = smov (!%p616_p12, %s585_s25), 5 }
  0x28   : > { %s18579_s15 = smov (!%p587_p13, %s10511_s15), 95  ;;  %s618_s29 = scalar_lea.vmem %s17673_s3, %s18577_s25 }
  0x29   : > { %s10512_s24 = sshll.u32 %s18579_s15, 3 }
  0x2a   : > { %s13431_s16 = scalar_lea.vmem %s17670_s0, %s10512_s24  ;;  %s13436_s23 = scalar_lea.vmem %s17671_s1, %s10512_s24 }
  0x2b   : > { %s13441_s13 = scalar_lea.vmem %s17672_s2, %s10512_s24 }
  0x2d PF: > { %v643_v1 = vld [vmem:[%s17674_s4] sm:$0xff]  ;;  %vm651_vm0 = vcmask 64512   ;;  %v628_v3 = vld [vmem:[%s13431_s16 + $0x8] sm:$0xff]  ;;  %v629_v7 = vld [vmem:[%s13431_s16 + $0x10] sm:$0xff]  ;;  %vm1793_vm1 = vcmask 261120   ;;  %s18059_s21 = sld [smem:[#allocation126_spill]] }
  0x2e   : > { %v627_v2 = vld [vmem:[%s13431_s16] sm:$0xff]  ;;  %v13453_v4 = vand.u32 4294901760, %v643_v1  ;;  %v656_v6 = vsel %vm651_vm0, %v628_v3, 0  ;;  %v630_v8 = vld [vmem:[%s13431_s16 + $0x18] sm:$0xff]  ;;  %v659_v12 = vsel %vm651_vm0, %v629_v7, 0  ;;  %v632_v14 = vld [vmem:[%s13431_s16 + $0x28] sm:$0xff] }
  0x2f   : > { %v653_v5 = vsel %vm651_vm0, %v627_v2, 0  ;;  %v631_v9 = vld [vmem:[%s13431_s16 + $0x20] sm:$0xff]  ;;  %v13462_v11 = vand.u32 4294901760, %v656_v6  ;;  %v662_v13 = vsel %vm651_vm0, %v630_v8, 0  ;;  %v13468_v15 = vand.u32 4294901760, %v659_v12  ;;  %v633_v19 = vld [vmem:[%s13431_s16 + $0x30] sm:$0xff] }
  0x30   : > { %v13460_v10 = vand.u32 4294901760, %v653_v5  ;;  %10901 = vmatprep.subr.mxu0 %v13453_v4  ;;  %v13471_v16 = vsub.f32 %v643_v1, %v13453_v4  ;;  %v13473_v17 = vand.u32 4294901760, %v662_v13  ;;  %v665_v18 = vsel %vm651_vm0, %v631_v9, 0  ;;  %v634_v40 = vld [vmem:[%s13431_s16 + $0x38] sm:$0xff]  ;;  %v635_v45 = vld [vmem:[%s13431_s16 + $0x40] sm:$0xff]  ;;  %v636_v50 = vld [vmem:[%s13431_s16 + $0x48] sm:$0xff] }
  0x31   : > { %10902 = vmatpush3.msra.mxu0 %v13453_v4  ;;  %v13482_v21 = vsub.f32 %v656_v6, %v13462_v11  ;;  %v13484_v22 = vand.u32 4294901760, %v665_v18  ;;  %v668_v23 = vsel %vm651_vm0, %v632_v14, 0  ;;  %v13488_v24 = vsub.f32 %v659_v12, %v13468_v15  ;;  %v637_v51 = vld [vmem:[%s13431_s16 + $0x50] sm:$0xff]  ;;  %v638_v56 = vld [vmem:[%s13431_s16 + $0x58] sm:$0xff]  ;;  %v639_v61 = vld [vmem:[%s13431_s16 + $0x60] sm:$0xff]  ;;  %s18296_s24 = sld [smem:[#allocation125_spill]] }
  0x32   : > { %v13479_v20 = vsub.f32 %v653_v5, %v13460_v10  ;;  %v13491_v25 = vand.u32 4294901760, %v13471_v16  ;;  %v13494_v26 = vsub.f32 %v662_v13, %v13473_v17  ;;  %v13496_v27 = vand.u32 4294901760, %v668_v23  ;;  %v640_v62 = vld [vmem:[%s13431_s16 + $0x68] sm:$0xff]  ;;  %v641_v14 = vld [vmem:[%s13431_s16 + $0x70] sm:$0xff]  ;;  %s18554_s25 = sld [smem:[#allocation8_spill]]  ;;  %s10399_s20 = sshll.u32 %s13443_s14, 4  ;;  %s17612_s20 = int_to_ptr.vmem [resolvable:$true] %s10399_s20 }
  0x33   : > { %v778_v29 = vand.u32 4294901760, %v13482_v21  ;;  %v13501_v30 = vsub.f32 %v665_v18, %v13484_v22  ;;  %v671_v31 = vsel %vm651_vm0, %v633_v19, 0  ;;  %v788_v32 = vand.u32 4294901760, %v13488_v24  ;;  %s18060_s28 = smov %s18059_s21  ;;  %s18557_s19 = sld [smem:[#allocation127_spill]] }
  0x34   : > { %v768_v28 = vand.u32 4294901760, %v13479_v20  ;;  %v930_v33 = vsub.f32 %v13471_v16, %v13491_v25  ;;  %v798_v34 = vand.u32 4294901760, %v13494_v26  ;;  %v13509_v35 = vsub.f32 %v668_v23, %v13496_v27  ;;  %s13265_s27 = smov [#allocation2]  }
  0x35   : > { %v779_v37 = vsub.f32 %v13482_v21, %v778_v29  ;;  %v808_v38 = vand.u32 4294901760, %v13501_v30  ;;  %v13518_v39 = vand.u32 4294901760, %v671_v31  ;;  %v789_v41 = vsub.f32 %v13488_v24, %v788_v32  ;;  %s13169_s17 = sshll.u32 %s13265_s27, 4  ;;  %s13170_s17 = int_to_ptr.vmem [resolvable:$false] %s13169_s17 }
  0x36   : > { %v769_v36 = vsub.f32 %v13479_v20, %v768_v28  ;;  %v931_v42 = vand.u32 4294901760, %v930_v33  ;;  %v799_v43 = vsub.f32 %v13494_v26, %v798_v34  ;;  %v818_v44 = vand.u32 4294901760, %v13509_v35  ;;  %p13172_p5 = scmp.lt.s32.totalorder %s17612_s20, %s13170_s17 }
  0x37   : > { %v780_v47 = vand.u32 4294901760, %v779_v37  ;;  %v809_v48 = vsub.f32 %v13501_v30, %v808_v38  ;;  %v13533_v49 = vsub.f32 %v671_v31, %v13518_v39  ;;  %v790_v52 = vand.u32 4294901760, %v789_v41  ;;  %s18297_s30 = smov %s18296_s24 }
  0x38   : > { %v770_v46 = vand.u32 4294901760, %v769_v36  ;;  %10927 = vmatprep.subr.mxu0 %v931_v42  ;;  %v800_v53 = vand.u32 4294901760, %v799_v43  ;;  %v819_v54 = vsub.f32 %v13509_v35, %v818_v44  ;;  %v674_v55 = vsel %vm651_vm0, %v634_v40, 0  ;;  %s10570_s15 = sshll.u32 %s18554_s25, 8  ;;  %s13171_s25 = scalar_lea.vmem %s13170_s17, 512 }
  0x39   : > { %v810_v57 = vand.u32 4294901760, %v809_v48  ;;  %v828_v58 = vand.u32 4294901760, %v13533_v49  ;;  %v13543_v59 = vand.u32 4294901760, %v674_v55  ;;  %v677_v60 = vsel %vm651_vm0, %v635_v45, 0 }
  0x3a   : > { %10903 = vmatprep.mubr.f32.mxu0 %v770_v46  ;;  %v820_v63 = vand.u32 4294901760, %v819_v54  ;;  %v13548_v0 = vand.u32 4294901760, %v677_v60  ;;  %v680_v1 = vsel %vm651_vm0, %v636_v50, 0  ;;  %v683_v2 = vsel %vm651_vm0, %v637_v51, 0  ;;  %v642_v50 = vld [vmem:[%s13431_s16 + $0x78] sm:$0xff]  ;;  %s18558_s16 = smov %s18557_s19 }
  0x3b   : > { %10904 = vmatmul.mubr.f32.vlgmr.msra.gmra.mrb[0].mxu0 %v780_v47  ;;  %v829_v3 = vsub.f32 %v13533_v49, %v828_v58  ;;  %v13556_v5 = vsub.f32 %v674_v55, %v13543_v59  ;;  %v13558_v6 = vand.u32 4294901760, %v680_v1  ;;  %v13560_v7 = vand.u32 4294901760, %v683_v2 }
  0x3c   : > { %10906 = vmatprep.mubr.f32.mxu0 %v790_v52  ;;  %10928 = vmatpush3.msra.mxu0 %v931_v42  ;;  %v13563_v8 = vsub.f32 %v677_v60, %v13548_v0  ;;  %v686_v9 = vsel %vm651_vm0, %v638_v56, 0  ;;  %v689_v12 = vsel %vm651_vm0, %v639_v61, 0  ;;  %v692_v13 = vsel %vm651_vm0, %v640_v62, 0 }
  0x3d   : > { %10953 = vmatprep.subr.mxu0 %v13471_v16  ;;  %v830_v18 = vand.u32 4294901760, %v829_v3  ;;  %v838_v19 = vand.u32 4294901760, %v13556_v5  ;;  %v13572_v23 = vsub.f32 %v680_v1, %v13558_v6  ;;  %v13575_v31 = vsub.f32 %v683_v2, %v13560_v7 }
  0x3e   : > { %v848_v33 = vand.u32 4294901760, %v13563_v8  ;;  %v13578_v36 = vand.u32 4294901760, %v686_v9  ;;  %v13580_v37 = vand.u32 4294901760, %v689_v12  ;;  %v13582_v40 = vand.u32 4294901760, %v692_v13 }
  0x3f   : > { %10907 = vmatmul.mubr.f32.gmra.mrb[2].mxu0 %v800_v53  ;;  %v839_v41 = vsub.f32 %v13556_v5, %v838_v19  ;;  %v858_v42 = vand.u32 4294901760, %v13572_v23  ;;  %v868_v43 = vand.u32 4294901760, %v13575_v31  ;;  %v695_v45 = vsel %vm651_vm0, %v641_v14, 0 }
  0x40   : > { %10909 = vmatprep.mubr.f32.mxu0 %v810_v57  ;;  %v849_v46 = vsub.f32 %v13563_v8, %v848_v33  ;;  %v13594_v47 = vsub.f32 %v686_v9, %v13578_v36  ;;  %v13597_v48 = vsub.f32 %v689_v12, %v13580_v37  ;;  %v13601_v51 = vsub.f32 %v692_v13, %v13582_v40 }
  0x41   : > { %v13603_v52 = vand.u32 4294901760, %v695_v45  ;;  %v840_v53 = vand.u32 4294901760, %v839_v41  ;;  %v859_v54 = vsub.f32 %v13572_v23, %v858_v42  ;;  %v869_v55 = vsub.f32 %v13575_v31, %v868_v43 }
  0x42   : > { %v878_v56 = vand.u32 4294901760, %v13594_v47  ;;  %v850_v57 = vand.u32 4294901760, %v849_v46  ;;  %v888_v60 = vand.u32 4294901760, %v13597_v48  ;;  %v698_v62 = vsel %vm651_vm0, %v642_v50, 0 }
  0x43   : > { %10910 = vmatmul.mubr.f32.gmra.mrb[4].mxu0 %v820_v63  ;;  %v13614_v61 = vsub.f32 %v695_v45, %v13603_v52  ;;  %v13617_v63 = vand.u32 4294901760, %v698_v62  ;;  %v860_v1 = vand.u32 4294901760, %v859_v54  ;;  %v898_v3 = vand.u32 4294901760, %v13601_v51 }
  0x44   : > { %10912 = vmatprep.mubr.f32.mxu0 %v830_v18  ;;  %v879_v2 = vsub.f32 %v13594_v47, %v878_v56  ;;  %v870_v12 = vand.u32 4294901760, %v869_v55  ;;  %v889_v13 = vsub.f32 %v13597_v48, %v888_v60  ;;  %vm6404_vm2 = vcmask 523264  }
  0x45   : > { %v13624_v9 = vsub.f32 %v698_v62, %v13617_v63  ;;  %v908_v14 = vand.u32 4294901760, %v13614_v61  ;;  %v899_v41 = vsub.f32 %v13601_v51, %v898_v3 }
  0x46   : > { %v880_v18 = vand.u32 4294901760, %v879_v2  ;;  %v890_v46 = vand.u32 4294901760, %v889_v13 }
  0x47   : > { %10913 = vmatmul.mubr.f32.gmra.mrb[6].mxu0 %v840_v53  ;;  %v918_v45 = vand.u32 4294901760, %v13624_v9  ;;  %v909_v50 = vsub.f32 %v13614_v61, %v908_v14  ;;  %v900_v53 = vand.u32 4294901760, %v899_v41 }
  0x48   : > { %10915 = vmatprep.mubr.f32.mxu0 %v850_v57 }
  0x49   : > { %v919_v54 = vsub.f32 %v13624_v9, %v918_v45  ;;  %v910_v55 = vand.u32 4294901760, %v909_v50 }
  0x4b   : > { %10916 = vmatmul.mubr.f32.gmra.mrb[8].mxu0 %v860_v1  ;;  %v920_v57 = vand.u32 4294901760, %v919_v54 }
  0x4c   : > { %10918 = vmatprep.mubr.f32.mxu0 %v870_v12 }
  0x4f   : > { %10919 = vmatmul.mubr.f32.gmra.mrb[10].mxu0 %v880_v18 }
  0x50   : > { %10921 = vmatprep.mubr.f32.mxu0 %v890_v46 }
  0x53   : > { %10922 = vmatmul.mubr.f32.gmra.mrb[12].mxu0 %v900_v53 }
  0x54   : > { %10924 = vmatprep.mubr.f32.mxu0 %v910_v55 }
  0x57   : > { %10925 = vmatmul.mubr.f32.gmra.mrb[14].mxu0 %v920_v57 }
  0x58   : > { %10929 = vmatprep.mubr.f32.mxu0 %v13460_v10 }
  0x5b   : > { %10930 = vmatmul.mubr.f32.vlgmr.msra.gmra.mrb[0].mxu0 %v13462_v11 }
  0x5c   : > { %10932 = vmatprep.mubr.f32.mxu0 %v13468_v15  ;;  %10954 = vmatpush3.msra.mxu0 %v13471_v16 }
  0x5d   : > { %10979 = vmatprep.subr.mxu0 %v13453_v4 }
  0x5f   : > { %10933 = vmatmul.mubr.f32.gmra.mrb[2].mxu0 %v13473_v17 }
  0x60   : > { %10935 = vmatprep.mubr.f32.mxu0 %v13484_v22 }
  0x63   : > { %10936 = vmatmul.mubr.f32.gmra.mrb[4].mxu0 %v13496_v27 }
  0x64   : > { %10938 = vmatprep.mubr.f32.mxu0 %v13518_v39 }
  0x67   : > { %10939 = vmatmul.mubr.f32.gmra.mrb[6].mxu0 %v13543_v59 }
  0x68   : > { %10941 = vmatprep.mubr.f32.mxu0 %v13548_v0 }
  0x6b   : > { %10942 = vmatmul.mubr.f32.gmra.mrb[8].mxu0 %v13558_v6 }
  0x6c   : > { %10944 = vmatprep.mubr.f32.mxu0 %v13560_v7 }
  0x6f   : > { %10945 = vmatmul.mubr.f32.gmra.mrb[10].mxu0 %v13578_v36 }
  0x70   : > { %10947 = vmatprep.mubr.f32.mxu0 %v13580_v37 }
  0x73   : > { %10948 = vmatmul.mubr.f32.gmra.mrb[12].mxu0 %v13582_v40 }
  0x74   : > { %10950 = vmatprep.mubr.f32.mxu0 %v13603_v52 }
  0x77   : > { %10951 = vmatmul.mubr.f32.gmra.mrb[14].mxu0 %v13617_v63 }
  0x78   : > { %10955 = vmatprep.mubr.f32.mxu0 %v13479_v20 }
  0x7b   : > { %10956 = vmatmul.mubr.f32.vlgmr.msra.gmra.mrb[0].mxu0 %v13482_v21 }
  0x7c   : > { %10958 = vmatprep.mubr.f32.mxu0 %v13488_v24  ;;  %10980 = vmatpush3.msra.mxu0 %v13453_v4 }
  0x7d   : > { %11005 = vmatprep.subr.mxu0 %v13491_v25 }
  0x7f   : > { %10959 = vmatmul.mubr.f32.gmra.mrb[2].mxu0 %v13494_v26 }
  0x80   : > { %10961 = vmatprep.mubr.f32.mxu0 %v13501_v30 }
  0x83   : > { %10962 = vmatmul.mubr.f32.gmra.mrb[4].mxu0 %v13509_v35 }
  0x84   : > { %10964 = vmatprep.mubr.f32.mxu0 %v13533_v49 }
  0x87   : > { %10965 = vmatmul.mubr.f32.gmra.mrb[6].mxu0 %v13556_v5 }
  0x88   : > { %10967 = vmatprep.mubr.f32.mxu0 %v13563_v8 }
  0x8b   : > { %10968 = vmatmul.mubr.f32.gmra.mrb[8].mxu0 %v13572_v23 }
  0x8c   : > { %10970 = vmatprep.mubr.f32.mxu0 %v13575_v31 }
  0x8f   : > { %10971 = vmatmul.mubr.f32.gmra.mrb[10].mxu0 %v13594_v47 }
  0x90   : > { %10973 = vmatprep.mubr.f32.mxu0 %v13597_v48 }
  0x93   : > { %10974 = vmatmul.mubr.f32.gmra.mrb[12].mxu0 %v13601_v51 }
  0x94   : > { %10976 = vmatprep.mubr.f32.mxu0 %v13614_v61 }
  0x97   : > { %10977 = vmatmul.mubr.f32.gmra.mrb[14].mxu0 %v13624_v9 }
  0x98   : > { %10981 = vmatprep.mubr.f32.mxu0 %v768_v28 }
  0x9b   : > { %10982 = vmatmul.mubr.f32.vlgmr.msra.gmra.mrb[0].mxu0 %v778_v29 }
  0x9c   : > { %10984 = vmatprep.mubr.f32.mxu0 %v788_v32  ;;  %11006 = vmatpush3.msra.mxu0 %v13491_v25 }
  0x9d   : > { %11031 = vmatprep.subr.mxu0 %v13453_v4 }
  0x9f   : > { %10985 = vmatmul.mubr.f32.gmra.mrb[2].mxu0 %v798_v34 }
  0xa0   : > { %10987 = vmatprep.mubr.f32.mxu0 %v808_v38 }
  0xa3   : > { %10988 = vmatmul.mubr.f32.gmra.mrb[4].mxu0 %v818_v44 }
  0xa4   : > { %10990 = vmatprep.mubr.f32.mxu0 %v828_v58 }
  0xa7   : > { %10991 = vmatmul.mubr.f32.gmra.mrb[6].mxu0 %v838_v19 }
  0xa8   : > { %10993 = vmatprep.mubr.f32.mxu0 %v848_v33 }
  0xab   : > { %10994 = vmatmul.mubr.f32.gmra.mrb[8].mxu0 %v858_v42 }
  0xac   : > { %10996 = vmatprep.mubr.f32.mxu0 %v868_v43 }
  0xaf   : > { %10997 = vmatmul.mubr.f32.gmra.mrb[10].mxu0 %v878_v56 }
  0xb0   : > { %10999 = vmatprep.mubr.f32.mxu0 %v888_v60 }
  0xb3   : > { %11000 = vmatmul.mubr.f32.gmra.mrb[12].mxu0 %v898_v3 }
  0xb4   : > { %11002 = vmatprep.mubr.f32.mxu0 %v908_v14 }
  0xb7   : > { %11003 = vmatmul.mubr.f32.gmra.mrb[14].mxu0 %v918_v45 }
  0xb8   : > { %11007 = vmatprep.mubr.f32.mxu0 %v13460_v10 }
  0xbb   : > { %11008 = vmatmul.mubr.f32.vlgmr.msra.gmra.mrb[0].mxu0 %v13462_v11 }
  0xbc   : > { %11010 = vmatprep.mubr.f32.mxu0 %v13468_v15  ;;  %11032 = vmatpush3.msra.mxu0 %v13453_v4  ;;  %v10518_v4 = vld [vmem:[%s17675_s5] ss:$0 sm:$0xff] }
  0xbf   : > { %11011 = vmatmul.mubr.f32.gmra.mrb[2].mxu0 %v13473_v17 }
  0xc0   : > { %11013 = vmatprep.mubr.f32.mxu0 %v13484_v22 }
  0xc3   : > { %11014 = vmatmul.mubr.f32.gmra.mrb[4].mxu0 %v13496_v27 }
  0xc4   : > { %11016 = vmatprep.mubr.f32.mxu0 %v13518_v39 }
  0xc7   : > { %11017 = vmatmul.mubr.f32.gmra.mrb[6].mxu0 %v13543_v59 }
  0xc8   : > { %11019 = vmatprep.mubr.f32.mxu0 %v13548_v0 }
  0xcb   : > { %11020 = vmatmul.mubr.f32.gmra.mrb[8].mxu0 %v13558_v6 }
  0xcc   : > { %11022 = vmatprep.mubr.f32.mxu0 %v13560_v7 }
  0xcf   : > { %11023 = vmatmul.mubr.f32.gmra.mrb[10].mxu0 %v13578_v36 }
  0xd0   : > { %11025 = vmatprep.mubr.f32.mxu0 %v13580_v37 }
  0xd3   : > { %11026 = vmatmul.mubr.f32.gmra.mrb[12].mxu0 %v13582_v40 }
  0xd4   : > { %11028 = vmatprep.mubr.f32.mxu0 %v13603_v52 }
  0xd7   : > { %11029 = vmatmul.mubr.f32.gmra.mrb[14].mxu0 %v13617_v63 }
  0xd8   : > { %11033 = vmatprep.mubr.f32.mxu0 %v13460_v10 }
  0xdb   : > { %11034 = vmatmul.mubr.f32.vlgmr.msra.gmra.mrb[0].mxu0 %v13462_v11 }
  0xdc   : > { %11036 = vmatprep.mubr.f32.mxu0 %v13468_v15 }
  0xdf   : > { %11037 = vmatmul.mubr.f32.gmra.mrb[2].mxu0 %v13473_v17 }
  0xe0   : > { %11039 = vmatprep.mubr.f32.mxu0 %v13484_v22 }
  0xe3   : > { %11040 = vmatmul.mubr.f32.gmra.mrb[4].mxu0 %v13496_v27 }
  0xe4   : > { %11042 = vmatprep.mubr.f32.mxu0 %v13518_v39 }
  0xe7   : > { %11043 = vmatmul.mubr.f32.gmra.mrb[6].mxu0 %v13543_v59 }
  0xe8   : > { %11045 = vmatprep.mubr.f32.mxu0 %v13548_v0 }
  0xeb   : > { %11046 = vmatmul.mubr.f32.gmra.mrb[8].mxu0 %v13558_v6 }
  0xec   : > { %11048 = vmatprep.mubr.f32.mxu0 %v13560_v7 }
  0xef   : > { %11049 = vmatmul.mubr.f32.gmra.mrb[10].mxu0 %v13578_v36 }
  0xf0   : > { %11051 = vmatprep.mubr.f32.mxu0 %v13580_v37 }
  0xf3   : > { %11052 = vmatmul.mubr.f32.gmra.mrb[12].mxu0 %v13582_v40 }
  0xf4   : > { %11054 = vmatprep.mubr.f32.mxu0 %v13603_v52 }
  0xf7   : > { %11055 = vmatmul.mubr.f32.gmra.mrb[14].mxu0 %v13617_v63 }
 0x1ae   : > { %v11035_v10 = vpop.f32.mrb[0].mxu0 }
 0x1af   : > { %v1697_v11 = vpop.f32.mrb[1].mxu0  ;;  %v13748_v16 = vadd.f32 %v11035_v10, %v10518_v4 }
 0x1b0   : > { %v13746_v15 = vadd.f32 %v10518_v4, %v1697_v11 }
 0x1b1   : > { %v1797_v27 = vsel %vm1793_vm1, %v13748_v16, 0.0 }
 0x1b2   : > { %v11038_v17 = vpop.f32.mrb[2].mxu0  ;;  %v1794_v20 = vsel %vm1793_vm1, %v13746_v15, 0.0 }
 0x1b3   : > { %v1709_v21 = vpop.f32.mrb[3].mxu0  ;;  %1795 = vadd.xlane.f32.xlu0 %v1794_v20  ;;  %v13754_v24 = vadd.f32 %v11038_v17, %v10518_v4 }
 0x1b4   : > { %v13752_v22 = vadd.f32 %v10518_v4, %v1709_v21 }
 0x1b5   : > { %v1803_v34 = vsel %vm1793_vm1, %v13754_v24, 0.0 }
 0x1b6   : > { %v11041_v25 = vpop.f32.mrb[4].mxu0  ;;  %v1800_v26 = vsel %vm1793_vm1, %v13752_v22, 0.0 }
 0x1b7   : > { %v1721_v28 = vpop.f32.mrb[5].mxu0  ;;  %1801 = vadd.xlane.f32.xlu1 %v1800_v26  ;;  %1798 = vadd.xlane.f32.xlu0 %v1797_v27  ;;  %v13762_v30 = vadd.f32 %v11041_v25, %v10518_v4 }
 0x1b8   : > { %v13760_v29 = vadd.f32 %v10518_v4, %v1721_v28 }
 0x1b9   : > { %v1809_v58 = vsel %vm1793_vm1, %v13762_v30, 0.0 }
 0x1ba   : > { %v11044_v32 = vpop.f32.mrb[6].mxu0  ;;  %v1806_v35 = vsel %vm1793_vm1, %v13760_v29, 0.0 }
 0x1bb   : > { %v1733_v38 = vpop.f32.mrb[7].mxu0  ;;  %1804 = vadd.xlane.f32.xlu1 %v1803_v34  ;;  %1807 = vadd.xlane.f32.xlu0 %v1806_v35  ;;  %v13770_v44 = vadd.f32 %v11044_v32, %v10518_v4 }
 0x1bc   : > { %v13768_v39 = vadd.f32 %v10518_v4, %v1733_v38 }
 0x1bd   : > { %v1815_v8 = vsel %vm1793_vm1, %v13770_v44, 0.0 }
 0x1be   : > { %v11047_v49 = vpop.f32.mrb[8].mxu0  ;;  %v1812_v59 = vsel %vm1793_vm1, %v13768_v39, 0.0 }
 0x1bf   : > { %v1745_v0 = vpop.f32.mrb[9].mxu0  ;;  %1810 = vadd.xlane.f32.xlu1 %v1809_v58  ;;  %1813 = vadd.xlane.f32.xlu0 %v1812_v59  ;;  %v13778_v6 = vadd.f32 %v11047_v49, %v10518_v4 }
 0x1c0   : > { %v13776_v5 = vadd.f32 %v10518_v4, %v1745_v0 }
 0x1c1   : > { %v1821_v37 = vsel %vm1793_vm1, %v13778_v6, 0.0 }
 0x1c2   : > { %v11050_v7 = vpop.f32.mrb[10].mxu0  ;;  %v1818_v19 = vsel %vm1793_vm1, %v13776_v5, 0.0 }
 0x1c3   : > { %v1757_v23 = vpop.f32.mrb[11].mxu0  ;;  %1816 = vadd.xlane.f32.xlu1 %v1815_v8  ;;  %1819 = vadd.xlane.f32.xlu0 %v1818_v19  ;;  %v13786_v33 = vadd.f32 %v11050_v7, %v10518_v4 }
 0x1c4   : > { %v13784_v31 = vadd.f32 %v10518_v4, %v1757_v23 }
 0x1c5   : > { %v1827_v51 = vsel %vm1793_vm1, %v13786_v33, 0.0 }
 0x1c6   : > { %v11053_v36 = vpop.f32.mrb[12].mxu0  ;;  %v1824_v40 = vsel %vm1793_vm1, %v13784_v31, 0.0 }
 0x1c7   : > { %v1769_v42 = vpop.f32.mrb[13].mxu0  ;;  %1822 = vadd.xlane.f32.xlu1 %v1821_v37  ;;  %1825 = vadd.xlane.f32.xlu0 %v1824_v40  ;;  %v13794_v47 = vadd.f32 %v11053_v36, %v10518_v4 }
 0x1c8   : > { %v13792_v43 = vadd.f32 %v10518_v4, %v1769_v42 }
 0x1c9   : > { %v1833_v62 = vsel %vm1793_vm1, %v13794_v47, 0.0 }
 0x1ca   : > { %v11056_v48 = vpop.f32.mrb[14].mxu0  ;;  %v1830_v52 = vsel %vm1793_vm1, %v13792_v43, 0.0 }
 0x1cb   : > { %v1781_v56 = vpop.f32.mrb[15].mxu0  ;;  %1828 = vadd.xlane.f32.xlu1 %v1827_v51  ;;  %1831 = vadd.xlane.f32.xlu0 %v1830_v52  ;;  %v13802_v61 = vadd.f32 %v11056_v48, %v10518_v4 }
 0x1cc   : > { %v13800_v60 = vadd.f32 %v10518_v4, %v1781_v56 }
 0x1cd   : > { %v1839_v1 = vsel %vm1793_vm1, %v13802_v61, 0.0 }
 0x1ce   : > { %v1836_v63 = vsel %vm1793_vm1, %v13800_v60, 0.0 }
 0x1cf   : > { %1834 = vadd.xlane.f32.xlu1 %v1833_v62  ;;  %1837 = vadd.xlane.f32.xlu0 %v1836_v63 }
 0x1d3   : > { %1840 = vadd.xlane.f32.xlu1 %v1839_v1 }
 0x240   : > { %v1796_v2 = vpop.xlane.xlu0 %1795 }
 0x241   : > { %v1843_v3 = vmul.f32 0.03125, %v1796_v2 }
 0x243   : > { %v13811_v9 = vsub.f32 %v13746_v15, %v1843_v3 }
 0x244   : > { %v1802_v12 = vpop.xlane.xlu1 %1801  ;;  %v1799_v13 = vpop.xlane.xlu0 %1798 }
 0x245   : > { %v1845_v14 = vmul.f32 0.03125, %v1802_v12  ;;  %v1844_v18 = vmul.f32 0.03125, %v1799_v13  ;;  %v1875_v41 = vmul.f32 %v13811_v9, %v13811_v9 }
 0x247   : > { %v13816_v45 = vsub.f32 %v13752_v22, %v1845_v14  ;;  %v13819_v46 = vsub.f32 %v13748_v16, %v1844_v18  ;;  %v1891_v50 = vsel %vm1793_vm1, %v1875_v41, 0.0 }
 0x248   : > { %v1805_v53 = vpop.xlane.xlu1 %1804  ;;  %1892 = vadd.xlane.f32.xlu0 %v1891_v50  ;;  %v1808_v54 = vpop.xlane.xlu0 %1807 }
 0x249   : > { %v1846_v55 = vmul.f32 0.03125, %v1805_v53  ;;  %v1847_v57 = vmul.f32 0.03125, %v1808_v54  ;;  %v1877_v4 = vmul.f32 %v13816_v45, %v13816_v45  ;;  %v1876_v10 = vmul.f32 %v13819_v46, %v13819_v46 }
 0x24b   : > { %v13827_v11 = vsub.f32 %v13754_v24, %v1846_v55  ;;  %v13830_v15 = vsub.f32 %v13760_v29, %v1847_v57  ;;  %v1897_v16 = vsel %vm1793_vm1, %v1877_v4, 0.0  ;;  %v1894_v17 = vsel %vm1793_vm1, %v1876_v10, 0.0 }
 0x24c   : > { %v1811_v20 = vpop.xlane.xlu1 %1810  ;;  %1898 = vadd.xlane.f32.xlu0 %v1897_v16  ;;  %1895 = vadd.xlane.f32.xlu1 %v1894_v17  ;;  %v1814_v21 = vpop.xlane.xlu0 %1813 }
 0x24d   : > { %v1848_v22 = vmul.f32 0.03125, %v1811_v20  ;;  %v1849_v25 = vmul.f32 0.03125, %v1814_v21  ;;  %v1878_v26 = vmul.f32 %v13827_v11, %v13827_v11  ;;  %v1879_v24 = vmul.f32 %v13830_v15, %v13830_v15  ;;  %v2159_v21 = vld [vmem:[%s17678_s8] sm:$0xff] }
 0x24f   : > { %v13839_v27 = vsub.f32 %v13762_v30, %v1848_v22  ;;  %v13842_v28 = vsub.f32 %v13768_v39, %v1849_v25  ;;  %v1900_v29 = vsel %vm1793_vm1, %v1878_v26, 0.0  ;;  %v1903_v32 = vsel %vm1793_vm1, %v1879_v24, 0.0  ;;  %v2161_v22 = vld [vmem:[%s17678_s8 + $0x10] sm:$0xff]  ;;  %v2162_v24 = vld [vmem:[%s17678_s8 + $0x18] sm:$0xff] }
 0x250   : > { %v1817_v34 = vpop.xlane.xlu1 %1816  ;;  %1901 = vadd.xlane.f32.xlu1 %v1900_v29  ;;  %1904 = vadd.xlane.f32.xlu0 %v1903_v32  ;;  %v1820_v35 = vpop.xlane.xlu0 %1819  ;;  %v2219_v25 = vand.u32 4294901760, %v2159_v21  ;;  %v2225_v29 = vand.u32 4294901760, %v2161_v22  ;;  %v2228_v32 = vand.u32 4294901760, %v2162_v24 }
 0x251   : > { %v1850_v38 = vmul.f32 0.03125, %v1817_v34  ;;  %v1851_v49 = vmul.f32 0.03125, %v1820_v35  ;;  %v1880_v58 = vmul.f32 %v13839_v27, %v13839_v27  ;;  %v1881_v30 = vmul.f32 %v13842_v28, %v13842_v28 }
 0x252   : > { %v13920_v35 = vpack.c.bf16 %v2228_v32, %v2225_v29 }
 0x253   : > { %v13851_v59 = vsub.f32 %v13770_v44, %v1850_v38  ;;  %v13854_v39 = vsub.f32 %v13776_v5, %v1851_v49  ;;  %v1906_v0 = vsel %vm1793_vm1, %v1880_v58, 0.0  ;;  %v1909_v7 = vsel %vm1793_vm1, %v1881_v30, 0.0 }
 0x254   : > { %v1823_v8 = vpop.xlane.xlu1 %1822  ;;  %1907 = vadd.xlane.f32.xlu1 %v1906_v0  ;;  %1910 = vadd.xlane.f32.xlu0 %v1909_v7  ;;  %v1826_v19 = vpop.xlane.xlu0 %1825  ;;  %v13926_v38 = vsub.f32 %v2159_v21, %v2219_v25 }
 0x255   : > { %v1852_v23 = vmul.f32 0.03125, %v1823_v8  ;;  %v1853_v36 = vmul.f32 0.03125, %v1826_v19  ;;  %v1882_v37 = vmul.f32 %v13851_v59, %v13851_v59  ;;  %v1883_v44 = vmul.f32 %v13854_v39, %v13854_v39 }
 0x256   : > { %v2450_v58 = vand.u32 4294901760, %v13926_v38 }
 0x257   : > { %v13863_v40 = vsub.f32 %v13778_v6, %v1852_v23  ;;  %v13866_v5 = vsub.f32 %v13784_v31, %v1853_v36  ;;  %v1912_v42 = vsel %vm1793_vm1, %v1882_v37, 0.0  ;;  %v1915_v48 = vsel %vm1793_vm1, %v1883_v44, 0.0 }
 0x258   : > { %v1829_v51 = vpop.xlane.xlu1 %1828  ;;  %1913 = vadd.xlane.f32.xlu1 %v1912_v42  ;;  %1916 = vadd.xlane.f32.xlu0 %v1915_v48  ;;  %v1832_v52 = vpop.xlane.xlu0 %1831  ;;  %v2451_v0 = vsub.f32 %v13926_v38, %v2450_v58  ;;  %v13941_v36 = vsub.f32 %v2161_v22, %v2225_v29  ;;  %v13943_v37 = vsub.f32 %v2162_v24, %v2228_v32  ;;  %v13966_v22 = vld [vmem:[%s17676_s6] ss:$0 sm:$0xff] }
 0x259   : > { %v1854_v56 = vmul.f32 0.03125, %v1829_v51  ;;  %v1855_v62 = vmul.f32 0.03125, %v1832_v52  ;;  %v1884_v63 = vmul.f32 %v13863_v40, %v13863_v40  ;;  %v1885_v6 = vmul.f32 %v13866_v5, %v13866_v5 }
 0x25a   : > { %v2452_v8 = vand.u32 4294901760, %v2451_v0  ;;  %v2464_v44 = vand.u32 4294901760, %v13941_v36  ;;  %v2471_v42 = vand.u32 4294901760, %v13943_v37 }
 0x25b   : > { %v13875_v1 = vsub.f32 %v13786_v33, %v1854_v56  ;;  %v13878_v31 = vsub.f32 %v13792_v43, %v1855_v62  ;;  %v1918_v2 = vsel %vm1793_vm1, %v1884_v63, 0.0  ;;  %v1921_v3 = vsel %vm1793_vm1, %v1885_v6, 0.0 }
 0x25c   : > { %v1835_v12 = vpop.xlane.xlu1 %1834  ;;  %1919 = vadd.xlane.f32.xlu1 %v1918_v2  ;;  %1922 = vadd.xlane.f32.xlu0 %v1921_v3  ;;  %v1838_v13 = vpop.xlane.xlu0 %1837  ;;  %v2465_v48 = vsub.f32 %v13941_v36, %v2464_v44  ;;  %v2472_v51 = vsub.f32 %v13943_v37, %v2471_v42  ;;  %v13961_v6 = vpack.c.bf16 %v13943_v37, %v13941_v36 }
 0x25d   : > { %v1856_v14 = vmul.f32 0.03125, %v1835_v12  ;;  %v1857_v18 = vmul.f32 0.03125, %v1838_v13  ;;  %v1886_v41 = vmul.f32 %v13875_v1, %v13875_v1  ;;  %v1887_v33 = vmul.f32 %v13878_v31, %v13878_v31 }
 0x25e   : > { %v2466_v52 = vand.u32 4294901760, %v2465_v48  ;;  %v2473_v56 = vand.u32 4294901760, %v2472_v51 }
 0x25f   : > { %v13887_v50 = vsub.f32 %v13794_v47, %v1856_v14  ;;  %v13890_v43 = vsub.f32 %v13800_v60, %v1857_v18  ;;  %v1924_v53 = vsel %vm1793_vm1, %v1886_v41, 0.0  ;;  %v1927_v54 = vsel %vm1793_vm1, %v1887_v33, 0.0 }
 0x260   : > { %v1841_v55 = vpop.xlane.xlu1 %1840  ;;  %1925 = vadd.xlane.f32.xlu1 %v1924_v53  ;;  %1928 = vadd.xlane.f32.xlu0 %v1927_v54  ;;  %v13953_v62 = vpack.c.bf16 %v2473_v56, %v2466_v52 }
 0x261   : > { %v1858_v57 = vmul.f32 0.03125, %v1841_v55  ;;  %v1888_v4 = vmul.f32 %v13887_v50, %v13887_v50  ;;  %v1889_v10 = vmul.f32 %v13890_v43, %v13890_v43 }
 0x263   : > { %v13899_v47 = vsub.f32 %v13802_v61, %v1858_v57  ;;  %v1930_v60 = vsel %vm1793_vm1, %v1888_v4, 0.0  ;;  %v1933_v16 = vsel %vm1793_vm1, %v1889_v10, 0.0  ;;  %v2160_v61 = vld [vmem:[%s17678_s8 + $0x8] sm:$0xff] }
 0x264   : > { %1931 = vadd.xlane.f32.xlu1 %v1930_v60  ;;  %1934 = vadd.xlane.f32.xlu0 %v1933_v16  ;;  %v2222_v26 = vand.u32 4294901760, %v2160_v61 }
 0x265   : > { %v1890_v17 = vmul.f32 %v13899_v47, %v13899_v47 }
 0x266   : > { %v13918_v34 = vpack.c.bf16 %v2222_v26, %v2219_v25  ;;  %v13928_v49 = vsub.f32 %v2160_v61, %v2222_v26 }
 0x267   : > { %v1936_v20 = vsel %vm1793_vm1, %v1890_v17, 0.0 }
 0x268   : > { %1937 = vadd.xlane.f32.xlu1 %v1936_v20  ;;  %11460 = vmatprep.subr.bf16.mxu1 %v13918_v34  ;;  %v2457_v30 = vand.u32 4294901760, %v13928_v49  ;;  %v13957_v63 = vpack.c.bf16 %v13928_v49, %v13926_v38  ;;  %v11495_v38 = vpack.c.bf16 %v2471_v42, %v2464_v44 }
 0x269   : > { %11462 = vmatpush3.bf16.msra.mxu1 %v13918_v34 }
 0x26a   : > { %11464 = vmatprep.subr.bf16.mxu1 %v13920_v35  ;;  %v2458_v7 = vsub.f32 %v13928_v49, %v2457_v30 }
 0x26c   : > { %v2459_v19 = vand.u32 4294901760, %v2458_v7 }
 0x26d   : > { %11466 = vmatpush3.bf16.msra.mxu1 %v13920_v35 }
 0x26e   : > { %v13938_v23 = vpack.c.bf16 %v2459_v19, %v2452_v8  ;;  %v13972_v8 = vld [vmem:[%s17677_s7] ss:$0 sm:$0xff] }
 0x270   : > { %11468 = vmatprep.subr.bf16.mxu1 %v13938_v23 }
 0x2d5   : > { %v1893_v2 = vpop.xlane.xlu0 %1892 }
 0x2d6   : > { %v1939_v3 = vmul.f32 0.03125, %v1893_v2 }
 0x2d8   : > { %v1955_v12 = vadd.f32 1e-05, %v1939_v3 }
 0x2d9   : > { %v1896_v13 = vpop.xlane.xlu1 %1895  ;;  %v1899_v14 = vpop.xlane.xlu0 %1898 }
 0x2da   : > { %12972 = vrsqrt.f32 %v1955_v12  ;;  %v1940_v18 = vmul.f32 0.03125, %v1896_v13  ;;  %v1941_v41 = vmul.f32 0.03125, %v1899_v14 }
 0x2dc   : > { %v1956_v33 = vadd.f32 1e-05, %v1940_v18  ;;  %v1957_v53 = vadd.f32 1e-05, %v1941_v41 }
 0x2dd   : > { %v1902_v54 = vpop.xlane.xlu1 %1901  ;;  %v1905_v55 = vpop.xlane.xlu0 %1904 }
 0x2de   : > { %12974 = vrsqrt.f32 %v1956_v33  ;;  %v1942_v57 = vmul.f32 0.03125, %v1902_v54  ;;  %v1943_v4 = vmul.f32 0.03125, %v1905_v55 }
 0x2df   : > { %12976 = vrsqrt.f32 %v1957_v53 }
 0x2e0   : > { %v1958_v10 = vadd.f32 1e-05, %v1942_v57  ;;  %v1959_v60 = vadd.f32 1e-05, %v1943_v4 }
 0x2e1   : > { %v1908_v16 = vpop.xlane.xlu1 %1907  ;;  %v1911_v17 = vpop.xlane.xlu0 %1910 }
 0x2e2   : > { %12978 = vrsqrt.f32 %v1958_v10  ;;  %v1944_v20 = vmul.f32 0.03125, %v1908_v16  ;;  %v1945_v21 = vmul.f32 0.03125, %v1911_v17 }
 0x2e3   : > { %12980 = vrsqrt.f32 %v1959_v60 }
 0x2e4   : > { %v12973_v61 = vpop.eup %12972  ;;  %v1960_v25 = vadd.f32 1e-05, %v1944_v20  ;;  %v1961_v26 = vadd.f32 1e-05, %v1945_v21 }
 0x2e5   : > { %v1987_v24 = vmul.f32 %v12973_v61, %v13811_v9  ;;  %v1914_v29 = vpop.xlane.xlu1 %1913  ;;  %v1917_v32 = vpop.xlane.xlu0 %1916 }
 0x2e6   : > { %12982 = vrsqrt.f32 %v1960_v25  ;;  %v1946_v0 = vmul.f32 0.03125, %v1914_v29  ;;  %v1947_v7 = vmul.f32 0.03125, %v1917_v32 }
 0x2e7   : > { %12984 = vrsqrt.f32 %v1961_v26  ;;  %v2009_v19 = vmul.f32 %v13966_v22, %v1987_v24 }
 0x2e8   : > { %v12975_v48 = vpop.eup %12974  ;;  %v1962_v51 = vadd.f32 1e-05, %v1946_v0  ;;  %v1963_v52 = vadd.f32 1e-05, %v1947_v7 }
 0x2e9   : > { %v12977_v56 = vpop.eup %12976  ;;  %v1988_v2 = vmul.f32 %v12975_v48, %v13819_v46  ;;  %v1920_v9 = vpop.xlane.xlu1 %1919  ;;  %v13977_v12 = vadd.f32 %v13972_v8, %v2009_v19 }
 0x2ea   : > { %v1923_v3 = vpop.xlane.xlu0 %1922  ;;  %v1989_v13 = vmul.f32 %v12977_v56, %v13816_v45  ;;  %12986 = vrsqrt.f32 %v1962_v51  ;;  %v1948_v14 = vmul.f32 0.03125, %v1920_v9 }
 0x2eb   : > { %v1949_v18 = vmul.f32 0.03125, %v1923_v3  ;;  %v2010_v41 = vmul.f32 %v13966_v22, %v1988_v2  ;;  %12988 = vrsqrt.f32 %v1963_v52  ;;  %v10521_v33 = vmul.f32 -1.442695, %v13977_v12 }
 0x2ec   : > { %v12979_v53 = vpop.eup %12978  ;;  %v2011_v54 = vmul.f32 %v13966_v22, %v1989_v13  ;;  %v1964_v55 = vadd.f32 1e-05, %v1948_v14 }
 0x2ed   : > { %v1965_v46 = vadd.f32 1e-05, %v1949_v18  ;;  %v12981_v57 = vpop.eup %12980  ;;  %v1990_v4 = vmul.f32 %v12979_v53, %v13827_v11  ;;  %v1926_v10 = vpop.xlane.xlu1 %1925  ;;  %12990 = vpow2.f32 %v10521_v33  ;;  %v13985_v45 = vadd.f32 %v13972_v8, %v2010_v41 }
 0x2ee   : > { %v1929_v60 = vpop.xlane.xlu0 %1928  ;;  %v1991_v16 = vmul.f32 %v12981_v57, %v13830_v15  ;;  %12992 = vrsqrt.f32 %v1964_v55  ;;  %v1950_v17 = vmul.f32 0.03125, %v1926_v10  ;;  %v13991_v25 = vadd.f32 %v13972_v8, %v2011_v54 }
 0x2ef   : > { %v1951_v20 = vmul.f32 0.03125, %v1929_v60  ;;  %v2012_v21 = vmul.f32 %v13966_v22, %v1990_v4  ;;  %12994 = vrsqrt.f32 %v1965_v46  ;;  %v10522_v61 = vmul.f32 -1.442695, %v13985_v45 }
 0x2f0   : > { %v12983_v11 = vpop.eup %12982  ;;  %v2013_v26 = vmul.f32 %v13966_v22, %v1991_v16  ;;  %v1966_v24 = vadd.f32 1e-05, %v1950_v17  ;;  %v10523_v19 = vmul.f32 -1.442695, %v13991_v25 }
 0x2f1   : > { %v1967_v29 = vadd.f32 1e-05, %v1951_v20  ;;  %v12985_v32 = vpop.eup %12984  ;;  %v1992_v0 = vmul.f32 %v12983_v11, %v13839_v27  ;;  %v1932_v15 = vpop.xlane.xlu1 %1931  ;;  %12996 = vpow2.f32 %v10522_v61  ;;  %v13997_v48 = vadd.f32 %v13972_v8, %v2012_v21 }
 0x2f2   : > { %v1935_v7 = vpop.xlane.xlu0 %1934  ;;  %v1993_v51 = vmul.f32 %v12985_v32, %v13842_v28  ;;  %12998 = vrsqrt.f32 %v1966_v24  ;;  %v1952_v52 = vmul.f32 0.03125, %v1932_v15  ;;  %v14003_v27 = vadd.f32 %v13972_v8, %v2013_v26 }
 0x2f3   : > { %v1953_v56 = vmul.f32 0.03125, %v1935_v7  ;;  %v2014_v2 = vmul.f32 %v13966_v22, %v1992_v0  ;;  %13000 = vrsqrt.f32 %v1967_v29  ;;  %v10524_v9 = vmul.f32 -1.442695, %v13997_v48 }
 0x2f4   : > { %v12987_v3 = vpop.eup %12986  ;;  %v2015_v13 = vmul.f32 %v13966_v22, %v1993_v51  ;;  %v1968_v14 = vadd.f32 1e-05, %v1952_v52  ;;  %13002 = vpow2.f32 %v10523_v19  ;;  %v10525_v53 = vmul.f32 -1.442695, %v14003_v27 }
 0x2f5   : > { %v1969_v18 = vadd.f32 1e-05, %v1953_v56  ;;  %v12989_v41 = vpop.eup %12988  ;;  %v1994_v28 = vmul.f32 %v12987_v3, %v13851_v59  ;;  %v1938_v33 = vpop.xlane.xlu1 %1937  ;;  %13004 = vpow2.f32 %v10524_v9  ;;  %v14009_v54 = vadd.f32 %v13972_v8, %v2014_v2 }
 0x2f6   : > { %v1995_v55 = vmul.f32 %v12989_v41, %v13854_v39  ;;  %13006 = vrsqrt.f32 %v1968_v14  ;;  %v1954_v46 = vmul.f32 0.03125, %v1938_v33  ;;  %v14013_v57 = vadd.f32 %v13972_v8, %v2015_v13 }
 0x2f7   : > { %v12991_v4 = vpop.eup %12990  ;;  %v2016_v10 = vmul.f32 %v13966_v22, %v1994_v28  ;;  %13008 = vrsqrt.f32 %v1969_v18  ;;  %v10526_v59 = vmul.f32 -1.442695, %v14009_v54 }
 0x2f8   : > { %v12993_v60 = vpop.eup %12992  ;;  %v2017_v16 = vmul.f32 %v13966_v22, %v1995_v55  ;;  %v1970_v17 = vadd.f32 1e-05, %v1954_v46  ;;  %v2095_v20 = vadd.f32 1.0, %v12991_v4  ;;  %13010 = vpow2.f32 %v10525_v53 }
 0x2f9   : > { %v12995_v21 = vpop.eup %12994  ;;  %v1996_v39 = vmul.f32 %v12993_v60, %v13863_v40  ;;  %13012 = vpow2.f32 %v10526_v59  ;;  %v10527_v61 = vmul.f32 -1.442695, %v14013_v57  ;;  %v14021_v11 = vadd.f32 %v13972_v8, %v2016_v10 }
 0x2fa   : > { %v1997_v26 = vmul.f32 %v12995_v21, %v13866_v5  ;;  %13014 = vrsqrt.f32 %v1970_v17  ;;  %v14025_v24 = vadd.f32 %v13972_v8, %v2017_v16 }
 0x2fb   : > { %v12997_v29 = vpop.eup %12996  ;;  %v2018_v32 = vmul.f32 %v13966_v22, %v1996_v39  ;;  %13016 = vrcp.f32 %v2095_v20  ;;  %v10528_v0 = vmul.f32 -1.442695, %v14021_v11 }
 0x2fc   : > { %v12999_v15 = vpop.eup %12998  ;;  %v2019_v40 = vmul.f32 %v13966_v22, %v1997_v26  ;;  %v2096_v7 = vadd.f32 1.0, %v12997_v29  ;;  %13018 = vpow2.f32 %v10527_v61  ;;  %v10529_v19 = vmul.f32 -1.442695, %v14025_v24 }
 0x2fd   : > { %v13001_v51 = vpop.eup %13000  ;;  %v1998_v5 = vmul.f32 %v12999_v15, %v13875_v1  ;;  %13020 = vpow2.f32 %v10528_v0  ;;  %v14033_v52 = vadd.f32 %v13972_v8, %v2018_v32 }
 0x2fe   : > { %v13003_v56 = vpop.eup %13002  ;;  %v1999_v2 = vmul.f32 %v13001_v51, %v13878_v31  ;;  %13022 = vrcp.f32 %v2096_v7  ;;  %v14037_v9 = vadd.f32 %v13972_v8, %v2019_v40 }
 0x2ff   : > { %v13005_v3 = vpop.eup %13004  ;;  %v2020_v13 = vmul.f32 %v13966_v22, %v1998_v5  ;;  %v2097_v14 = vadd.f32 1.0, %v13003_v56  ;;  %13024 = vpow2.f32 %v10529_v19  ;;  %v10530_v18 = vmul.f32 -1.442695, %v14033_v52 }
 0x300   : > { %v13007_v41 = vpop.eup %13006  ;;  %v2021_v1 = vmul.f32 %v13966_v22, %v1999_v2  ;;  %v2098_v28 = vadd.f32 1.0, %v13005_v3  ;;  %v10531_v33 = vmul.f32 -1.442695, %v14037_v9 }
 0x301   : > { %v13009_v53 = vpop.eup %13008  ;;  %v2000_v31 = vmul.f32 %v13007_v41, %v13887_v50  ;;  %13026 = vrcp.f32 %v2097_v14  ;;  %v14045_v55 = vadd.f32 %v13972_v8, %v2020_v13 }
 0x302   : > { %v13011_v46 = vpop.eup %13010  ;;  %v2001_v4 = vmul.f32 %v13009_v53, %v13890_v43  ;;  %13028 = vrcp.f32 %v2098_v28  ;;  %v14049_v10 = vadd.f32 %v13972_v8, %v2021_v1 }
 0x303   : > { %v13013_v59 = vpop.eup %13012  ;;  %v2022_v60 = vmul.f32 %v13966_v22, %v2000_v31  ;;  %v2099_v16 = vadd.f32 1.0, %v13011_v46  ;;  %13030 = vpow2.f32 %v10530_v18  ;;  %v10532_v17 = vmul.f32 -1.442695, %v14045_v55 }
 0x304   : > { %v13015_v20 = vpop.eup %13014  ;;  %v2023_v50 = vmul.f32 %v13966_v22, %v2001_v4  ;;  %v2100_v21 = vadd.f32 1.0, %v13013_v59  ;;  %13032 = vpow2.f32 %v10531_v33  ;;  %v10533_v39 = vmul.f32 -1.442695, %v14049_v10 }
 0x305   : > { %v13017_v61 = vpop.eup %13016  ;;  %v2002_v43 = vmul.f32 %v13015_v20, %v13899_v47  ;;  %13034 = vrcp.f32 %v2099_v16  ;;  %v14057_v26 = vadd.f32 %v13972_v8, %v2022_v60 }
 0x306   : > { %v13019_v29 = vpop.eup %13018  ;;  %v2143_v32 = vmul.f32 %v13017_v61, %v13977_v12  ;;  %13036 = vrcp.f32 %v2100_v21  ;;  %v14061_v0 = vadd.f32 %v13972_v8, %v2023_v50 }
 0x307   : > { %v13021_v15 = vpop.eup %13020  ;;  %v2024_v40 = vmul.f32 %v13966_v22, %v2002_v43  ;;  %v2101_v7 = vadd.f32 1.0, %v13019_v29  ;;  %13038 = vpow2.f32 %v10532_v17  ;;  %v10534_v19 = vmul.f32 -1.442695, %v14057_v26 }
 0x308   : > { %v13023_v51 = vpop.eup %13022  ;;  %v2171_v47 = vsel %vm1793_vm1, %v2143_v32, 0  ;;  %v2102_v5 = vadd.f32 1.0, %v13021_v15  ;;  %13040 = vpow2.f32 %v10533_v39  ;;  %v10535_v56 = vmul.f32 -1.442695, %v14061_v0 }
 0x309   : > { %v13025_v2 = vpop.eup %13024  ;;  %v14067_v12 = vand.u32 4294901760, %v2171_v47  ;;  %v2144_v3 = vmul.f32 %v13023_v51, %v13985_v45  ;;  %13042 = vrcp.f32 %v2101_v7  ;;  %v14071_v13 = vadd.f32 %v13972_v8, %v2024_v40 }
 0x30a   : > { %13044 = vrcp.f32 %v2102_v5  ;;  %v2103_v22 = vadd.f32 1.0, %v13025_v2 }
 0x30b   : > { %v13027_v14 = vpop.eup %13026  ;;  %v14074_v18 = vsub.f32 %v2171_v47, %v14067_v12  ;;  %v2174_v41 = vsel %vm1793_vm1, %v2144_v3, 0  ;;  %13046 = vpow2.f32 %v10534_v19  ;;  %v10536_v1 = vmul.f32 -1.442695, %v14071_v13 }
 0x30c   : > { %v13029_v28 = vpop.eup %13028  ;;  %v14078_v33 = vand.u32 4294901760, %v2174_v41  ;;  %v2145_v45 = vmul.f32 %v13027_v14, %v13991_v25  ;;  %13048 = vrcp.f32 %v2103_v22 }
 0x30d   : > { %v13031_v53 = vpop.eup %13030  ;;  %v2289_v8 = vand.u32 4294901760, %v14074_v18  ;;  %v2146_v31 = vmul.f32 %v13029_v28, %v13997_v48  ;;  %13050 = vpow2.f32 %v10535_v56 }
 0x30e   : > { %v13033_v46 = vpop.eup %13032  ;;  %v14084_v4 = vsub.f32 %v2174_v41, %v14078_v33  ;;  %v2177_v59 = vsel %vm1793_vm1, %v2145_v45, 0  ;;  %v2104_v60 = vadd.f32 1.0, %v13031_v53  ;;  %13052 = vpow2.f32 %v10536_v1 }
 0x30f   : > { %v13035_v16 = vpop.eup %13034  ;;  %v2290_v25 = vsub.f32 %v14074_v18, %v2289_v8  ;;  %v14090_v17 = vand.u32 4294901760, %v2177_v59  ;;  %v2180_v20 = vsel %vm1793_vm1, %v2146_v31, 0  ;;  %v2105_v50 = vadd.f32 1.0, %v13033_v46 }
 0x310   : > { %v13037_v48 = vpop.eup %13036  ;;  %v2299_v21 = vand.u32 4294901760, %v14084_v4  ;;  %v14094_v39 = vand.u32 4294901760, %v2180_v20  ;;  %v2147_v61 = vmul.f32 %v13035_v16, %v14003_v27  ;;  %13054 = vrcp.f32 %v2104_v60 }
 0x311   : > { %v13039_v43 = vpop.eup %13038  ;;  %v2291_v29 = vand.u32 4294901760, %v2290_v25  ;;  %v14098_v32 = vsub.f32 %v2177_v59, %v14090_v17  ;;  %v2148_v15 = vmul.f32 %v13037_v48, %v14009_v54  ;;  %13056 = vrcp.f32 %v2105_v50 }
 0x312   : > { %v13041_v40 = vpop.eup %13040  ;;  %v2300_v7 = vsub.f32 %v14084_v4, %v2299_v21  ;;  %v14105_v19 = vsub.f32 %v2180_v20, %v14094_v39  ;;  %v2183_v51 = vsel %vm1793_vm1, %v2147_v61, 0  ;;  %v2106_v27 = vadd.f32 1.0, %v13039_v43 }
 0x313   : > { %v13043_v47 = vpop.eup %13042  ;;  %11065 = vmatprep.mubr.f32.mxu1 %v2291_v29  ;;  %v2309_v5 = vand.u32 4294901760, %v14098_v32  ;;  %v14109_v56 = vand.u32 4294901760, %v2183_v51  ;;  %v2186_v54 = vsel %vm1793_vm1, %v2148_v15, 0  ;;  %v2107_v2 = vadd.f32 1.0, %v13041_v40 }
 0x314   : > { %v13045_v3 = vpop.eup %13044  ;;  %v2301_v22 = vand.u32 4294901760, %v2300_v7  ;;  %v2319_v14 = vand.u32 4294901760, %v14105_v19  ;;  %v14113_v41 = vand.u32 4294901760, %v2186_v54  ;;  %v2149_v1 = vmul.f32 %v13043_v47, %v14013_v57 }
 0x315   : > { %v13047_v28 = vpop.eup %13046  ;;  %v2310_v45 = vsub.f32 %v14098_v32, %v2309_v5  ;;  %v14120_v53 = vsub.f32 %v2183_v51, %v14109_v56  ;;  %v2150_v31 = vmul.f32 %v13045_v3, %v14021_v11  ;;  %13058 = vrcp.f32 %v2106_v27 }
 0x316   : > { %v13049_v46 = vpop.eup %13048  ;;  %11066 = vmatmul.mubr.f32.vlgmr.msra.gmra.mrb[0].mxu1 %v2301_v22  ;;  %v2320_v59 = vsub.f32 %v14105_v19, %v2319_v14  ;;  %v14127_v60 = vsub.f32 %v2186_v54, %v14113_v41  ;;  %v2189_v57 = vsel %vm1793_vm1, %v2149_v1, 0  ;;  %13060 = vrcp.f32 %v2107_v2 }
 0x317   : > { %v13051_v16 = vpop.eup %13050  ;;  %v2311_v25 = vand.u32 4294901760, %v2310_v45  ;;  %11470 = vmatpush3.bf16.msra.mxu1 %v13938_v23  ;;  %v2329_v20 = vand.u32 4294901760, %v14120_v53  ;;  %v14132_v11 = vand.u32 4294901760, %v2189_v57  ;;  %v2192_v50 = vsel %vm1793_vm1, %v2150_v31, 0 }
 0x318   : > { %v13053_v48 = vpop.eup %13052  ;;  %v2321_v61 = vand.u32 4294901760, %v2320_v59  ;;  %v2339_v43 = vand.u32 4294901760, %v14127_v60  ;;  %v14136_v29 = vand.u32 4294901760, %v2192_v50  ;;  %v2151_v15 = vmul.f32 %v13049_v46, %v14025_v24  ;;  %11472 = vmatprep.subr.bf16.mxu1 %v13953_v62 }
 0x319   : > { %11068 = vmatprep.mubr.f32.mxu1 %v2311_v25  ;;  %v2330_v23 = vsub.f32 %v14120_v53, %v2329_v20  ;;  %v14144_v40 = vsub.f32 %v2189_v57, %v14132_v11  ;;  %v2108_v7 = vadd.f32 1.0, %v13047_v28  ;;  %v2109_v51 = vadd.f32 1.0, %v13051_v16 }
 0x31a   : > { %v13055_v27 = vpop.eup %13054  ;;  %11069 = vmatmul.mubr.f32.gmra.mrb[2].mxu1 %v2321_v61  ;;  %v2340_v47 = vsub.f32 %v14127_v60, %v2339_v43  ;;  %v14150_v24 = vsub.f32 %v2192_v50, %v14136_v29  ;;  %v2195_v54 = vsel %vm1793_vm1, %v2151_v15, 0  ;;  %v2110_v2 = vadd.f32 1.0, %v13053_v48 }
 0x31b   : > { %v13057_v3 = vpop.eup %13056  ;;  %v2331_v22 = vand.u32 4294901760, %v2330_v23  ;;  %v2349_v1 = vand.u32 4294901760, %v14144_v40  ;;  %v14154_v45 = vand.u32 4294901760, %v2195_v54  ;;  %v2152_v28 = vmul.f32 %v13055_v27, %v14033_v52  ;;  %11474 = vmatpush3.bf16.msra.mxu1 %v13953_v62 }
 0x31c   : > { %v2341_v31 = vand.u32 4294901760, %v2340_v47  ;;  %v2359_v46 = vand.u32 4294901760, %v14150_v24  ;;  %v2153_v59 = vmul.f32 %v13057_v3, %v14037_v9  ;;  %13062 = vrcp.f32 %v2108_v7  ;;  %11476 = vmatprep.subr.bf16.mxu1 %v13957_v63 }
 0x31d   : > { %11071 = vmatprep.mubr.f32.mxu1 %v2331_v22  ;;  %v2350_v57 = vsub.f32 %v14144_v40, %v2349_v1  ;;  %v14165_v16 = vsub.f32 %v2195_v54, %v14154_v45  ;;  %v2198_v52 = vsel %vm1793_vm1, %v2152_v28, 0  ;;  %13064 = vrcp.f32 %v2109_v51 }
 0x31e   : > { %11072 = vmatmul.mubr.f32.gmra.mrb[4].mxu1 %v2341_v31  ;;  %v2360_v62 = vsub.f32 %v14150_v24, %v2359_v46  ;;  %v14171_v9 = vand.u32 4294901760, %v2198_v52  ;;  %v2201_v25 = vsel %vm1793_vm1, %v2153_v59, 0  ;;  %13066 = vrcp.f32 %v2110_v2 }
 0x31f   : > { %v13059_v50 = vpop.eup %13058  ;;  %v2351_v48 = vand.u32 4294901760, %v2350_v57  ;;  %v2369_v61 = vand.u32 4294901760, %v14165_v16  ;;  %v14175_v15 = vand.u32 4294901760, %v2201_v25 }
 0x320   : > { %v13061_v23 = vpop.eup %13060  ;;  %v2361_v7 = vand.u32 4294901760, %v2360_v62  ;;  %v14178_v51 = vsub.f32 %v2198_v52, %v14171_v9  ;;  %v2154_v27 = vmul.f32 %v13059_v50, %v14045_v55 }
 0x321   : > { %11074 = vmatprep.mubr.f32.mxu1 %v2351_v48  ;;  %v2370_v47 = vsub.f32 %v14165_v16, %v2369_v61  ;;  %v14185_v54 = vsub.f32 %v2201_v25, %v14175_v15  ;;  %v2155_v2 = vmul.f32 %v13061_v23, %v14049_v10 }
 0x322   : > { %11075 = vmatmul.mubr.f32.gmra.mrb[6].mxu1 %v2361_v7  ;;  %v17703_v3 = vand.u32 4294901760, %v14178_v51  ;;  %v2204_v22 = vsel %vm1793_vm1, %v2154_v27, 0  ;;  %v17970_v49 = vand.u32 4294901760, %v14178_v51 }
 0x323   : > { %v2371_v28 = vand.u32 4294901760, %v2370_v47  ;;  %v17702_v31 = vand.u32 4294901760, %v14185_v54  ;;  %v14191_v59 = vand.u32 4294901760, %v2204_v22  ;;  %v2207_v55 = vsel %vm1793_vm1, %v2155_v2, 0 }
 0x324   : > { %v2380_v57 = vsub.f32 %v14178_v51, %v17703_v3  ;;  %v14197_v52 = vand.u32 4294901760, %v2207_v55 }
 0x325   : > { %11077 = vmatprep.mubr.f32.mxu1 %v2371_v28  ;;  %v2390_v10 = vsub.f32 %v14185_v54, %v17702_v31  ;;  %v14203_v62 = vsub.f32 %v2204_v22, %v14191_v59 }
 0x326   : > { %v13063_v25 = vpop.eup %13062  ;;  %v2381_v50 = vand.u32 4294901760, %v2380_v57  ;;  %v14206_v48 = vsub.f32 %v2207_v55, %v14197_v52 }
 0x327   : > { %v13065_v23 = vpop.eup %13064  ;;  %v2391_v7 = vand.u32 4294901760, %v2390_v10  ;;  %v2399_v27 = vand.u32 4294901760, %v14203_v62  ;;  %v2156_v47 = vmul.f32 %v13063_v25, %v14057_v26 }
 0x328   : > { %v13067_v2 = vpop.eup %13066  ;;  %11078 = vmatmul.mubr.f32.gmra.mrb[8].mxu1 %v2381_v50  ;;  %v2409_v28 = vand.u32 4294901760, %v14206_v48  ;;  %v2157_v31 = vmul.f32 %v13065_v23, %v14061_v0 }
 0x329   : > { %11080 = vmatprep.mubr.f32.mxu1 %v2391_v7  ;;  %v2400_v22 = vsub.f32 %v14203_v62, %v2399_v27  ;;  %v2210_v55 = vsel %vm1793_vm1, %v2156_v47, 0  ;;  %v2158_v57 = vmul.f32 %v13067_v2, %v14071_v13 }
 0x32a   : > { %v2410_v10 = vsub.f32 %v14206_v48, %v2409_v28  ;;  %v14220_v26 = vand.u32 4294901760, %v2210_v55  ;;  %v2213_v25 = vsel %vm1793_vm1, %v2157_v31, 0 }
 0x32b   : > { %v2401_v50 = vand.u32 4294901760, %v2400_v22  ;;  %v14223_v3 = vand.u32 4294901760, %v2213_v25  ;;  %v2216_v0 = vsel %vm1793_vm1, %v2158_v57, 0 }
 0x32c   : > { %v2411_v23 = vand.u32 4294901760, %v2410_v10  ;;  %v14227_v7 = vsub.f32 %v2210_v55, %v14220_v26  ;;  %v14229_v47 = vand.u32 4294901760, %v2216_v0 }
 0x32d   : > { %11081 = vmatmul.mubr.f32.gmra.mrb[10].mxu1 %v2401_v50  ;;  %v14232_v13 = vsub.f32 %v2213_v25, %v14223_v3 }
 0x32e   : > { %11083 = vmatprep.mubr.f32.mxu1 %v2411_v23  ;;  %v2419_v2 = vand.u32 4294901760, %v14227_v7  ;;  %v14236_v31 = vsub.f32 %v2216_v0, %v14229_v47 }
 0x32f   : > { %v2429_v22 = vand.u32 4294901760, %v14232_v13 }
 0x330   : > { %v2420_v57 = vsub.f32 %v14227_v7, %v2419_v2  ;;  %v2439_v55 = vand.u32 4294901760, %v14236_v31 }
 0x331   : > { %v2430_v10 = vsub.f32 %v14232_v13, %v2429_v22 }
 0x332   : > { %v2421_v25 = vand.u32 4294901760, %v2420_v57  ;;  %v2440_v50 = vsub.f32 %v14236_v31, %v2439_v55 }
 0x333   : > { %v2431_v23 = vand.u32 4294901760, %v2430_v10 }
 0x334   : > { %11084 = vmatmul.mubr.f32.gmra.mrb[12].mxu1 %v2421_v25  ;;  %v2441_v0 = vand.u32 4294901760, %v2440_v50 }
 0x335   : > { %11086 = vmatprep.mubr.f32.mxu1 %v2431_v23 }
 0x338   : > { %11087 = vmatmul.mubr.f32.gmra.mrb[14].mxu1 %v2441_v0 }
 0x339   : > { %11097 = vmatprep.mubr.f32.mxu1 %v14067_v12 }
 0x33c   : > { %11098 = vmatmul.mubr.f32.vlgmr.msra.gmra.mrb[0].mxu1 %v14078_v33 }
 0x33d   : > { %11100 = vmatprep.mubr.f32.mxu1 %v14090_v17  ;;  %11478 = vmatpush3.bf16.msra.mxu1 %v13957_v63  ;;  %v11491_v63 = vpack.c.bf16 %v2457_v30, %v2450_v58  ;;  %v17971_v58 = vand.u32 4294901760, %v14185_v54 }
 0x33e   : > { %11480 = vmatprep.subr.bf16.mxu1 %v13961_v6 }
 0x340   : > { %11101 = vmatmul.mubr.f32.gmra.mrb[2].mxu1 %v14094_v39 }
 0x341   : > { %11103 = vmatprep.mubr.f32.mxu1 %v14109_v56  ;;  %11482 = vmatpush3.bf16.msra.mxu1 %v13961_v6 }
 0x342   : > { %11484 = vmatprep.subr.bf16.mxu1 %v13918_v34 }
 0x344   : > { %11104 = vmatmul.mubr.f32.gmra.mrb[4].mxu1 %v14113_v41 }
 0x345   : > { %11106 = vmatprep.mubr.f32.mxu1 %v14132_v11 }
 0x348   : > { %11107 = vmatmul.mubr.f32.gmra.mrb[6].mxu1 %v14136_v29 }
 0x349   : > { %11109 = vmatprep.mubr.f32.mxu1 %v14154_v45 }
 0x34c   : > { %11110 = vmatmul.mubr.f32.gmra.mrb[8].mxu1 %v14171_v9 }
 0x34d   : > { %11112 = vmatprep.mubr.f32.mxu1 %v14175_v15 }
 0x350   : > { %11113 = vmatmul.mubr.f32.gmra.mrb[10].mxu1 %v14191_v59 }
 0x351   : > { %11115 = vmatprep.mubr.f32.mxu1 %v14197_v52 }
 0x354   : > { %11116 = vmatmul.mubr.f32.gmra.mrb[12].mxu1 %v14220_v26 }
 0x355   : > { %11118 = vmatprep.mubr.f32.mxu1 %v14223_v3 }
 0x358   : > { %11119 = vmatmul.mubr.f32.gmra.mrb[14].mxu1 %v14229_v47 }
 0x359   : > { %11129 = vmatprep.mubr.f32.mxu1 %v14074_v18 }
 0x35c   : > { %11130 = vmatmul.mubr.f32.vlgmr.msra.gmra.mrb[0].mxu1 %v14084_v4 }
 0x35d   : > { %11132 = vmatprep.mubr.f32.mxu1 %v14098_v32  ;;  %11486 = vmatpush3.bf16.msra.mxu1 %v13918_v34 }
 0x35e   : > { %11488 = vmatprep.subr.bf16.mxu1 %v13920_v35 }
 0x360   : > { %11133 = vmatmul.mubr.f32.gmra.mrb[2].mxu1 %v14105_v19 }
 0x361   : > { %11135 = vmatprep.mubr.f32.mxu1 %v14120_v53  ;;  %11490 = vmatpush3.bf16.msra.mxu1 %v13920_v35 }
 0x362   : > { %11492 = vmatprep.subr.bf16.mxu1 %v11491_v63 }
 0x364   : > { %11136 = vmatmul.mubr.f32.gmra.mrb[4].mxu1 %v14127_v60 }
 0x365   : > { %11138 = vmatprep.mubr.f32.mxu1 %v14144_v40 }
 0x368   : > { %11139 = vmatmul.mubr.f32.gmra.mrb[6].mxu1 %v14150_v24 }
 0x369   : > { %11141 = vmatprep.mubr.f32.mxu1 %v14165_v16 }
 0x36c   : > { %11142 = vmatmul.mubr.f32.gmra.mrb[8].mxu1 %v14178_v51 }
 0x36d   : > { %11144 = vmatprep.mubr.f32.mxu1 %v14185_v54 }
 0x370   : > { %11145 = vmatmul.mubr.f32.gmra.mrb[10].mxu1 %v14203_v62 }
 0x371   : > { %11147 = vmatprep.mubr.f32.mxu1 %v14206_v48 }
 0x374   : > { %11148 = vmatmul.mubr.f32.gmra.mrb[12].mxu1 %v14227_v7 }
 0x375   : > { %11150 = vmatprep.mubr.f32.mxu1 %v14232_v13 }
 0x378   : > { %11151 = vmatmul.mubr.f32.gmra.mrb[14].mxu1 %v14236_v31 }
 0x379   : > { %11161 = vmatprep.mubr.f32.mxu1 %v2289_v8 }
 0x37c   : > { %11162 = vmatmul.mubr.f32.vlgmr.msra.gmra.mrb[0].mxu1 %v2299_v21 }
 0x37d   : > { %11164 = vmatprep.mubr.f32.mxu1 %v2309_v5  ;;  %11494 = vmatpush3.bf16.msra.mxu1 %v11491_v63 }
 0x37e   : > { %11496 = vmatprep.subr.bf16.mxu1 %v11495_v38 }
 0x380   : > { %11165 = vmatmul.mubr.f32.gmra.mrb[2].mxu1 %v2319_v14 }
 0x381   : > { %11167 = vmatprep.mubr.f32.mxu1 %v2329_v20  ;;  %11498 = vmatpush3.bf16.msra.mxu1 %v11495_v38 }
 0x382   : > { %11500 = vmatprep.subr.bf16.mxu1 %v13918_v34 }
 0x384   : > { %11168 = vmatmul.mubr.f32.gmra.mrb[4].mxu1 %v2339_v43 }
 0x385   : > { %11170 = vmatprep.mubr.f32.mxu1 %v2349_v1 }
 0x388   : > { %11171 = vmatmul.mubr.f32.gmra.mrb[6].mxu1 %v2359_v46 }
 0x389   : > { %11173 = vmatprep.mubr.f32.mxu1 %v2369_v61 }
 0x38c   : > { %11174 = vmatmul.mubr.f32.gmra.mrb[8].mxu1 %v17970_v49 }
 0x38d   : > { %11176 = vmatprep.mubr.f32.mxu1 %v17971_v58 }
 0x390   : > { %11177 = vmatmul.mubr.f32.gmra.mrb[10].mxu1 %v2399_v27 }
 0x391   : > { %11179 = vmatprep.mubr.f32.mxu1 %v2409_v28 }
 0x394   : > { %11180 = vmatmul.mubr.f32.gmra.mrb[12].mxu1 %v2419_v2 }
 0x395   : > { %11182 = vmatprep.mubr.f32.mxu1 %v2429_v22 }
 0x398   : > { %11183 = vmatmul.mubr.f32.gmra.mrb[14].mxu1 %v2439_v55 }
 0x399   : > { %11193 = vmatprep.mubr.f32.mxu1 %v14067_v12 }
 0x39c   : > { %11194 = vmatmul.mubr.f32.vlgmr.msra.gmra.mrb[0].mxu1 %v14078_v33 }
 0x39d   : > { %11196 = vmatprep.mubr.f32.mxu1 %v14090_v17  ;;  %11502 = vmatpush3.bf16.msra.mxu1 %v13918_v34  ;;  %v10537_v34 = vld [vmem:[%s17679_s9] ss:$0 sm:$0xff] }
 0x39e   : > { %11504 = vmatprep.subr.bf16.mxu1 %v13920_v35 }
 0x3a0   : > { %11197 = vmatmul.mubr.f32.gmra.mrb[2].mxu1 %v14094_v39 }
 0x3a1   : > { %11199 = vmatprep.mubr.f32.mxu1 %v14109_v56  ;;  %11506 = vmatpush3.bf16.msra.mxu1 %v13920_v35 }
 0x3a4   : > { %11200 = vmatmul.mubr.f32.gmra.mrb[4].mxu1 %v14113_v41 }
 0x3a5   : > { %11202 = vmatprep.mubr.f32.mxu1 %v14132_v11 }
 0x3a8   : > { %11203 = vmatmul.mubr.f32.gmra.mrb[6].mxu1 %v14136_v29 }
 0x3a9   : > { %11205 = vmatprep.mubr.f32.mxu1 %v14154_v45 }
 0x3ac   : > { %11206 = vmatmul.mubr.f32.gmra.mrb[8].mxu1 %v14171_v9 }
 0x3ad   : > { %11208 = vmatprep.mubr.f32.mxu1 %v14175_v15 }
 0x3b0   : > { %11209 = vmatmul.mubr.f32.gmra.mrb[10].mxu1 %v14191_v59 }
 0x3b1   : > { %11211 = vmatprep.mubr.f32.mxu1 %v14197_v52 }
 0x3b4   : > { %11212 = vmatmul.mubr.f32.gmra.mrb[12].mxu1 %v14220_v26 }
 0x3b5   : > { %11214 = vmatprep.mubr.f32.mxu1 %v14223_v3 }
 0x3b8   : > { %11215 = vmatmul.mubr.f32.gmra.mrb[14].mxu1 %v14229_v47 }
 0x3b9   : > { %11225 = vmatprep.mubr.f32.mxu1 %v14067_v12 }
 0x3bc   : > { %11226 = vmatmul.mubr.f32.vlgmr.msra.gmra.mrb[0].mxu1 %v14078_v33 }
 0x3bd   : > { %11228 = vmatprep.mubr.f32.mxu1 %v14090_v17 }
 0x3c0   : > { %11229 = vmatmul.mubr.f32.gmra.mrb[2].mxu1 %v14094_v39 }
 0x3c1   : > { %11231 = vmatprep.mubr.f32.mxu1 %v14109_v56 }
 0x3c4   : > { %11232 = vmatmul.mubr.f32.gmra.mrb[4].mxu1 %v14113_v41 }
 0x3c5   : > { %11234 = vmatprep.mubr.f32.mxu1 %v14132_v11 }
 0x3c8   : > { %11235 = vmatmul.mubr.f32.gmra.mrb[6].mxu1 %v14136_v29 }
 0x3c9   : > { %11237 = vmatprep.mubr.f32.mxu1 %v14154_v45 }
 0x3cc   : > { %11238 = vmatmul.mubr.f32.gmra.mrb[8].mxu1 %v14171_v9 }
 0x3cd   : > { %11240 = vmatprep.mubr.f32.mxu1 %v14175_v15 }
 0x3d0   : > { %11241 = vmatmul.mubr.f32.gmra.mrb[10].mxu1 %v14191_v59 }
 0x3d1   : > { %11243 = vmatprep.mubr.f32.mxu1 %v14197_v52 }
 0x3d4   : > { %11244 = vmatmul.mubr.f32.gmra.mrb[12].mxu1 %v14220_v26 }
 0x3d5   : > { %11246 = vmatprep.mubr.f32.mxu1 %v14223_v3 }
 0x3d8   : > { %11247 = vmatmul.mubr.f32.gmra.mrb[14].mxu1 %v14229_v47 }
 0x48f   : > { %v11227_v35 = vpop.f32.mrb[0].mxu1 }
 0x490   : > { %v14367_v30 = vadd.f32 %v11227_v35, %v10537_v34  ;;  %v3254_v36 = vpop.f32.mrb[1].mxu1 }
 0x491   : > { %v14369_v37 = vadd.f32 %v10537_v34, %v3254_v36 }
 0x492   : > { %v3353_v44 = vsel %vm1793_vm1, %v14367_v30, 0.0 }
 0x493   : > { %3354 = vadd.xlane.f32.xlu1 %v3353_v44  ;;  %v11230_v42 = vpop.f32.mrb[2].mxu1  ;;  %v3350_v6 = vsel %vm1793_vm1, %v14369_v37, 0.0 }
 0x494   : > { %v14375_v12 = vadd.f32 %v11230_v42, %v10537_v34  ;;  %v3266_v18 = vpop.f32.mrb[3].mxu1  ;;  %3351 = vadd.xlane.f32.xlu0 %v3350_v6 }
 0x495   : > { %v14377_v33 = vadd.f32 %v10537_v34, %v3266_v18 }
 0x496   : > { %v3359_v8 = vsel %vm1793_vm1, %v14375_v12, 0.0 }
 0x497   : > { %3360 = vadd.xlane.f32.xlu1 %v3359_v8  ;;  %v11233_v4 = vpop.f32.mrb[4].mxu1  ;;  %v3356_v17 = vsel %vm1793_vm1, %v14377_v33, 0.0 }
 0x498   : > { %v14383_v21 = vadd.f32 %v11233_v4, %v10537_v34  ;;  %v3278_v39 = vpop.f32.mrb[5].mxu1  ;;  %3357 = vadd.xlane.f32.xlu0 %v3356_v17 }
 0x499   : > { %v14385_v32 = vadd.f32 %v10537_v34, %v3278_v39 }
 0x49a   : > { %v3365_v19 = vsel %vm1793_vm1, %v14383_v21, 0.0 }
 0x49b   : > { %3366 = vadd.xlane.f32.xlu1 %v3365_v19  ;;  %v11236_v5 = vpop.f32.mrb[6].mxu1  ;;  %v3362_v56 = vsel %vm1793_vm1, %v14385_v32, 0.0 }
 0x49c   : > { %v14391_v14 = vadd.f32 %v11236_v5, %v10537_v34  ;;  %v3290_v41 = vpop.f32.mrb[7].mxu1  ;;  %3363 = vadd.xlane.f32.xlu0 %v3362_v56 }
 0x49d   : > { %v14393_v53 = vadd.f32 %v10537_v34, %v3290_v41 }
 0x49e   : > { %v3371_v60 = vsel %vm1793_vm1, %v14391_v14, 0.0 }
 0x49f   : > { %3372 = vadd.xlane.f32.xlu1 %v3371_v60  ;;  %v11239_v20 = vpop.f32.mrb[8].mxu1  ;;  %v3368_v11 = vsel %vm1793_vm1, %v14393_v53, 0.0 }
 0x4a0   : > { %v14399_v43 = vadd.f32 %v11239_v20, %v10537_v34  ;;  %v3302_v29 = vpop.f32.mrb[9].mxu1  ;;  %3369 = vadd.xlane.f32.xlu0 %v3368_v11 }
 0x4a1   : > { %v14401_v40 = vadd.f32 %v10537_v34, %v3302_v29 }
 0x4a2   : > { %v3377_v24 = vsel %vm1793_vm1, %v14399_v43, 0.0 }
 0x4a3   : > { %3378 = vadd.xlane.f32.xlu1 %v3377_v24  ;;  %v11242_v1 = vpop.f32.mrb[10].mxu1  ;;  %v3374_v45 = vsel %vm1793_vm1, %v14401_v40, 0.0 }
 0x4a4   : > { %v14407_v46 = vadd.f32 %v11242_v1, %v10537_v34  ;;  %v3314_v16 = vpop.f32.mrb[11].mxu1  ;;  %3375 = vadd.xlane.f32.xlu0 %v3374_v45 }
 0x4a5   : > { %v14409_v9 = vadd.f32 %v10537_v34, %v3314_v16 }
 0x4a6   : > { %v3383_v61 = vsel %vm1793_vm1, %v14407_v46, 0.0 }
 0x4a7   : > { %3384 = vadd.xlane.f32.xlu1 %v3383_v61  ;;  %v11245_v15 = vpop.f32.mrb[12].mxu1  ;;  %v3380_v51 = vsel %vm1793_vm1, %v14409_v9, 0.0 }
 0x4a8   : > { %v14415_v54 = vadd.f32 %v11245_v15, %v10537_v34  ;;  %v3326_v3 = vpop.f32.mrb[13].mxu1  ;;  %3381 = vadd.xlane.f32.xlu0 %v3380_v51 }
 0x4a9   : > { %v14417_v59 = vadd.f32 %v10537_v34, %v3326_v3 }
 0x4aa   : > { %v3389_v52 = vsel %vm1793_vm1, %v14415_v54, 0.0 }
 0x4ab   : > { %3390 = vadd.xlane.f32.xlu1 %v3389_v52  ;;  %v11248_v62 = vpop.f32.mrb[14].mxu1  ;;  %v3386_v48 = vsel %vm1793_vm1, %v14417_v59, 0.0 }
 0x4ac   : > { %v14423_v27 = vadd.f32 %v11248_v62, %v10537_v34  ;;  %v3338_v28 = vpop.f32.mrb[15].mxu1  ;;  %3387 = vadd.xlane.f32.xlu0 %v3386_v48 }
 0x4ad   : > { %v14425_v26 = vadd.f32 %v10537_v34, %v3338_v28 }
 0x4ae   : > { %v3395_v7 = vsel %vm1793_vm1, %v14423_v27, 0.0 }
 0x4af   : > { %3396 = vadd.xlane.f32.xlu1 %v3395_v7  ;;  %v3392_v47 = vsel %vm1793_vm1, %v14425_v26, 0.0 }
 0x4b0   : > { %3393 = vadd.xlane.f32.xlu0 %v3392_v47 }
 0x520   : > { %v3355_v13 = vpop.xlane.xlu1 %3354 }
 0x521   : > { %v3399_v2 = vmul.f32 0.03125, %v3355_v13  ;;  %v3352_v31 = vpop.xlane.xlu0 %3351 }
 0x522   : > { %v3398_v22 = vmul.f32 0.03125, %v3352_v31 }
 0x523   : > { %v14432_v57 = vsub.f32 %v14367_v30, %v3399_v2 }
 0x524   : > { %v14435_v55 = vsub.f32 %v14369_v37, %v3398_v22  ;;  %v3361_v10 = vpop.xlane.xlu1 %3360 }
 0x525   : > { %v3401_v25 = vmul.f32 0.03125, %v3361_v10  ;;  %v3358_v50 = vpop.xlane.xlu0 %3357  ;;  %v3431_v23 = vmul.f32 %v14432_v57, %v14432_v57 }
 0x526   : > { %v3400_v0 = vmul.f32 0.03125, %v3358_v50  ;;  %v3430_v63 = vmul.f32 %v14435_v55, %v14435_v55 }
 0x527   : > { %v14442_v38 = vsub.f32 %v14375_v12, %v3401_v25  ;;  %v3449_v49 = vsel %vm1793_vm1, %v3431_v23, 0.0 }
 0x528   : > { %v14446_v58 = vsub.f32 %v14377_v33, %v3400_v0  ;;  %v3367_v34 = vpop.xlane.xlu1 %3366  ;;  %3450 = vadd.xlane.f32.xlu1 %v3449_v49  ;;  %v3446_v35 = vsel %vm1793_vm1, %v3430_v63, 0.0 }
 0x529   : > { %v3403_v30 = vmul.f32 0.03125, %v3367_v34  ;;  %3447 = vadd.xlane.f32.xlu0 %v3446_v35  ;;  %v3364_v36 = vpop.xlane.xlu0 %3363  ;;  %v3433_v37 = vmul.f32 %v14442_v38, %v14442_v38 }
 0x52a   : > { %v3402_v44 = vmul.f32 0.03125, %v3364_v36  ;;  %v3432_v42 = vmul.f32 %v14446_v58, %v14446_v58 }
 0x52b   : > { %v14454_v6 = vsub.f32 %v14383_v21, %v3403_v30  ;;  %v3455_v12 = vsel %vm1793_vm1, %v3433_v37, 0.0 }
 0x52c   : > { %v14458_v18 = vsub.f32 %v14385_v32, %v3402_v44  ;;  %v3373_v33 = vpop.xlane.xlu1 %3372  ;;  %3456 = vadd.xlane.f32.xlu1 %v3455_v12  ;;  %v3452_v8 = vsel %vm1793_vm1, %v3432_v42, 0.0  ;;  %v3719_v42 = vld [vmem:[%s17682_s12 + $0x28] sm:$0xff] }
 0x52d   : > { %v3405_v4 = vmul.f32 0.03125, %v3373_v33  ;;  %3453 = vadd.xlane.f32.xlu0 %v3452_v8  ;;  %v3370_v17 = vpop.xlane.xlu0 %3369  ;;  %v3435_v39 = vmul.f32 %v14454_v6, %v14454_v6  ;;  %v3804_v33 = vand.u32 4294901760, %v3719_v42  ;;  %v3714_v8 = vld [vmem:[%s17682_s12] sm:$0xff] }
 0x52e   : > { %v3404_v19 = vmul.f32 0.03125, %v3370_v17  ;;  %v3434_v21 = vmul.f32 %v14458_v18, %v14458_v18  ;;  %v3802_v17 = vand.u32 4294901760, %v3714_v8 }
 0x52f   : > { %v14466_v5 = vsub.f32 %v14391_v14, %v3405_v4  ;;  %v3461_v32 = vsel %vm1793_vm1, %v3435_v39, 0.0  ;;  %v3718_v4 = vld [vmem:[%s17682_s12 + $0x20] sm:$0xff] }
 0x530   : > { %v14470_v56 = vsub.f32 %v14393_v53, %v3404_v19  ;;  %v3379_v41 = vpop.xlane.xlu1 %3378  ;;  %3462 = vadd.xlane.f32.xlu1 %v3461_v32  ;;  %v3458_v60 = vsel %vm1793_vm1, %v3434_v21, 0.0  ;;  %v3806_v39 = vand.u32 4294901760, %v3718_v4  ;;  %v14541_v21 = vsub.f32 %v3719_v42, %v3804_v33 }
 0x531   : > { %v3407_v20 = vmul.f32 0.03125, %v3379_v41  ;;  %3459 = vadd.xlane.f32.xlu0 %v3458_v60  ;;  %v3376_v11 = vpop.xlane.xlu0 %3375  ;;  %v3437_v29 = vmul.f32 %v14466_v5, %v14466_v5  ;;  %v14543_v32 = vsub.f32 %v3714_v8, %v3802_v17  ;;  %v3723_v60 = vld [vmem:[%s17682_s12 + $0x48] sm:$0xff] }
 0x532   : > { %v3406_v24 = vmul.f32 0.03125, %v3376_v11  ;;  %v3436_v14 = vmul.f32 %v14470_v56, %v14470_v56  ;;  %v14545_v41 = vsub.f32 %v3718_v4, %v3806_v39 }
 0x533   : > { %v14478_v1 = vsub.f32 %v14399_v43, %v3407_v20  ;;  %v3467_v53 = vsel %vm1793_vm1, %v3437_v29, 0.0  ;;  %v3727_v20 = vld [vmem:[%s17682_s12 + $0x68] sm:$0xff]  ;;  %v17710_v29 = vand.u32 4294901760, %v14541_v21 }
 0x534   : > { %v14482_v45 = vsub.f32 %v14401_v40, %v3406_v24  ;;  %v3385_v16 = vpop.xlane.xlu1 %3384  ;;  %3468 = vadd.xlane.f32.xlu1 %v3467_v53  ;;  %v3464_v61 = vsel %vm1793_vm1, %v3436_v14, 0.0  ;;  %v3808_v24 = vand.u32 4294901760, %v3723_v60  ;;  %v3812_v14 = vand.u32 4294901760, %v3727_v20  ;;  %v3722_v53 = vld [vmem:[%s17682_s12 + $0x40] sm:$0xff] }
 0x535   : > { %v3409_v15 = vmul.f32 0.03125, %v3385_v16  ;;  %3465 = vadd.xlane.f32.xlu0 %v3464_v61  ;;  %v3382_v51 = vpop.xlane.xlu0 %3381  ;;  %v3439_v3 = vmul.f32 %v14478_v1, %v14478_v1  ;;  %v3726_v16 = vld [vmem:[%s17682_s12 + $0x60] sm:$0xff]  ;;  %v17709_v61 = vand.u32 4294901760, %v14543_v32 }
 0x536   : > { %v3408_v52 = vmul.f32 0.03125, %v3382_v51  ;;  %v3438_v43 = vmul.f32 %v14482_v45, %v14482_v45  ;;  %v3810_v51 = vand.u32 4294901760, %v3722_v53 }
 0x537   : > { %v14490_v62 = vsub.f32 %v14407_v46, %v3409_v15  ;;  %v3473_v40 = vsel %vm1793_vm1, %v3439_v3, 0.0  ;;  %v17708_v15 = vand.u32 4294901760, %v14545_v41  ;;  %v3814_v3 = vand.u32 4294901760, %v3726_v16 }
 0x538   : > { %v14494_v48 = vsub.f32 %v14409_v9, %v3408_v52  ;;  %v3391_v28 = vpop.xlane.xlu1 %3390  ;;  %3474 = vadd.xlane.f32.xlu1 %v3473_v40  ;;  %v3470_v7 = vsel %vm1793_vm1, %v3438_v43, 0.0  ;;  %v4064_v43 = vsub.f32 %v14541_v21, %v17710_v29  ;;  %v14569_v40 = vsub.f32 %v3723_v60, %v3808_v24 }
 0x539   : > { %v3411_v47 = vmul.f32 0.03125, %v3391_v28  ;;  %3471 = vadd.xlane.f32.xlu0 %v3470_v7  ;;  %v3388_v13 = vpop.xlane.xlu0 %3387  ;;  %v3441_v2 = vmul.f32 %v14490_v62, %v14490_v62  ;;  %v14571_v28 = vsub.f32 %v3727_v20, %v3812_v14  ;;  %v4058_v7 = vsub.f32 %v14543_v32, %v17709_v61 }
 0x53a   : > { %v3410_v31 = vmul.f32 0.03125, %v3388_v13  ;;  %v3440_v46 = vmul.f32 %v14494_v48, %v14494_v48  ;;  %v14579_v13 = vsub.f32 %v3722_v53, %v3810_v51  ;;  %v14601_v20 = vpack.c.bf16 %v3806_v39, %v3802_v17 }
 0x53b   : > { %v14502_v22 = vsub.f32 %v14415_v54, %v3411_v47  ;;  %v3479_v9 = vsel %vm1793_vm1, %v3441_v2, 0.0  ;;  %v4070_v47 = vsub.f32 %v14545_v41, %v17708_v15  ;;  %v14581_v2 = vsub.f32 %v3726_v16, %v3814_v3 }
 0x53c   : > { %v14506_v10 = vsub.f32 %v14417_v59, %v3410_v31  ;;  %3480 = vadd.xlane.f32.xlu1 %v3479_v9  ;;  %v3397_v25 = vpop.xlane.xlu1 %3396  ;;  %v3476_v50 = vsel %vm1793_vm1, %v3440_v46, 0.0  ;;  %v4065_v46 = vand.u32 4294901760, %v4064_v43  ;;  %v17707_v9 = vand.u32 4294901760, %v14569_v40 }
 0x53d   : > { %v3413_v23 = vmul.f32 0.03125, %v3397_v25  ;;  %3477 = vadd.xlane.f32.xlu0 %v3476_v50  ;;  %v3394_v0 = vpop.xlane.xlu0 %3393  ;;  %v3443_v63 = vmul.f32 %v14502_v22, %v14502_v22  ;;  %v17706_v25 = vand.u32 4294901760, %v14571_v28  ;;  %v4059_v50 = vand.u32 4294901760, %v4058_v7 }
 0x53e   : > { %v3412_v49 = vmul.f32 0.03125, %v3394_v0  ;;  %v3442_v54 = vmul.f32 %v14506_v10, %v14506_v10  ;;  %v17705_v0 = vand.u32 4294901760, %v14579_v13  ;;  %v17716_v53 = vmov 0.0  }
 0x53f   : > { %v14514_v34 = vsub.f32 %v14423_v27, %v3413_v23  ;;  %v3485_v59 = vsel %vm1793_vm1, %v3443_v63, 0.0  ;;  %v4071_v23 = vand.u32 4294901760, %v4070_v47  ;;  %v17704_v63 = vand.u32 4294901760, %v14581_v2  ;;  %4153 = vmatprep.mubr.f32.mxu0 %v17716_v53  ;;  %3872 = vmatprep.mubr.f32.mxu1 %v17716_v53 }
 0x540   : > { %v14518_v35 = vsub.f32 %v14425_v26, %v3412_v49  ;;  %3486 = vadd.xlane.f32.xlu1 %v3485_v59  ;;  %v3482_v30 = vsel %vm1793_vm1, %v3442_v54, 0.0  ;;  %v3715_v26 = vld [vmem:[%s17682_s12 + $0x8] sm:$0xff]  ;;  %v4076_v54 = vsub.f32 %v14569_v40, %v17707_v9  ;;  %v4088_v59 = vsub.f32 %v14571_v28, %v17706_v25 }
 0x541   : > { %3483 = vadd.xlane.f32.xlu0 %v3482_v30  ;;  %v3445_v36 = vmul.f32 %v14514_v34, %v14514_v34  ;;  %v3800_v12 = vand.u32 4294901760, %v3715_v26  ;;  %v11517_v30 = vpack.c.bf16 %v4071_v23, %v4059_v50  ;;  %v14607_v16 = vpack.c.bf16 %v3812_v14, %v3808_v24 }
 0x542   : > { %v3444_v37 = vmul.f32 %v14518_v35, %v14518_v35  ;;  %v11527_v9 = vpack.c.bf16 %v14571_v28, %v14569_v40 }
 0x543   : > { %v3491_v44 = vsel %vm1793_vm1, %v3445_v36, 0.0  ;;  %v14539_v19 = vsub.f32 %v3715_v26, %v3800_v12  ;;  %v4082_v36 = vsub.f32 %v14579_v13, %v17705_v0  ;;  %v14599_v60 = vpack.c.bf16 %v3804_v33, %v3800_v12  ;;  %v3717_v12 = vld [vmem:[%s17682_s12 + $0x18] sm:$0xff] }
 0x544   : > { %3492 = vadd.xlane.f32.xlu1 %v3491_v44  ;;  %v3488_v27 = vsel %vm1793_vm1, %v3444_v37, 0.0  ;;  %v4094_v37 = vsub.f32 %v14581_v2, %v17704_v63  ;;  %v4077_v44 = vand.u32 4294901760, %v4076_v54  ;;  %v3721_v33 = vld [vmem:[%s17682_s12 + $0x38] sm:$0xff]  ;;  %v5078_v17 = vand.u32 4294901760, %v3717_v12 }
 0x545   : > { %3489 = vadd.xlane.f32.xlu0 %v3488_v27  ;;  %v17711_v11 = vand.u32 4294901760, %v14539_v19  ;;  %v4089_v27 = vand.u32 4294901760, %v4088_v59  ;;  %v4083_v26 = vand.u32 4294901760, %v4082_v36  ;;  %17972 = vst [vmem:[#allocation17_spill] sm:$0xff] %v14599_v60  ;;  %11508 = vmatprep.subr.bf16.mxu1 %v14599_v60  ;;  %v5082_v39 = vand.u32 4294901760, %v3721_v33 }
 0x546   : > { %v4095_v42 = vand.u32 4294901760, %v4094_v37  ;;  %11510 = vmatpush1.bf16.msra.mxu1 %v14601_v20  ;;  %v14621_v24 = vsub.f32 %v3717_v12, %v5078_v17 }
 0x547   : > { %v4052_v52 = vsub.f32 %v14539_v19, %v17711_v11  ;;  %v11519_v8 = vpack.c.bf16 %v4089_v27, %v4077_v44  ;;  %11512 = vmatprep.subr.bf16.mxu1 %v14607_v16  ;;  %v14619_v43 = vpack.c.bf16 %v5082_v39, %v5078_v17  ;;  %v14623_v14 = vsub.f32 %v3721_v33, %v5082_v39 }
 0x548   : > { %v11521_v4 = vpack.c.bf16 %v4095_v42, %v4083_v26  ;;  %v17715_v61 = vand.u32 4294901760, %v14621_v24 }
 0x549   : > { %v4053_v31 = vand.u32 4294901760, %v4052_v52  ;;  %v14609_v52 = vpack.c.bf16 %v3814_v3, %v3810_v51  ;;  %17973 = vst [vmem:[#allocation18_spill] sm:$0xff] %v14619_v43  ;;  %v11523_v51 = vpack.c.bf16 %v14541_v21, %v14539_v19 }
 0x54b   : > { %v11515_v49 = vpack.c.bf16 %v4065_v46, %v4053_v31  ;;  %11514 = vmatpush1.bf16.msra.mxu1 %v14609_v52 }
 0x54c   : > { %11556 = vmatprep.subr.bf16.mxu1 %v14619_v43 }
 0x54d   : > { %11516 = vmatprep.subr.bf16.mxu0 %v11515_v49 }
 0x54e   : > { %11518 = vmatpush1.bf16.msra.mxu0 %v11517_v30 }
 0x54f   : > { %11520 = vmatprep.subr.bf16.mxu0 %v11519_v8 }
 0x552   : > { %11522 = vmatpush1.bf16.msra.mxu0 %v11521_v4 }
 0x553   : > { %11524 = vmatprep.subr.bf16.mxu0 %v11523_v51  ;;  %v14631_v51 = vld [vmem:[%s17680_s10] ss:$0 sm:$0xff] }
 0x5b5   : > { %v3451_v3 = vpop.xlane.xlu1 %3450 }
 0x5b6   : > { %v3495_v7 = vmul.f32 0.03125, %v3451_v3  ;;  %v3448_v47 = vpop.xlane.xlu0 %3447 }
 0x5b7   : > { %v3494_v31 = vmul.f32 0.03125, %v3448_v47 }
 0x5b8   : > { %v3511_v46 = vadd.f32 1e-05, %v3495_v7 }
 0x5b9   : > { %v3510_v50 = vadd.f32 1e-05, %v3494_v31  ;;  %v3457_v23 = vpop.xlane.xlu1 %3456 }
 0x5ba   : > { %13068 = vrsqrt.f32 %v3511_v46  ;;  %v3497_v49 = vmul.f32 0.03125, %v3457_v23  ;;  %v3454_v54 = vpop.xlane.xlu0 %3453 }
 0x5bb   : > { %13070 = vrsqrt.f32 %v3510_v50  ;;  %v3496_v59 = vmul.f32 0.03125, %v3454_v54  ;;  %v14637_v50 = vld [vmem:[%s17681_s11] ss:$0 sm:$0xff] }
 0x5bc   : > { %v3513_v30 = vadd.f32 1e-05, %v3497_v49 }
 0x5bd   : > { %v3512_v36 = vadd.f32 1e-05, %v3496_v59  ;;  %v3463_v37 = vpop.xlane.xlu1 %3462 }
 0x5be   : > { %13072 = vrsqrt.f32 %v3513_v30  ;;  %v3499_v44 = vmul.f32 0.03125, %v3463_v37  ;;  %v3460_v27 = vpop.xlane.xlu0 %3459 }
 0x5bf   : > { %13074 = vrsqrt.f32 %v3512_v36  ;;  %v3498_v26 = vmul.f32 0.03125, %v3460_v27 }
 0x5c0   : > { %v3515_v42 = vadd.f32 1e-05, %v3499_v44 }
 0x5c1   : > { %v3514_v8 = vadd.f32 1e-05, %v3498_v26  ;;  %v3469_v4 = vpop.xlane.xlu1 %3468 }
 0x5c2   : > { %13076 = vrsqrt.f32 %v3515_v42  ;;  %v3501_v12 = vmul.f32 0.03125, %v3469_v4  ;;  %v3466_v33 = vpop.xlane.xlu0 %3465 }
 0x5c3   : > { %13078 = vrsqrt.f32 %v3514_v8  ;;  %v3500_v17 = vmul.f32 0.03125, %v3466_v33 }
 0x5c4   : > { %v13069_v39 = vpop.eup %13068  ;;  %v3517_v3 = vadd.f32 1e-05, %v3501_v12 }
 0x5c5   : > { %v13071_v7 = vpop.eup %13070  ;;  %v3543_v47 = vmul.f32 %v13069_v39, %v14432_v57  ;;  %v3516_v31 = vadd.f32 1e-05, %v3500_v17  ;;  %v3475_v46 = vpop.xlane.xlu1 %3474 }
 0x5c6   : > { %v3542_v23 = vmul.f32 %v13071_v7, %v14435_v55  ;;  %13080 = vrsqrt.f32 %v3517_v3  ;;  %v3503_v49 = vmul.f32 0.03125, %v3475_v46  ;;  %v3472_v54 = vpop.xlane.xlu0 %3471 }
 0x5c7   : > { %v3565_v59 = vmul.f32 %v14631_v51, %v3543_v47  ;;  %13082 = vrsqrt.f32 %v3516_v31  ;;  %v3502_v30 = vmul.f32 0.03125, %v3472_v54 }
 0x5c8   : > { %v13073_v36 = vpop.eup %13072  ;;  %v3564_v37 = vmul.f32 %v14631_v51, %v3542_v23  ;;  %v3519_v57 = vadd.f32 1e-05, %v3503_v49 }
 0x5c9   : > { %v13075_v44 = vpop.eup %13074  ;;  %v14643_v27 = vadd.f32 %v14637_v50, %v3565_v59  ;;  %v3545_v26 = vmul.f32 %v13073_v36, %v14442_v38  ;;  %v3518_v42 = vadd.f32 1e-05, %v3502_v30  ;;  %v3481_v8 = vpop.xlane.xlu1 %3480 }
 0x5ca   : > { %v14647_v55 = vadd.f32 %v14637_v50, %v3564_v37  ;;  %v3544_v4 = vmul.f32 %v13075_v44, %v14446_v58  ;;  %13084 = vrsqrt.f32 %v3519_v57  ;;  %v3505_v12 = vmul.f32 0.03125, %v3481_v8  ;;  %v3478_v33 = vpop.xlane.xlu0 %3477 }
 0x5cb   : > { %v10541_v17 = vmul.f32 -1.442695, %v14643_v27  ;;  %v3567_v39 = vmul.f32 %v14631_v51, %v3545_v26  ;;  %13086 = vrsqrt.f32 %v3518_v42  ;;  %v3504_v3 = vmul.f32 0.03125, %v3478_v33 }
 0x5cc   : > { %v13077_v7 = vpop.eup %13076  ;;  %v10540_v47 = vmul.f32 -1.442695, %v14647_v55  ;;  %v3566_v38 = vmul.f32 %v14631_v51, %v3544_v4  ;;  %v3521_v31 = vadd.f32 1e-05, %v3505_v12 }
 0x5cd   : > { %v13079_v46 = vpop.eup %13078  ;;  %13088 = vpow2.f32 %v10541_v17  ;;  %v14655_v23 = vadd.f32 %v14637_v50, %v3567_v39  ;;  %v3547_v58 = vmul.f32 %v13077_v7, %v14454_v6  ;;  %v3520_v49 = vadd.f32 1e-05, %v3504_v3  ;;  %v3487_v54 = vpop.xlane.xlu1 %3486 }
 0x5ce   : > { %13090 = vpow2.f32 %v10540_v47  ;;  %v14659_v59 = vadd.f32 %v14637_v50, %v3566_v38  ;;  %v3546_v30 = vmul.f32 %v13079_v46, %v14458_v18  ;;  %v3507_v36 = vmul.f32 0.03125, %v3487_v54  ;;  %v3484_v37 = vpop.xlane.xlu0 %3483 }
 0x5cf   : > { %v10543_v57 = vmul.f32 -1.442695, %v14655_v23  ;;  %v3569_v44 = vmul.f32 %v14631_v51, %v3547_v58  ;;  %13092 = vrsqrt.f32 %v3521_v31  ;;  %v3506_v26 = vmul.f32 0.03125, %v3484_v37 }
 0x5d0   : > { %v13081_v42 = vpop.eup %13080  ;;  %v10542_v8 = vmul.f32 -1.442695, %v14659_v59  ;;  %v3568_v6 = vmul.f32 %v14631_v51, %v3546_v30  ;;  %13094 = vrsqrt.f32 %v3520_v49  ;;  %v3523_v4 = vadd.f32 1e-05, %v3507_v36 }
 0x5d1   : > { %v13083_v12 = vpop.eup %13082  ;;  %13096 = vpow2.f32 %v10543_v57  ;;  %v14667_v33 = vadd.f32 %v14637_v50, %v3569_v44  ;;  %v3549_v18 = vmul.f32 %v13081_v42, %v14466_v5  ;;  %v3522_v17 = vadd.f32 1e-05, %v3506_v26  ;;  %v3493_v39 = vpop.xlane.xlu1 %3492 }
 0x5d2   : > { %13098 = vpow2.f32 %v10542_v8  ;;  %v14671_v3 = vadd.f32 %v14637_v50, %v3568_v6  ;;  %v3548_v7 = vmul.f32 %v13083_v12, %v14470_v56  ;;  %v3509_v47 = vmul.f32 0.03125, %v3493_v39  ;;  %v3490_v38 = vpop.xlane.xlu0 %3489 }
 0x5d3   : > { %v10545_v31 = vmul.f32 -1.442695, %v14667_v33  ;;  %v3571_v46 = vmul.f32 %v14631_v51, %v3549_v18  ;;  %13100 = vrsqrt.f32 %v3523_v4  ;;  %v3508_v58 = vmul.f32 0.03125, %v3490_v38  ;;  %v14691_v4 = vld [vmem:[%s17682_s12 + $0x10] sm:$0xff] }
 0x5d4   : > { %v13085_v49 = vpop.eup %13084  ;;  %v10544_v54 = vmul.f32 -1.442695, %v14671_v3  ;;  %v3570_v5 = vmul.f32 %v14631_v51, %v3548_v7  ;;  %13102 = vrsqrt.f32 %v3522_v17  ;;  %v3525_v30 = vadd.f32 1e-05, %v3509_v47 }
 0x5d5   : > { %v13087_v36 = vpop.eup %13086  ;;  %13104 = vpow2.f32 %v10545_v31  ;;  %v14679_v37 = vadd.f32 %v14637_v50, %v3571_v46  ;;  %v3551_v56 = vmul.f32 %v13085_v49, %v14478_v1  ;;  %v3524_v57 = vadd.f32 1e-05, %v3508_v58 }
 0x5d6   : > { %13106 = vpow2.f32 %v10544_v54  ;;  %v14683_v44 = vadd.f32 %v14637_v50, %v3570_v5  ;;  %v3550_v26 = vmul.f32 %v13087_v36, %v14482_v45  ;;  %v14698_v45 = vld [vmem:[%s17682_s12 + $0x30] sm:$0xff]  ;;  %v17713_v58 = vand.u32 4294901760, %v14691_v4 }
 0x5d7   : > { %v13089_v42 = vpop.eup %13088  ;;  %v10547_v8 = vmul.f32 -1.442695, %v14679_v37  ;;  %v3573_v6 = vmul.f32 %v14631_v51, %v3551_v56  ;;  %13108 = vrsqrt.f32 %v3525_v30  ;;  %v17712_v30 = vand.u32 4294901760, %v14698_v45 }
 0x5d8   : > { %v13091_v12 = vpop.eup %13090  ;;  %v3651_v1 = vadd.f32 1.0, %v13089_v42  ;;  %v10546_v18 = vmul.f32 -1.442695, %v14683_v44  ;;  %v3572_v17 = vmul.f32 %v14631_v51, %v3550_v26  ;;  %13110 = vrsqrt.f32 %v3524_v57 }
 0x5d9   : > { %v13093_v39 = vpop.eup %13092  ;;  %v3650_v7 = vadd.f32 1.0, %v13091_v12  ;;  %13112 = vpow2.f32 %v10547_v8  ;;  %v14701_v47 = vadd.f32 %v14637_v50, %v3573_v6 }
 0x5da   : > { %v13095_v38 = vpop.eup %13094  ;;  %13114 = vrcp.f32 %v3651_v1  ;;  %v14704_v31 = vadd.f32 %v14637_v50, %v3572_v17  ;;  %v3553_v46 = vmul.f32 %v13093_v39, %v14490_v62  ;;  %v14721_v1 = vld [vmem:[%s17682_s12 + $0x58] sm:$0xff] }
 0x5db   : > { %v13097_v49 = vpop.eup %13096  ;;  %13116 = vrcp.f32 %v3650_v7  ;;  %v10549_v54 = vmul.f32 -1.442695, %v14701_v47  ;;  %v3552_v5 = vmul.f32 %v13095_v38, %v14494_v48  ;;  %v14730_v7 = vld [vmem:[%s17682_s12 + $0x78] sm:$0xff] }
 0x5dc   : > { %v13099_v36 = vpop.eup %13098  ;;  %v3653_v56 = vadd.f32 1.0, %v13097_v49  ;;  %13118 = vpow2.f32 %v10546_v18  ;;  %v10548_v57 = vmul.f32 -1.442695, %v14704_v31  ;;  %v3575_v26 = vmul.f32 %v14631_v51, %v3553_v46 }
 0x5dd   : > { %v13101_v42 = vpop.eup %13100  ;;  %v3652_v8 = vadd.f32 1.0, %v13099_v36  ;;  %13120 = vpow2.f32 %v10549_v54  ;;  %v3574_v62 = vmul.f32 %v14631_v51, %v3552_v5  ;;  %v14747_v54 = vld [vmem:[%s17682_s12 + $0x70] sm:$0xff] }
 0x5de   : > { %v13103_v6 = vpop.eup %13102  ;;  %13122 = vrcp.f32 %v3653_v56  ;;  %v14715_v12 = vadd.f32 %v14637_v50, %v3575_v26  ;;  %v3555_v48 = vmul.f32 %v13101_v42, %v14502_v22  ;;  %v14735_v22 = vld [vmem:[%s17682_s12 + $0x50] sm:$0xff] }
 0x5df   : > { %v13105_v18 = vpop.eup %13104  ;;  %13124 = vrcp.f32 %v3652_v8  ;;  %v14724_v17 = vadd.f32 %v14637_v50, %v3574_v62  ;;  %v3554_v39 = vmul.f32 %v13103_v6, %v14506_v10  ;;  %v14742_v10 = vpack.c.bf16 %v17712_v30, %v17713_v58 }
 0x5e0   : > { %v13107_v38 = vpop.eup %13106  ;;  %v3655_v46 = vadd.f32 1.0, %v13105_v18  ;;  %13126 = vpow2.f32 %v10548_v57  ;;  %v3577_v49 = vmul.f32 %v14631_v51, %v3555_v48  ;;  %v17718_v57 = vand.u32 4294901760, %v14721_v1 }
 0x5e1   : > { %17974 = vst [vmem:[#allocation19_spill] sm:$0xff] %v14742_v10  ;;  %v13109_v5 = vpop.eup %13108  ;;  %v3654_v36 = vadd.f32 1.0, %v13107_v38  ;;  %v10550_v56 = vmul.f32 -1.442695, %v14724_v17  ;;  %v3576_v26 = vmul.f32 %v14631_v51, %v3554_v39  ;;  %v10551_v8 = vmul.f32 -1.442695, %v14715_v12 }
 0x5e2   : > { %v13111_v42 = vpop.eup %13110  ;;  %13128 = vrcp.f32 %v3655_v46  ;;  %v14761_v25 = vadd.f32 %v14637_v50, %v3577_v49  ;;  %v11525_v46 = vpack.c.bf16 %v14545_v41, %v14543_v32 }
 0x5e3   : > { %v13113_v48 = vpop.eup %13112  ;;  %13130 = vrcp.f32 %v3654_v36  ;;  %v14756_v18 = vadd.f32 %v14637_v50, %v3576_v26  ;;  %v3556_v38 = vmul.f32 %v13111_v42, %v14518_v35  ;;  %v3557_v26 = vmul.f32 %v13109_v5, %v14514_v34 }
 0x5e4   : > { %v13115_v39 = vpop.eup %13114  ;;  %v3657_v0 = vadd.f32 1.0, %v13113_v48  ;;  %13132 = vpow2.f32 %v10550_v56  ;;  %v11529_v35 = vpack.c.bf16 %v14581_v2, %v14579_v13 }
 0x5e5   : > { %v13117_v15 = vpop.eup %13116  ;;  %v3699_v36 = vmul.f32 %v13115_v39, %v14643_v27  ;;  %13134 = vpow2.f32 %v10551_v8  ;;  %v3578_v49 = vmul.f32 %v14631_v51, %v3556_v38  ;;  %v10552_v27 = vmul.f32 -1.442695, %v14756_v18 }
 0x5e6   : > { %v13119_v42 = vpop.eup %13118  ;;  %v3698_v48 = vmul.f32 %v13117_v15, %v14647_v55  ;;  %13136 = vrcp.f32 %v3657_v0  ;;  %v10553_v39 = vmul.f32 -1.442695, %v14761_v25  ;;  %v17714_v15 = vand.u32 4294901760, %v14623_v14 }
 0x5e7   : > { %v13121_v29 = vpop.eup %13120  ;;  %v3756_v11 = vsel %vm1793_vm1, %v3699_v36, 0  ;;  %v3656_v30 = vadd.f32 1.0, %v13119_v42  ;;  %v3579_v0 = vmul.f32 %v14631_v51, %v3557_v26  ;;  %v14787_v63 = vadd.f32 %v14637_v50, %v3578_v49 }
 0x5e8   : > { %v13123_v56 = vpop.eup %13122  ;;  %v14776_v34 = vand.u32 4294901760, %v3756_v11  ;;  %v3753_v5 = vsel %vm1793_vm1, %v3698_v48, 0  ;;  %v3659_v58 = vadd.f32 1.0, %v13121_v29 }
 0x5e9   : > { %v13125_v55 = vpop.eup %13124  ;;  %v14781_v8 = vand.u32 4294901760, %v3753_v5  ;;  %v3701_v38 = vmul.f32 %v13123_v56, %v14655_v23  ;;  %13138 = vrcp.f32 %v3656_v30 }
 0x5ea   : > { %17975 = vst [vmem:[#allocation20_spill] sm:$0xff] %v14776_v34  ;;  %v13127_v36 = vpop.eup %13126  ;;  %v3700_v42 = vmul.f32 %v13125_v55, %v14659_v59  ;;  %v14790_v48 = vsub.f32 %v3756_v11, %v14776_v34  ;;  %13140 = vpow2.f32 %v10552_v27  ;;  %v5330_v11 = vsub.f32 %v14621_v24, %v17715_v61 }
 0x5eb   : > { %17976 = vst [vmem:[#allocation21_spill] sm:$0xff] %v14781_v8  ;;  %v3762_v6 = vsel %vm1793_vm1, %v3701_v38, 0  ;;  %v3658_v62 = vadd.f32 1.0, %v13127_v36  ;;  %4155 = vmatmul.mubr.f32.vlgmr.msra.gmra.mrb[16].mxu0 %v14781_v8  ;;  %v14795_v23 = vsub.f32 %v3753_v5, %v14781_v8  ;;  %v14815_v55 = vadd.f32 %v14637_v50, %v3579_v0 }
 0x5ec   : > { %v13129_v51 = vpop.eup %13128  ;;  %v14797_v30 = vand.u32 4294901760, %v3762_v6  ;;  %v3759_v29 = vsel %vm1793_vm1, %v3700_v42, 0  ;;  %4160 = vmatprep.mubr.f32.mxu0 %v17716_v53  ;;  %v14802_v59 = vand.u32 4294901760, %v14790_v48  ;;  %11526 = vmatpush1.bf16.msra.mxu0 %v11525_v46  ;;  %v5342_v46 = vsub.f32 %v14623_v14, %v17714_v15 }
 0x5ed   : > { %17977 = vst [vmem:[#allocation22_spill] sm:$0xff] %v14795_v23  ;;  %v13131_v26 = vpop.eup %13130  ;;  %v14807_v49 = vand.u32 4294901760, %v3759_v29  ;;  %v3703_v27 = vmul.f32 %v13129_v51, %v14667_v33  ;;  %13142 = vrcp.f32 %v3658_v62  ;;  %v14811_v56 = vand.u32 4294901760, %v14795_v23  ;;  %11528 = vmatprep.subr.bf16.mxu0 %v11527_v9 }
 0x5ee   : > { %17978 = vst [vmem:[#allocation23_spill] sm:$0xff] %v14797_v30  ;;  %17979 = vst [vmem:[#allocation24_spill] sm:$0xff] %v14802_v59  ;;  %v3702_v5 = vmul.f32 %v13131_v26, %v14671_v3  ;;  %13144 = vpow2.f32 %v10553_v39  ;;  %v13133_v38 = vpop.eup %13132  ;;  %v10554_v36 = vmul.f32 -1.442695, %v14787_v63  ;;  %v3887_v62 = vsub.f32 %v14790_v48, %v14802_v59 }
 0x5ef   : > { %17980 = vst [vmem:[#allocation25_spill] sm:$0xff] %v14807_v49  ;;  %13146 = vrcp.f32 %v3659_v58  ;;  %4162 = vmatmul.mubr.f32.gmra.mrb[18].mxu0 %v14776_v34  ;;  %v3876_v33 = vsub.f32 %v14795_v23, %v14811_v56  ;;  %v14825_v9 = vsub.f32 %v3759_v29, %v14807_v49  ;;  %v13135_v3 = vpop.eup %13134  ;;  %v14832_v58 = vsub.f32 %v3762_v6, %v14797_v30 }
 0x5f0   : > { %v3765_v50 = vsel %vm1793_vm1, %v3702_v5, 0  ;;  %4167 = vmatprep.mubr.f32.mxu0 %v17716_v53  ;;  %v17981_v39 = vand.u32 4294901760, %v14730_v7  ;;  %11530 = vmatpush1.bf16.msra.mxu0 %v11529_v35  ;;  %v13137_v42 = vpop.eup %13136  ;;  %v3768_v51 = vsel %vm1793_vm1, %v3703_v27, 0  ;;  %v3660_v26 = vadd.f32 1.0, %v13133_v38 }
 0x5f1   : > { %v14841_v29 = vand.u32 4294901760, %v3765_v50  ;;  %v14843_v5 = vand.u32 4294901760, %v3876_v33  ;;  %11532 = vmatprep.subr.bf16.mxu0 %v14599_v60  ;;  %v10555_v6 = vmul.f32 -1.442695, %v14815_v55  ;;  %v14848_v15 = vand.u32 4294901760, %v14825_v9 }
 0x5f2   : > { %v14838_v0 = vpack.c.bf16 %v17981_v39, %v17718_v57  ;;  %v5331_v61 = vand.u32 4294901760, %v5330_v11  ;;  %v5343_v53 = vand.u32 4294901760, %v5342_v46  ;;  %v3661_v57 = vadd.f32 1.0, %v13135_v3 }
 0x5f3   : > { %17983 = vst [vmem:[#allocation27_spill] sm:$0xff] %v14841_v29  ;;  %17984 = vst [vmem:[#allocation28_spill] sm:$0xff] %v14848_v15  ;;  %v13139_v39 = vpop.eup %13138  ;;  %13148 = vpow2.f32 %v10554_v36  ;;  %3878 = vmatmul.mubr.f32.vlgmr.msra.gmra.mrb[16].mxu1 %v14843_v5  ;;  %4169 = vmatmul.mubr.f32.gmra.mrb[20].mxu0 %v14807_v49  ;;  %v17985_v35 = vand.u32 4294901760, %v14735_v22  ;;  %v17986_v27 = vand.u32 4294901760, %v14747_v54  ;;  %v14858_v33 = vand.u32 4294901760, %v3768_v51 }
 0x5f4   : > { %17982 = vst [vmem:[#allocation26_spill] sm:$0xff] %v14838_v0  ;;  %v3705_v43 = vmul.f32 %v13137_v42, %v14679_v37  ;;  %v3704_v11 = vmul.f32 %v13139_v39, %v14683_v44  ;;  %v17989_v46 = vmov 0.0   ;;  %v14864_v36 = vand.u32 4294901760, %v3887_v62  ;;  %v13141_v3 = vpop.eup %13140  ;;  %11558 = vmatpush1.bf16.msra.mxu1 %v14742_v10 }
 0x5f5   : > { %v14856_v38 = vpack.c.bf16 %v17986_v27, %v17985_v35  ;;  %17988 = vst [vmem:[#allocation30_spill] sm:$0xff] %v14858_v33  ;;  %3883 = vmatprep.mubr.f32.mxu1 %v17989_v46  ;;  %4174 = vmatprep.mubr.f32.mxu0 %v17989_v46  ;;  %13150 = vrcp.f32 %v3660_v26  ;;  %v3898_v35 = vsub.f32 %v14825_v9, %v14848_v15  ;;  %v14870_v27 = vand.u32 4294901760, %v14832_v58 }
 0x5f6   : > { %v14873_v37 = vsub.f32 %v3765_v50, %v14841_v29  ;;  %v3771_v44 = vsel %vm1793_vm1, %v3704_v11, 0  ;;  %13152 = vpow2.f32 %v10555_v6  ;;  %11560 = vmatprep.subr.bf16.mxu1 %v14838_v0  ;;  %v11563_v62 = vpack.c.bf16 %v5343_v53, %v5331_v61 }
 0x5f7   : > { %17987 = vst [vmem:[#allocation29_spill] sm:$0xff] %v14856_v38  ;;  %17990 = vst [vmem:[#allocation31_spill] sm:$0xff] %v14870_v27  ;;  %v13143_v42 = vpop.eup %13142  ;;  %3889 = vmatmul.mubr.f32.gmra.mrb[18].mxu1 %v14864_v36  ;;  %4176 = vmatmul.mubr.f32.gmra.mrb[22].mxu0 %v14797_v30  ;;  %v3774_v39 = vsel %vm1793_vm1, %v3705_v43, 0  ;;  %13154 = vrcp.f32 %v3661_v57  ;;  %v3662_v10 = vadd.f32 1.0, %v13141_v3  ;;  %v14883_v50 = vsub.f32 %v3768_v51, %v14858_v33 }
 0x5f8   : > { %v13145_v26 = vpop.eup %13144  ;;  %3894 = vmatprep.mubr.f32.mxu1 %v17989_v46  ;;  %4181 = vmatprep.mubr.f32.mxu0 %v17989_v46  ;;  %v14885_v11 = vand.u32 4294901760, %v3771_v44  ;;  %v14887_v61 = vand.u32 4294901760, %v3898_v35  ;;  %v3909_v53 = vsub.f32 %v14832_v58, %v14870_v27  ;;  %v14892_v0 = vand.u32 4294901760, %v14873_v37 }
 0x5f9   : > { %v13147_v6 = vpop.eup %13146  ;;  %11562 = vmatpush1.bf16.msra.mxu1 %v14856_v38  ;;  %v3706_v43 = vmul.f32 %v13143_v42, %v14704_v31  ;;  %v3663_v57 = vadd.f32 1.0, %v13145_v26  ;;  %v14898_v51 = vand.u32 4294901760, %v3774_v39  ;;  %v14904_v35 = vand.u32 4294901760, %v14883_v50 }
 0x5fa   : > { %17991 = vst [vmem:[#allocation32_spill] sm:$0xff] %v14885_v11  ;;  %17992 = vst [vmem:[#allocation33_spill] sm:$0xff] %v14892_v0  ;;  %11564 = vmatprep.subr.bf16.mxu1 %v11563_v62  ;;  %v3707_v3 = vmul.f32 %v13147_v6, %v14701_v47  ;;  %13156 = vrcp.f32 %v3662_v10  ;;  %v14906_v31 = vand.u32 4294901760, %v3909_v53  ;;  %v3920_v62 = vsub.f32 %v14873_v37, %v14892_v0 }
 0x5fb   : > { %3900 = vmatmul.mubr.f32.gmra.mrb[20].mxu1 %v14887_v61  ;;  %4183 = vmatmul.mubr.f32.gmra.mrb[24].mxu0 %v14841_v29  ;;  %17993 = vst [vmem:[#allocation34_spill] sm:$0xff] %v14898_v51  ;;  %17994 = vst [vmem:[#allocation35_spill] sm:$0xff] %v14904_v35  ;;  %v14911_v42 = vsub.f32 %v3771_v44, %v14885_v11  ;;  %v3777_v26 = vsel %vm1793_vm1, %v3706_v43, 0  ;;  %13158 = vrcp.f32 %v3663_v57 }
 0x5fc   : > { %3905 = vmatprep.mubr.f32.mxu1 %v17989_v46  ;;  %4188 = vmatprep.mubr.f32.mxu0 %v17989_v46  ;;  %v3780_v29 = vsel %vm1793_vm1, %v3707_v3, 0  ;;  %v3931_v44 = vsub.f32 %v14883_v50, %v14904_v35  ;;  %v14921_v53 = vand.u32 4294901760, %v3777_v26  ;;  %v14923_v43 = vand.u32 4294901760, %v3920_v62 }
 0x5fd   : > { %v13149_v38 = vpop.eup %13148  ;;  %v14926_v57 = vand.u32 4294901760, %v14911_v42  ;;  %v14934_v49 = vand.u32 4294901760, %v3780_v29 }
 0x5fe   : > { %v3664_v10 = vadd.f32 1.0, %v13149_v38  ;;  %17995 = vst [vmem:[#allocation36_spill] sm:$0xff] %v14921_v53  ;;  %v14938_v62 = vand.u32 4294901760, %v3931_v44 }
 0x5ff   : > { %v13151_v47 = vpop.eup %13150  ;;  %3911 = vmatmul.mubr.f32.gmra.mrb[22].mxu1 %v14906_v31  ;;  %4190 = vmatmul.mubr.f32.gmra.mrb[26].mxu0 %v14858_v33  ;;  %17996 = vst [vmem:[#allocation37_spill] sm:$0xff] %v14926_v57  ;;  %v14929_v33 = vsub.f32 %v3774_v39, %v14898_v51  ;;  %17997 = vst [vmem:[#allocation38_spill] sm:$0xff] %v14934_v49  ;;  %v3942_v39 = vsub.f32 %v14911_v42, %v14926_v57 }
 0x600   : > { %v13153_v6 = vpop.eup %13152  ;;  %3916 = vmatprep.mubr.f32.mxu1 %v17989_v46  ;;  %4195 = vmatprep.mubr.f32.mxu0 %v17989_v46  ;;  %v3708_v38 = vmul.f32 %v13151_v47, %v14724_v17  ;;  %13160 = vrcp.f32 %v3664_v10  ;;  %v14946_v17 = vsub.f32 %v3777_v26, %v14921_v53  ;;  %v14955_v44 = vsub.f32 %v3780_v29, %v14934_v49 }
 0x601   : > { %v13155_v30 = vpop.eup %13154  ;;  %v3665_v3 = vadd.f32 1.0, %v13153_v6  ;;  %v14943_v35 = vand.u32 4294901760, %v14929_v33  ;;  %v14959_v57 = vand.u32 4294901760, %v3942_v39 }
 0x602   : > { %v3709_v47 = vmul.f32 %v13155_v30, %v14715_v12  ;;  %v3783_v6 = vsel %vm1793_vm1, %v3708_v38, 0  ;;  %v14964_v30 = vand.u32 4294901760, %v14946_v17  ;;  %v14974_v39 = vand.u32 4294901760, %v14955_v44 }
 0x603   : > { %3922 = vmatmul.mubr.f32.gmra.mrb[24].mxu1 %v14923_v43  ;;  %4197 = vmatmul.mubr.f32.gmra.mrb[28].mxu0 %v14885_v11  ;;  %17998 = vst [vmem:[#allocation39_spill] sm:$0xff] %v14943_v35  ;;  %13162 = vrcp.f32 %v3665_v3  ;;  %v14957_v26 = vand.u32 4294901760, %v3783_v6  ;;  %v3953_v12 = vsub.f32 %v14929_v33, %v14943_v35 }
 0x604   : > { %3927 = vmatprep.mubr.f32.mxu1 %v17989_v46  ;;  %4202 = vmatprep.mubr.f32.mxu0 %v17989_v46  ;;  %v13157_v10 = vpop.eup %13156  ;;  %18000 = vst [vmem:[#allocation41_spill] sm:$0xff] %v14964_v30  ;;  %v3786_v38 = vsel %vm1793_vm1, %v3709_v47, 0  ;;  %18001 = vst [vmem:[#allocation42_spill] sm:$0xff] %v14974_v39 }
 0x605   : > { %v13159_v11 = vpop.eup %13158  ;;  %17999 = vst [vmem:[#allocation40_spill] sm:$0xff] %v14957_v26  ;;  %v3710_v3 = vmul.f32 %v13157_v10, %v14756_v18  ;;  %v14978_v35 = vand.u32 4294901760, %v3953_v12  ;;  %v3964_v18 = vsub.f32 %v14946_v17, %v14964_v30  ;;  %v14983_v47 = vsub.f32 %v3783_v6, %v14957_v26 }
 0x606   : > { %v3711_v29 = vmul.f32 %v13159_v11, %v14761_v25  ;;  %v3975_v12 = vsub.f32 %v14955_v44, %v14974_v39  ;;  %v18007_v39 = vand.u32 4294901760, %v14730_v7 }
 0x607   : > { %3933 = vmatmul.mubr.f32.gmra.mrb[26].mxu1 %v14938_v62  ;;  %4204 = vmatmul.mubr.f32.gmra.mrb[30].mxu0 %v14898_v51  ;;  %v14976_v51 = vand.u32 4294901760, %v3786_v38  ;;  %v3789_v25 = vsel %vm1793_vm1, %v3710_v3, 0  ;;  %v14995_v6 = vand.u32 4294901760, %v3964_v18  ;;  %v14998_v3 = vand.u32 4294901760, %v14983_v47 }
 0x608   : > { %3938 = vmatprep.mubr.f32.mxu1 %v17989_v46  ;;  %4209 = vmatprep.mubr.f32.mxu0 %v17989_v46  ;;  %v3792_v11 = vsel %vm1793_vm1, %v3711_v29, 0  ;;  %v14993_v30 = vand.u32 4294901760, %v3789_v25  ;;  %v15012_v27 = vsub.f32 %v14730_v7, %v18007_v39  ;;  %v18009_v18 = vand.u32 4294901760, %v14735_v22 }
 0x609   : > { %18002 = vst [vmem:[#allocation43_spill] sm:$0xff] %v14976_v51  ;;  %18004 = vst [vmem:[#allocation45_spill] sm:$0xff] %v14998_v3  ;;  %v15001_v0 = vsub.f32 %v3786_v38, %v14976_v51  ;;  %v15033_v39 = vand.u32 4294901760, %v3975_v12 }
 0x60a   : > { %v13161_v10 = vpop.eup %13160  ;;  %18003 = vst [vmem:[#allocation44_spill] sm:$0xff] %v14993_v30  ;;  %18008 = vst [vmem:[#allocation47_spill] sm:$0xff] %v15012_v27  ;;  %v15019_v38 = vsub.f32 %v14735_v22, %v18009_v18  ;;  %v3986_v22 = vsub.f32 %v14983_v47, %v14998_v3  ;;  %v18022_v59 = vand.u32 4294901760, %v15012_v27 }
 0x60b   : > { %3944 = vmatmul.mubr.f32.gmra.mrb[28].mxu1 %v14959_v57  ;;  %4211 = vmatmul.mubr.f32.gmra.mrb[32].mxu0 %v14921_v53  ;;  %v3712_v29 = vmul.f32 %v13161_v10, %v14787_v63  ;;  %v15021_v63 = vand.u32 4294901760, %v3792_v11  ;;  %v15038_v18 = vand.u32 4294901760, %v15001_v0 }
 0x60c   : > { %3949 = vmatprep.mubr.f32.mxu1 %v17989_v46  ;;  %4216 = vmatprep.mubr.f32.mxu0 %v17989_v46 }
 0x60d   : > { %v13163_v53 = vpop.eup %13162  ;;  %18010 = vst [vmem:[#allocation48_spill] sm:$0xff] %v15021_v63  ;;  %18012 = vst [vmem:[#allocation49_spill] sm:$0xff] %v15038_v18 }
 0x60e   : > { %v3713_v10 = vmul.f32 %v13163_v53, %v14815_v55  ;;  %v15041_v55 = vsub.f32 %v3789_v25, %v14993_v30  ;;  %v3795_v53 = vsel %vm1793_vm1, %v3712_v29, 0  ;;  %v3997_v29 = vsub.f32 %v15001_v0, %v15038_v18 }
 0x60f   : > { %3955 = vmatmul.mubr.f32.gmra.mrb[30].mxu1 %v14978_v35  ;;  %4218 = vmatmul.mubr.f32.gmra.mrb[34].mxu0 %v14934_v49  ;;  %v18005_v49 = vand.u32 4294901760, %v14721_v1  ;;  %v15054_v25 = vand.u32 4294901760, %v3795_v53 }
 0x610   : > { %3960 = vmatprep.mubr.f32.mxu1 %v17989_v46  ;;  %4223 = vmatprep.mubr.f32.mxu0 %v17989_v46  ;;  %v3798_v12 = vsel %vm1793_vm1, %v3713_v10, 0 }
 0x611   : > { %v15007_v34 = vsub.f32 %v14721_v1, %v18005_v49  ;;  %v18011_v1 = vand.u32 4294901760, %v14747_v54  ;;  %18013 = vst [vmem:[#allocation50_spill] sm:$0xff] %v15054_v25  ;;  %v15056_v49 = vand.u32 4294901760, %v3986_v22  ;;  %v15065_v10 = vand.u32 4294901760, %v3798_v12 }
 0x613   : > { %18006 = vst [vmem:[#allocation46_spill] sm:$0xff] %v15007_v34  ;;  %3966 = vmatmul.mubr.f32.gmra.mrb[32].mxu1 %v14995_v6  ;;  %4225 = vmatmul.mubr.f32.gmra.mrb[36].mxu0 %v14957_v26  ;;  %v15029_v7 = vsub.f32 %v14747_v54, %v18011_v1  ;;  %v15052_v1 = vsub.f32 %v3792_v11, %v15021_v63  ;;  %18015 = vst [vmem:[#allocation52_spill] sm:$0xff] %v15065_v10  ;;  %v15069_v11 = vand.u32 4294901760, %v3997_v29 }
 0x614   : > { %3971 = vmatprep.mubr.f32.mxu1 %v17989_v46  ;;  %4230 = vmatprep.mubr.f32.mxu0 %v17989_v46  ;;  %v15077_v26 = vsub.f32 %v3795_v53, %v15054_v25  ;;  %v18018_v29 = vand.u32 4294901760, %v14698_v45  ;;  %v18021_v15 = vand.u32 4294901760, %v15007_v34 }
 0x615   : > { %v15074_v54 = vand.u32 4294901760, %v15052_v1 }
 0x616   : > { %v15089_v3 = vsub.f32 %v14698_v45, %v18018_v29  ;;  %v5354_v60 = vsub.f32 %v15007_v34, %v18021_v15 }
 0x617   : > { %3977 = vmatmul.mubr.f32.gmra.mrb[34].mxu1 %v15033_v39  ;;  %4232 = vmatmul.mubr.f32.gmra.mrb[38].mxu0 %v14976_v51  ;;  %v15061_v51 = vand.u32 4294901760, %v15041_v55  ;;  %18016 = vst [vmem:[#allocation53_spill] sm:$0xff] %v15074_v54 }
 0x618   : > { %3982 = vmatprep.mubr.f32.mxu1 %v17989_v46  ;;  %4237 = vmatprep.mubr.f32.mxu0 %v17989_v46  ;;  %v5355_v34 = vand.u32 4294901760, %v5354_v60 }
 0x619   : > { %18014 = vst [vmem:[#allocation51_spill] sm:$0xff] %v15061_v51  ;;  %v4008_v22 = vsub.f32 %v15041_v55, %v15061_v51  ;;  %v4019_v51 = vsub.f32 %v15052_v1, %v15074_v54  ;;  %v17797_v54 = vand.u32 4294901760, %v15019_v38 }
 0x61b   : > { %3988 = vmatmul.mubr.f32.gmra.mrb[36].mxu1 %v15056_v49  ;;  %4239 = vmatmul.mubr.f32.gmra.mrb[40].mxu0 %v14993_v30  ;;  %v18017_v30 = vand.u32 4294901760, %v14691_v4  ;;  %v15093_v53 = vand.u32 4294901760, %v4008_v22  ;;  %v15109_v22 = vand.u32 4294901760, %v4019_v51  ;;  %v5360_v15 = vsub.f32 %v15019_v38, %v17797_v54 }
 0x61c   : > { %3993 = vmatprep.mubr.f32.mxu1 %v17989_v46  ;;  %4244 = vmatprep.mubr.f32.mxu0 %v17989_v46 }
 0x61d   : > { %v15084_v18 = vsub.f32 %v14691_v4, %v18017_v30  ;;  %v15101_v4 = vsub.f32 %v3798_v12, %v15065_v10  ;;  %v17789_v30 = vand.u32 4294901760, %v15089_v3 }
 0x61f   : > { %3999 = vmatmul.mubr.f32.gmra.mrb[38].mxu1 %v15069_v11  ;;  %4246 = vmatmul.mubr.f32.gmra.mrb[42].mxu0 %v15021_v63  ;;  %v15098_v63 = vand.u32 4294901760, %v15077_v26  ;;  %v17788_v45 = vand.u32 4294901760, %v15084_v18  ;;  %v15114_v12 = vand.u32 4294901760, %v15101_v4 }
 0x620   : > { %4004 = vmatprep.mubr.f32.mxu1 %v17989_v46  ;;  %4251 = vmatprep.mubr.f32.mxu0 %v17989_v46 }
 0x621   : > { %18019 = vst [vmem:[#allocation54_spill] sm:$0xff] %v15098_v63  ;;  %v4030_v29 = vsub.f32 %v15077_v26, %v15098_v63  ;;  %18020 = vst [vmem:[#allocation55_spill] sm:$0xff] %v15114_v12  ;;  %v5336_v51 = vsub.f32 %v15084_v18, %v17788_v45  ;;  %v5348_v63 = vsub.f32 %v15089_v3, %v17789_v30 }
 0x622   : > { %v5366_v45 = vsub.f32 %v15012_v27, %v18022_v59  ;;  %v18024_v27 = vand.u32 4294901760, %v14539_v19 }
 0x623   : > { %4010 = vmatmul.mubr.f32.gmra.mrb[40].mxu1 %v15093_v53  ;;  %4253 = vmatmul.mubr.f32.gmra.mrb[44].mxu0 %v15054_v25  ;;  %v15128_v8 = vand.u32 4294901760, %v4030_v29  ;;  %v4041_v25 = vsub.f32 %v15101_v4, %v15114_v12  ;;  %v5337_v29 = vand.u32 4294901760, %v5336_v51  ;;  %v18023_v12 = vand.u32 4294901760, %v15029_v7 }
 0x624   : > { %4015 = vmatprep.mubr.f32.mxu1 %v17989_v46  ;;  %4258 = vmatprep.mubr.f32.mxu0 %v17989_v46 }
 0x625   : > { %v15144_v30 = vand.u32 4294901760, %v4041_v25  ;;  %v5372_v59 = vsub.f32 %v15029_v7, %v18023_v12  ;;  %v18025_v25 = vand.u32 4294901760, %v14541_v21  ;;  %v5361_v12 = vand.u32 4294901760, %v5360_v15  ;;  %v18051_v15 = vld [vmem:[#allocation41_spill] sm:$0xff] }
 0x626   : > { %v11571_v21 = vpack.c.bf16 %v14623_v14, %v14621_v24 }
 0x627   : > { %4021 = vmatmul.mubr.f32.gmra.mrb[42].mxu1 %v15109_v22  ;;  %4260 = vmatmul.mubr.f32.gmra.mrb[46].mxu0 %v15065_v10  ;;  %v5349_v10 = vand.u32 4294901760, %v5348_v63  ;;  %v11539_v51 = vpack.c.bf16 %v18025_v25, %v18024_v27  ;;  %v5373_v54 = vand.u32 4294901760, %v5372_v59  ;;  %v18029_v27 = vand.u32 4294901760, %v14571_v28  ;;  %v18033_v28 = vld [vmem:[#allocation17_spill] sm:$0xff]  ;;  %v18052_v59 = vld [vmem:[#allocation32_spill] sm:$0xff]  ;;  %v18053_v25 = vld [vmem:[#allocation42_spill] sm:$0xff] }
 0x628   : > { %4026 = vmatprep.mubr.f32.mxu1 %v17989_v46  ;;  %4346 = vmatprep.mubr.f32.mxu0 %v17989_v46 }
 0x629   : > { %v11565_v63 = vpack.c.bf16 %v5349_v10, %v5337_v29  ;;  %v11569_v19 = vpack.c.bf16 %v5373_v54, %v5361_v12  ;;  %v18043_v54 = vld [vmem:[#allocation33_spill] sm:$0xff]  ;;  %v18050_v29 = vld [vmem:[#allocation30_spill] sm:$0xff]  ;;  %v18056_v12 = vld [vmem:[#allocation36_spill] sm:$0xff] }
 0x62a   : > { %v18044_v10 = vld [vmem:[#allocation25_spill] sm:$0xff] }
 0x62b   : > { %4032 = vmatmul.mubr.f32.gmra.mrb[44].mxu1 %v15128_v8  ;;  %4349 = vmatmul.mubr.f32.vlgmr.msra.gmra.mrb[16].mxu0 %v14795_v23  ;;  %v5367_v23 = vand.u32 4294901760, %v5366_v45  ;;  %v18047_v45 = vld [vmem:[#allocation37_spill] sm:$0xff] }
 0x62c   : > { %4037 = vmatprep.mubr.f32.mxu1 %v17989_v46  ;;  %4354 = vmatprep.mubr.f32.mxu0 %v17989_v46 }
 0x62d   : > { %11534 = vmatpush1.bf16.msra.mxu0 %v14601_v20  ;;  %v11567_v60 = vpack.c.bf16 %v5367_v23, %v5355_v34  ;;  %v18026_v34 = vand.u32 4294901760, %v14543_v32  ;;  %v18027_v23 = vand.u32 4294901760, %v14545_v41  ;;  %v18031_v32 = vand.u32 4294901760, %v14581_v2  ;;  %v18036_v2 = vld [vmem:[#allocation47_spill] sm:$0xff] }
 0x62e   : > { %11536 = vmatprep.subr.bf16.mxu0 %v14607_v16 }
 0x62f   : > { %4043 = vmatmul.mubr.f32.gmra.mrb[46].mxu1 %v15144_v30  ;;  %4357 = vmatmul.mubr.f32.gmra.mrb[18].mxu0 %v14790_v48 }
 0x630   : > { %4362 = vmatprep.mubr.f32.mxu0 %v17989_v46  ;;  %5150 = vmatprep.mubr.f32.mxu1 %v17989_v46 }
 0x631   : > { %11538 = vmatpush1.bf16.msra.mxu0 %v14609_v52 }
 0x632   : > { %11540 = vmatprep.subr.bf16.mxu0 %v11539_v51  ;;  %v18054_v51 = vld [vmem:[#allocation34_spill] sm:$0xff] }
 0x633   : > { %4365 = vmatmul.mubr.f32.gmra.mrb[20].mxu0 %v14825_v9  ;;  %5156 = vmatmul.mubr.f32.vlgmr.msra.gmra.mrb[48].mxu1 %v14843_v5  ;;  %v11541_v5 = vpack.c.bf16 %v18027_v23, %v18026_v34  ;;  %v6377_v34 = vld [vmem:[%s18060_s28 + $0x28] sm:$0xff]  ;;  %v18061_v23 = vld [vmem:[#allocation51_spill] sm:$0xff] }
 0x634   : > { %4370 = vmatprep.mubr.f32.mxu0 %v17989_v46  ;;  %5161 = vmatprep.mubr.f32.mxu1 %v17989_v46 }
 0x635   : > { %11566 = vmatpush1.bf16.msra.mxu1 %v11565_v63  ;;  %v18055_v63 = vld [vmem:[#allocation45_spill] sm:$0xff] }
 0x636   : > { %11568 = vmatprep.subr.bf16.mxu1 %v11567_v60  ;;  %v18057_v60 = vld [vmem:[#allocation49_spill] sm:$0xff] }
 0x637   : > { %4373 = vmatmul.mubr.f32.gmra.mrb[22].mxu0 %v14832_v58  ;;  %5167 = vmatmul.mubr.f32.gmra.mrb[50].mxu1 %v14864_v36  ;;  %v18028_v36 = vand.u32 4294901760, %v14569_v40  ;;  %v11573_v40 = vpack.c.bf16 %v15089_v3, %v15084_v18 }
 0x638   : > { %4378 = vmatprep.mubr.f32.mxu0 %v17989_v46  ;;  %5172 = vmatprep.mubr.f32.mxu1 %v17989_v46 }
 0x639   : > { %11570 = vmatpush1.bf16.msra.mxu1 %v11569_v19  ;;  %v18058_v19 = vld [vmem:[#allocation38_spill] sm:$0xff] }
 0x63a   : > { %11572 = vmatprep.subr.bf16.mxu1 %v11571_v21  ;;  %v6373_v21 = vld [vmem:[%s18059_s21 + $0x8] sm:$0xff]  ;;  %s17610_s21 = scalar_lea.hbm %s18557_s19, %s10570_s15 }
 0x63b   : > { %4381 = vmatmul.mubr.f32.gmra.mrb[24].mxu0 %v14873_v37  ;;  %5178 = vmatmul.mubr.f32.gmra.mrb[52].mxu1 %v14887_v61  ;;  %v11543_v61 = vpack.c.bf16 %v18029_v27, %v18028_v36  ;;  %v6453_v36 = vand.u32 4294901760, %v6373_v21  ;;  %v6457_v27 = vand.u32 4294901760, %v6377_v34 }
 0x63c   : > { %4386 = vmatprep.mubr.f32.mxu0 %v17989_v46  ;;  %5183 = vmatprep.mubr.f32.mxu1 %v17989_v46 }
 0x63f   : > { %4389 = vmatmul.mubr.f32.gmra.mrb[26].mxu0 %v14883_v50  ;;  %5189 = vmatmul.mubr.f32.gmra.mrb[54].mxu1 %v14906_v31  ;;  %v18032_v31 = vld [vmem:[#allocation24_spill] sm:$0xff] }
 0x640   : > { %4394 = vmatprep.mubr.f32.mxu0 %v17989_v46  ;;  %5194 = vmatprep.mubr.f32.mxu1 %v17989_v46 }
 0x643   : > { %4397 = vmatmul.mubr.f32.gmra.mrb[28].mxu0 %v14911_v42  ;;  %5200 = vmatmul.mubr.f32.gmra.mrb[56].mxu1 %v14923_v43  ;;  %v18037_v43 = vld [vmem:[#allocation46_spill] sm:$0xff] }
 0x644   : > { %4402 = vmatprep.mubr.f32.mxu0 %v17989_v46  ;;  %5205 = vmatprep.mubr.f32.mxu1 %v17989_v46 }
 0x647   : > { %4405 = vmatmul.mubr.f32.gmra.mrb[30].mxu0 %v14929_v33  ;;  %5211 = vmatmul.mubr.f32.gmra.mrb[58].mxu1 %v14938_v62  ;;  %v18039_v62 = vld [vmem:[#allocation31_spill] sm:$0xff] }
 0x648   : > { %4410 = vmatprep.mubr.f32.mxu0 %v17989_v46  ;;  %5216 = vmatprep.mubr.f32.mxu1 %v17989_v46 }
 0x64b   : > { %4413 = vmatmul.mubr.f32.gmra.mrb[32].mxu0 %v14946_v17  ;;  %5222 = vmatmul.mubr.f32.gmra.mrb[60].mxu1 %v14959_v57  ;;  %v18038_v57 = vpack.c.bf16 %v18036_v2, %v18037_v43 }
 0x64c   : > { %4418 = vmatprep.mubr.f32.mxu0 %v17989_v46  ;;  %5227 = vmatprep.mubr.f32.mxu1 %v17989_v46 }
 0x64f   : > { %4421 = vmatmul.mubr.f32.gmra.mrb[34].mxu0 %v14955_v44  ;;  %5233 = vmatmul.mubr.f32.gmra.mrb[62].mxu1 %v14978_v35  ;;  %v18030_v35 = vand.u32 4294901760, %v14579_v13  ;;  %v18035_v13 = vld [vmem:[#allocation21_spill] sm:$0xff] }
 0x650   : > { %4426 = vmatprep.mubr.f32.mxu0 %v17989_v46  ;;  %5238 = vmatprep.mubr.f32.mxu1 %v17989_v46 }
 0x651   : > { %v11545_v41 = vpack.c.bf16 %v18031_v32, %v18030_v35  ;;  %v15303_v35 = vsub.f32 %v6377_v34, %v6457_v27  ;;  %v18065_v32 = vld [vmem:[#allocation53_spill] sm:$0xff]  ;;  %v15323_v34 = vpack.c.bf16 %v6457_v27, %v6453_v36  ;;  %v18078_v27 = vand.u32 4294901760, %v14623_v14 }
 0x653   : > { %4429 = vmatmul.mubr.f32.gmra.mrb[36].mxu0 %v14983_v47  ;;  %5244 = vmatmul.mubr.f32.gmra.mrb[64].mxu1 %v14995_v6  ;;  %v18040_v6 = vld [vmem:[#allocation20_spill] sm:$0xff]  ;;  %18064 = vst [vmem:[#allocation17_spill] sm:$0xff] %v15303_v35 }
 0x654   : > { %4434 = vmatprep.mubr.f32.mxu0 %v17989_v46  ;;  %5249 = vmatprep.mubr.f32.mxu1 %v17989_v46 }
 0x657   : > { %4437 = vmatmul.mubr.f32.gmra.mrb[38].mxu0 %v15001_v0  ;;  %5255 = vmatmul.mubr.f32.gmra.mrb[66].mxu1 %v15033_v39  ;;  %v18042_v39 = vld [vmem:[#allocation18_spill] sm:$0xff] }
 0x658   : > { %4442 = vmatprep.mubr.f32.mxu0 %v17989_v46  ;;  %5260 = vmatprep.mubr.f32.mxu1 %v17989_v46 }
 0x65b   : > { %4445 = vmatmul.mubr.f32.gmra.mrb[40].mxu0 %v15041_v55  ;;  %5266 = vmatmul.mubr.f32.gmra.mrb[68].mxu1 %v15056_v49  ;;  %v18041_v49 = vpack.c.bf16 %v15029_v7, %v15019_v38 }
 0x65c   : > { %4450 = vmatprep.mubr.f32.mxu0 %v17989_v46  ;;  %5271 = vmatprep.mubr.f32.mxu1 %v17989_v46 }
 0x65f   : > { %4453 = vmatmul.mubr.f32.gmra.mrb[42].mxu0 %v15052_v1  ;;  %5277 = vmatmul.mubr.f32.gmra.mrb[70].mxu1 %v15069_v11  ;;  %v18045_v11 = vld [vmem:[#allocation35_spill] sm:$0xff] }
 0x660   : > { %4458 = vmatprep.mubr.f32.mxu0 %v17989_v46  ;;  %5282 = vmatprep.mubr.f32.mxu1 %v17989_v46 }
 0x663   : > { %4461 = vmatmul.mubr.f32.gmra.mrb[44].mxu0 %v15077_v26  ;;  %5288 = vmatmul.mubr.f32.gmra.mrb[72].mxu1 %v15093_v53  ;;  %v18046_v53 = vld [vmem:[#allocation23_spill] sm:$0xff] }
 0x664   : > { %4466 = vmatprep.mubr.f32.mxu0 %v17989_v46  ;;  %5293 = vmatprep.mubr.f32.mxu1 %v17989_v46 }
 0x667   : > { %4469 = vmatmul.mubr.f32.gmra.mrb[46].mxu0 %v15101_v4  ;;  %5299 = vmatmul.mubr.f32.gmra.mrb[74].mxu1 %v15109_v22  ;;  %v18049_v22 = vld [vmem:[#allocation39_spill] sm:$0xff] }
 0x668   : > { %4547 = vmatprep.mubr.f32.mxu0 %v17989_v46  ;;  %5304 = vmatprep.mubr.f32.mxu1 %v17989_v46 }
 0x66b   : > { %4551 = vmatmul.mubr.f32.vlgmr.msra.gmra.mrb[16].mxu0 %v14811_v56  ;;  %5310 = vmatmul.mubr.f32.gmra.mrb[76].mxu1 %v15128_v8  ;;  %v18034_v8 = vld [vmem:[#allocation28_spill] sm:$0xff] }
 0x66c   : > { %4556 = vmatprep.mubr.f32.mxu0 %v17989_v46  ;;  %5315 = vmatprep.mubr.f32.mxu1 %v17989_v46  ;;  %18072 = vst [vmem:[#allocation28_spill] sm:$0xff] %v15323_v34 }
 0x66d   : > { %11542 = vmatpush1.bf16.msra.mxu0 %v11541_v5  ;;  %v18062_v5 = vld [vmem:[#allocation40_spill] sm:$0xff] }
 0x66e   : > { %11544 = vmatprep.subr.bf16.mxu0 %v11543_v61  ;;  %v15301_v61 = vsub.f32 %v6373_v21, %v6453_v36  ;;  %v18071_v21 = vld [vmem:[#allocation50_spill] sm:$0xff]  ;;  %v18077_v36 = vand.u32 4294901760, %v14621_v24 }
 0x66f   : > { %4560 = vmatmul.mubr.f32.gmra.mrb[18].mxu0 %v18032_v31  ;;  %5321 = vmatmul.mubr.f32.gmra.mrb[78].mxu1 %v15144_v30  ;;  %v18048_v30 = vld [vmem:[#allocation27_spill] sm:$0xff] }
 0x670   : > { %4565 = vmatprep.mubr.f32.mxu0 %v17989_v46  ;;  %5431 = vmatprep.mubr.f32.mxu1 %v17989_v46  ;;  %18063 = vst [vmem:[#allocation24_spill] sm:$0xff] %v15301_v61 }
 0x671   : > { %11546 = vmatpush1.bf16.msra.mxu0 %v11545_v41  ;;  %v18066_v41 = vld [vmem:[#allocation43_spill] sm:$0xff] }
 0x672   : > { %11548 = vmatprep.subr.bf16.mxu0 %v18033_v28  ;;  %v18068_v28 = vld [vmem:[#allocation44_spill] sm:$0xff] }
 0x673   : > { %4569 = vmatmul.mubr.f32.gmra.mrb[20].mxu0 %v18034_v8  ;;  %5433 = vmatmul.mubr.f32.vlgmr.msra.gmra.mrb[48].mxu1 %v18035_v13 }
 0x674   : > { %4574 = vmatprep.mubr.f32.mxu0 %v17989_v46  ;;  %5438 = vmatprep.mubr.f32.mxu1 %v17989_v46 }
 0x675   : > { %11574 = vmatpush1.bf16.msra.mxu1 %v11573_v40  ;;  %v18067_v40 = vld [vmem:[#allocation54_spill] sm:$0xff] }
 0x676   : > { %11576 = vmatprep.subr.bf16.mxu1 %v18038_v57  ;;  %v18069_v57 = vld [vmem:[#allocation55_spill] sm:$0xff] }
 0x677   : > { %4578 = vmatmul.mubr.f32.gmra.mrb[22].mxu0 %v18039_v62  ;;  %5440 = vmatmul.mubr.f32.gmra.mrb[50].mxu1 %v18040_v6 }
 0x678   : > { %4583 = vmatprep.mubr.f32.mxu0 %v17989_v46  ;;  %5445 = vmatprep.mubr.f32.mxu1 %v17989_v46 }
 0x679   : > { %11578 = vmatpush1.bf16.msra.mxu1 %v18041_v49  ;;  %v18070_v49 = vld [vmem:[#allocation48_spill] sm:$0xff] }
 0x67a   : > { %11580 = vmatprep.subr.bf16.mxu1 %v18042_v39 }
 0x67b   : > { %4587 = vmatmul.mubr.f32.gmra.mrb[24].mxu0 %v18043_v54  ;;  %5447 = vmatmul.mubr.f32.gmra.mrb[52].mxu1 %v18044_v10 }
 0x67c   : > { %4592 = vmatprep.mubr.f32.mxu0 %v17989_v46  ;;  %5452 = vmatprep.mubr.f32.mxu1 %v17989_v46 }
 0x67f   : > { %4596 = vmatmul.mubr.f32.gmra.mrb[26].mxu0 %v18045_v11  ;;  %5454 = vmatmul.mubr.f32.gmra.mrb[54].mxu1 %v18046_v53 }
 0x680   : > { %4601 = vmatprep.mubr.f32.mxu0 %v17989_v46  ;;  %5459 = vmatprep.mubr.f32.mxu1 %v17989_v46 }
 0x683   : > { %4605 = vmatmul.mubr.f32.gmra.mrb[28].mxu0 %v18047_v45  ;;  %5461 = vmatmul.mubr.f32.gmra.mrb[56].mxu1 %v18048_v30 }
 0x684   : > { %4610 = vmatprep.mubr.f32.mxu0 %v17989_v46  ;;  %5466 = vmatprep.mubr.f32.mxu1 %v17989_v46 }
 0x687   : > { %4614 = vmatmul.mubr.f32.gmra.mrb[30].mxu0 %v18049_v22  ;;  %5468 = vmatmul.mubr.f32.gmra.mrb[58].mxu1 %v18050_v29 }
 0x688   : > { %4619 = vmatprep.mubr.f32.mxu0 %v17989_v46  ;;  %5473 = vmatprep.mubr.f32.mxu1 %v17989_v46 }
 0x68b   : > { %4623 = vmatmul.mubr.f32.gmra.mrb[32].mxu0 %v18051_v15  ;;  %5475 = vmatmul.mubr.f32.gmra.mrb[60].mxu1 %v18052_v59 }
 0x68c   : > { %4628 = vmatprep.mubr.f32.mxu0 %v17989_v46  ;;  %5480 = vmatprep.mubr.f32.mxu1 %v17989_v46 }
 0x68f   : > { %4632 = vmatmul.mubr.f32.gmra.mrb[34].mxu0 %v18053_v25  ;;  %5482 = vmatmul.mubr.f32.gmra.mrb[62].mxu1 %v18054_v51 }
 0x690   : > { %4637 = vmatprep.mubr.f32.mxu0 %v17989_v46  ;;  %5487 = vmatprep.mubr.f32.mxu1 %v17989_v46 }
 0x693   : > { %4641 = vmatmul.mubr.f32.gmra.mrb[36].mxu0 %v18055_v63  ;;  %5489 = vmatmul.mubr.f32.gmra.mrb[64].mxu1 %v18056_v12 }
 0x694   : > { %4646 = vmatprep.mubr.f32.mxu0 %v17989_v46  ;;  %5494 = vmatprep.mubr.f32.mxu1 %v17989_v46 }
 0x697   : > { %4650 = vmatmul.mubr.f32.gmra.mrb[38].mxu0 %v18057_v60  ;;  %5496 = vmatmul.mubr.f32.gmra.mrb[66].mxu1 %v18058_v19 }
 0x698   : > { %4655 = vmatprep.mubr.f32.mxu0 %v17989_v46  ;;  %5501 = vmatprep.mubr.f32.mxu1 %v17989_v46 }
 0x69b   : > { %4659 = vmatmul.mubr.f32.gmra.mrb[40].mxu0 %v18061_v23  ;;  %5503 = vmatmul.mubr.f32.gmra.mrb[68].mxu1 %v18062_v5 }
 0x69c   : > { %4664 = vmatprep.mubr.f32.mxu0 %v17989_v46  ;;  %5508 = vmatprep.mubr.f32.mxu1 %v17989_v46 }
 0x69f   : > { %4668 = vmatmul.mubr.f32.gmra.mrb[42].mxu0 %v18065_v32  ;;  %5510 = vmatmul.mubr.f32.gmra.mrb[70].mxu1 %v18066_v41  ;;  %v11587_v32 = vpack.c.bf16 %v18078_v27, %v18077_v36 }
 0x6a0   : > { %4673 = vmatprep.mubr.f32.mxu0 %v17989_v46  ;;  %5515 = vmatprep.mubr.f32.mxu1 %v17989_v46 }
 0x6a3   : > { %4677 = vmatmul.mubr.f32.gmra.mrb[44].mxu0 %v18067_v40  ;;  %5517 = vmatmul.mubr.f32.gmra.mrb[72].mxu1 %v18068_v28  ;;  %v18074_v40 = vld [vmem:[#allocation22_spill] sm:$0xff] }
 0x6a4   : > { %4682 = vmatprep.mubr.f32.mxu0 %v17989_v46  ;;  %5522 = vmatprep.mubr.f32.mxu1 %v17989_v46 }
 0x6a7   : > { %4686 = vmatmul.mubr.f32.gmra.mrb[46].mxu0 %v18069_v57  ;;  %5524 = vmatmul.mubr.f32.gmra.mrb[74].mxu1 %v18070_v49  ;;  %v18073_v57 = vld [vmem:[#allocation52_spill] sm:$0xff] }
 0x6a8   : > { %4780 = vmatprep.mubr.f32.mxu0 %v17989_v46  ;;  %5529 = vmatprep.mubr.f32.mxu1 %v17989_v46 }
 0x6ab   : > { %4782 = vmatmul.mubr.f32.vlgmr.msra.gmra.mrb[16].mxu0 %v18035_v13  ;;  %5531 = vmatmul.mubr.f32.gmra.mrb[76].mxu1 %v18071_v21 }
 0x6ac   : > { %4787 = vmatprep.mubr.f32.mxu0 %v17989_v46  ;;  %5536 = vmatprep.mubr.f32.mxu1 %v17989_v46 }
 0x6ad   : > { %11550 = vmatpush1.bf16.msra.mxu0 %v14601_v20  ;;  %v18075_v20 = vld [vmem:[#allocation19_spill] sm:$0xff] }
 0x6ae   : > { %11552 = vmatprep.subr.bf16.mxu0 %v14607_v16  ;;  %v18076_v16 = vld [vmem:[#allocation26_spill] sm:$0xff] }
 0x6af   : > { %4789 = vmatmul.mubr.f32.gmra.mrb[18].mxu0 %v18040_v6  ;;  %5538 = vmatmul.mubr.f32.gmra.mrb[78].mxu1 %v18073_v57 }
 0x6b0   : > { %4794 = vmatprep.mubr.f32.mxu0 %v17989_v46  ;;  %5624 = vmatprep.mubr.f32.mxu1 %v17989_v46 }
 0x6b1   : > { %11554 = vmatpush1.bf16.msra.mxu0 %v14609_v52  ;;  %v18079_v52 = vld [vmem:[#allocation29_spill] sm:$0xff] }
 0x6b2   : > { %11604 = vmatprep.subr.bf16.mxu0 %v15323_v34 }
 0x6b3   : > { %4796 = vmatmul.mubr.f32.gmra.mrb[20].mxu0 %v18044_v10  ;;  %5627 = vmatmul.mubr.f32.vlgmr.msra.gmra.mrb[48].mxu1 %v18074_v40 }
 0x6b4   : > { %4801 = vmatprep.mubr.f32.mxu0 %v17989_v46  ;;  %5632 = vmatprep.mubr.f32.mxu1 %v17989_v46 }
 0x6b5   : > { %11582 = vmatpush1.bf16.msra.mxu1 %v18075_v20  ;;  %v18115_v20 = vand.u32 4294901760, %v15084_v18  ;;  %v18122_v18 = vand.u32 4294901760, %v18036_v2  ;;  %v15597_v2 = vld [vmem:[%s18060_s28 + $0x18] sm:$0xff] }
 0x6b6   : > { %11584 = vmatprep.subr.bf16.mxu1 %v18076_v16 }
 0x6b7   : > { %4803 = vmatmul.mubr.f32.gmra.mrb[22].mxu0 %v18046_v53  ;;  %5635 = vmatmul.mubr.f32.gmra.mrb[50].mxu1 %v14790_v48 }
 0x6b8   : > { %4808 = vmatprep.mubr.f32.mxu0 %v17989_v46  ;;  %5640 = vmatprep.mubr.f32.mxu1 %v17989_v46 }
 0x6b9   : > { %11586 = vmatpush1.bf16.msra.mxu1 %v18079_v52  ;;  %v18113_v52 = vand.u32 4294901760, %v15303_v35 }
 0x6ba   : > { %11588 = vmatprep.subr.bf16.mxu1 %v11587_v32 }
 0x6bb   : > { %4810 = vmatmul.mubr.f32.gmra.mrb[24].mxu0 %v18048_v30  ;;  %5643 = vmatmul.mubr.f32.gmra.mrb[52].mxu1 %v14825_v9 }
 0x6bc   : > { %4815 = vmatprep.mubr.f32.mxu0 %v17989_v46  ;;  %5648 = vmatprep.mubr.f32.mxu1 %v17989_v46 }
 0x6bf   : > { %4817 = vmatmul.mubr.f32.gmra.mrb[26].mxu0 %v18050_v29  ;;  %5651 = vmatmul.mubr.f32.gmra.mrb[54].mxu1 %v14832_v58 }
 0x6c0   : > { %4822 = vmatprep.mubr.f32.mxu0 %v17989_v46  ;;  %5656 = vmatprep.mubr.f32.mxu1 %v17989_v46 }
 0x6c3   : > { %4824 = vmatmul.mubr.f32.gmra.mrb[28].mxu0 %v18052_v59  ;;  %5659 = vmatmul.mubr.f32.gmra.mrb[56].mxu1 %v14873_v37 }
 0x6c4   : > { %4829 = vmatprep.mubr.f32.mxu0 %v17989_v46  ;;  %5664 = vmatprep.mubr.f32.mxu1 %v17989_v46 }
 0x6c6   : > { %v15358_v24 = vpop.f32.mrb[16].mxu1 }
 0x6c7   : > { %18080 = vst [vmem:[#allocation21_spill] sm:$0xff] %v15358_v24  ;;  %v15360_v14 = vpop.f32.mrb[17].mxu1  ;;  %4831 = vmatmul.mubr.f32.gmra.mrb[30].mxu0 %v18054_v51  ;;  %5667 = vmatmul.mubr.f32.gmra.mrb[58].mxu1 %v14883_v50 }
 0x6c8   : > { %18081 = vst [vmem:[#allocation47_spill] sm:$0xff] %v15360_v14  ;;  %4836 = vmatprep.mubr.f32.mxu0 %v17989_v46  ;;  %5672 = vmatprep.mubr.f32.mxu1 %v17989_v46 }
 0x6ca   : > { %v15366_v48 = vpop.f32.mrb[18].mxu1 }
 0x6cb   : > { %18082 = vst [vmem:[#allocation46_spill] sm:$0xff] %v15366_v48  ;;  %v15368_v9 = vpop.f32.mrb[19].mxu1  ;;  %4838 = vmatmul.mubr.f32.gmra.mrb[32].mxu0 %v18056_v12  ;;  %5675 = vmatmul.mubr.f32.gmra.mrb[60].mxu1 %v14911_v42 }
 0x6cc   : > { %18083 = vst [vmem:[#allocation31_spill] sm:$0xff] %v15368_v9  ;;  %4843 = vmatprep.mubr.f32.mxu0 %v17989_v46  ;;  %5680 = vmatprep.mubr.f32.mxu1 %v17989_v46 }
 0x6ce   : > { %v15374_v58 = vpop.f32.mrb[20].mxu1 }
 0x6cf   : > { %18084 = vst [vmem:[#allocation18_spill] sm:$0xff] %v15374_v58  ;;  %v15376_v37 = vpop.f32.mrb[21].mxu1  ;;  %4845 = vmatmul.mubr.f32.gmra.mrb[34].mxu0 %v18058_v19  ;;  %5683 = vmatmul.mubr.f32.gmra.mrb[62].mxu1 %v14929_v33 }
 0x6d0   : > { %18085 = vst [vmem:[#allocation33_spill] sm:$0xff] %v15376_v37  ;;  %4850 = vmatprep.mubr.f32.mxu0 %v17989_v46  ;;  %5688 = vmatprep.mubr.f32.mxu1 %v17989_v46 }
 0x6d2   : > { %v15382_v50 = vpop.f32.mrb[22].mxu1 }
 0x6d3   : > { %18086 = vst [vmem:[#allocation25_spill] sm:$0xff] %v15382_v50  ;;  %v15384_v32 = vpop.f32.mrb[23].mxu1  ;;  %4852 = vmatmul.mubr.f32.gmra.mrb[36].mxu0 %v18062_v5  ;;  %5691 = vmatmul.mubr.f32.gmra.mrb[64].mxu1 %v14946_v17 }
 0x6d4   : > { %18087 = vst [vmem:[#allocation35_spill] sm:$0xff] %v15384_v32  ;;  %4857 = vmatprep.mubr.f32.mxu0 %v17989_v46  ;;  %5696 = vmatprep.mubr.f32.mxu1 %v17989_v46  ;;  %v15456_v32 = vld [vmem:[%s18060_s28 + $0x60] sm:$0xff] }
 0x6d6   : > { %v15390_v42 = vpop.f32.mrb[24].mxu1 }
 0x6d7   : > { %18088 = vst [vmem:[#allocation23_spill] sm:$0xff] %v15390_v42  ;;  %v15392_v40 = vpop.f32.mrb[25].mxu1  ;;  %4859 = vmatmul.mubr.f32.gmra.mrb[38].mxu0 %v18066_v41  ;;  %5699 = vmatmul.mubr.f32.gmra.mrb[66].mxu1 %v14955_v44  ;;  %v15417_v44 = vld [vmem:[%s18060_s28] sm:$0xff] }
 0x6d8   : > { %18089 = vst [vmem:[#allocation37_spill] sm:$0xff] %v15392_v40  ;;  %4864 = vmatprep.mubr.f32.mxu0 %v17989_v46  ;;  %5704 = vmatprep.mubr.f32.mxu1 %v17989_v46  ;;  %v18098_v42 = vand.u32 4294901760, %v15417_v44 }
 0x6da   : > { %v15398_v33 = vpop.f32.mrb[26].mxu1 }
 0x6db   : > { %18090 = vst [vmem:[#allocation27_spill] sm:$0xff] %v15398_v33  ;;  %v15400_v36 = vpop.f32.mrb[27].mxu1  ;;  %4866 = vmatmul.mubr.f32.gmra.mrb[40].mxu0 %v18068_v28  ;;  %5707 = vmatmul.mubr.f32.gmra.mrb[68].mxu1 %v14983_v47  ;;  %v15422_v47 = vld [vmem:[%s18060_s28 + $0x20] sm:$0xff] }
 0x6dc   : > { %18091 = vst [vmem:[#allocation39_spill] sm:$0xff] %v15400_v36  ;;  %4871 = vmatprep.mubr.f32.mxu0 %v17989_v46  ;;  %5712 = vmatprep.mubr.f32.mxu1 %v17989_v46  ;;  %v15438_v36 = vld [vmem:[%s18060_s28 + $0x68] sm:$0xff]  ;;  %v18099_v40 = vand.u32 4294901760, %v15422_v47 }
 0x6dd   : > { %v18103_v14 = vand.u32 4294901760, %v15438_v36 }
 0x6de   : > { %v15406_v17 = vpop.f32.mrb[28].mxu1  ;;  %v15478_v50 = vpack.c.bf16 %v18099_v40, %v18098_v42  ;;  %v15495_v42 = vld [vmem:[%s18060_s28 + $0x80] sm:$0xff] }
 0x6df   : > { %18092 = vst [vmem:[#allocation30_spill] sm:$0xff] %v15406_v17  ;;  %v15408_v27 = vpop.f32.mrb[29].mxu1  ;;  %4873 = vmatmul.mubr.f32.gmra.mrb[42].mxu0 %v18070_v49  ;;  %5715 = vmatmul.mubr.f32.gmra.mrb[70].mxu1 %v15001_v0  ;;  %v15433_v0 = vld [vmem:[%s18060_s28 + $0x48] sm:$0xff]  ;;  %v15500_v40 = vld [vmem:[%s18060_s28 + $0xa0] sm:$0xff] }
 0x6e0   : > { %18093 = vst [vmem:[#allocation41_spill] sm:$0xff] %v15408_v27  ;;  %4878 = vmatprep.mubr.f32.mxu0 %v17989_v46  ;;  %5720 = vmatprep.mubr.f32.mxu1 %v17989_v46  ;;  %18100 = vst [vmem:[#allocation36_spill] sm:$0xff] %v15478_v50 }
 0x6e2   : > { %v15424_v17 = vpop.f32.mrb[30].mxu1 }
 0x6e3   : > { %18094 = vst [vmem:[#allocation32_spill] sm:$0xff] %v15424_v17  ;;  %v15426_v27 = vpop.f32.mrb[31].mxu1  ;;  %4880 = vmatmul.mubr.f32.gmra.mrb[44].mxu0 %v18071_v21  ;;  %5723 = vmatmul.mubr.f32.gmra.mrb[72].mxu1 %v15041_v55  ;;  %v15447_v55 = vld [vmem:[%s18060_s28 + $0x40] sm:$0xff]  ;;  %v15461_v17 = vld [vmem:[%s18060_s28 + $0x88] sm:$0xff] }
 0x6e4   : > { %18095 = vst [vmem:[#allocation42_spill] sm:$0xff] %v15426_v27  ;;  %4885 = vmatprep.mubr.f32.mxu0 %v17989_v46  ;;  %5728 = vmatprep.mubr.f32.mxu1 %v17989_v46  ;;  %v15466_v27 = vld [vmem:[%s18060_s28 + $0xa8] sm:$0xff]  ;;  %v17802_v37 = vand.u32 4294901760, %v15447_v55  ;;  %v18108_v9 = vand.u32 4294901760, %v15461_v17 }
 0x6e6   : > { %v15449_v33 = vpop.f32.mrb[32].mxu1 }
 0x6e7   : > { %18096 = vst [vmem:[#allocation34_spill] sm:$0xff] %v15449_v33  ;;  %v15468_v33 = vpop.f32.mrb[33].mxu1  ;;  %4887 = vmatmul.mubr.f32.gmra.mrb[46].mxu0 %v18073_v57  ;;  %5731 = vmatmul.mubr.f32.gmra.mrb[74].mxu1 %v15052_v1  ;;  %v18102_v1 = vand.u32 4294901760, %v15433_v0 }
 0x6e8   : > { %18097 = vst [vmem:[#allocation45_spill] sm:$0xff] %v15468_v33  ;;  %4965 = vmatprep.mubr.f32.mxu0 %v17989_v46  ;;  %5736 = vmatprep.mubr.f32.mxu1 %v17989_v46 }
 0x6e9   : > { %v15490_v24 = vpack.c.bf16 %v18103_v14, %v18102_v1  ;;  %v15511_v14 = vld [vmem:[%s18060_s28 + $0xc8] sm:$0xff] }
 0x6ea   : > { %v15484_v48 = vpop.f32.mrb[34].mxu1  ;;  %v15516_v1 = vld [vmem:[%s18060_s28 + $0xe8] sm:$0xff] }
 0x6eb   : > { %18101 = vst [vmem:[#allocation49_spill] sm:$0xff] %v15484_v48  ;;  %18104 = vst [vmem:[#allocation38_spill] sm:$0xff] %v15490_v24  ;;  %v15504_v58 = vpop.f32.mrb[35].mxu1  ;;  %4967 = vmatmul.mubr.f32.vlgmr.msra.gmra.mrb[16].mxu0 %v18035_v13  ;;  %5739 = vmatmul.mubr.f32.gmra.mrb[76].mxu1 %v15077_v26  ;;  %v18106_v26 = vand.u32 4294901760, %v15456_v32 }
 0x6ec   : > { %18105 = vst [vmem:[#allocation51_spill] sm:$0xff] %v15504_v58  ;;  %4972 = vmatprep.mubr.f32.mxu0 %v17989_v46  ;;  %5744 = vmatprep.mubr.f32.mxu1 %v17989_v46  ;;  %v18109_v58 = vand.u32 4294901760, %v15466_v27 }
 0x6ed   : > { %11606 = vmatpush1.bf16.msra.mxu0 %v15478_v50  ;;  %v15525_v33 = vpack.c.bf16 %v18106_v26, %v17802_v37  ;;  %v15543_v26 = vld [vmem:[%s18060_s28 + $0xc0] sm:$0xff]  ;;  %v6725_v50 = vsub.f32 %v15303_v35, %v18113_v52  ;;  %v18118_v52 = vand.u32 4294901760, %v15500_v40 }
 0x6ee   : > { %v15531_v48 = vpack.c.bf16 %v18109_v58, %v18108_v9  ;;  %v15535_v16 = vpop.f32.mrb[36].mxu1  ;;  %11608 = vmatprep.subr.bf16.mxu0 %v15490_v24  ;;  %v15548_v9 = vld [vmem:[%s18060_s28 + $0xe0] sm:$0xff]  ;;  %v18112_v58 = vand.u32 4294901760, %v15301_v61 }
 0x6ef   : > { %18107 = vst [vmem:[#allocation40_spill] sm:$0xff] %v15525_v33  ;;  %18111 = vst [vmem:[#allocation44_spill] sm:$0xff] %v15535_v16  ;;  %v15556_v34 = vpop.f32.mrb[37].mxu1  ;;  %4974 = vmatmul.mubr.f32.gmra.mrb[18].mxu0 %v18040_v6  ;;  %5747 = vmatmul.mubr.f32.gmra.mrb[78].mxu1 %v15101_v4  ;;  %v18116_v16 = vand.u32 4294901760, %v15089_v3  ;;  %v17814_v4 = vand.u32 4294901760, %v15548_v9 }
 0x6f0   : > { %18110 = vst [vmem:[#allocation43_spill] sm:$0xff] %v15531_v48  ;;  %v6713_v37 = vsub.f32 %v15301_v61, %v18112_v58  ;;  %18114 = vst [vmem:[#allocation48_spill] sm:$0xff] %v15556_v34  ;;  %4979 = vmatprep.mubr.f32.mxu0 %v17989_v46  ;;  %5825 = vmatprep.mubr.f32.mxu1 %v17989_v46  ;;  %v18117_v58 = vand.u32 4294901760, %v15495_v42  ;;  %v18121_v61 = vand.u32 4294901760, %v18037_v43  ;;  %v15602_v43 = vld [vmem:[%s18060_s28 + $0x38] sm:$0xff] }
 0x6f1   : > { %v11589_v24 = vpack.c.bf16 %v18116_v16, %v18115_v20  ;;  %11610 = vmatpush1.bf16.msra.mxu0 %v15525_v33  ;;  %v18123_v20 = vand.u32 4294901760, %v15511_v14  ;;  %v18124_v16 = vand.u32 4294901760, %v15516_v1 }
 0x6f2   : > { %v15571_v34 = vpack.c.bf16 %v18118_v52, %v18117_v58  ;;  %v15575_v35 = vpop.f32.mrb[38].mxu1  ;;  %v11591_v3 = vpack.c.bf16 %v18122_v18, %v18121_v61  ;;  %11612 = vmatprep.subr.bf16.mxu0 %v15531_v48  ;;  %v6714_v58 = vand.u32 4294901760, %v6713_v37  ;;  %v6726_v52 = vand.u32 4294901760, %v6725_v50 }
 0x6f3   : > { %18120 = vst [vmem:[#allocation52_spill] sm:$0xff] %v15575_v35  ;;  %v15586_v33 = vpack.c.bf16 %v18124_v16, %v18123_v20  ;;  %v15588_v6 = vpop.f32.mrb[39].mxu1  ;;  %4981 = vmatmul.mubr.f32.gmra.mrb[20].mxu0 %v18044_v10  ;;  %5829 = vmatmul.mubr.f32.vlgmr.msra.gmra.mrb[48].mxu1 %v14811_v56  ;;  %v18127_v61 = vand.u32 4294901760, %v15019_v38  ;;  %v18128_v37 = vand.u32 4294901760, %v15029_v7  ;;  %v18129_v50 = vand.u32 4294901760, %v15543_v26 }
 0x6f4   : > { %18119 = vst [vmem:[#allocation50_spill] sm:$0xff] %v15571_v34  ;;  %18126 = vst [vmem:[#allocation56_spill] sm:$0xff] %v15588_v6  ;;  %4986 = vmatprep.mubr.f32.mxu0 %v17989_v46  ;;  %5834 = vmatprep.mubr.f32.mxu1 %v17989_v46  ;;  %v17813_v20 = vand.u32 4294901760, %v15597_v2  ;;  %v17812_v38 = vand.u32 4294901760, %v15602_v43 }
 0x6f5   : > { %18125 = vst [vmem:[#allocation22_spill] sm:$0xff] %v15586_v33  ;;  %11590 = vmatpush1.bf16.msra.mxu1 %v11589_v24  ;;  %v11593_v56 = vpack.c.bf16 %v18128_v37, %v18127_v61  ;;  %11614 = vmatpush1.bf16.msra.mxu0 %v15571_v34  ;;  %v15613_v18 = vpack.c.bf16 %v17814_v4, %v18129_v50  ;;  %v6358_v50 = vld [vmem:[%s13441_s13 + $0x10] sm:$0xff]  ;;  %v18186_v34 = vld [vmem:[#allocation53_spill] sm:$0xff] }
 0x6f6   : > { %v15616_v16 = vpop.f32.mrb[40].mxu1  ;;  %11592 = vmatprep.subr.bf16.mxu1 %v11591_v3  ;;  %11616 = vmatprep.subr.bf16.mxu0 %v15586_v33  ;;  %v11619_v24 = vpack.c.bf16 %v6726_v52, %v6714_v58  ;;  %v15627_v61 = vsub.f32 %v15597_v2, %v17813_v20  ;;  %v15634_v3 = vsub.f32 %v15602_v43, %v17812_v38  ;;  %v18146_v38 = vand.u32 4294901760, %v15422_v47 }
 0x6f7   : > { %18130 = vst [vmem:[#allocation57_spill] sm:$0xff] %v15613_v18  ;;  %18131 = vst [vmem:[#allocation58_spill] sm:$0xff] %v15616_v16  ;;  %v15620_v7 = vpop.f32.mrb[41].mxu1  ;;  %4988 = vmatmul.mubr.f32.gmra.mrb[22].mxu0 %v18046_v53  ;;  %5838 = vmatmul.mubr.f32.gmra.mrb[50].mxu1 %v18032_v31 }
 0x6f8   : > { %18132 = vst [vmem:[#allocation59_spill] sm:$0xff] %v15620_v7  ;;  %18133 = vst [vmem:[#allocation60_spill] sm:$0xff] %v15627_v61  ;;  %4993 = vmatprep.mubr.f32.mxu0 %v17989_v46  ;;  %5843 = vmatprep.mubr.f32.mxu1 %v17989_v46  ;;  %v15701_v20 = vsub.f32 %v15422_v47, %v18146_v38  ;;  %v18177_v7 = vand.u32 4294901760, %v15543_v26 }
 0x6f9   : > { %18134 = vst [vmem:[#allocation61_spill] sm:$0xff] %v15634_v3  ;;  %11594 = vmatpush1.bf16.msra.mxu1 %v11593_v56  ;;  %11618 = vmatpush1.bf16.msra.mxu0 %v15613_v18 }
 0x6fa   : > { %v15637_v58 = vpop.f32.mrb[42].mxu1  ;;  %11596 = vmatprep.subr.bf16.mxu1 %v18042_v39  ;;  %11620 = vmatprep.subr.bf16.mxu0 %v11619_v24  ;;  %18147 = vst [vmem:[#allocation72_spill] sm:$0xff] %v15701_v20  ;;  %v15803_v16 = vsub.f32 %v15543_v26, %v18177_v7 }
 0x6fb   : > { %18135 = vst [vmem:[#allocation62_spill] sm:$0xff] %v15637_v58  ;;  %v15640_v31 = vpop.f32.mrb[43].mxu1  ;;  %4995 = vmatmul.mubr.f32.gmra.mrb[24].mxu0 %v18048_v30  ;;  %5847 = vmatmul.mubr.f32.gmra.mrb[52].mxu1 %v18034_v8  ;;  %v18175_v58 = vand.u32 4294901760, %v15516_v1 }
 0x6fc   : > { %18136 = vst [vmem:[#allocation63_spill] sm:$0xff] %v15640_v31  ;;  %5000 = vmatprep.mubr.f32.mxu0 %v17989_v46  ;;  %5852 = vmatprep.mubr.f32.mxu1 %v17989_v46  ;;  %v18179_v31 = vand.u32 4294901760, %v15548_v9 }
 0x6fe   : > { %v15646_v52 = vpop.f32.mrb[44].mxu1 }
 0x6ff   : > { %18137 = vst [vmem:[#allocation64_spill] sm:$0xff] %v15646_v52  ;;  %v15648_v37 = vpop.f32.mrb[45].mxu1  ;;  %5002 = vmatmul.mubr.f32.gmra.mrb[26].mxu0 %v18050_v29  ;;  %5856 = vmatmul.mubr.f32.gmra.mrb[54].mxu1 %v18039_v62  ;;  %v6356_v62 = vld [vmem:[%s13441_s13] sm:$0xff] }
 0x700   : > { %18138 = vst [vmem:[#allocation65_spill] sm:$0xff] %v15648_v37  ;;  %5007 = vmatprep.mubr.f32.mxu0 %v17989_v46  ;;  %5861 = vmatprep.mubr.f32.mxu1 %v17989_v46 }
 0x702   : > { %v15654_v39 = vpop.f32.mrb[46].mxu1 }
 0x703   : > { %18139 = vst [vmem:[#allocation66_spill] sm:$0xff] %v15654_v39  ;;  %v15656_v8 = vpop.f32.mrb[47].mxu1  ;;  %5009 = vmatmul.mubr.f32.gmra.mrb[28].mxu0 %v18052_v59  ;;  %5865 = vmatmul.mubr.f32.gmra.mrb[56].mxu1 %v18043_v54  ;;  %v6406_v54 = vsel %vm6404_vm2, %v6356_v62, 0  ;;  %v6412_v62 = vsel %vm6404_vm2, %v6358_v50, 0 }
 0x704   : > { %18140 = vst [vmem:[#allocation67_spill] sm:$0xff] %v15656_v8  ;;  %5014 = vmatprep.mubr.f32.mxu0 %v17989_v46  ;;  %5870 = vmatprep.mubr.f32.mxu1 %v17989_v46  ;;  %v15677_v56 = vand.u32 4294901760, %v6406_v54  ;;  %v15718_v47 = vand.u32 4294901760, %v6412_v62  ;;  %v6359_v8 = vld [vmem:[%s13441_s13 + $0x18] sm:$0xff] }
 0x706   : > { %18141 = vst [vmem:[#allocation68_spill] sm:$0xff] %v15677_v56  ;;  %v15688_v24 = vsub.f32 %v6406_v54, %v15677_v56  ;;  %v18148_v54 = vand.u32 4294901760, %v15433_v0  ;;  %18153 = vst [vmem:[#allocation76_spill] sm:$0xff] %v15718_v47 }
 0x707   : > { %5016 = vmatmul.mubr.f32.gmra.mrb[30].mxu0 %v18054_v51  ;;  %5874 = vmatmul.mubr.f32.gmra.mrb[58].mxu1 %v18045_v11  ;;  %v6357_v11 = vld [vmem:[%s13441_s13 + $0x8] sm:$0xff] }
 0x708   : > { %5021 = vmatprep.mubr.f32.mxu0 %v17989_v46  ;;  %5879 = vmatprep.mubr.f32.mxu1 %v17989_v46  ;;  %18143 = vst [vmem:[#allocation70_spill] sm:$0xff] %v15688_v24  ;;  %v15708_v50 = vsub.f32 %v15433_v0, %v18148_v54  ;;  %v15721_v38 = vand.u32 4294901760, %v15688_v24  ;;  %v18159_v54 = vand.u32 4294901760, %v15461_v17 }
 0x70a   : > { %18149 = vst [vmem:[#allocation73_spill] sm:$0xff] %v15708_v50  ;;  %18154 = vst [vmem:[#allocation77_spill] sm:$0xff] %v15721_v38  ;;  %v15745_v39 = vsub.f32 %v15461_v17, %v18159_v54  ;;  %v6537_v54 = vsub.f32 %v15688_v24, %v15721_v38  ;;  %v18173_v52 = vand.u32 4294901760, %v15708_v50 }
 0x70b   : > { %5023 = vmatmul.mubr.f32.gmra.mrb[32].mxu0 %v18056_v12  ;;  %5883 = vmatmul.mubr.f32.gmra.mrb[60].mxu1 %v18047_v45  ;;  %v6409_v45 = vsel %vm6404_vm2, %v6357_v11, 0  ;;  %v18144_v11 = vand.u32 4294901760, %v15417_v44 }
 0x70c   : > { %5028 = vmatprep.mubr.f32.mxu0 %v17989_v46  ;;  %5888 = vmatprep.mubr.f32.mxu1 %v17989_v46  ;;  %18160 = vst [vmem:[#allocation80_spill] sm:$0xff] %v15745_v39  ;;  %v15815_v38 = vand.u32 4294901760, %v6537_v54 }
 0x70e   : > { %18180 = vst [vmem:[#allocation89_spill] sm:$0xff] %v15815_v38 }
 0x70f   : > { %5030 = vmatmul.mubr.f32.gmra.mrb[34].mxu0 %v18058_v19  ;;  %5892 = vmatmul.mubr.f32.gmra.mrb[62].mxu1 %v18049_v22  ;;  %v15685_v22 = vand.u32 4294901760, %v6409_v45 }
 0x710   : > { %5035 = vmatprep.mubr.f32.mxu0 %v17989_v46  ;;  %5897 = vmatprep.mubr.f32.mxu1 %v17989_v46 }
 0x711   : > { %18142 = vst [vmem:[#allocation69_spill] sm:$0xff] %v15685_v22 }
 0x713   : > { %5037 = vmatmul.mubr.f32.gmra.mrb[36].mxu0 %v18062_v5  ;;  %5901 = vmatmul.mubr.f32.gmra.mrb[64].mxu1 %v18051_v15  ;;  %v15696_v15 = vsub.f32 %v15417_v44, %v18144_v11  ;;  %v15716_v11 = vsub.f32 %v6409_v45, %v15685_v22 }
 0x714   : > { %5042 = vmatprep.mubr.f32.mxu0 %v17989_v46  ;;  %5906 = vmatprep.mubr.f32.mxu1 %v17989_v46 }
 0x715   : > { %18145 = vst [vmem:[#allocation71_spill] sm:$0xff] %v15696_v15  ;;  %18152 = vst [vmem:[#allocation75_spill] sm:$0xff] %v15716_v11  ;;  %v15748_v37 = vand.u32 4294901760, %v15716_v11 }
 0x717   : > { %5044 = vmatmul.mubr.f32.gmra.mrb[38].mxu0 %v18066_v41  ;;  %5910 = vmatmul.mubr.f32.gmra.mrb[66].mxu1 %v18053_v25  ;;  %v18150_v25 = vand.u32 4294901760, %v15438_v36  ;;  %18161 = vst [vmem:[#allocation81_spill] sm:$0xff] %v15748_v37 }
 0x718   : > { %5049 = vmatprep.mubr.f32.mxu0 %v17989_v46  ;;  %5915 = vmatprep.mubr.f32.mxu1 %v17989_v46 }
 0x719   : > { %v15713_v44 = vsub.f32 %v15438_v36, %v18150_v25  ;;  %v18155_v36 = vand.u32 4294901760, %v15447_v55  ;;  %v18157_v25 = vand.u32 4294901760, %v15456_v32 }
 0x71b   : > { %18151 = vst [vmem:[#allocation74_spill] sm:$0xff] %v15713_v44  ;;  %5051 = vmatmul.mubr.f32.gmra.mrb[40].mxu0 %v18068_v28  ;;  %5919 = vmatmul.mubr.f32.gmra.mrb[68].mxu1 %v18055_v63  ;;  %v15732_v45 = vsub.f32 %v15447_v55, %v18155_v36  ;;  %v15737_v4 = vsub.f32 %v15456_v32, %v18157_v25  ;;  %v18163_v32 = vand.u32 4294901760, %v15466_v27  ;;  %v18165_v25 = vand.u32 4294901760, %v15495_v42 }
 0x71c   : > { %5056 = vmatprep.mubr.f32.mxu0 %v17989_v46  ;;  %5924 = vmatprep.mubr.f32.mxu1 %v17989_v46  ;;  %v15751_v55 = vsub.f32 %v6412_v62, %v15718_v47  ;;  %v18167_v63 = vand.u32 4294901760, %v15500_v40 }
 0x71d   : > { %18156 = vst [vmem:[#allocation78_spill] sm:$0xff] %v15732_v45  ;;  %18158 = vst [vmem:[#allocation79_spill] sm:$0xff] %v15737_v4  ;;  %v15756_v36 = vsub.f32 %v15466_v27, %v18163_v32  ;;  %v15761_v0 = vsub.f32 %v15495_v42, %v18165_v25  ;;  %v18169_v27 = vand.u32 4294901760, %v15511_v14  ;;  %v6415_v42 = vsel %vm6404_vm2, %v6359_v8, 0 }
 0x71e   : > { %18162 = vst [vmem:[#allocation82_spill] sm:$0xff] %v15751_v55  ;;  %v15766_v17 = vsub.f32 %v15500_v40, %v18167_v63  ;;  %v18171_v32 = vand.u32 4294901760, %v15696_v15  ;;  %v18172_v40 = vand.u32 4294901760, %v15701_v20  ;;  %v15821_v26 = vand.u32 4294901760, %v6415_v42 }
 0x71f   : > { %18164 = vst [vmem:[#allocation83_spill] sm:$0xff] %v15756_v36  ;;  %18166 = vst [vmem:[#allocation84_spill] sm:$0xff] %v15761_v0  ;;  %5058 = vmatmul.mubr.f32.gmra.mrb[42].mxu0 %v18070_v49  ;;  %5928 = vmatmul.mubr.f32.gmra.mrb[70].mxu1 %v18057_v60  ;;  %v15775_v62 = vsub.f32 %v15511_v14, %v18169_v27  ;;  %v6360_v60 = vld [vmem:[%s13441_s13 + $0x20] sm:$0xff]  ;;  %v6737_v14 = vsub.f32 %v15708_v50, %v18173_v52  ;;  %v18174_v27 = vand.u32 4294901760, %v15713_v44 }
 0x720   : > { %18168 = vst [vmem:[#allocation85_spill] sm:$0xff] %v15766_v17  ;;  %v6719_v25 = vsub.f32 %v15696_v15, %v18171_v32  ;;  %v6731_v63 = vsub.f32 %v15701_v20, %v18172_v40  ;;  %5063 = vmatprep.mubr.f32.mxu0 %v17989_v46  ;;  %5933 = vmatprep.mubr.f32.mxu1 %v17989_v46  ;;  %18181 = vst [vmem:[#allocation90_spill] sm:$0xff] %v15821_v26  ;;  %v6418_v7 = vsel %vm6404_vm2, %v6360_v60, 0 }
 0x721   : > { %18170 = vst [vmem:[#allocation86_spill] sm:$0xff] %v15775_v62  ;;  %v6749_v8 = vsub.f32 %v15713_v44, %v18174_v27  ;;  %v15798_v40 = vsub.f32 %v15516_v1, %v18175_v58  ;;  %v6548_v52 = vsub.f32 %v15716_v11, %v15748_v37  ;;  %v15808_v27 = vand.u32 4294901760, %v15751_v55 }
 0x722   : > { %v15813_v32 = vsub.f32 %v15548_v9, %v18179_v31  ;;  %v6720_v37 = vand.u32 4294901760, %v6719_v25  ;;  %v6732_v6 = vand.u32 4294901760, %v6731_v63  ;;  %v6361_v9 = vld [vmem:[%s13441_s13 + $0x28] sm:$0xff]  ;;  %v6738_v31 = vand.u32 4294901760, %v6737_v14 }
 0x723   : > { %18176 = vst [vmem:[#allocation87_spill] sm:$0xff] %v15798_v40  ;;  %18178 = vst [vmem:[#allocation88_spill] sm:$0xff] %v15808_v27  ;;  %5065 = vmatmul.mubr.f32.gmra.mrb[44].mxu0 %v18071_v21  ;;  %5937 = vmatmul.mubr.f32.gmra.mrb[72].mxu1 %v18061_v23  ;;  %v6750_v54 = vand.u32 4294901760, %v6749_v8  ;;  %v18182_v1 = vand.u32 4294901760, %v15732_v45  ;;  %v18183_v35 = vand.u32 4294901760, %v15737_v4  ;;  %v15833_v18 = vand.u32 4294901760, %v6548_v52 }
 0x724   : > { %5070 = vmatprep.mubr.f32.mxu0 %v17989_v46  ;;  %5942 = vmatprep.mubr.f32.mxu1 %v17989_v46  ;;  %v6559_v25 = vsub.f32 %v15751_v55, %v15808_v27  ;;  %v18184_v14 = vand.u32 4294901760, %v15745_v39  ;;  %v15850_v63 = vsub.f32 %v6415_v42, %v15821_v26  ;;  %v15852_v60 = vand.u32 4294901760, %v6418_v7 }
 0x725   : > { %v6743_v58 = vsub.f32 %v15732_v45, %v18182_v1  ;;  %v6755_v23 = vsub.f32 %v15737_v4, %v18183_v35  ;;  %v18185_v1 = vand.u32 4294901760, %v15756_v36  ;;  %v6421_v27 = vsel %vm6404_vm2, %v6361_v9, 0 }
 0x726   : > { %v6761_v8 = vsub.f32 %v15745_v39, %v18184_v14  ;;  %18187 = vst [vmem:[#allocation53_spill] sm:$0xff] %v15852_v60  ;;  %v11621_v14 = vpack.c.bf16 %v6732_v6, %v6720_v37  ;;  %v11623_v35 = vpack.c.bf16 %v6750_v54, %v6738_v31  ;;  %v18189_v11 = vand.u32 4294901760, %v15766_v17 }
 0x727   : > { %v6773_v33 = vsub.f32 %v15756_v36, %v18185_v1  ;;  %5072 = vmatmul.mubr.f32.gmra.mrb[46].mxu0 %v18073_v57  ;;  %5946 = vmatmul.mubr.f32.gmra.mrb[74].mxu1 %v18186_v34  ;;  %v6362_v1 = vld [vmem:[%s13441_s13 + $0x30] sm:$0xff]  ;;  %v6744_v55 = vand.u32 4294901760, %v6743_v58  ;;  %v6756_v52 = vand.u32 4294901760, %v6755_v23  ;;  %v18188_v34 = vand.u32 4294901760, %v15761_v0 }
 0x728   : > { %5951 = vmatprep.mubr.f32.mxu1 %v17989_v46  ;;  %6533 = vmatprep.mubr.f32.mxu0 %v17989_v46  ;;  %v6779_v9 = vsub.f32 %v15766_v17, %v18189_v11  ;;  %v6762_v24 = vand.u32 4294901760, %v6761_v8  ;;  %v18190_v58 = vand.u32 4294901760, %v15775_v62  ;;  %v18191_v23 = vand.u32 4294901760, %v15798_v40 }
 0x729   : > { %v6767_v42 = vsub.f32 %v15761_v0, %v18188_v34  ;;  %v6774_v31 = vand.u32 4294901760, %v6773_v33  ;;  %v18192_v34 = vld [vmem:[#allocation54_spill] sm:$0xff]  ;;  %v15877_v11 = vand.u32 4294901760, %v15850_v63  ;;  %v15880_v6 = vsub.f32 %v6418_v7, %v15852_v60 }
 0x72a   : > { %v6785_v54 = vsub.f32 %v15775_v62, %v18190_v58  ;;  %v6797_v48 = vsub.f32 %v15798_v40, %v18191_v23  ;;  %v15882_v8 = vand.u32 4294901760, %v6421_v27  ;;  %v6424_v33 = vsel %vm6404_vm2, %v6362_v1, 0  ;;  %v6363_v23 = vld [vmem:[%s13441_s13 + $0x38] sm:$0xff]  ;;  %v18196_v40 = vld [vmem:[#allocation55_spill] sm:$0xff] }
 0x72b   : > { %5955 = vmatmul.mubr.f32.gmra.mrb[76].mxu1 %v18192_v34  ;;  %6539 = vmatmul.mubr.f32.vlgmr.msra.gmra.mrb[48].mxu0 %v15815_v38  ;;  %18193 = vst [vmem:[#allocation54_spill] sm:$0xff] %v15877_v11  ;;  %v15887_v58 = vand.u32 4294901760, %v6559_v25  ;;  %v11625_v34 = vpack.c.bf16 %v6756_v52, %v6744_v55  ;;  %v6768_v37 = vand.u32 4294901760, %v6767_v42  ;;  %v6780_v38 = vand.u32 4294901760, %v6779_v9 }
 0x72c   : > { %5960 = vmatprep.mubr.f32.mxu1 %v17989_v46  ;;  %6544 = vmatprep.mubr.f32.mxu0 %v17989_v46  ;;  %v18194_v26 = vand.u32 4294901760, %v15803_v16  ;;  %v18195_v60 = vand.u32 4294901760, %v15813_v32  ;;  %v15896_v47 = vand.u32 4294901760, %v6424_v33  ;;  %v11627_v3 = vpack.c.bf16 %v6774_v31, %v6762_v24 }
 0x72d   : > { %11622 = vmatpush1.bf16.msra.mxu0 %v11621_v14  ;;  %v6786_v25 = vand.u32 4294901760, %v6785_v54  ;;  %v6798_v61 = vand.u32 4294901760, %v6797_v48  ;;  %v6570_v55 = vsub.f32 %v15850_v63, %v15877_v11  ;;  %v15903_v52 = vand.u32 4294901760, %v15880_v6  ;;  %v6364_v48 = vld [vmem:[%s13441_s13 + $0x40] sm:$0xff] }
 0x72e   : > { %v6791_v7 = vsub.f32 %v15803_v16, %v18194_v26  ;;  %v6803_v1 = vsub.f32 %v15813_v32, %v18195_v60  ;;  %11624 = vmatprep.subr.bf16.mxu0 %v11623_v35  ;;  %v15906_v26 = vsub.f32 %v6421_v27, %v15882_v8  ;;  %v6427_v60 = vsel %vm6404_vm2, %v6363_v23, 0 }
 0x72f   : > { %5964 = vmatmul.mubr.f32.gmra.mrb[78].mxu1 %v18196_v40  ;;  %6550 = vmatmul.mubr.f32.gmra.mrb[50].mxu0 %v15833_v18  ;;  %18197 = vst [vmem:[#allocation55_spill] sm:$0xff] %v15903_v52  ;;  %v11629_v24 = vpack.c.bf16 %v6780_v38, %v6768_v37  ;;  %v15913_v14 = vsub.f32 %v6424_v33, %v15896_v47  ;;  %v15915_v42 = vand.u32 4294901760, %v6427_v60  ;;  %v15919_v9 = vand.u32 4294901760, %v6570_v55  ;;  %v18209_v55 = vld [vmem:[#allocation24_spill] sm:$0xff] }
 0x730   : > { %18198 = vst [vmem:[#allocation91_spill] sm:$0xff] %v15906_v26  ;;  %6058 = vmatprep.mubr.f32.mxu1 %v17989_v46  ;;  %6555 = vmatprep.mubr.f32.mxu0 %v17989_v46  ;;  %v6792_v40 = vand.u32 4294901760, %v6791_v7  ;;  %v6804_v35 = vand.u32 4294901760, %v6803_v1  ;;  %v11631_v27 = vpack.c.bf16 %v6798_v61, %v6786_v25  ;;  %v6581_v31 = vsub.f32 %v15880_v6, %v15903_v52  ;;  %v6365_v61 = vld [vmem:[%s13441_s13 + $0x48] sm:$0xff] }
 0x731   : > { %11626 = vmatpush1.bf16.msra.mxu0 %v11625_v34  ;;  %18199 = vst [vmem:[#allocation92_spill] sm:$0xff] %v15913_v14  ;;  %18200 = vst [vmem:[#allocation93_spill] sm:$0xff] %v15919_v9  ;;  %v15924_v38 = vand.u32 4294901760, %v15906_v26  ;;  %v6430_v37 = vsel %vm6404_vm2, %v6364_v48, 0  ;;  %v15932_v33 = vand.u32 4294901760, %v15913_v14  ;;  %v15935_v23 = vsub.f32 %v6427_v60, %v15915_v42  ;;  %v18205_v34 = vld [vmem:[#allocation26_spill] sm:$0xff] }
 0x732   : > { %11628 = vmatprep.subr.bf16.mxu0 %v11627_v3  ;;  %v18202_v3 = vld [vmem:[#allocation19_spill] sm:$0xff]  ;;  %v11633_v54 = vpack.c.bf16 %v6804_v35, %v6792_v40  ;;  %v18206_v7 = vand.u32 4294901760, %v15597_v2  ;;  %v18207_v1 = vand.u32 4294901760, %v15602_v43  ;;  %v18210_v48 = vld [vmem:[#allocation17_spill] sm:$0xff]  ;;  %v15948_v40 = vand.u32 4294901760, %v6581_v31 }
 0x733   : > { %6060 = vmatmul.mubr.f32.vlgmr.msra.gmra.mrb[48].mxu1 %v18035_v13  ;;  %6561 = vmatmul.mubr.f32.gmra.mrb[52].mxu0 %v15887_v58  ;;  %18201 = vst [vmem:[#allocation94_spill] sm:$0xff] %v15924_v38  ;;  %18203 = vst [vmem:[#allocation19_spill] sm:$0xff] %v15932_v33  ;;  %v6592_v60 = vsub.f32 %v15906_v26, %v15924_v38  ;;  %v15952_v35 = vand.u32 4294901760, %v6430_v37  ;;  %v6433_v2 = vsel %vm6404_vm2, %v6365_v61, 0  ;;  %v6366_v43 = vld [vmem:[%s13441_s13 + $0x50] sm:$0xff] }
 0x734   : > { %6065 = vmatprep.mubr.f32.mxu1 %v17989_v46  ;;  %6566 = vmatprep.mubr.f32.mxu0 %v17989_v46  ;;  %18204 = vst [vmem:[#allocation95_spill] sm:$0xff] %v15935_v23  ;;  %v15942_v25 = vpack.c.bf16 %v18207_v1, %v18206_v7  ;;  %18212 = vst [vmem:[#allocation24_spill] sm:$0xff] %v15948_v40  ;;  %v6603_v31 = vsub.f32 %v15913_v14, %v15932_v33  ;;  %v6436_v1 = vsel %vm6404_vm2, %v6366_v43, 0 }
 0x735   : > { %11598 = vmatpush1.bf16.msra.mxu1 %v18202_v3  ;;  %11630 = vmatpush1.bf16.msra.mxu0 %v11629_v24  ;;  %v11635_v24 = vpack.c.bf16 %v18210_v48, %v18209_v55  ;;  %v18211_v3 = vld [vmem:[#allocation20_spill] sm:$0xff]  ;;  %v15967_v7 = vand.u32 4294901760, %v6592_v60  ;;  %v15970_v61 = vsub.f32 %v6430_v37, %v15952_v35 }
 0x736   : > { %11600 = vmatprep.subr.bf16.mxu1 %v18205_v34  ;;  %11632 = vmatprep.subr.bf16.mxu0 %v11631_v27  ;;  %18208 = vst [vmem:[#allocation26_spill] sm:$0xff] %v15942_v25  ;;  %v18213_v27 = vld [vmem:[#allocation29_spill] sm:$0xff]  ;;  %v15962_v34 = vand.u32 4294901760, %v15935_v23 }
 0x737   : > { %6067 = vmatmul.mubr.f32.gmra.mrb[50].mxu1 %v18211_v3  ;;  %6572 = vmatmul.mubr.f32.gmra.mrb[54].mxu0 %v15919_v9  ;;  %18215 = vst [vmem:[#allocation20_spill] sm:$0xff] %v15967_v7  ;;  %18216 = vst [vmem:[#allocation29_spill] sm:$0xff] %v15970_v61  ;;  %v15985_v37 = vand.u32 4294901760, %v15970_v61 }
 0x738   : > { %6072 = vmatprep.mubr.f32.mxu1 %v17989_v46  ;;  %6577 = vmatprep.mubr.f32.mxu0 %v17989_v46  ;;  %18214 = vst [vmem:[#allocation17_spill] sm:$0xff] %v15962_v34  ;;  %v6614_v33 = vsub.f32 %v15935_v23, %v15962_v34 }
 0x739   : > { %11602 = vmatpush1.bf16.msra.mxu1 %v18213_v27  ;;  %11634 = vmatpush1.bf16.msra.mxu0 %v11633_v54  ;;  %v15972_v54 = vand.u32 4294901760, %v6433_v2  ;;  %v6367_v27 = vld [vmem:[%s13441_s13 + $0x58] sm:$0xff]  ;;  %18218 = vst [vmem:[#allocation97_spill] sm:$0xff] %v15985_v37 }
 0x73a   : > { %11700 = vmatprep.subr.bf16.mxu1 %v15942_v25  ;;  %11636 = vmatprep.subr.bf16.mxu0 %v11635_v24  ;;  %v15978_v24 = vand.u32 4294901760, %v6603_v31  ;;  %v15990_v25 = vand.u32 4294901760, %v6436_v1  ;;  %v6439_v43 = vsel %vm6404_vm2, %v6367_v27, 0  ;;  %v6368_v31 = vld [vmem:[%s13441_s13 + $0x60] sm:$0xff]  ;;  %v16000_v38 = vand.u32 4294901760, %v6614_v33 }
 0x73b   : > { %6074 = vmatmul.mubr.f32.gmra.mrb[52].mxu1 %v18044_v10  ;;  %6583 = vmatmul.mubr.f32.gmra.mrb[56].mxu0 %v15948_v40  ;;  %v15988_v60 = vsub.f32 %v6433_v2, %v15972_v54  ;;  %v15996_v34 = vand.u32 4294901760, %v6439_v43  ;;  %v6625_v2 = vsub.f32 %v15970_v61, %v15985_v37  ;;  %v6442_v11 = vsel %vm6404_vm2, %v6368_v31, 0  ;;  %v6370_v31 = vld [vmem:[%s13441_s13 + $0x70] sm:$0xff]  ;;  %v6371_v40 = vld [vmem:[%s13441_s13 + $0x78] sm:$0xff] }
 0x73c   : > { %6079 = vmatprep.mubr.f32.mxu1 %v17989_v46  ;;  %6588 = vmatprep.mubr.f32.mxu0 %v17989_v46  ;;  %18217 = vst [vmem:[#allocation96_spill] sm:$0xff] %v15978_v24  ;;  %18220 = vst [vmem:[#allocation99_spill] sm:$0xff] %v16000_v38  ;;  %v16008_v27 = vsub.f32 %v6436_v1, %v15990_v25  ;;  %v16026_v61 = vand.u32 4294901760, %v6442_v11 }
 0x73d   : > { %18219 = vst [vmem:[#allocation98_spill] sm:$0xff] %v15988_v60  ;;  %v16005_v52 = vand.u32 4294901760, %v15988_v60  ;;  %v16015_v33 = vsub.f32 %v6439_v43, %v15996_v34  ;;  %v16019_v37 = vand.u32 4294901760, %v6625_v2 }
 0x73e   : > { %18222 = vst [vmem:[#allocation101_spill] sm:$0xff] %v16008_v27 }
 0x73f   : > { %6081 = vmatmul.mubr.f32.gmra.mrb[54].mxu1 %v18046_v53  ;;  %6594 = vmatmul.mubr.f32.gmra.mrb[58].mxu0 %v15967_v7  ;;  %18221 = vst [vmem:[#allocation100_spill] sm:$0xff] %v16005_v52  ;;  %v6369_v7 = vld [vmem:[%s13441_s13 + $0x68] sm:$0xff]  ;;  %18223 = vst [vmem:[#allocation102_spill] sm:$0xff] %v16015_v33  ;;  %v6636_v1 = vsub.f32 %v15988_v60, %v16005_v52  ;;  %v16042_v60 = vsub.f32 %v6442_v11, %v16026_v61 }
 0x740   : > { %6086 = vmatprep.mubr.f32.mxu1 %v17989_v46  ;;  %6599 = vmatprep.mubr.f32.mxu0 %v17989_v46  ;;  %18224 = vst [vmem:[#allocation103_spill] sm:$0xff] %v16019_v37  ;;  %v6445_v43 = vsel %vm6404_vm2, %v6369_v7, 0  ;;  %v6448_v7 = vsel %vm6404_vm2, %v6370_v31, 0  ;;  %v6451_v31 = vsel %vm6404_vm2, %v6371_v40, 0 }
 0x741   : > { %v16037_v2 = vand.u32 4294901760, %v6636_v1  ;;  %18228 = vst [vmem:[#allocation107_spill] sm:$0xff] %v16042_v60  ;;  %v16044_v23 = vand.u32 4294901760, %v6445_v43  ;;  %v16057_v11 = vand.u32 4294901760, %v16042_v60 }
 0x743   : > { %6088 = vmatmul.mubr.f32.gmra.mrb[56].mxu1 %v18048_v30  ;;  %6605 = vmatmul.mubr.f32.gmra.mrb[60].mxu0 %v15978_v24  ;;  %v16024_v24 = vand.u32 4294901760, %v16008_v27  ;;  %18227 = vst [vmem:[#allocation106_spill] sm:$0xff] %v16037_v2  ;;  %18230 = vst [vmem:[#allocation109_spill] sm:$0xff] %v16057_v11 }
 0x744   : > { %6093 = vmatprep.mubr.f32.mxu1 %v17989_v46  ;;  %6610 = vmatprep.mubr.f32.mxu0 %v17989_v46 }
 0x745   : > { %18225 = vst [vmem:[#allocation104_spill] sm:$0xff] %v16024_v24  ;;  %v6647_v52 = vsub.f32 %v16008_v27, %v16024_v24  ;;  %v16060_v24 = vsub.f32 %v6445_v43, %v16044_v23  ;;  %v16062_v27 = vand.u32 4294901760, %v6448_v7 }
 0x747   : > { %6095 = vmatmul.mubr.f32.gmra.mrb[58].mxu1 %v18050_v29  ;;  %6616 = vmatmul.mubr.f32.gmra.mrb[62].mxu0 %v16000_v38  ;;  %v16033_v38 = vand.u32 4294901760, %v16015_v33  ;;  %v16054_v1 = vand.u32 4294901760, %v6647_v52  ;;  %18231 = vst [vmem:[#allocation110_spill] sm:$0xff] %v16060_v24  ;;  %v6669_v52 = vsub.f32 %v16042_v60, %v16057_v11  ;;  %v16074_v43 = vand.u32 4294901760, %v16060_v24 }
 0x748   : > { %6100 = vmatprep.mubr.f32.mxu1 %v17989_v46  ;;  %6621 = vmatprep.mubr.f32.mxu0 %v17989_v46 }
 0x749   : > { %18226 = vst [vmem:[#allocation105_spill] sm:$0xff] %v16033_v38  ;;  %18229 = vst [vmem:[#allocation108_spill] sm:$0xff] %v16054_v1  ;;  %v16085_v40 = vand.u32 4294901760, %v6669_v52 }
 0x74a   : > { %18233 = vst [vmem:[#allocation112_spill] sm:$0xff] %v16074_v43 }
 0x74b   : > { %6102 = vmatmul.mubr.f32.gmra.mrb[60].mxu1 %v18052_v59  ;;  %6627 = vmatmul.mubr.f32.gmra.mrb[64].mxu0 %v16019_v37  ;;  %v6658_v37 = vsub.f32 %v16015_v33, %v16033_v38  ;;  %v16079_v33 = vand.u32 4294901760, %v6451_v31  ;;  %18235 = vst [vmem:[#allocation114_spill] sm:$0xff] %v16085_v40 }
 0x74c   : > { %6107 = vmatprep.mubr.f32.mxu1 %v17989_v46  ;;  %6632 = vmatprep.mubr.f32.mxu0 %v17989_v46 }
 0x74d   : > { %v16067_v38 = vand.u32 4294901760, %v6658_v37  ;;  %v6680_v37 = vsub.f32 %v16060_v24, %v16074_v43 }
 0x74f   : > { %6109 = vmatmul.mubr.f32.gmra.mrb[62].mxu1 %v18054_v51  ;;  %6638 = vmatmul.mubr.f32.gmra.mrb[66].mxu0 %v16037_v2  ;;  %18232 = vst [vmem:[#allocation111_spill] sm:$0xff] %v16067_v38  ;;  %v16077_v2 = vsub.f32 %v6448_v7, %v16062_v27  ;;  %v16093_v7 = vsub.f32 %v6451_v31, %v16079_v33 }
 0x750   : > { %6114 = vmatprep.mubr.f32.mxu1 %v17989_v46  ;;  %6643 = vmatprep.mubr.f32.mxu0 %v17989_v46 }
 0x751   : > { %18234 = vst [vmem:[#allocation113_spill] sm:$0xff] %v16077_v2  ;;  %v16090_v11 = vand.u32 4294901760, %v16077_v2  ;;  %18237 = vst [vmem:[#allocation116_spill] sm:$0xff] %v16093_v7  ;;  %v16104_v43 = vand.u32 4294901760, %v16093_v7 }
 0x753   : > { %6116 = vmatmul.mubr.f32.gmra.mrb[64].mxu1 %v18056_v12  ;;  %6649 = vmatmul.mubr.f32.gmra.mrb[68].mxu0 %v16054_v1  ;;  %18236 = vst [vmem:[#allocation115_spill] sm:$0xff] %v16090_v11  ;;  %v6691_v52 = vsub.f32 %v16077_v2, %v16090_v11  ;;  %18239 = vst [vmem:[#allocation118_spill] sm:$0xff] %v16104_v43 }
 0x754   : > { %6121 = vmatprep.mubr.f32.mxu1 %v17989_v46  ;;  %6654 = vmatprep.mubr.f32.mxu0 %v17989_v46 }
 0x755   : > { %v16110_v31 = vand.u32 4294901760, %v6691_v52  ;;  %v16129_v52 = vld [vmem:[%s18060_s28 + $0x10] sm:$0xff] }
 0x757   : > { %6123 = vmatmul.mubr.f32.gmra.mrb[66].mxu1 %v18058_v19  ;;  %6660 = vmatmul.mubr.f32.gmra.mrb[70].mxu0 %v16067_v38  ;;  %v16099_v38 = vand.u32 4294901760, %v6680_v37  ;;  %18240 = vst [vmem:[#allocation119_spill] sm:$0xff] %v16110_v31  ;;  %v6702_v37 = vsub.f32 %v16093_v7, %v16104_v43  ;;  %v11637_v43 = vpack.c.bf16 %v15701_v20, %v15696_v15 }
 0x758   : > { %6128 = vmatprep.mubr.f32.mxu1 %v17989_v46  ;;  %6665 = vmatprep.mubr.f32.mxu0 %v17989_v46  ;;  %v11641_v20 = vpack.c.bf16 %v15737_v4, %v15732_v45  ;;  %v11643_v15 = vpack.c.bf16 %v15756_v36, %v15745_v39  ;;  %v18248_v36 = vld [vmem:[#allocation60_spill] sm:$0xff]  ;;  %v18249_v45 = vld [vmem:[#allocation61_spill] sm:$0xff] }
 0x759   : > { %18238 = vst [vmem:[#allocation117_spill] sm:$0xff] %v16099_v38  ;;  %v16118_v11 = vand.u32 4294901760, %v6702_v37  ;;  %v16134_v37 = vld [vmem:[%s18060_s28 + $0x30] sm:$0xff] }
 0x75a   : > { %v18242_v7 = vand.u32 4294901760, %v16134_v37 }
 0x75b   : > { %6130 = vmatmul.mubr.f32.gmra.mrb[68].mxu1 %v18062_v5  ;;  %6671 = vmatmul.mubr.f32.gmra.mrb[72].mxu0 %v16085_v40  ;;  %18241 = vst [vmem:[#allocation120_spill] sm:$0xff] %v16118_v11  ;;  %v16168_v40 = vld [vmem:[%s18060_s28 + $0x70] sm:$0xff] }
 0x75c   : > { %6135 = vmatprep.mubr.f32.mxu1 %v17989_v46  ;;  %6676 = vmatprep.mubr.f32.mxu0 %v17989_v46 }
 0x75f   : > { %6137 = vmatmul.mubr.f32.gmra.mrb[70].mxu1 %v18066_v41  ;;  %6682 = vmatmul.mubr.f32.gmra.mrb[74].mxu0 %v16099_v38  ;;  %v16150_v38 = vld [vmem:[%s18060_s28 + $0x78] sm:$0xff] }
 0x760   : > { %6142 = vmatprep.mubr.f32.mxu1 %v17989_v46  ;;  %6687 = vmatprep.mubr.f32.mxu0 %v17989_v46  ;;  %v18245_v24 = vand.u32 4294901760, %v16150_v38 }
 0x763   : > { %6144 = vmatmul.mubr.f32.gmra.mrb[72].mxu1 %v18068_v28  ;;  %6693 = vmatmul.mubr.f32.gmra.mrb[76].mxu0 %v16110_v31  ;;  %v16145_v31 = vld [vmem:[%s18060_s28 + $0x58] sm:$0xff] }
 0x764   : > { %6149 = vmatprep.mubr.f32.mxu1 %v17989_v46  ;;  %6698 = vmatprep.mubr.f32.mxu0 %v17989_v46  ;;  %v18244_v2 = vand.u32 4294901760, %v16145_v31 }
 0x766   : > { %v16202_v1 = vpack.c.bf16 %v18245_v24, %v18244_v2  ;;  %v18250_v24 = vld [vmem:[#allocation76_spill] sm:$0xff] }
 0x767   : > { %6151 = vmatmul.mubr.f32.gmra.mrb[74].mxu1 %v18070_v49  ;;  %6704 = vmatmul.mubr.f32.gmra.mrb[78].mxu0 %v16118_v11  ;;  %v11639_v11 = vpack.c.bf16 %v15713_v44, %v15708_v50  ;;  %v17914_v44 = vand.u32 4294901760, %v16129_v52  ;;  %v16173_v50 = vld [vmem:[%s18060_s28 + $0x98] sm:$0xff] }
 0x768   : > { %6156 = vmatprep.mubr.f32.mxu1 %v17989_v46  ;;  %6854 = vmatprep.mubr.f32.mxu0 %v17989_v46  ;;  %18246 = vst [vmem:[#allocation122_spill] sm:$0xff] %v16202_v1  ;;  %v16223_v2 = vld [vmem:[%s18060_s28 + $0xd8] sm:$0xff] }
 0x769   : > { %v16190_v4 = vpack.c.bf16 %v18242_v7, %v17914_v44  ;;  %v16207_v7 = vld [vmem:[%s18060_s28 + $0x90] sm:$0xff] }
 0x76a   : > { %v16212_v44 = vld [vmem:[%s18060_s28 + $0xb0] sm:$0xff] }
 0x76b   : > { %6158 = vmatmul.mubr.f32.gmra.mrb[76].mxu1 %v18071_v21  ;;  %6856 = vmatmul.mubr.f32.vlgmr.msra.gmra.mrb[48].mxu0 %v15677_v56  ;;  %v16159_v56 = vld [vmem:[%s18060_s28 + $0x50] sm:$0xff]  ;;  %18243 = vst [vmem:[#allocation121_spill] sm:$0xff] %v16190_v4  ;;  %v17931_v60 = vand.u32 4294901760, %v16212_v44 }
 0x76c   : > { %6163 = vmatprep.mubr.f32.mxu1 %v17989_v46  ;;  %6861 = vmatprep.mubr.f32.mxu0 %v17989_v46 }
 0x76d   : > { %11638 = vmatpush1.bf16.msra.mxu0 %v11637_v43  ;;  %v16178_v43 = vld [vmem:[%s18060_s28 + $0xb8] sm:$0xff] }
 0x76e   : > { %11640 = vmatprep.subr.bf16.mxu0 %v11639_v11 }
 0x76f   : > { %6165 = vmatmul.mubr.f32.gmra.mrb[78].mxu1 %v18073_v57  ;;  %6863 = vmatmul.mubr.f32.gmra.mrb[50].mxu0 %v15685_v22  ;;  %v11645_v22 = vpack.c.bf16 %v15766_v17, %v15761_v0  ;;  %v18252_v17 = vand.u32 4294901760, %v16168_v40  ;;  %v17932_v0 = vand.u32 4294901760, %v16207_v7 }
 0x770   : > { %6243 = vmatprep.mubr.f32.mxu1 %v17989_v46  ;;  %6868 = vmatprep.mubr.f32.mxu0 %v17989_v46 }
 0x771   : > { %11642 = vmatpush1.bf16.msra.mxu0 %v11641_v20  ;;  %v18247_v20 = vld [vmem:[#allocation87_spill] sm:$0xff]  ;;  %v16275_v14 = vpack.c.bf16 %v17931_v60, %v17932_v0  ;;  %v18265_v60 = vld [vmem:[#allocation28_spill] sm:$0xff]  ;;  %v18266_v0 = vld [vmem:[#allocation53_spill] sm:$0xff] }
 0x772   : > { %11644 = vmatprep.subr.bf16.mxu0 %v11643_v15  ;;  %v11647_v39 = vpack.c.bf16 %v18247_v20, %v15775_v62  ;;  %v16228_v15 = vld [vmem:[%s18060_s28 + $0xf8] sm:$0xff]  ;;  %v18255_v20 = vand.u32 4294901760, %v16178_v43 }
 0x773   : > { %6245 = vmatmul.mubr.f32.vlgmr.msra.gmra.mrb[48].mxu1 %v18035_v13  ;;  %6870 = vmatmul.mubr.f32.gmra.mrb[52].mxu0 %v18250_v24  ;;  %v18251_v13 = vand.u32 4294901760, %v16159_v56  ;;  %v18254_v24 = vand.u32 4294901760, %v16173_v50  ;;  %18260 = vst [vmem:[#allocation123_spill] sm:$0xff] %v16275_v14 }
 0x774   : > { %6250 = vmatprep.mubr.f32.mxu1 %v17989_v46  ;;  %6875 = vmatprep.mubr.f32.mxu0 %v17989_v46 }
 0x775   : > { %11702 = vmatpush1.bf16.msra.mxu1 %v16190_v4  ;;  %v16237_v11 = vpack.c.bf16 %v18252_v17, %v18251_v13  ;;  %v16243_v62 = vpack.c.bf16 %v18255_v20, %v18254_v24  ;;  %11646 = vmatpush1.bf16.msra.mxu0 %v11645_v22  ;;  %v16253_v17 = vld [vmem:[%s18060_s28 + $0xd0] sm:$0xff]  ;;  %v18257_v24 = vand.u32 4294901760, %v18248_v36  ;;  %v18258_v13 = vand.u32 4294901760, %v18249_v45 }
 0x776   : > { %11704 = vmatprep.subr.bf16.mxu1 %v16202_v1  ;;  %11648 = vmatprep.subr.bf16.mxu0 %v11647_v39  ;;  %v16258_v20 = vld [vmem:[%s18060_s28 + $0xf0] sm:$0xff]  ;;  %v18259_v39 = vld [vmem:[#allocation90_spill] sm:$0xff]  ;;  %v18262_v1 = vand.u32 4294901760, %v16223_v2 }
 0x777   : > { %18253 = vst [vmem:[#allocation60_spill] sm:$0xff] %v16237_v11  ;;  %18256 = vst [vmem:[#allocation61_spill] sm:$0xff] %v16243_v62  ;;  %v8095_v22 = vsub.f32 %v18248_v36, %v18257_v24  ;;  %v8107_v4 = vsub.f32 %v18249_v45, %v18258_v13  ;;  %6252 = vmatmul.mubr.f32.gmra.mrb[50].mxu1 %v18211_v3  ;;  %6877 = vmatmul.mubr.f32.gmra.mrb[54].mxu0 %v18259_v39  ;;  %v7861_v24 = vand.u32 4294901760, %v16253_v17 }
 0x778   : > { %6257 = vmatprep.mubr.f32.mxu1 %v17989_v46  ;;  %6882 = vmatprep.mubr.f32.mxu0 %v17989_v46  ;;  %v7865_v13 = vand.u32 4294901760, %v16258_v20  ;;  %v18261_v3 = vpack.c.bf16 %v15813_v32, %v15803_v16 }
 0x779   : > { %11706 = vmatpush1.bf16.msra.mxu1 %v16237_v11  ;;  %v18263_v11 = vand.u32 4294901760, %v16228_v15  ;;  %v8096_v9 = vand.u32 4294901760, %v8095_v22  ;;  %v8108_v26 = vand.u32 4294901760, %v8107_v4  ;;  %v18269_v22 = vand.u32 4294901760, %v16150_v38 }
 0x77a   : > { %11650 = vmatpush1.bf16.msra.mxu0 %v18261_v3  ;;  %11708 = vmatprep.subr.bf16.mxu1 %v16243_v62 }
 0x77b   : > { %v16287_v39 = vpack.c.bf16 %v18263_v11, %v18262_v1  ;;  %11652 = vmatprep.subr.bf16.mxu0 %v18265_v60  ;;  %6259 = vmatmul.mubr.f32.gmra.mrb[52].mxu1 %v18044_v10  ;;  %v16299_v1 = vpack.c.bf16 %v7865_v13, %v7861_v24  ;;  %v11715_v4 = vpack.c.bf16 %v8108_v26, %v8096_v9  ;;  %v18268_v10 = vand.u32 4294901760, %v16145_v31 }
 0x77c   : > { %6884 = vmatmul.mubr.f32.gmra.mrb[56].mxu0 %v18266_v0  ;;  %6264 = vmatprep.mubr.f32.mxu1 %v17989_v46  ;;  %v16315_v3 = vsub.f32 %v16150_v38, %v18269_v22  ;;  %v18270_v26 = vand.u32 4294901760, %v16159_v56  ;;  %v18271_v38 = vand.u32 4294901760, %v16168_v40 }
 0x77d   : > { %18264 = vst [vmem:[#allocation124_spill] sm:$0xff] %v16287_v39  ;;  %6889 = vmatprep.mubr.f32.mxu0 %v17989_v46  ;;  %11710 = vmatpush1.bf16.msra.mxu1 %v16275_v14  ;;  %18267 = vst [vmem:[#allocation28_spill] sm:$0xff] %v16299_v1  ;;  %v16310_v11 = vsub.f32 %v16145_v31, %v18268_v10  ;;  %v18275_v10 = vand.u32 4294901760, %v16212_v44 }
 0x77e   : > { %11712 = vmatprep.subr.bf16.mxu1 %v16287_v39  ;;  %v16326_v9 = vsub.f32 %v16159_v56, %v18270_v26  ;;  %v16331_v31 = vsub.f32 %v16168_v40, %v18271_v38 }
 0x77f   : > { %6266 = vmatmul.mubr.f32.gmra.mrb[54].mxu1 %v18046_v53 }
 0x780   : > { %6891 = vmatmul.mubr.f32.gmra.mrb[58].mxu0 %v15882_v8  ;;  %6271 = vmatprep.mubr.f32.mxu1 %v17989_v46 }
 0x781   : > { %6896 = vmatprep.mubr.f32.mxu0 %v17989_v46  ;;  %11714 = vmatpush1.bf16.msra.mxu1 %v16299_v1  ;;  %v18287_v1 = vld [vmem:[#allocation40_spill] sm:$0xff] }
 0x782   : > { %11716 = vmatprep.subr.bf16.mxu1 %v11715_v4  ;;  %v18274_v4 = vand.u32 4294901760, %v16207_v7 }
 0x783   : > { %6273 = vmatmul.mubr.f32.gmra.mrb[56].mxu1 %v18048_v30  ;;  %v18285_v30 = vld [vmem:[#allocation75_spill] sm:$0xff] }
 0x784   : > { %6898 = vmatmul.mubr.f32.gmra.mrb[60].mxu0 %v15896_v47  ;;  %6278 = vmatprep.mubr.f32.mxu1 %v17989_v46 }
 0x785   : > { %6903 = vmatprep.mubr.f32.mxu0 %v17989_v46 }
 0x787   : > { %6280 = vmatmul.mubr.f32.gmra.mrb[58].mxu1 %v18050_v29  ;;  %v18272_v29 = vand.u32 4294901760, %v16173_v50 }
 0x788   : > { %6905 = vmatmul.mubr.f32.gmra.mrb[62].mxu0 %v15915_v42  ;;  %6285 = vmatprep.mubr.f32.mxu1 %v17989_v46 }
 0x789   : > { %6910 = vmatprep.mubr.f32.mxu0 %v17989_v46  ;;  %v16350_v56 = vsub.f32 %v16173_v50, %v18272_v29  ;;  %v16366_v50 = vsub.f32 %v16207_v7, %v18274_v4  ;;  %v18277_v7 = vand.u32 4294901760, %v16134_v37  ;;  %v17935_v29 = vand.u32 4294901760, %v16315_v3 }
 0x78b   : > { %6287 = vmatmul.mubr.f32.gmra.mrb[60].mxu1 %v18052_v59  ;;  %v18273_v59 = vand.u32 4294901760, %v16178_v43  ;;  %v16391_v22 = vsub.f32 %v16134_v37, %v18277_v7 }
 0x78c   : > { %6912 = vmatmul.mubr.f32.gmra.mrb[64].mxu0 %v15952_v35  ;;  %6292 = vmatprep.mubr.f32.mxu1 %v17989_v46 }
 0x78d   : > { %6917 = vmatprep.mubr.f32.mxu0 %v17989_v46  ;;  %v16355_v40 = vsub.f32 %v16178_v43, %v18273_v59  ;;  %v16371_v43 = vsub.f32 %v16212_v44, %v18275_v10  ;;  %v18276_v44 = vand.u32 4294901760, %v16129_v52  ;;  %18278 = vst [vmem:[#allocation53_spill] sm:$0xff] %v16391_v22  ;;  %v17933_v37 = vand.u32 4294901760, %v16391_v22 }
 0x78e   : > { %v16425_v59 = vsub.f32 %v16258_v20, %v7865_v13  ;;  %v8131_v20 = vsub.f32 %v16315_v3, %v17935_v29  ;;  %v17938_v13 = vand.u32 4294901760, %v16331_v31 }
 0x78f   : > { %6294 = vmatmul.mubr.f32.gmra.mrb[62].mxu1 %v18054_v51  ;;  %v8113_v10 = vsub.f32 %v16391_v22, %v17933_v37  ;;  %v17940_v7 = vand.u32 4294901760, %v16355_v40 }
 0x790   : > { %6919 = vmatmul.mubr.f32.gmra.mrb[66].mxu0 %v15972_v54  ;;  %6299 = vmatprep.mubr.f32.mxu1 %v17989_v46 }
 0x791   : > { %6924 = vmatprep.mubr.f32.mxu0 %v17989_v46 }
 0x793   : > { %6301 = vmatmul.mubr.f32.gmra.mrb[64].mxu1 %v18056_v12 }
 0x794   : > { %6926 = vmatmul.mubr.f32.gmra.mrb[68].mxu0 %v15990_v25  ;;  %6306 = vmatprep.mubr.f32.mxu1 %v17989_v46 }
 0x795   : > { %6931 = vmatprep.mubr.f32.mxu0 %v17989_v46 }
 0x797   : > { %6308 = vmatmul.mubr.f32.gmra.mrb[66].mxu1 %v18058_v19  ;;  %v16386_v19 = vsub.f32 %v16129_v52, %v18276_v44  ;;  %v18280_v52 = vand.u32 4294901760, %v16228_v15  ;;  %v17939_v44 = vand.u32 4294901760, %v16350_v56 }
 0x798   : > { %6933 = vmatmul.mubr.f32.gmra.mrb[70].mxu0 %v15996_v34  ;;  %6313 = vmatprep.mubr.f32.mxu1 %v17989_v46 }
 0x799   : > { %6938 = vmatprep.mubr.f32.mxu0 %v17989_v46  ;;  %v16405_v38 = vsub.f32 %v16228_v15, %v18280_v52  ;;  %v18281_v52 = vld [vmem:[#allocation70_spill] sm:$0xff]  ;;  %v8137_v15 = vsub.f32 %v16331_v31, %v17938_v13  ;;  %v18286_v13 = vand.u32 4294901760, %v16371_v43 }
 0x79b   : > { %6315 = vmatmul.mubr.f32.gmra.mrb[68].mxu1 %v18062_v5  ;;  %v18279_v5 = vand.u32 4294901760, %v16223_v2 }
 0x79c   : > { %6940 = vmatmul.mubr.f32.gmra.mrb[72].mxu0 %v16026_v61  ;;  %6320 = vmatprep.mubr.f32.mxu1 %v17989_v46 }
 0x79d   : > { %6945 = vmatprep.mubr.f32.mxu0 %v17989_v46  ;;  %v16400_v26 = vsub.f32 %v16223_v2, %v18279_v5  ;;  %v17936_v2 = vand.u32 4294901760, %v16310_v11  ;;  %v3732_v5 = vlaneseq }
 0x79f   : > { %6322 = vmatmul.mubr.f32.gmra.mrb[70].mxu1 %v18066_v41  ;;  %v17934_v41 = vand.u32 4294901760, %v16386_v19  ;;  %v16471_v51 = vshrl.u32 %v3732_v5, 7  ;;  %v8161_v5 = vsub.f32 %v16371_v43, %v18286_v13  ;;  %v18292_v13 = vld [vmem:[#allocation89_spill] sm:$0xff] }
 0x7a0   : > { %6947 = vmatmul.mubr.f32.gmra.mrb[74].mxu0 %v16044_v23  ;;  %6327 = vmatprep.mubr.f32.mxu1 %v17989_v46 }
 0x7a1   : > { %6952 = vmatprep.mubr.f32.mxu0 %v17989_v46  ;;  %v8101_v4 = vsub.f32 %v16386_v19, %v17934_v41  ;;  %v8114_v41 = vand.u32 4294901760, %v8113_v10  ;;  %v8143_v10 = vsub.f32 %v16350_v56, %v17939_v44  ;;  %v3738_v39 = vsub.s32 1, %v16471_v51 }
 0x7a3   : > { %6329 = vmatmul.mubr.f32.gmra.mrb[72].mxu1 %v18068_v28  ;;  %v16420_v28 = vsub.f32 %v16253_v17, %v7861_v24  ;;  %v17937_v24 = vand.u32 4294901760, %v16326_v9  ;;  %v8102_v37 = vand.u32 4294901760, %v8101_v4  ;;  %v18282_v4 = vld [vmem:[#allocation36_spill] sm:$0xff]  ;;  %v8144_v14 = vand.u32 4294901760, %v8143_v10 }
 0x7a4   : > { %6954 = vmatmul.mubr.f32.gmra.mrb[76].mxu0 %v16062_v27  ;;  %6334 = vmatprep.mubr.f32.mxu1 %v17989_v46  ;;  %18284 = vst [vmem:[#allocation36_spill] sm:$0xff] %v16471_v51 }
 0x7a5   : > { %6959 = vmatprep.mubr.f32.mxu0 %v17989_v46  ;;  %v8125_v17 = vsub.f32 %v16326_v9, %v17937_v24  ;;  %v11717_v44 = vpack.c.bf16 %v8114_v41, %v8102_v37  ;;  %v18288_v41 = vld [vmem:[#allocation43_spill] sm:$0xff]  ;;  %v18289_v37 = vand.u32 4294901760, %v16400_v26 }
 0x7a7   : > { %6336 = vmatmul.mubr.f32.gmra.mrb[74].mxu1 %v18070_v49  ;;  %v8119_v49 = vsub.f32 %v16310_v11, %v17936_v2  ;;  %v8132_v2 = vand.u32 4294901760, %v8131_v20  ;;  %v18283_v20 = vld [vmem:[#allocation38_spill] sm:$0xff]  ;;  %v8126_v12 = vand.u32 4294901760, %v8125_v17 }
 0x7a8   : > { %6961 = vmatmul.mubr.f32.gmra.mrb[78].mxu0 %v16079_v33  ;;  %6341 = vmatprep.mubr.f32.mxu1 %v17989_v46  ;;  %v18291_v17 = vld [vmem:[#allocation82_spill] sm:$0xff] }
 0x7a9   : > { %7063 = vmatprep.mubr.f32.mxu0 %v17989_v46  ;;  %v8120_v29 = vand.u32 4294901760, %v8119_v49  ;;  %v8155_v49 = vsub.f32 %v16355_v40, %v17940_v7  ;;  %v8138_v7 = vand.u32 4294901760, %v8137_v15 }
 0x7ab   : > { %6343 = vmatmul.mubr.f32.gmra.mrb[76].mxu1 %v18071_v21  ;;  %v17949_v21 = vand.u32 4294901760, %v16366_v50  ;;  %v11719_v53 = vpack.c.bf16 %v8132_v2, %v8120_v29  ;;  %v8156_v62 = vand.u32 4294901760, %v8155_v49  ;;  %v8167_v2 = vsub.f32 %v16400_v26, %v18289_v37 }
 0x7ac   : > { %7066 = vmatmul.mubr.f32.vlgmr.msra.gmra.mrb[48].mxu0 %v18281_v52  ;;  %6348 = vmatprep.mubr.f32.mxu1 %v17989_v46  ;;  %v18290_v29 = vand.u32 4294901760, %v16405_v38  ;;  %v11721_v10 = vpack.c.bf16 %v8138_v7, %v8126_v12  ;;  %v8162_v37 = vand.u32 4294901760, %v8161_v5  ;;  %v18299_v7 = vand.u32 4294901760, %v18209_v55 }
 0x7ad   : > { %7071 = vmatprep.mubr.f32.mxu0 %v17989_v46  ;;  %11654 = vmatpush1.bf16.msra.mxu0 %v18282_v4  ;;  %v8149_v24 = vsub.f32 %v16366_v50, %v17949_v21  ;;  %v3734_v21 = vsub.s32 0, %v16471_v51  ;;  %v3730_v51 = vld [vmem:[%s18296_s24] sm:$0xf]  ;;  %v11723_v52 = vpack.c.bf16 %v8156_v62, %v8144_v14  ;;  %v8168_v12 = vand.u32 4294901760, %v8167_v2 }
 0x7ae   : > { %11656 = vmatprep.subr.bf16.mxu0 %v18283_v20  ;;  %v8179_v15 = vsub.f32 %v16405_v38, %v18290_v29  ;;  %v18294_v29 = vand.u32 4294901760, %v16420_v28  ;;  %v18300_v5 = vand.u32 4294901760, %v18210_v48  ;;  %v18301_v2 = vld [vmem:[#allocation57_spill] sm:$0xff]  ;;  %v16521_v55 = vrot.slane %v3730_v51, %v3738_v39 }
 0x7af   : > { %6350 = vmatmul.mubr.f32.gmra.mrb[78].mxu1 %v18073_v57  ;;  %v8150_v49 = vand.u32 4294901760, %v8149_v24  ;;  %v18293_v57 = vld [vmem:[#allocation50_spill] sm:$0xff] }
 0x7b0   : > { %7074 = vmatmul.mubr.f32.gmra.mrb[50].mxu0 %v18285_v30  ;;  %7915 = vmatprep.mubr.f32.mxu1 %v17989_v46  ;;  %v18298_v24 = vld [vmem:[#allocation22_spill] sm:$0xff] }
 0x7b1   : > { %7079 = vmatprep.mubr.f32.mxu0 %v17989_v46  ;;  %11658 = vmatpush1.bf16.msra.mxu0 %v18287_v1  ;;  %v11725_v62 = vpack.c.bf16 %v8162_v37, %v8150_v49  ;;  %v18308_v37 = vld [vmem:[#allocation46_spill] sm:$0xff] }
 0x7b2   : > { %11660 = vmatprep.subr.bf16.mxu0 %v18288_v41 }
 0x7b3   : > { %7921 = vmatmul.mubr.f32.vlgmr.msra.gmra.mrb[80].mxu1 %v18292_v13  ;;  %v18295_v13 = vand.u32 4294901760, %v16425_v59 }
 0x7b4   : > { %7082 = vmatmul.mubr.f32.gmra.mrb[52].mxu0 %v18291_v17  ;;  %7926 = vmatprep.mubr.f32.mxu1 %v17989_v46  ;;  %v8173_v17 = vsub.f32 %v16420_v28, %v18294_v29  ;;  %v16518_v29 = vrot.slane %v3730_v51, %v3734_v21 }
 0x7b5   : > { %7087 = vmatprep.mubr.f32.mxu0 %v17989_v46  ;;  %11718 = vmatpush1.bf16.msra.mxu1 %v11717_v44  ;;  %v8185_v30 = vsub.f32 %v16425_v59, %v18295_v13  ;;  %v8180_v44 = vand.u32 4294901760, %v8179_v15  ;;  %v18303_v15 = vld [vmem:[#allocation47_spill] sm:$0xff] }
 0x7b6   : > { %11662 = vmatpush1.bf16.msra.mxu0 %v18293_v57  ;;  %11720 = vmatprep.subr.bf16.mxu1 %v11719_v53  ;;  %v11667_v57 = vpack.c.bf16 %v18300_v5, %v18299_v7  ;;  %v8174_v14 = vand.u32 4294901760, %v8173_v17  ;;  %v3882_v39 = vadd.f32 %v18303_v15, %v16521_v55  ;;  %v18305_v17 = vld [vmem:[#allocation91_spill] sm:$0xff]  ;;  %v3891_v13 = vadd.f32 %v18308_v37, %v16518_v29 }
 0x7b7   : > { %11664 = vmatprep.subr.bf16.mxu0 %v18298_v24  ;;  %7932 = vmatmul.mubr.f32.gmra.mrb[82].mxu1 %v15833_v18  ;;  %v8186_v53 = vand.u32 4294901760, %v8185_v30  ;;  %v11727_v48 = vpack.c.bf16 %v8180_v44, %v8168_v12  ;;  %v18302_v18 = vld [vmem:[#allocation21_spill] sm:$0xff]  ;;  %v18309_v12 = vld [vmem:[#allocation31_spill] sm:$0xff] }
 0x7b8   : > { %7090 = vmatmul.mubr.f32.gmra.mrb[54].mxu0 %v15850_v63  ;;  %7937 = vmatprep.mubr.f32.mxu1 %v17989_v46  ;;  %v3880_v21 = vadd.f32 %v18302_v18, %v16518_v29  ;;  %v3893_v44 = vadd.f32 %v18309_v12, %v16521_v55  ;;  %v18314_v18 = vld [vmem:[#allocation18_spill] sm:$0xff] }
 0x7b9   : > { %7095 = vmatprep.mubr.f32.mxu0 %v17989_v46  ;;  %11722 = vmatpush1.bf16.msra.mxu1 %v11721_v10  ;;  %v11729_v30 = vpack.c.bf16 %v8186_v53, %v8174_v14  ;;  %v18306_v10 = vld [vmem:[#allocation93_spill] sm:$0xff]  ;;  %v18311_v14 = vld [vmem:[#allocation92_spill] sm:$0xff] }
 0x7ba   : > { %11666 = vmatpush1.bf16.msra.mxu0 %v18301_v2  ;;  %11724 = vmatprep.subr.bf16.mxu1 %v11723_v52  ;;  %v11731_v52 = vpack.c.bf16 %v18249_v45, %v18248_v36  ;;  %v18312_v53 = vld [vmem:[#allocation24_spill] sm:$0xff] }
 0x7bb   : > { %11668 = vmatprep.subr.bf16.mxu0 %v11667_v57  ;;  %7943 = vmatmul.mubr.f32.gmra.mrb[84].mxu1 %v15887_v58 }
 0x7bc   : > { %7098 = vmatmul.mubr.f32.gmra.mrb[56].mxu0 %v15880_v6  ;;  %7948 = vmatprep.mubr.f32.mxu1 %v17989_v46 }
 0x7bd   : > { %7103 = vmatprep.mubr.f32.mxu0 %v17989_v46  ;;  %11726 = vmatpush1.bf16.msra.mxu1 %v11725_v62 }
 0x7be   : > { %v4968_v51 = vpop.f32.mrb[16].mxu0  ;;  %11728 = vmatprep.subr.bf16.mxu1 %v11727_v48 }
 0x7bf   : > { %v16533_v57 = vadd.f32 %v4968_v51, %v3880_v21  ;;  %v4970_v58 = vpop.f32.mrb[17].mxu0  ;;  %7954 = vmatmul.mubr.f32.gmra.mrb[86].mxu1 %v18306_v10  ;;  %v3902_v21 = vadd.f32 %v18314_v18, %v16518_v29  ;;  %v18318_v10 = vld [vmem:[#allocation20_spill] sm:$0xff] }
 0x7c0   : > { %7106 = vmatmul.mubr.f32.gmra.mrb[58].mxu0 %v18305_v17  ;;  %v16537_v49 = vadd.f32 %v4970_v58, %v3882_v39  ;;  %7959 = vmatprep.mubr.f32.mxu1 %v17989_v46  ;;  %v18317_v58 = vld [vmem:[#allocation95_spill] sm:$0xff] }
 0x7c1   : > { %18304 = vst [vmem:[#allocation38_spill] sm:$0xff] %v16533_v57  ;;  %7111 = vmatprep.mubr.f32.mxu0 %v17989_v46  ;;  %11730 = vmatpush1.bf16.msra.mxu1 %v11729_v30  ;;  %v18315_v30 = vld [vmem:[#allocation33_spill] sm:$0xff]  ;;  %v18360_v57 = vld [vmem:[#allocation114_spill] sm:$0xff] }
 0x7c2   : > { %18307 = vst [vmem:[#allocation40_spill] sm:$0xff] %v16537_v49  ;;  %v4975_v7 = vpop.f32.mrb[18].mxu0  ;;  %11732 = vmatprep.subr.bf16.mxu1 %v11731_v52  ;;  %v3904_v15 = vadd.f32 %v18315_v30, %v16521_v55  ;;  %v18324_v30 = vld [vmem:[#allocation96_spill] sm:$0xff]  ;;  %v18354_v49 = vld [vmem:[#allocation111_spill] sm:$0xff] }
 0x7c3   : > { %v16545_v5 = vadd.f32 %v4975_v7, %v3891_v13  ;;  %v4977_v62 = vpop.f32.mrb[19].mxu0  ;;  %7965 = vmatmul.mubr.f32.gmra.mrb[88].mxu1 %v18312_v53  ;;  %v18320_v13 = vld [vmem:[#allocation25_spill] sm:$0xff] }
 0x7c4   : > { %7114 = vmatmul.mubr.f32.gmra.mrb[60].mxu0 %v18311_v14  ;;  %v16549_v48 = vadd.f32 %v4977_v62, %v3893_v44  ;;  %7970 = vmatprep.mubr.f32.mxu1 %v17989_v46  ;;  %v3913_v12 = vadd.f32 %v18320_v13, %v16518_v29  ;;  %v18321_v44 = vld [vmem:[#allocation35_spill] sm:$0xff] }
 0x7c5   : > { %18310 = vst [vmem:[#allocation43_spill] sm:$0xff] %v16545_v5  ;;  %7119 = vmatprep.mubr.f32.mxu0 %v17989_v46  ;;  %v3915_v7 = vadd.f32 %v18321_v44, %v16521_v55  ;;  %v18348_v5 = vld [vmem:[#allocation108_spill] sm:$0xff] }
 0x7c6   : > { %18313 = vst [vmem:[#allocation89_spill] sm:$0xff] %v16549_v48  ;;  %v4982_v39 = vpop.f32.mrb[20].mxu0  ;;  %v18342_v48 = vld [vmem:[#allocation106_spill] sm:$0xff] }
 0x7c7   : > { %v16557_v51 = vadd.f32 %v4982_v39, %v3902_v21  ;;  %v4984_v52 = vpop.f32.mrb[21].mxu0  ;;  %7976 = vmatmul.mubr.f32.gmra.mrb[90].mxu1 %v18318_v10  ;;  %v18323_v21 = vld [vmem:[#allocation29_spill] sm:$0xff]  ;;  %v18326_v39 = vld [vmem:[#allocation23_spill] sm:$0xff] }
 0x7c8   : > { %7122 = vmatmul.mubr.f32.gmra.mrb[62].mxu0 %v18317_v58  ;;  %v16561_v37 = vadd.f32 %v4984_v52, %v3904_v15  ;;  %7981 = vmatprep.mubr.f32.mxu1 %v17989_v46  ;;  %v3924_v52 = vadd.f32 %v18326_v39, %v16518_v29  ;;  %v18327_v10 = vld [vmem:[#allocation37_spill] sm:$0xff]  ;;  %v18333_v39 = vld [vmem:[#allocation39_spill] sm:$0xff] }
 0x7c9   : > { %18316 = vst [vmem:[#allocation22_spill] sm:$0xff] %v16557_v51  ;;  %7127 = vmatprep.mubr.f32.mxu0 %v17989_v46  ;;  %v3926_v13 = vadd.f32 %v18327_v10, %v16521_v55  ;;  %v3937_v10 = vadd.f32 %v18333_v39, %v16521_v55  ;;  %v18336_v51 = vld [vmem:[#allocation103_spill] sm:$0xff] }
 0x7ca   : > { %18319 = vst [vmem:[#allocation57_spill] sm:$0xff] %v16561_v37  ;;  %v4989_v62 = vpop.f32.mrb[22].mxu0  ;;  %v18330_v37 = vld [vmem:[#allocation99_spill] sm:$0xff] }
 0x7cb   : > { %v16569_v53 = vadd.f32 %v4989_v62, %v3913_v12  ;;  %v4991_v18 = vpop.f32.mrb[23].mxu0  ;;  %7987 = vmatmul.mubr.f32.gmra.mrb[92].mxu1 %v18324_v30 }
 0x7cc   : > { %7130 = vmatmul.mubr.f32.gmra.mrb[64].mxu0 %v18323_v21  ;;  %v16573_v15 = vadd.f32 %v4991_v18, %v3915_v7  ;;  %7992 = vmatprep.mubr.f32.mxu1 %v17989_v46  ;;  %v18332_v18 = vld [vmem:[#allocation27_spill] sm:$0xff] }
 0x7cd   : > { %18322 = vst [vmem:[#allocation21_spill] sm:$0xff] %v16569_v53  ;;  %7135 = vmatprep.mubr.f32.mxu0 %v17989_v46  ;;  %v18329_v53 = vld [vmem:[#allocation98_spill] sm:$0xff]  ;;  %v3935_v30 = vadd.f32 %v18332_v18, %v16518_v29  ;;  %v18339_v18 = vld [vmem:[#allocation41_spill] sm:$0xff] }
 0x7ce   : > { %18325 = vst [vmem:[#allocation47_spill] sm:$0xff] %v16573_v15  ;;  %v4996_v44 = vpop.f32.mrb[24].mxu0  ;;  %v3948_v39 = vadd.f32 %v18339_v18, %v16521_v55 }
 0x7cf   : > { %v16581_v12 = vadd.f32 %v4996_v44, %v3924_v52  ;;  %v4998_v62 = vpop.f32.mrb[25].mxu0  ;;  %7998 = vmatmul.mubr.f32.gmra.mrb[94].mxu1 %v18330_v37 }
 0x7d0   : > { %7138 = vmatmul.mubr.f32.gmra.mrb[66].mxu0 %v18329_v53  ;;  %v16585_v7 = vadd.f32 %v4998_v62, %v3926_v13  ;;  %8003 = vmatprep.mubr.f32.mxu1 %v17989_v46  ;;  %v18338_v13 = vld [vmem:[#allocation30_spill] sm:$0xff]  ;;  %v18379_v53 = vld [vmem:[#allocation77_spill] sm:$0xff] }
 0x7d1   : > { %18328 = vst [vmem:[#allocation91_spill] sm:$0xff] %v16581_v12  ;;  %7143 = vmatprep.mubr.f32.mxu0 %v17989_v46  ;;  %v18335_v12 = vld [vmem:[#allocation101_spill] sm:$0xff]  ;;  %v3946_v62 = vadd.f32 %v18338_v13, %v16518_v29  ;;  %v18345_v13 = vld [vmem:[#allocation42_spill] sm:$0xff] }
 0x7d2   : > { %18331 = vst [vmem:[#allocation93_spill] sm:$0xff] %v16585_v7  ;;  %v5003_v15 = vpop.f32.mrb[26].mxu0  ;;  %v3959_v18 = vadd.f32 %v18345_v13, %v16521_v55 }
 0x7d3   : > { %v16593_v52 = vadd.f32 %v5003_v15, %v3935_v30  ;;  %v5005_v44 = vpop.f32.mrb[27].mxu0  ;;  %8009 = vmatmul.mubr.f32.gmra.mrb[96].mxu1 %v18336_v51 }
 0x7d4   : > { %7146 = vmatmul.mubr.f32.gmra.mrb[68].mxu0 %v18335_v12  ;;  %v16597_v37 = vadd.f32 %v5005_v44, %v3937_v10  ;;  %8014 = vmatprep.mubr.f32.mxu1 %v17989_v46  ;;  %v18344_v10 = vld [vmem:[#allocation32_spill] sm:$0xff] }
 0x7d5   : > { %18334 = vst [vmem:[#allocation46_spill] sm:$0xff] %v16593_v52  ;;  %7151 = vmatprep.mubr.f32.mxu0 %v17989_v46  ;;  %v18341_v52 = vld [vmem:[#allocation102_spill] sm:$0xff]  ;;  %v3957_v44 = vadd.f32 %v18344_v10, %v16518_v29  ;;  %v18351_v10 = vld [vmem:[#allocation45_spill] sm:$0xff] }
 0x7d6   : > { %18337 = vst [vmem:[#allocation31_spill] sm:$0xff] %v16597_v37  ;;  %v5010_v7 = vpop.f32.mrb[28].mxu0  ;;  %v3970_v13 = vadd.f32 %v18351_v10, %v16521_v55 }
 0x7d7   : > { %v16605_v15 = vadd.f32 %v5010_v7, %v3946_v62  ;;  %v5012_v30 = vpop.f32.mrb[29].mxu0  ;;  %8020 = vmatmul.mubr.f32.gmra.mrb[98].mxu1 %v18342_v48 }
 0x7d8   : > { %7154 = vmatmul.mubr.f32.gmra.mrb[70].mxu0 %v18341_v52  ;;  %v16609_v51 = vadd.f32 %v5012_v30, %v3948_v39  ;;  %8025 = vmatprep.mubr.f32.mxu1 %v17989_v46  ;;  %v18350_v39 = vld [vmem:[#allocation34_spill] sm:$0xff] }
 0x7d9   : > { %18340 = vst [vmem:[#allocation92_spill] sm:$0xff] %v16605_v15  ;;  %7159 = vmatprep.mubr.f32.mxu0 %v17989_v46  ;;  %v18347_v15 = vld [vmem:[#allocation107_spill] sm:$0xff]  ;;  %v3968_v30 = vadd.f32 %v18350_v39, %v16518_v29 }
 0x7da   : > { %18343 = vst [vmem:[#allocation24_spill] sm:$0xff] %v16609_v51  ;;  %v5017_v37 = vpop.f32.mrb[30].mxu0  ;;  %v18357_v39 = vld [vmem:[#allocation51_spill] sm:$0xff] }
 0x7db   : > { %v16617_v7 = vadd.f32 %v5017_v37, %v3957_v44  ;;  %v5019_v62 = vpop.f32.mrb[31].mxu0  ;;  %8031 = vmatmul.mubr.f32.gmra.mrb[100].mxu1 %v18348_v5  ;;  %v3981_v10 = vadd.f32 %v18357_v39, %v16521_v55 }
 0x7dc   : > { %7162 = vmatmul.mubr.f32.gmra.mrb[72].mxu0 %v18347_v15  ;;  %v16621_v48 = vadd.f32 %v5019_v62, %v3959_v18  ;;  %8036 = vmatprep.mubr.f32.mxu1 %v17989_v46  ;;  %v18356_v18 = vld [vmem:[#allocation49_spill] sm:$0xff] }
 0x7dd   : > { %18346 = vst [vmem:[#allocation18_spill] sm:$0xff] %v16617_v7  ;;  %7167 = vmatprep.mubr.f32.mxu0 %v17989_v46  ;;  %v18353_v7 = vld [vmem:[#allocation110_spill] sm:$0xff]  ;;  %v3979_v62 = vadd.f32 %v18356_v18, %v16518_v29  ;;  %v18363_v18 = vld [vmem:[#allocation48_spill] sm:$0xff]  ;;  %v18374_v15 = vld [vmem:[#allocation73_spill] sm:$0xff] }
 0x7de   : > { %18349 = vst [vmem:[#allocation33_spill] sm:$0xff] %v16621_v48  ;;  %v5024_v51 = vpop.f32.mrb[32].mxu0  ;;  %v3992_v39 = vadd.f32 %v18363_v18, %v16521_v55  ;;  %v18371_v18 = vld [vmem:[#allocation72_spill] sm:$0xff] }
 0x7df   : > { %v16629_v37 = vadd.f32 %v5024_v51, %v3968_v30  ;;  %v5026_v44 = vpop.f32.mrb[33].mxu0  ;;  %8042 = vmatmul.mubr.f32.gmra.mrb[102].mxu1 %v18354_v49 }
 0x7e0   : > { %7170 = vmatmul.mubr.f32.gmra.mrb[74].mxu0 %v18353_v7  ;;  %v16633_v5 = vadd.f32 %v5026_v44, %v3970_v13  ;;  %8047 = vmatprep.mubr.f32.mxu1 %v17989_v46  ;;  %v18362_v13 = vld [vmem:[#allocation44_spill] sm:$0xff]  ;;  %v18372_v7 = vand.u32 4294901760, %v18371_v18 }
 0x7e1   : > { %18352 = vst [vmem:[#allocation95_spill] sm:$0xff] %v16629_v37  ;;  %7175 = vmatprep.mubr.f32.mxu0 %v17989_v46  ;;  %v18359_v37 = vld [vmem:[#allocation113_spill] sm:$0xff]  ;;  %v3990_v44 = vadd.f32 %v18362_v13, %v16518_v29  ;;  %v18369_v13 = vld [vmem:[#allocation71_spill] sm:$0xff] }
 0x7e2   : > { %18355 = vst [vmem:[#allocation20_spill] sm:$0xff] %v16633_v5  ;;  %v5031_v48 = vpop.f32.mrb[34].mxu0 }
 0x7e3   : > { %v16641_v51 = vadd.f32 %v5031_v48, %v3979_v62  ;;  %v5033_v30 = vpop.f32.mrb[35].mxu0  ;;  %8053 = vmatmul.mubr.f32.gmra.mrb[104].mxu1 %v18360_v57 }
 0x7e4   : > { %7178 = vmatmul.mubr.f32.gmra.mrb[76].mxu0 %v18359_v37  ;;  %v16645_v49 = vadd.f32 %v5033_v30, %v3981_v10  ;;  %8058 = vmatprep.mubr.f32.mxu1 %v17989_v46  ;;  %v18366_v37 = vld [vmem:[#allocation117_spill] sm:$0xff]  ;;  %v18368_v10 = vld [vmem:[#allocation52_spill] sm:$0xff] }
 0x7e5   : > { %18358 = vst [vmem:[#allocation25_spill] sm:$0xff] %v16641_v51  ;;  %7183 = vmatprep.mubr.f32.mxu0 %v17989_v46  ;;  %v18365_v51 = vld [vmem:[#allocation116_spill] sm:$0xff]  ;;  %v4001_v30 = vadd.f32 %v18368_v10, %v16518_v29  ;;  %v18380_v10 = vld [vmem:[#allocation119_spill] sm:$0xff] }
 0x7e6   : > { %18361 = vst [vmem:[#allocation35_spill] sm:$0xff] %v16645_v49  ;;  %v5038_v5 = vpop.f32.mrb[36].mxu0  ;;  %v18370_v49 = vand.u32 4294901760, %v18369_v13 }
 0x7e7   : > { %v16653_v48 = vadd.f32 %v5038_v5, %v3990_v44  ;;  %v5040_v62 = vpop.f32.mrb[37].mxu0  ;;  %8064 = vmatmul.mubr.f32.gmra.mrb[106].mxu1 %v18366_v37  ;;  %v18373_v44 = vld [vmem:[#allocation56_spill] sm:$0xff]  ;;  %v18375_v37 = vand.u32 4294901760, %v18374_v15  ;;  %v18383_v15 = vld [vmem:[#allocation78_spill] sm:$0xff] }
 0x7e8   : > { %7186 = vmatmul.mubr.f32.gmra.mrb[78].mxu0 %v18365_v51  ;;  %v16657_v57 = vadd.f32 %v5040_v62, %v3992_v39  ;;  %8069 = vmatprep.mubr.f32.mxu1 %v17989_v46  ;;  %v11669_v5 = vpack.c.bf16 %v18372_v7, %v18370_v49  ;;  %v18376_v39 = vld [vmem:[#allocation74_spill] sm:$0xff]  ;;  %v18384_v18 = vand.u32 4294901760, %v18383_v15 }
 0x7e9   : > { %18364 = vst [vmem:[#allocation96_spill] sm:$0xff] %v16653_v48  ;;  %7272 = vmatprep.mubr.f32.mxu0 %v17989_v46  ;;  %v4003_v48 = vadd.f32 %v18373_v44, %v16521_v55  ;;  %v18377_v62 = vand.u32 4294901760, %v18376_v39  ;;  %v18382_v7 = vld [vmem:[#allocation58_spill] sm:$0xff]  ;;  %v18385_v44 = vld [vmem:[#allocation79_spill] sm:$0xff] }
 0x7ea   : > { %18367 = vst [vmem:[#allocation23_spill] sm:$0xff] %v16657_v57  ;;  %v5045_v51 = vpop.f32.mrb[38].mxu0  ;;  %v4012_v49 = vadd.f32 %v18382_v7, %v16518_v29  ;;  %v18393_v7 = vld [vmem:[#allocation81_spill] sm:$0xff] }
 0x7eb   : > { %v11671_v57 = vpack.c.bf16 %v18377_v62, %v18375_v37  ;;  %v16673_v52 = vadd.f32 %v5045_v51, %v4001_v30  ;;  %v5047_v12 = vpop.f32.mrb[39].mxu0  ;;  %8075 = vmatmul.mubr.f32.gmra.mrb[108].mxu1 %v18380_v10  ;;  %v18386_v51 = vand.u32 4294901760, %v18385_v44  ;;  %v18387_v37 = vld [vmem:[#allocation59_spill] sm:$0xff]  ;;  %v11733_v44 = vpack.c.bf16 %v16391_v22, %v16386_v19  ;;  %v18406_v22 = vld [vmem:[#allocation88_spill] sm:$0xff] }
 0x7ec   : > { %7276 = vmatmul.mubr.f32.vlgmr.msra.gmra.mrb[48].mxu0 %v18379_v53  ;;  %v16677_v13 = vadd.f32 %v5047_v12, %v4003_v48  ;;  %8080 = vmatprep.mubr.f32.mxu1 %v17989_v46  ;;  %v4014_v39 = vadd.f32 %v18387_v37, %v16521_v55  ;;  %v18388_v12 = vld [vmem:[#allocation80_spill] sm:$0xff]  ;;  %v18390_v10 = vld [vmem:[#allocation83_spill] sm:$0xff] }
 0x7ed   : > { %18378 = vst [vmem:[#allocation37_spill] sm:$0xff] %v16673_v52  ;;  %7281 = vmatprep.mubr.f32.mxu0 %v17989_v46  ;;  %11670 = vmatpush1.bf16.msra.mxu0 %v11669_v5  ;;  %v11673_v30 = vpack.c.bf16 %v18386_v51, %v18384_v18  ;;  %v18389_v48 = vand.u32 4294901760, %v18388_v12  ;;  %v18394_v5 = vld [vmem:[#allocation120_spill] sm:$0xff]  ;;  %v18399_v51 = vld [vmem:[#allocation85_spill] sm:$0xff]  ;;  %v18401_v12 = vld [vmem:[#allocation63_spill] sm:$0xff] }
 0x7ee   : > { %18381 = vst [vmem:[#allocation99_spill] sm:$0xff] %v16677_v13  ;;  %v5052_v62 = vpop.f32.mrb[40].mxu0  ;;  %11672 = vmatprep.subr.bf16.mxu0 %v11671_v57  ;;  %v18391_v13 = vand.u32 4294901760, %v18390_v10  ;;  %v18396_v57 = vld [vmem:[#allocation62_spill] sm:$0xff]  ;;  %v18400_v37 = vand.u32 4294901760, %v18399_v51 }
 0x7ef   : > { %v16693_v53 = vadd.f32 %v5052_v62, %v4012_v49  ;;  %v5054_v21 = vpop.f32.mrb[41].mxu0  ;;  %8086 = vmatmul.mubr.f32.gmra.mrb[110].mxu1 %v18394_v5  ;;  %v4023_v18 = vadd.f32 %v18396_v57, %v16518_v29  ;;  %v18404_v5 = vld [vmem:[#allocation87_spill] sm:$0xff] }
 0x7f0   : > { %v11675_v52 = vpack.c.bf16 %v18391_v13, %v18389_v48  ;;  %7285 = vmatmul.mubr.f32.gmra.mrb[50].mxu0 %v18393_v7  ;;  %v16697_v15 = vadd.f32 %v5054_v21, %v4014_v39  ;;  %8236 = vmatprep.mubr.f32.mxu1 %v17989_v46  ;;  %v18397_v13 = vld [vmem:[#allocation84_spill] sm:$0xff]  ;;  %v4025_v21 = vadd.f32 %v18401_v12, %v16521_v55  ;;  %v18402_v48 = vld [vmem:[#allocation86_spill] sm:$0xff] }
 0x7f1   : > { %18392 = vst [vmem:[#allocation27_spill] sm:$0xff] %v16693_v53  ;;  %7290 = vmatprep.mubr.f32.mxu0 %v17989_v46  ;;  %11674 = vmatpush1.bf16.msra.mxu0 %v11673_v30  ;;  %v18398_v49 = vand.u32 4294901760, %v18397_v13  ;;  %v18403_v10 = vand.u32 4294901760, %v18402_v48  ;;  %v18407_v30 = vld [vmem:[#allocation68_spill] sm:$0xff] }
 0x7f2   : > { %18395 = vst [vmem:[#allocation39_spill] sm:$0xff] %v16697_v15  ;;  %v5059_v39 = vpop.f32.mrb[42].mxu0  ;;  %11676 = vmatprep.subr.bf16.mxu0 %v11675_v52  ;;  %v18405_v15 = vand.u32 4294901760, %v18404_v5  ;;  %v18409_v52 = vld [vmem:[#allocation64_spill] sm:$0xff]  ;;  %v18419_v5 = vpack.c.bf16 %v16331_v31, %v16326_v9 }
 0x7f3   : > { %v11677_v62 = vpack.c.bf16 %v18400_v37, %v18398_v49  ;;  %v16715_v57 = vadd.f32 %v5059_v39, %v4023_v18  ;;  %v5061_v7 = vpop.f32.mrb[43].mxu0  ;;  %8238 = vmatmul.mubr.f32.vlgmr.msra.gmra.mrb[80].mxu1 %v18407_v30  ;;  %v4034_v49 = vadd.f32 %v18409_v52, %v16518_v29  ;;  %v18411_v18 = vand.u32 4294901760, %v15813_v32  ;;  %v18412_v37 = vld [vmem:[#allocation65_spill] sm:$0xff]  ;;  %v18418_v32 = vld [vmem:[#allocation66_spill] sm:$0xff] }
 0x7f4   : > { %v11679_v53 = vpack.c.bf16 %v18405_v15, %v18403_v10  ;;  %7294 = vmatmul.mubr.f32.gmra.mrb[52].mxu0 %v18406_v22  ;;  %v16719_v13 = vadd.f32 %v5061_v7, %v4025_v21  ;;  %8243 = vmatprep.mubr.f32.mxu1 %v17989_v46  ;;  %v18410_v15 = vand.u32 4294901760, %v15803_v16  ;;  %v4036_v12 = vadd.f32 %v18412_v37, %v16521_v55  ;;  %v18415_v10 = vld [vmem:[#allocation54_spill] sm:$0xff] }
 0x7f5   : > { %7299 = vmatprep.mubr.f32.mxu0 %v17989_v46  ;;  %11734 = vmatpush1.bf16.msra.mxu1 %v11733_v44  ;;  %v18413_v7 = vpack.c.bf16 %v16315_v3, %v16310_v11  ;;  %v18416_v44 = vld [vmem:[#allocation69_spill] sm:$0xff] }
 0x7f6   : > { %18408 = vst [vmem:[#allocation103_spill] sm:$0xff] %v16719_v13  ;;  %11678 = vmatpush1.bf16.msra.mxu0 %v11677_v62  ;;  %v11681_v51 = vpack.c.bf16 %v18411_v18, %v18410_v15  ;;  %v5066_v39 = vpop.f32.mrb[44].mxu0  ;;  %v4045_v62 = vadd.f32 %v18418_v32, %v16518_v29  ;;  %v18421_v15 = vpack.c.bf16 %v16355_v40, %v16350_v56  ;;  %v18424_v29 = vld [vmem:[#allocation76_spill] sm:$0xff]  ;;  %v18431_v32 = vld [vmem:[#allocation26_spill] sm:$0xff] }
 0x7f7   : > { %11736 = vmatprep.subr.bf16.mxu1 %v18413_v7  ;;  %11680 = vmatprep.subr.bf16.mxu0 %v11679_v53  ;;  %v16734_v21 = vadd.f32 %v5066_v39, %v4034_v49  ;;  %v5068_v48 = vpop.f32.mrb[45].mxu0  ;;  %v18420_v53 = vld [vmem:[#allocation67_spill] sm:$0xff]  ;;  %v18429_v7 = vld [vmem:[#allocation90_spill] sm:$0xff] }
 0x7f8   : > { %7303 = vmatmul.mubr.f32.gmra.mrb[54].mxu0 %v18415_v10  ;;  %8245 = vmatmul.mubr.f32.gmra.mrb[82].mxu1 %v18416_v44  ;;  %v16738_v16 = vadd.f32 %v5068_v48, %v4036_v12  ;;  %v4047_v52 = vadd.f32 %v18420_v53, %v16521_v55  ;;  %v18423_v12 = vld [vmem:[#allocation55_spill] sm:$0xff]  ;;  %v18426_v55 = vpack.c.bf16 %v16371_v43, %v16366_v50  ;;  %v18434_v53 = vld [vmem:[#allocation97_spill] sm:$0xff] }
 0x7f9   : > { %18414 = vst [vmem:[#allocation30_spill] sm:$0xff] %v16734_v21  ;;  %7308 = vmatprep.mubr.f32.mxu0 %v17989_v46  ;;  %8250 = vmatprep.mubr.f32.mxu1 %v17989_v46  ;;  %v18430_v48 = vpack.c.bf16 %v16425_v59, %v16420_v28  ;;  %v18453_v21 = vand.u32 4294901760, %v18249_v45 }
 0x7fa   : > { %18417 = vst [vmem:[#allocation41_spill] sm:$0xff] %v16738_v16  ;;  %11738 = vmatpush1.bf16.msra.mxu1 %v18419_v5  ;;  %11682 = vmatpush1.bf16.msra.mxu0 %v11681_v51  ;;  %v5073_v49 = vpop.f32.mrb[46].mxu0  ;;  %v18428_v51 = vld [vmem:[#allocation94_spill] sm:$0xff]  ;;  %v18433_v5 = vld [vmem:[#allocation17_spill] sm:$0xff]  ;;  %v18452_v16 = vand.u32 4294901760, %v18248_v36 }
 0x7fb   : > { %11740 = vmatprep.subr.bf16.mxu1 %v18421_v15  ;;  %11684 = vmatprep.subr.bf16.mxu0 %v18265_v60  ;;  %v16753_v18 = vadd.f32 %v5073_v49, %v4045_v62  ;;  %v5075_v37 = vpop.f32.mrb[47].mxu0  ;;  %v18427_v60 = vpack.c.bf16 %v16405_v38, %v16400_v26  ;;  %v18432_v62 = vld [vmem:[#allocation19_spill] sm:$0xff]  ;;  %v18436_v49 = vld [vmem:[#allocation104_spill] sm:$0xff]  ;;  %v18437_v15 = vld [vmem:[#allocation105_spill] sm:$0xff] }
 0x7fc   : > { %7312 = vmatmul.mubr.f32.gmra.mrb[56].mxu0 %v18423_v12  ;;  %8252 = vmatmul.mubr.f32.gmra.mrb[84].mxu1 %v18424_v29  ;;  %v16757_v39 = vadd.f32 %v5075_v37, %v4047_v52  ;;  %v18435_v52 = vld [vmem:[#allocation100_spill] sm:$0xff]  ;;  %v18438_v37 = vld [vmem:[#allocation109_spill] sm:$0xff]  ;;  %v11763_v13 = vpack.c.bf16 %v18453_v21, %v18452_v16 }
 0x7fd   : > { %18422 = vst [vmem:[#allocation106_spill] sm:$0xff] %v16753_v18  ;;  %7317 = vmatprep.mubr.f32.mxu0 %v17989_v46  ;;  %8257 = vmatprep.mubr.f32.mxu1 %v17989_v46  ;;  %v18445_v18 = vld [vmem:[#allocation122_spill] sm:$0xff] }
 0x7fe   : > { %18425 = vst [vmem:[#allocation32_spill] sm:$0xff] %v16757_v39  ;;  %11742 = vmatpush1.bf16.msra.mxu1 %v18426_v55  ;;  %v18439_v55 = vld [vmem:[#allocation112_spill] sm:$0xff]  ;;  %v18442_v39 = vld [vmem:[#allocation70_spill] sm:$0xff] }
 0x7ff   : > { %11744 = vmatprep.subr.bf16.mxu1 %v18427_v60  ;;  %v18440_v60 = vld [vmem:[#allocation115_spill] sm:$0xff] }
 0x800   : > { %7321 = vmatmul.mubr.f32.gmra.mrb[58].mxu0 %v18428_v51  ;;  %8259 = vmatmul.mubr.f32.gmra.mrb[86].mxu1 %v18429_v7 }
 0x801   : > { %7326 = vmatprep.mubr.f32.mxu0 %v17989_v46  ;;  %8264 = vmatprep.mubr.f32.mxu1 %v17989_v46 }
 0x802   : > { %11746 = vmatpush1.bf16.msra.mxu1 %v18430_v48  ;;  %v18441_v48 = vld [vmem:[#allocation118_spill] sm:$0xff] }
 0x803   : > { %11748 = vmatprep.subr.bf16.mxu1 %v18431_v32 }
 0x804   : > { %7330 = vmatmul.mubr.f32.gmra.mrb[60].mxu0 %v18432_v62  ;;  %8266 = vmatmul.mubr.f32.gmra.mrb[88].mxu1 %v18266_v0 }
 0x805   : > { %7335 = vmatprep.mubr.f32.mxu0 %v17989_v46  ;;  %8271 = vmatprep.mubr.f32.mxu1 %v17989_v46 }
 0x808   : > { %7339 = vmatmul.mubr.f32.gmra.mrb[62].mxu0 %v18433_v5  ;;  %8273 = vmatmul.mubr.f32.gmra.mrb[90].mxu1 %v15882_v8 }
 0x809   : > { %7344 = vmatprep.mubr.f32.mxu0 %v17989_v46  ;;  %8278 = vmatprep.mubr.f32.mxu1 %v17989_v46 }
 0x80c   : > { %7348 = vmatmul.mubr.f32.gmra.mrb[64].mxu0 %v18434_v53  ;;  %8280 = vmatmul.mubr.f32.gmra.mrb[92].mxu1 %v15896_v47 }
 0x80d   : > { %7353 = vmatprep.mubr.f32.mxu0 %v17989_v46  ;;  %8285 = vmatprep.mubr.f32.mxu1 %v17989_v46 }
 0x810   : > { %7357 = vmatmul.mubr.f32.gmra.mrb[66].mxu0 %v18435_v52  ;;  %8287 = vmatmul.mubr.f32.gmra.mrb[94].mxu1 %v15915_v42 }
 0x811   : > { %7362 = vmatprep.mubr.f32.mxu0 %v17989_v46  ;;  %8292 = vmatprep.mubr.f32.mxu1 %v17989_v46 }
 0x814   : > { %7366 = vmatmul.mubr.f32.gmra.mrb[68].mxu0 %v18436_v49  ;;  %8294 = vmatmul.mubr.f32.gmra.mrb[96].mxu1 %v15952_v35 }
 0x815   : > { %7371 = vmatprep.mubr.f32.mxu0 %v17989_v46  ;;  %8299 = vmatprep.mubr.f32.mxu1 %v17989_v46 }
 0x818   : > { %7375 = vmatmul.mubr.f32.gmra.mrb[70].mxu0 %v18437_v15  ;;  %8301 = vmatmul.mubr.f32.gmra.mrb[98].mxu1 %v15972_v54 }
 0x819   : > { %7380 = vmatprep.mubr.f32.mxu0 %v17989_v46  ;;  %8306 = vmatprep.mubr.f32.mxu1 %v17989_v46 }
 0x81c   : > { %7384 = vmatmul.mubr.f32.gmra.mrb[72].mxu0 %v18438_v37  ;;  %8308 = vmatmul.mubr.f32.gmra.mrb[100].mxu1 %v15990_v25 }
 0x81d   : > { %7389 = vmatprep.mubr.f32.mxu0 %v17989_v46  ;;  %8313 = vmatprep.mubr.f32.mxu1 %v17989_v46 }
 0x820   : > { %7393 = vmatmul.mubr.f32.gmra.mrb[74].mxu0 %v18439_v55  ;;  %8315 = vmatmul.mubr.f32.gmra.mrb[102].mxu1 %v15996_v34 }
 0x821   : > { %7398 = vmatprep.mubr.f32.mxu0 %v17989_v46  ;;  %8320 = vmatprep.mubr.f32.mxu1 %v17989_v46 }
 0x824   : > { %7402 = vmatmul.mubr.f32.gmra.mrb[76].mxu0 %v18440_v60  ;;  %8322 = vmatmul.mubr.f32.gmra.mrb[104].mxu1 %v16026_v61 }
 0x825   : > { %7407 = vmatprep.mubr.f32.mxu0 %v17989_v46  ;;  %8327 = vmatprep.mubr.f32.mxu1 %v17989_v46 }
 0x828   : > { %7411 = vmatmul.mubr.f32.gmra.mrb[78].mxu0 %v18441_v48  ;;  %8329 = vmatmul.mubr.f32.gmra.mrb[106].mxu1 %v16044_v23 }
 0x829   : > { %7529 = vmatprep.mubr.f32.mxu0 %v17989_v46  ;;  %8334 = vmatprep.mubr.f32.mxu1 %v17989_v46 }
 0x82c   : > { %7531 = vmatmul.mubr.f32.vlgmr.msra.gmra.mrb[48].mxu0 %v18407_v30  ;;  %8336 = vmatmul.mubr.f32.gmra.mrb[108].mxu1 %v16062_v27 }
 0x82d   : > { %7536 = vmatprep.mubr.f32.mxu0 %v17989_v46  ;;  %8341 = vmatprep.mubr.f32.mxu1 %v17989_v46 }
 0x82e   : > { %11686 = vmatpush1.bf16.msra.mxu0 %v18282_v4  ;;  %v18443_v4 = vld [vmem:[#allocation121_spill] sm:$0xff] }
 0x82f   : > { %11688 = vmatprep.subr.bf16.mxu0 %v18283_v20  ;;  %v18444_v20 = vld [vmem:[#allocation50_spill] sm:$0xff] }
 0x830   : > { %7538 = vmatmul.mubr.f32.gmra.mrb[50].mxu0 %v18416_v44  ;;  %8343 = vmatmul.mubr.f32.gmra.mrb[110].mxu1 %v16079_v33 }
 0x831   : > { %7543 = vmatprep.mubr.f32.mxu0 %v17989_v46  ;;  %8445 = vmatprep.mubr.f32.mxu1 %v17989_v46 }
 0x832   : > { %11690 = vmatpush1.bf16.msra.mxu0 %v18287_v1  ;;  %v18446_v1 = vld [vmem:[#allocation75_spill] sm:$0xff] }
 0x833   : > { %11692 = vmatprep.subr.bf16.mxu0 %v18288_v41  ;;  %v18447_v41 = vld [vmem:[#allocation60_spill] sm:$0xff] }
 0x834   : > { %7545 = vmatmul.mubr.f32.gmra.mrb[52].mxu0 %v18424_v29  ;;  %8448 = vmatmul.mubr.f32.vlgmr.msra.gmra.mrb[80].mxu1 %v18442_v39  ;;  %v18448_v39 = vld [vmem:[#allocation61_spill] sm:$0xff] }
 0x835   : > { %7550 = vmatprep.mubr.f32.mxu0 %v17989_v46  ;;  %8453 = vmatprep.mubr.f32.mxu1 %v17989_v46 }
 0x836   : > { %11750 = vmatpush1.bf16.msra.mxu1 %v18443_v4  ;;  %11694 = vmatpush1.bf16.msra.mxu0 %v18444_v20  ;;  %v18449_v20 = vld [vmem:[#allocation82_spill] sm:$0xff] }
 0x837   : > { %11752 = vmatprep.subr.bf16.mxu1 %v18445_v18  ;;  %11696 = vmatprep.subr.bf16.mxu0 %v18298_v24  ;;  %v18450_v24 = vld [vmem:[#allocation123_spill] sm:$0xff] }
 0x838   : > { %7552 = vmatmul.mubr.f32.gmra.mrb[54].mxu0 %v18429_v7  ;;  %8456 = vmatmul.mubr.f32.gmra.mrb[82].mxu1 %v18446_v1  ;;  %v18451_v1 = vld [vmem:[#allocation124_spill] sm:$0xff] }
 0x839   : > { %7557 = vmatprep.mubr.f32.mxu0 %v17989_v46  ;;  %8461 = vmatprep.mubr.f32.mxu1 %v17989_v46 }
 0x83a   : > { %11754 = vmatpush1.bf16.msra.mxu1 %v18447_v41  ;;  %11698 = vmatpush1.bf16.msra.mxu0 %v18301_v2  ;;  %v18454_v2 = vld [vmem:[#allocation28_spill] sm:$0xff] }
 0x83b   : > { %11756 = vmatprep.subr.bf16.mxu1 %v18448_v39 }
 0x83c   : > { %7559 = vmatmul.mubr.f32.gmra.mrb[56].mxu0 %v18266_v0  ;;  %8464 = vmatmul.mubr.f32.gmra.mrb[84].mxu1 %v18449_v20 }
 0x83d   : > { %7564 = vmatprep.mubr.f32.mxu0 %v17989_v46  ;;  %8469 = vmatprep.mubr.f32.mxu1 %v17989_v46 }
 0x83e   : > { %11758 = vmatpush1.bf16.msra.mxu1 %v18450_v24 }
 0x83f   : > { %11760 = vmatprep.subr.bf16.mxu1 %v18451_v1 }
 0x840   : > { %7566 = vmatmul.mubr.f32.gmra.mrb[58].mxu0 %v15882_v8  ;;  %8472 = vmatmul.mubr.f32.gmra.mrb[86].mxu1 %v15850_v63 }
 0x841   : > { %7571 = vmatprep.mubr.f32.mxu0 %v17989_v46  ;;  %8477 = vmatprep.mubr.f32.mxu1 %v17989_v46 }
 0x842   : > { %11762 = vmatpush1.bf16.msra.mxu1 %v18454_v2 }
 0x843   : > { %11764 = vmatprep.subr.bf16.mxu1 %v11763_v13 }
 0x844   : > { %7573 = vmatmul.mubr.f32.gmra.mrb[60].mxu0 %v15896_v47  ;;  %8480 = vmatmul.mubr.f32.gmra.mrb[88].mxu1 %v15880_v6 }
 0x845   : > { %7578 = vmatprep.mubr.f32.mxu0 %v17989_v46  ;;  %8485 = vmatprep.mubr.f32.mxu1 %v17989_v46 }
 0x846   : > { %v16861_v45 = vpop.f32.mrb[48].mxu1 }
 0x847   : > { %v16863_v36 = vpop.f32.mrb[49].mxu1 }
 0x848   : > { %18455 = vst [vmem:[#allocation42_spill] sm:$0xff] %v16863_v36  ;;  %7580 = vmatmul.mubr.f32.gmra.mrb[62].mxu0 %v15915_v42  ;;  %8488 = vmatmul.mubr.f32.gmra.mrb[90].mxu1 %v18305_v17 }
 0x849   : > { %7585 = vmatprep.mubr.f32.mxu0 %v17989_v46  ;;  %8493 = vmatprep.mubr.f32.mxu1 %v17989_v46 }
 0x84a   : > { %v16869_v63 = vpop.f32.mrb[50].mxu1 }
 0x84b   : > { %18456 = vst [vmem:[#allocation108_spill] sm:$0xff] %v16869_v63  ;;  %v16871_v13 = vpop.f32.mrb[51].mxu1  ;;  %v18487_v63 = vand.u32 4294901760, %v16310_v11 }
 0x84c   : > { %18457 = vst [vmem:[#allocation34_spill] sm:$0xff] %v16871_v13  ;;  %7587 = vmatmul.mubr.f32.gmra.mrb[64].mxu0 %v15952_v35  ;;  %8496 = vmatmul.mubr.f32.gmra.mrb[92].mxu1 %v18311_v14  ;;  %v18462_v14 = vld [vmem:[#allocation29_spill] sm:$0xff] }
 0x84d   : > { %7592 = vmatprep.mubr.f32.mxu0 %v17989_v46  ;;  %8501 = vmatprep.mubr.f32.mxu1 %v17989_v46 }
 0x84e   : > { %v16877_v6 = vpop.f32.mrb[52].mxu1 }
 0x84f   : > { %18458 = vst [vmem:[#allocation45_spill] sm:$0xff] %v16877_v6  ;;  %v16879_v21 = vpop.f32.mrb[53].mxu1 }
 0x850   : > { %18459 = vst [vmem:[#allocation111_spill] sm:$0xff] %v16879_v21  ;;  %7594 = vmatmul.mubr.f32.gmra.mrb[66].mxu0 %v15972_v54  ;;  %8504 = vmatmul.mubr.f32.gmra.mrb[94].mxu1 %v18317_v58  ;;  %v18465_v58 = vld [vmem:[#allocation98_spill] sm:$0xff] }
 0x851   : > { %7599 = vmatprep.mubr.f32.mxu0 %v17989_v46  ;;  %8509 = vmatprep.mubr.f32.mxu1 %v17989_v46 }
 0x852   : > { %v16885_v17 = vpop.f32.mrb[54].mxu1 }
 0x853   : > { %18460 = vst [vmem:[#allocation49_spill] sm:$0xff] %v16885_v17  ;;  %v16887_v16 = vpop.f32.mrb[55].mxu1 }
 0x854   : > { %18461 = vst [vmem:[#allocation51_spill] sm:$0xff] %v16887_v16  ;;  %7601 = vmatmul.mubr.f32.gmra.mrb[68].mxu0 %v15990_v25  ;;  %8512 = vmatmul.mubr.f32.gmra.mrb[96].mxu1 %v18462_v14  ;;  %v18468_v14 = vld [vmem:[#allocation101_spill] sm:$0xff] }
 0x855   : > { %7606 = vmatprep.mubr.f32.mxu0 %v17989_v46  ;;  %8517 = vmatprep.mubr.f32.mxu1 %v17989_v46 }
 0x856   : > { %v16893_v20 = vpop.f32.mrb[56].mxu1 }
 0x857   : > { %18463 = vst [vmem:[#allocation114_spill] sm:$0xff] %v16893_v20  ;;  %v16895_v21 = vpop.f32.mrb[57].mxu1 }
 0x858   : > { %18464 = vst [vmem:[#allocation44_spill] sm:$0xff] %v16895_v21  ;;  %7608 = vmatmul.mubr.f32.gmra.mrb[70].mxu0 %v15996_v34  ;;  %8520 = vmatmul.mubr.f32.gmra.mrb[98].mxu1 %v18465_v58  ;;  %v18471_v58 = vld [vmem:[#allocation102_spill] sm:$0xff] }
 0x859   : > { %7613 = vmatprep.mubr.f32.mxu0 %v17989_v46  ;;  %8525 = vmatprep.mubr.f32.mxu1 %v17989_v46 }
 0x85a   : > { %v16901_v16 = vpop.f32.mrb[58].mxu1 }
 0x85b   : > { %18466 = vst [vmem:[#allocation48_spill] sm:$0xff] %v16901_v16  ;;  %v16903_v17 = vpop.f32.mrb[59].mxu1 }
 0x85c   : > { %18467 = vst [vmem:[#allocation117_spill] sm:$0xff] %v16903_v17  ;;  %7615 = vmatmul.mubr.f32.gmra.mrb[72].mxu0 %v16026_v61  ;;  %8528 = vmatmul.mubr.f32.gmra.mrb[100].mxu1 %v18468_v14  ;;  %v18474_v14 = vld [vmem:[#allocation107_spill] sm:$0xff] }
 0x85d   : > { %7620 = vmatprep.mubr.f32.mxu0 %v17989_v46  ;;  %8533 = vmatprep.mubr.f32.mxu1 %v17989_v46 }
 0x85e   : > { %v16909_v21 = vpop.f32.mrb[60].mxu1 }
 0x85f   : > { %18469 = vst [vmem:[#allocation52_spill] sm:$0xff] %v16909_v21  ;;  %v16911_v20 = vpop.f32.mrb[61].mxu1 }
 0x860   : > { %18470 = vst [vmem:[#allocation71_spill] sm:$0xff] %v16911_v20  ;;  %7622 = vmatmul.mubr.f32.gmra.mrb[74].mxu0 %v16044_v23  ;;  %8536 = vmatmul.mubr.f32.gmra.mrb[102].mxu1 %v18471_v58  ;;  %v18477_v58 = vld [vmem:[#allocation110_spill] sm:$0xff] }
 0x861   : > { %7627 = vmatprep.mubr.f32.mxu0 %v17989_v46  ;;  %8541 = vmatprep.mubr.f32.mxu1 %v17989_v46 }
 0x862   : > { %v16917_v17 = vpop.f32.mrb[62].mxu1 }
 0x863   : > { %18472 = vst [vmem:[#allocation72_spill] sm:$0xff] %v16917_v17  ;;  %v16919_v16 = vpop.f32.mrb[63].mxu1 }
 0x864   : > { %18473 = vst [vmem:[#allocation56_spill] sm:$0xff] %v16919_v16  ;;  %7629 = vmatmul.mubr.f32.gmra.mrb[76].mxu0 %v16062_v27  ;;  %8544 = vmatmul.mubr.f32.gmra.mrb[104].mxu1 %v18474_v14  ;;  %v18480_v14 = vld [vmem:[#allocation113_spill] sm:$0xff] }
 0x865   : > { %7634 = vmatprep.mubr.f32.mxu0 %v17989_v46  ;;  %8549 = vmatprep.mubr.f32.mxu1 %v17989_v46 }
 0x866   : > { %v16925_v20 = vpop.f32.mrb[64].mxu1 }
 0x867   : > { %18475 = vst [vmem:[#allocation73_spill] sm:$0xff] %v16925_v20  ;;  %v16927_v21 = vpop.f32.mrb[65].mxu1 }
 0x868   : > { %18476 = vst [vmem:[#allocation74_spill] sm:$0xff] %v16927_v21  ;;  %7636 = vmatmul.mubr.f32.gmra.mrb[78].mxu0 %v16079_v33  ;;  %8552 = vmatmul.mubr.f32.gmra.mrb[106].mxu1 %v18477_v58  ;;  %v18483_v58 = vld [vmem:[#allocation116_spill] sm:$0xff] }
 0x869   : > { %7722 = vmatprep.mubr.f32.mxu0 %v17989_v46  ;;  %8557 = vmatprep.mubr.f32.mxu1 %v17989_v46 }
 0x86a   : > { %v16933_v16 = vpop.f32.mrb[66].mxu1 }
 0x86b   : > { %18478 = vst [vmem:[#allocation119_spill] sm:$0xff] %v16933_v16  ;;  %v16935_v17 = vpop.f32.mrb[67].mxu1  ;;  %v18485_v16 = vld [vmem:[#allocation53_spill] sm:$0xff] }
 0x86c   : > { %18479 = vst [vmem:[#allocation58_spill] sm:$0xff] %v16935_v17  ;;  %7724 = vmatmul.mubr.f32.vlgmr.msra.gmra.mrb[48].mxu0 %v18407_v30  ;;  %8560 = vmatmul.mubr.f32.gmra.mrb[108].mxu1 %v18480_v14  ;;  %v18484_v17 = vand.u32 4294901760, %v16386_v19  ;;  %v18486_v14 = vand.u32 4294901760, %v18485_v16  ;;  %v18490_v19 = vand.u32 4294901760, %v16326_v9  ;;  %v18495_v9 = vand.u32 4294901760, %v16366_v50 }
 0x86d   : > { %7729 = vmatprep.mubr.f32.mxu0 %v17989_v46  ;;  %8565 = vmatprep.mubr.f32.mxu1 %v17989_v46  ;;  %v18499_v50 = vand.u32 4294901760, %v16420_v28 }
 0x86e   : > { %v16941_v21 = vpop.f32.mrb[68].mxu1  ;;  %v11765_v6 = vpack.c.bf16 %v18486_v14, %v18484_v17  ;;  %v18491_v17 = vand.u32 4294901760, %v16331_v31  ;;  %v18496_v31 = vand.u32 4294901760, %v16371_v43  ;;  %v18500_v43 = vand.u32 4294901760, %v16425_v59  ;;  %v9330_v59 = vld [vmem:[%s13436_s23 + $0x8] sm:$0xff] }
 0x86f   : > { %18481 = vst [vmem:[#allocation78_spill] sm:$0xff] %v16941_v21  ;;  %v16943_v20 = vpop.f32.mrb[69].mxu1  ;;  %v18488_v21 = vand.u32 4294901760, %v16315_v3  ;;  %v18492_v3 = vand.u32 4294901760, %v16350_v56 }
 0x870   : > { %18482 = vst [vmem:[#allocation79_spill] sm:$0xff] %v16943_v20  ;;  %7731 = vmatmul.mubr.f32.gmra.mrb[50].mxu0 %v18416_v44  ;;  %8568 = vmatmul.mubr.f32.gmra.mrb[110].mxu1 %v18483_v58  ;;  %v18489_v58 = vld [vmem:[#allocation77_spill] sm:$0xff]  ;;  %v11769_v16 = vpack.c.bf16 %v18491_v17, %v18490_v19 }
 0x871   : > { %7736 = vmatprep.mubr.f32.mxu0 %v17989_v46  ;;  %8654 = vmatprep.mubr.f32.mxu1 %v17989_v46  ;;  %v11767_v20 = vpack.c.bf16 %v18488_v21, %v18487_v63  ;;  %v18493_v63 = vand.u32 4294901760, %v16355_v40  ;;  %v18497_v40 = vand.u32 4294901760, %v16400_v26 }
 0x872   : > { %v16953_v13 = vpop.f32.mrb[70].mxu1 }
 0x873   : > { %v16959_v36 = vpop.f32.mrb[71].mxu1  ;;  %v11771_v21 = vpack.c.bf16 %v18493_v63, %v18492_v3 }
 0x874   : > { %7738 = vmatmul.mubr.f32.gmra.mrb[52].mxu0 %v18424_v29  ;;  %8658 = vmatmul.mubr.f32.vlgmr.msra.gmra.mrb[80].mxu1 %v18489_v58  ;;  %v18494_v58 = vld [vmem:[#allocation81_spill] sm:$0xff] }
 0x875   : > { %7743 = vmatprep.mubr.f32.mxu0 %v17989_v46  ;;  %8663 = vmatprep.mubr.f32.mxu1 %v17989_v46 }
 0x876   : > { %11766 = vmatpush1.bf16.msra.mxu1 %v11765_v6  ;;  %v16969_v11 = vpop.f32.mrb[72].mxu1  ;;  %v11773_v6 = vpack.c.bf16 %v18496_v31, %v18495_v9 }
 0x877   : > { %11768 = vmatprep.subr.bf16.mxu1 %v11767_v20  ;;  %v16975_v14 = vpop.f32.mrb[73].mxu1  ;;  %v18498_v20 = vand.u32 4294901760, %v16405_v38 }
 0x878   : > { %7745 = vmatmul.mubr.f32.gmra.mrb[54].mxu0 %v18429_v7  ;;  %8667 = vmatmul.mubr.f32.gmra.mrb[82].mxu1 %v18494_v58 }
 0x879   : > { %7750 = vmatprep.mubr.f32.mxu0 %v17989_v46  ;;  %8672 = vmatprep.mubr.f32.mxu1 %v17989_v46  ;;  %v11775_v19 = vpack.c.bf16 %v18498_v20, %v18497_v40 }
 0x87a   : > { %11770 = vmatpush1.bf16.msra.mxu1 %v11769_v16  ;;  %v16985_v56 = vpop.f32.mrb[74].mxu1  ;;  %v11777_v16 = vpack.c.bf16 %v18500_v43, %v18499_v50 }
 0x87b   : > { %11772 = vmatprep.subr.bf16.mxu1 %v11771_v21  ;;  %v16991_v17 = vpop.f32.mrb[75].mxu1  ;;  %v9335_v21 = vld [vmem:[%s13436_s23 + $0x30] sm:$0xff] }
 0x87c   : > { %7752 = vmatmul.mubr.f32.gmra.mrb[56].mxu0 %v18266_v0  ;;  %8676 = vmatmul.mubr.f32.gmra.mrb[84].mxu1 %v18406_v22  ;;  %v17079_v50 = vmul.f32 0.16666667, %v9335_v21 }
 0x87d   : > { %7757 = vmatprep.mubr.f32.mxu0 %v17989_v46  ;;  %8681 = vmatprep.mubr.f32.mxu1 %v17989_v46 }
 0x87e   : > { %11774 = vmatpush1.bf16.msra.mxu1 %v11773_v6  ;;  %v17001_v26 = vpop.f32.mrb[76].mxu1  ;;  %vm9447_vm8 = vcmp.lt.f32.partialorder %v17079_v50, 1.0 }
 0x87f   : > { %11776 = vmatprep.subr.bf16.mxu1 %v11775_v19  ;;  %v17003_v38 = vpop.f32.mrb[77].mxu1 }
 0x880   : > { %7759 = vmatmul.mubr.f32.gmra.mrb[58].mxu0 %v15882_v8  ;;  %8685 = vmatmul.mubr.f32.gmra.mrb[86].mxu1 %v18415_v10  ;;  %v13263_v10 = vmov 0  }
 0x881   : > { %7764 = vmatprep.mubr.f32.mxu0 %v17989_v46  ;;  %8690 = vmatprep.mubr.f32.mxu1 %v17989_v46 }
 0x882   : > { %11778 = vmatpush1.bf16.msra.mxu1 %v11777_v16  ;;  %v17009_v22 = vpop.f32.mrb[78].mxu1  ;;  %12971 = vset.pattern.permute.xlu1 %v13263_v10 }
 0x883   : > { %11780 = vmatprep.subr.bf16.mxu1 %v18431_v32  ;;  %v17012_v28 = vpop.f32.mrb[79].mxu1  ;;  %12970 = vset.pattern.permute.xlu0 %v13263_v10  ;;  %v9331_v32 = vld [vmem:[%s13436_s23 + $0x10] sm:$0xff] }
 0x884   : > { %7766 = vmatmul.mubr.f32.gmra.mrb[60].mxu0 %v15896_v47  ;;  %8694 = vmatmul.mubr.f32.gmra.mrb[88].mxu1 %v18423_v12  ;;  %v9346_v12 = vmul.f32 0.16666667, %v9330_v59 }
 0x885   : > { %7771 = vmatprep.mubr.f32.mxu0 %v17989_v46  ;;  %8699 = vmatprep.mubr.f32.mxu1 %v17989_v46 }
 0x886   : > { %vm9442_vm3 = vcmp.lt.f32.partialorder %v9346_v12, 1.0 }
 0x888   : > { %7773 = vmatmul.mubr.f32.gmra.mrb[62].mxu0 %v15915_v42  ;;  %8703 = vmatmul.mubr.f32.gmra.mrb[90].mxu1 %v18428_v51  ;;  %v9362_v51 = vmul.f32 %v9346_v12, %v9346_v12 }
 0x889   : > { %7778 = vmatprep.mubr.f32.mxu0 %v17989_v46  ;;  %8708 = vmatprep.mubr.f32.mxu1 %v17989_v46 }
 0x88c   : > { %7780 = vmatmul.mubr.f32.gmra.mrb[64].mxu0 %v15952_v35  ;;  %8712 = vmatmul.mubr.f32.gmra.mrb[92].mxu1 %v18432_v62  ;;  %v9378_v62 = vmul.f32 %v9362_v51, %v9362_v51 }
 0x88d   : > { %7785 = vmatprep.mubr.f32.mxu0 %v17989_v46  ;;  %8717 = vmatprep.mubr.f32.mxu1 %v17989_v46 }
 0x890   : > { %7787 = vmatmul.mubr.f32.gmra.mrb[66].mxu0 %v15972_v54  ;;  %8721 = vmatmul.mubr.f32.gmra.mrb[94].mxu1 %v18433_v5  ;;  %v17057_v5 = vmul.f32 0.16666667, %v9331_v32 }
 0x891   : > { %7792 = vmatprep.mubr.f32.mxu0 %v17989_v46  ;;  %8726 = vmatprep.mubr.f32.mxu1 %v17989_v46 }
 0x892   : > { %vm9443_vm4 = vcmp.lt.f32.partialorder %v17057_v5, 1.0 }
 0x894   : > { %7794 = vmatmul.mubr.f32.gmra.mrb[68].mxu0 %v15990_v25  ;;  %8730 = vmatmul.mubr.f32.gmra.mrb[96].mxu1 %v18434_v53  ;;  %v9394_v53 = vmul.f32 %v9378_v62, %v9346_v12 }
 0x895   : > { %7799 = vmatprep.mubr.f32.mxu0 %v17989_v46  ;;  %8735 = vmatprep.mubr.f32.mxu1 %v17989_v46 }
 0x898   : > { %7801 = vmatmul.mubr.f32.gmra.mrb[70].mxu0 %v15996_v34  ;;  %8739 = vmatmul.mubr.f32.gmra.mrb[98].mxu1 %v18435_v52  ;;  %v9363_v52 = vmul.f32 %v17057_v5, %v17057_v5 }
 0x899   : > { %7806 = vmatprep.mubr.f32.mxu0 %v17989_v46  ;;  %8744 = vmatprep.mubr.f32.mxu1 %v17989_v46 }
 0x89a   : > { %v9379_v3 = vmul.f32 %v9363_v52, %v9363_v52 }
 0x89c   : > { %7808 = vmatmul.mubr.f32.gmra.mrb[72].mxu0 %v16026_v61  ;;  %8748 = vmatmul.mubr.f32.gmra.mrb[100].mxu1 %v18436_v49  ;;  %v9332_v49 = vld [vmem:[%s13436_s23 + $0x18] sm:$0xff] }
 0x89d   : > { %7813 = vmatprep.mubr.f32.mxu0 %v17989_v46  ;;  %8753 = vmatprep.mubr.f32.mxu1 %v17989_v46  ;;  %v17066_v63 = vmul.f32 0.16666667, %v9332_v49 }
 0x89f   : > { %v9364_v20 = vmul.f32 %v17066_v63, %v17066_v63  ;;  %vm9444_vm5 = vcmp.lt.f32.partialorder %v17066_v63, 1.0 }
 0x8a0   : > { %7815 = vmatmul.mubr.f32.gmra.mrb[74].mxu0 %v16044_v23  ;;  %8757 = vmatmul.mubr.f32.gmra.mrb[102].mxu1 %v18437_v15  ;;  %v9333_v15 = vld [vmem:[%s13436_s23 + $0x20] sm:$0xff] }
 0x8a1   : > { %7820 = vmatprep.mubr.f32.mxu0 %v17989_v46  ;;  %8762 = vmatprep.mubr.f32.mxu1 %v17989_v46  ;;  %v17069_v58 = vmul.f32 0.16666667, %v9333_v15  ;;  %v9380_v51 = vmul.f32 %v9364_v20, %v9364_v20 }
 0x8a3   : > { %v9365_v19 = vmul.f32 %v17069_v58, %v17069_v58  ;;  %vm9445_vm6 = vcmp.lt.f32.partialorder %v17069_v58, 1.0 }
 0x8a4   : > { %7822 = vmatmul.mubr.f32.gmra.mrb[76].mxu0 %v16062_v27  ;;  %8766 = vmatmul.mubr.f32.gmra.mrb[104].mxu1 %v18438_v37  ;;  %v9334_v37 = vld [vmem:[%s13436_s23 + $0x28] sm:$0xff] }
 0x8a5   : > { %7827 = vmatprep.mubr.f32.mxu0 %v17989_v46  ;;  %8771 = vmatprep.mubr.f32.mxu1 %v17989_v46  ;;  %v17071_v9 = vmul.f32 0.16666667, %v9334_v37  ;;  %v9381_v32 = vmul.f32 %v9365_v19, %v9365_v19 }
 0x8a7   : > { %v9366_v62 = vmul.f32 %v17071_v9, %v17071_v9  ;;  %v9397_v37 = vmul.f32 %v9381_v32, %v17069_v58  ;;  %vm9446_vm7 = vcmp.lt.f32.partialorder %v17071_v9, 1.0 }
 0x8a8   : > { %7829 = vmatmul.mubr.f32.gmra.mrb[78].mxu0 %v16079_v33  ;;  %8775 = vmatmul.mubr.f32.gmra.mrb[106].mxu1 %v18439_v55  ;;  %v9410_v55 = vmul.f32 %v9394_v53, %v9346_v12 }
 0x8a9   : > { %8780 = vmatprep.mubr.f32.mxu1 %v17989_v46  ;;  %v9461_v19 = vmul.f32 -21.0, %v9397_v37 }
 0x8aa   : > { %v9426_v31 = vmul.f32 %v9410_v55, %v9346_v12  ;;  %v9490_v40 = vmul.f32 35.0, %v9410_v55  ;;  %v9382_v55 = vmul.f32 %v9366_v62, %v9366_v62 }
 0x8ac   : > { %8784 = vmatmul.mubr.f32.gmra.mrb[108].mxu1 %v18440_v60  ;;  %v9458_v60 = vmul.f32 -21.0, %v9394_v53  ;;  %v9522_v16 = vmul.f32 -15.0, %v9426_v31 }
 0x8ad   : > { %8789 = vmatprep.mubr.f32.mxu1 %v17989_v46 }
 0x8ae   : > { %v9474_v6 = vadd.f32 1.0, %v9458_v60 }
 0x8b0   : > { %8793 = vmatmul.mubr.f32.gmra.mrb[110].mxu1 %v18441_v48  ;;  %v9395_v48 = vmul.f32 %v9379_v3, %v17057_v5  ;;  %v9506_v43 = vadd.f32 %v9490_v40, %v9474_v6 }
 0x8b1   : > { %8911 = vmatprep.mubr.f32.mxu1 %v17989_v46 }
 0x8b2   : > { %v9411_v59 = vmul.f32 %v9395_v48, %v17057_v5  ;;  %v9459_v10 = vmul.f32 -21.0, %v9395_v48  ;;  %v9538_v53 = vadd.f32 %v9522_v16, %v9506_v43  ;;  %v9413_v48 = vmul.f32 %v9397_v37, %v17069_v58 }
 0x8b3   : > { %v9398_v43 = vmul.f32 %v9382_v55, %v17071_v9 }
 0x8b4   : > { %8913 = vmatmul.mubr.f32.vlgmr.msra.gmra.mrb[80].mxu1 %v18407_v30  ;;  %v9427_v52 = vmul.f32 %v9411_v59, %v17057_v5  ;;  %v9475_v49 = vadd.f32 1.0, %v9459_v10  ;;  %v9491_v15 = vmul.f32 35.0, %v9411_v59  ;;  %v9554_v60 = vsel %vm9442_vm3, %v9538_v53, 0.0 }
 0x8b5   : > { %8918 = vmatprep.mubr.f32.mxu1 %v17989_v46  ;;  %11782 = vmatpush1.bf16.msra.mxu1 %v18443_v4  ;;  %v9396_v4 = vmul.f32 %v9380_v51, %v17066_v63  ;;  %v9570_v31 = vmul.f32 0.5, %v9554_v60  ;;  %v9477_v51 = vadd.f32 1.0, %v9461_v19  ;;  %v9493_v32 = vmul.f32 35.0, %v9413_v48 }
 0x8b6   : > { %11784 = vmatprep.subr.bf16.mxu1 %v18445_v18  ;;  %v9367_v18 = vmul.f32 %v17079_v50, %v17079_v50  ;;  %v9507_v3 = vadd.f32 %v9491_v15, %v9475_v49  ;;  %v9523_v21 = vmul.f32 -15.0, %v9427_v52  ;;  %v9414_v62 = vmul.f32 %v9398_v43, %v17071_v9 }
 0x8b7   : > { %v9412_v6 = vmul.f32 %v9396_v4, %v17066_v63  ;;  %v9460_v40 = vmul.f32 -21.0, %v9396_v4  ;;  %9592 = vperm.xlu1 %12971, %v9570_v31   ;;  %v9329_v4 = vld [vmem:[%s13436_s23] sm:$0xff]  ;;  %v9509_v37 = vadd.f32 %v9493_v32, %v9477_v51 }
 0x8b8   : > { %8920 = vmatmul.mubr.f32.gmra.mrb[82].mxu1 %v18416_v44  ;;  %v9539_v20 = vadd.f32 %v9523_v21, %v9507_v3  ;;  %v9383_v16 = vmul.f32 %v9367_v18, %v9367_v18  ;;  %v9430_v55 = vmul.f32 %v9414_v62, %v17071_v9  ;;  %v9462_v18 = vmul.f32 -21.0, %v9398_v43 }
 0x8b9   : > { %8925 = vmatprep.mubr.f32.mxu1 %v17989_v46  ;;  %11786 = vmatpush1.bf16.msra.mxu1 %v18447_v41  ;;  %v9428_v41 = vmul.f32 %v9412_v6, %v17066_v63  ;;  %v9476_v12 = vadd.f32 1.0, %v9460_v40  ;;  %v9492_v59 = vmul.f32 35.0, %v9412_v6 }
 0x8ba   : > { %11788 = vmatprep.subr.bf16.mxu1 %v18448_v39  ;;  %v9429_v39 = vmul.f32 %v9413_v48, %v17069_v58  ;;  %v9555_v10 = vsel %vm9443_vm4, %v9539_v20, 0.0  ;;  %v9399_v60 = vmul.f32 %v9383_v16, %v17079_v50  ;;  %v9478_v21 = vadd.f32 1.0, %v9462_v18  ;;  %v9336_v20 = vld [vmem:[%s13436_s23 + $0x38] sm:$0xff] }
 0x8bb   : > { %v9571_v53 = vmul.f32 0.5, %v9555_v10  ;;  %v9508_v52 = vadd.f32 %v9492_v59, %v9476_v12  ;;  %v9524_v49 = vmul.f32 -15.0, %v9428_v41  ;;  %v9526_v31 = vmul.f32 -15.0, %v9430_v55 }
 0x8bc   : > { %8927 = vmatmul.mubr.f32.gmra.mrb[84].mxu1 %v18424_v29  ;;  %v9525_v15 = vmul.f32 -15.0, %v9429_v39  ;;  %v9415_v40 = vmul.f32 %v9399_v60, %v17079_v50  ;;  %v9463_v48 = vmul.f32 -21.0, %v9399_v60  ;;  %v17126_v41 = vmul.f32 0.16666667, %v9336_v20 }
 0x8bd   : > { %8932 = vmatprep.mubr.f32.mxu1 %v17989_v46  ;;  %11790 = vmatpush1.bf16.msra.mxu1 %v18450_v24  ;;  %v9494_v24 = vmul.f32 35.0, %v9414_v62  ;;  %v9540_v5 = vadd.f32 %v9524_v49, %v9508_v52 }
 0x8be   : > { %11792 = vmatprep.subr.bf16.mxu1 %v18451_v1  ;;  %9597 = vperm.xlu1 %12971, %v9571_v53   ;;  %v17116_v1 = vmul.f32 0.16666667, %v9329_v4  ;;  %v9541_v3 = vadd.f32 %v9525_v15, %v9509_v37  ;;  %v9479_v63 = vadd.f32 1.0, %v9463_v48  ;;  %v9495_v12 = vmul.f32 35.0, %v9415_v40  ;;  %v9337_v53 = vld [vmem:[%s13436_s23 + $0x40] sm:$0xff]  ;;  %v9338_v4 = vld [vmem:[%s13436_s23 + $0x48] sm:$0xff] }
 0x8bf   : > { %v9556_v6 = vsel %vm9444_vm5, %v9540_v5, 0.0  ;;  %v9510_v16 = vadd.f32 %v9494_v24, %v9478_v21  ;;  %v9368_v10 = vmul.f32 %v17126_v41, %v17126_v41  ;;  %v17137_v15 = vmul.f32 0.16666667, %v9337_v53  ;;  %v9341_v53 = vld [vmem:[%s13436_s23 + $0x60] sm:$0xff] }
 0x8c0   : > { %8934 = vmatmul.mubr.f32.gmra.mrb[86].mxu1 %v18429_v7  ;;  %v9361_v58 = vmul.f32 %v17116_v1, %v17116_v1  ;;  %v9572_v19 = vmul.f32 0.5, %v9556_v6  ;;  %v9557_v43 = vsel %vm9445_vm6, %v9541_v3, 0.0  ;;  %v9511_v32 = vadd.f32 %v9495_v12, %v9479_v63 }
 0x8c1   : > { %8939 = vmatprep.mubr.f32.mxu1 %v17989_v46  ;;  %11794 = vmatpush1.bf16.msra.mxu1 %v18454_v2  ;;  %v9431_v2 = vmul.f32 %v9415_v40, %v17079_v50  ;;  %v9573_v59 = vmul.f32 0.5, %v9557_v43  ;;  %v9542_v39 = vadd.f32 %v9526_v31, %v9510_v16  ;;  %v9384_v52 = vmul.f32 %v9368_v10, %v9368_v10 }
 0x8c2   : > { %9602 = vperm.xlu1 %12971, %v9572_v19   ;;  %v9377_v51 = vmul.f32 %v9361_v58, %v9361_v58  ;;  %v17141_v18 = vmul.f32 0.16666667, %v9338_v4  ;;  %v9369_v3 = vmul.f32 %v17137_v15, %v17137_v15  ;;  %vm9448_vm9 = vcmp.lt.f32.partialorder %v17126_v41, 1.0  ;;  %v9339_v58 = vld [vmem:[%s13436_s23 + $0x50] sm:$0xff] }
 0x8c3   : > { %v9527_v62 = vmul.f32 -15.0, %v9431_v2  ;;  %v9558_v9 = vsel %vm9446_vm7, %v9542_v39, 0.0  ;;  %v9400_v24 = vmul.f32 %v9384_v52, %v17126_v41  ;;  %v9340_v2 = vld [vmem:[%s13436_s23 + $0x58] sm:$0xff]  ;;  %vm9441_vm10 = vcmp.lt.f32.partialorder %v17116_v1, 1.0 }
 0x8c4   : > { %8941 = vmatmul.mubr.f32.gmra.mrb[88].mxu1 %v18266_v0  ;;  %v9393_v49 = vmul.f32 %v9377_v51, %v17116_v1  ;;  %v9574_v37 = vmul.f32 0.5, %v9558_v9  ;;  %v9370_v31 = vmul.f32 %v17141_v18, %v17141_v18  ;;  %v9385_v16 = vmul.f32 %v9369_v3, %v9369_v3 }
 0x8c5   : > { %8946 = vmatprep.mubr.f32.mxu1 %v17989_v46  ;;  %v9543_v55 = vadd.f32 %v9527_v62, %v9511_v32  ;;  %v9416_v40 = vmul.f32 %v9400_v24, %v17126_v41  ;;  %v9464_v48 = vmul.f32 -21.0, %v9400_v24  ;;  %v17162_v62 = vmul.f32 0.16666667, %v9339_v58 }
 0x8c6   : > { %9607 = vperm.xlu1 %12971, %v9573_v59   ;;  %v9409_v5 = vmul.f32 %v9393_v49, %v17116_v1  ;;  %v9457_v60 = vmul.f32 -21.0, %v9393_v49  ;;  %v9386_v50 = vmul.f32 %v9370_v31, %v9370_v31  ;;  %v9401_v51 = vmul.f32 %v9385_v16, %v17137_v15 }
 0x8c7   : > { %v9559_v21 = vsel %vm9447_vm8, %v9543_v55, 0.0  ;;  %v9432_v63 = vmul.f32 %v9416_v40, %v17126_v41  ;;  %v9480_v12 = vadd.f32 1.0, %v9464_v48  ;;  %v9496_v59 = vmul.f32 35.0, %v9416_v40 }
 0x8c8   : > { %8948 = vmatmul.mubr.f32.gmra.mrb[90].mxu1 %v15882_v8  ;;  %v9575_v6 = vmul.f32 0.5, %v9559_v21  ;;  %v9425_v20 = vmul.f32 %v9409_v5, %v17116_v1  ;;  %v9473_v19 = vadd.f32 1.0, %v9457_v60  ;;  %v9489_v43 = vmul.f32 35.0, %v9409_v5 }
 0x8c9   : > { %8953 = vmatprep.mubr.f32.mxu1 %v17989_v46  ;;  %v9402_v32 = vmul.f32 %v9386_v50, %v17141_v18  ;;  %v9512_v9 = vadd.f32 %v9496_v59, %v9480_v12  ;;  %v9528_v52 = vmul.f32 -15.0, %v9432_v63  ;;  %v17166_v49 = vmul.f32 0.16666667, %v9340_v2  ;;  %v9342_v63 = vld [vmem:[%s13436_s23 + $0x68] sm:$0xff] }
 0x8ca   : > { %9612 = vperm.xlu1 %12971, %v9574_v37   ;;  %v9521_v39 = vmul.f32 -15.0, %v9425_v20  ;;  %v9505_v10 = vadd.f32 %v9489_v43, %v9473_v19  ;;  %v9417_v37 = vmul.f32 %v9401_v51, %v17137_v15  ;;  %v9465_v55 = vmul.f32 -21.0, %v9401_v51 }
 0x8cb   : > { %v9418_v24 = vmul.f32 %v9402_v32, %v17141_v18  ;;  %v9544_v5 = vadd.f32 %v9528_v52, %v9512_v9  ;;  %v9466_v60 = vmul.f32 -21.0, %v9402_v32  ;;  %v9371_v3 = vmul.f32 %v17162_v62, %v17162_v62 }
 0x8cc   : > { %8955 = vmatmul.mubr.f32.gmra.mrb[92].mxu1 %v15896_v47  ;;  %v9537_v4 = vadd.f32 %v9521_v39, %v9505_v10  ;;  %v17174_v1 = vmul.f32 0.16666667, %v9341_v53  ;;  %v9433_v31 = vmul.f32 %v9417_v37, %v17137_v15  ;;  %v9481_v40 = vadd.f32 1.0, %v9465_v55  ;;  %v9343_v39 = vld [vmem:[%s13436_s23 + $0x70] sm:$0xff] }
 0x8cd   : > { %8960 = vmatprep.mubr.f32.mxu1 %v17989_v46  ;;  %v9497_v48 = vmul.f32 35.0, %v9417_v37  ;;  %v9560_v20 = vsel %vm9448_vm9, %v9544_v5, 0.0  ;;  %v9482_v19 = vadd.f32 1.0, %v9466_v60  ;;  %v9498_v2 = vmul.f32 35.0, %v9418_v24 }
 0x8ce   : > { %9617 = vperm.xlu1 %12971, %v9575_v6   ;;  %v9553_v21 = vsel %vm9441_vm10, %v9537_v4, 0.0  ;;  %v9434_v6 = vmul.f32 %v9418_v24, %v17141_v18  ;;  %v9576_v43 = vmul.f32 0.5, %v9560_v20  ;;  %v9529_v50 = vmul.f32 -15.0, %v9433_v31  ;;  %v9344_v4 = vld [vmem:[%s13436_s23 + $0x78] sm:$0xff]  ;;  %s13165_s23 = scalar_lea.vmem %s17612_s20, 256 }
 0x8cf   : > { %v9569_v58 = vmul.f32 0.5, %v9553_v21  ;;  %v9513_v16 = vadd.f32 %v9497_v48, %v9481_v40  ;;  %vm9449_vm11 = vcmp.lt.f32.partialorder %v17137_v15, 1.0  ;;  %v9387_v12 = vmul.f32 %v9371_v3, %v9371_v3  ;;  %p13166_p1 = scmp.ne.s32.totalorder %s17612_s20, %s13165_s23  ;;  %p13173_p6 = scmp.lt.s32.totalorder %s13171_s25, %s13165_s23 }
 0x8d0   : > { %8962 = vmatmul.mubr.f32.gmra.mrb[94].mxu1 %v15915_v42  ;;  %v9530_v41 = vmul.f32 -15.0, %v9434_v6  ;;  %v9372_v59 = vmul.f32 %v17166_v49, %v17166_v49  ;;  %vm9450_vm12 = vcmp.lt.f32.partialorder %v17141_v18, 1.0  ;;  %v9514_v51 = vadd.f32 %v9498_v2, %v9482_v19 }
 0x8d1   : > { %8967 = vmatprep.mubr.f32.mxu1 %v17989_v46  ;;  %9587 = vperm.xlu0 %12970, %v9569_v58   ;;  %v9545_v10 = vadd.f32 %v9529_v50, %v9513_v16  ;;  %v9373_v32 = vmul.f32 %v17174_v1, %v17174_v1  ;;  %v9403_v53 = vmul.f32 %v9387_v12, %v17162_v62  ;;  %vm9451_vm13 = vcmp.lt.f32.partialorder %v17162_v62, 1.0  ;;  %p13167_p2 = pnand %p13166_p1, %p13397_p3  ;;  %p13174_p7 = por %p13173_p6, %p13172_p5 }
 0x8d2   : > { %9622 = vperm.xlu1 %12971, %v9576_v43   ;;  %v9388_v9 = vmul.f32 %v9372_v59, %v9372_v59  ;;  %v17192_v52 = vmul.f32 0.16666667, %v9342_v63  ;;  %v9546_v55 = vadd.f32 %v9530_v41, %v9514_v51  ;;  %v17198_v5 = vmul.f32 0.16666667, %v9343_v39 }
 0x8d3   : > { %v9561_v37 = vsel %vm9449_vm11, %v9545_v10, 0.0  ;;  %v9389_v24 = vmul.f32 %v9373_v32, %v9373_v32  ;;  %v9419_v3 = vmul.f32 %v9403_v53, %v17162_v62  ;;  %v9467_v21 = vmul.f32 -21.0, %v9403_v53  ;;  %p13168_p4 = pneg %p13167_p2 }
 0x8d4   : > { %8969 = vmatmul.mubr.f32.gmra.mrb[96].mxu1 %v15952_v35  ;;  %v9577_v60 = vmul.f32 0.5, %v9561_v37  ;;  %v9404_v31 = vmul.f32 %v9388_v9, %v17166_v49  ;;  %vm9452_vm14 = vcmp.lt.f32.partialorder %v17166_v49, 1.0  ;;  %v9562_v40 = vsel %vm9450_vm12, %v9546_v55, 0.0 }
 0x8d5   : > { %8974 = vmatprep.mubr.f32.mxu1 %v17989_v46  ;;  %v9405_v15 = vmul.f32 %v9389_v24, %v17174_v1  ;;  %vm9453_vm15 = vcmp.lt.f32.partialorder %v17174_v1, 1.0  ;;  %v9374_v48 = vmul.f32 %v17192_v52, %v17192_v52  ;;  %v17210_v20 = vmul.f32 0.16666667, %v9344_v4  ;;  %p13175_p8 = pnand %p13174_p7, %p13168_p4 }
 0x8d6   : > { %9627 = vperm.xlu1 %12971, %v9577_v60   ;;  %v9578_v58 = vmul.f32 0.5, %v9562_v40  ;;  %v9435_v6 = vmul.f32 %v9419_v3, %v17162_v62  ;;  %v9483_v19 = vadd.f32 1.0, %v9467_v21  ;;  %v9499_v43 = vmul.f32 35.0, %v9419_v3 }
 0x8d7   : > { %v9420_v18 = vmul.f32 %v9404_v31, %v17166_v49  ;;  %v9468_v16 = vmul.f32 -21.0, %v9404_v31  ;;  %v9421_v50 = vmul.f32 %v9405_v15, %v17174_v1  ;;  %v9469_v2 = vmul.f32 -21.0, %v9405_v15 }
 0x8d8   : > { %8976 = vmatmul.mubr.f32.gmra.mrb[98].mxu1 %v15972_v54  ;;  %9632 = vperm.xlu0 %12970, %v9578_v58   ;;  %v9515_v63 = vadd.f32 %v9499_v43, %v9483_v19  ;;  %v9531_v41 = vmul.f32 -15.0, %v9435_v6  ;;  %v9390_v12 = vmul.f32 %v9374_v48, %v9374_v48  ;;  %v9375_v59 = vmul.f32 %v17198_v5, %v17198_v5 }
 0x8d9   : > { %8981 = vmatprep.mubr.f32.mxu1 %v17989_v46  ;;  %v9436_v39 = vmul.f32 %v9420_v18, %v17166_v49  ;;  %v9484_v10 = vadd.f32 1.0, %v9468_v16  ;;  %v9500_v51 = vmul.f32 35.0, %v9420_v18  ;;  %v9437_v32 = vmul.f32 %v9421_v50, %v17174_v1 }
 0x8da   : > { %v9547_v53 = vadd.f32 %v9531_v41, %v9515_v63  ;;  %v9485_v9 = vadd.f32 1.0, %v9469_v2  ;;  %v9501_v4 = vmul.f32 35.0, %v9421_v50  ;;  %v9406_v37 = vmul.f32 %v9390_v12, %v17192_v52 }
 0x8db   : > { %v9516_v55 = vadd.f32 %v9500_v51, %v9484_v10  ;;  %v9532_v24 = vmul.f32 -15.0, %v9436_v39  ;;  %v9533_v60 = vmul.f32 -15.0, %v9437_v32  ;;  %v9391_v3 = vmul.f32 %v9375_v59, %v9375_v59 }
 0x8dc   : > { %8983 = vmatmul.mubr.f32.gmra.mrb[100].mxu1 %v15990_v25  ;;  %v9563_v21 = vsel %vm9451_vm13, %v9547_v53, 0.0  ;;  %v9517_v31 = vadd.f32 %v9501_v4, %v9485_v9  ;;  %v9422_v40 = vmul.f32 %v9406_v37, %v17192_v52  ;;  %v9470_v15 = vmul.f32 -21.0, %v9406_v37 }
 0x8dd   : > { %8988 = vmatprep.mubr.f32.mxu1 %v17989_v46  ;;  %v9579_v48 = vmul.f32 0.5, %v9563_v21  ;;  %v9548_v58 = vadd.f32 %v9532_v24, %v9516_v55  ;;  %vm9454_vm0 = vcmp.lt.f32.partialorder %v17192_v52, 1.0  ;;  %v9407_v6 = vmul.f32 %v9391_v3, %v17198_v5 }
 0x8de   : > { %v9549_v19 = vadd.f32 %v9533_v60, %v9517_v31  ;;  %v9438_v43 = vmul.f32 %v9422_v40, %v17192_v52  ;;  %v9486_v18 = vadd.f32 1.0, %v9470_v15  ;;  %v9502_v16 = vmul.f32 35.0, %v9422_v40 }
 0x8df   : > { %9637 = vperm.xlu1 %12971, %v9579_v48   ;;  %v9564_v62 = vsel %vm9452_vm14, %v9548_v58, 0.0  ;;  %v9423_v50 = vmul.f32 %v9407_v6, %v17198_v5  ;;  %v9471_v2 = vmul.f32 -21.0, %v9407_v6  ;;  %v9376_v63 = vmul.f32 %v17210_v20, %v17210_v20 }
 0x8e0   : > { %8990 = vmatmul.mubr.f32.gmra.mrb[102].mxu1 %v15996_v34  ;;  %v9580_v41 = vmul.f32 0.5, %v9564_v62  ;;  %v9565_v12 = vsel %vm9453_vm15, %v9549_v19, 0.0  ;;  %v9518_v59 = vadd.f32 %v9502_v16, %v9486_v18  ;;  %v9534_v39 = vmul.f32 -15.0, %v9438_v43  ;;  %v18506_v16 = vld [vmem:[#allocation57_spill] sm:$0xff] }
 0x8e1   : > { %8995 = vmatprep.mubr.f32.mxu1 %v17989_v46  ;;  %v9581_v10 = vmul.f32 0.5, %v9565_v12  ;;  %v9439_v51 = vmul.f32 %v9423_v50, %v17198_v5  ;;  %v9487_v32 = vadd.f32 1.0, %v9471_v2  ;;  %v9503_v49 = vmul.f32 35.0, %v9423_v50 }
 0x8e2   : > { %9642 = vperm.xlu0 %12970, %v9580_v41   ;;  %v9550_v53 = vadd.f32 %v9534_v39, %v9518_v59  ;;  %v9392_v9 = vmul.f32 %v9376_v63, %v9376_v63  ;;  %vm9455_vm1 = vcmp.lt.f32.partialorder %v17198_v5, 1.0  ;;  %vm9456_vm2 = vcmp.lt.f32.partialorder %v17210_v20, 1.0  ;;  %v18507_v63 = vld [vmem:[#allocation21_spill] sm:$0xff]  ;;  %v18508_v59 = vld [vmem:[#allocation47_spill] sm:$0xff] }
 0x8e3   : > { %9647 = vperm.xlu1 %12971, %v9581_v10   ;;  %v9519_v4 = vadd.f32 %v9503_v49, %v9487_v32  ;;  %v9535_v37 = vmul.f32 -15.0, %v9439_v51  ;;  %v18509_v32 = vld [vmem:[#allocation91_spill] sm:$0xff] }
 0x8e4   : > { %8997 = vmatmul.mubr.f32.gmra.mrb[104].mxu1 %v16026_v61  ;;  %v9566_v1 = vsel %vm9454_vm0, %v9550_v53, 0.0  ;;  %v9408_v55 = vmul.f32 %v9392_v9, %v17210_v20  ;;  %v18510_v9 = vld [vmem:[#allocation93_spill] sm:$0xff] }
 0x8e5   : > { %9002 = vmatprep.mubr.f32.mxu1 %v17989_v46  ;;  %v9582_v24 = vmul.f32 0.5, %v9566_v1  ;;  %v9551_v60 = vadd.f32 %v9535_v37, %v9519_v4 }
 0x8e6   : > { %v9424_v3 = vmul.f32 %v9408_v55, %v17210_v20  ;;  %v9472_v21 = vmul.f32 -21.0, %v9408_v55  ;;  %v18511_v55 = vld [vmem:[#allocation46_spill] sm:$0xff] }
 0x8e7   : > { %9652 = vperm.xlu0 %12970, %v9582_v24   ;;  %v9567_v31 = vsel %vm9455_vm1, %v9551_v60, 0.0 }
 0x8e8   : > { %9004 = vmatmul.mubr.f32.gmra.mrb[106].mxu1 %v16044_v23  ;;  %v9583_v40 = vmul.f32 0.5, %v9567_v31  ;;  %v9440_v15 = vmul.f32 %v9424_v3, %v17210_v20  ;;  %v9488_v52 = vadd.f32 1.0, %v9472_v21  ;;  %v9504_v48 = vmul.f32 35.0, %v9424_v3  ;;  %v18505_v20 = vld [vmem:[#allocation22_spill] sm:$0xff]  ;;  %v18512_v3 = vld [vmem:[#allocation31_spill] sm:$0xff] }
 0x8e9   : > { %9009 = vmatprep.mubr.f32.mxu1 %v17989_v46 }
 0x8ea   : > { %9657 = vperm.xlu1 %12971, %v9583_v40   ;;  %v9520_v5 = vadd.f32 %v9504_v48, %v9488_v52  ;;  %v9536_v58 = vmul.f32 -15.0, %v9440_v15  ;;  %v18513_v15 = vld [vmem:[#allocation92_spill] sm:$0xff] }
 0x8ec   : > { %9011 = vmatmul.mubr.f32.gmra.mrb[108].mxu1 %v16062_v27  ;;  %v9552_v6 = vadd.f32 %v9536_v58, %v9520_v5  ;;  %v18514_v5 = vld [vmem:[#allocation24_spill] sm:$0xff] }
 0x8ed   : > { %9016 = vmatprep.mubr.f32.mxu1 %v17989_v46 }
 0x8ee   : > { %v9568_v19 = vsel %vm9456_vm2, %v9552_v6, 0.0 }
 0x8ef   : > { %v9584_v43 = vmul.f32 0.5, %v9568_v19 }
 0x8f0   : > { %9018 = vmatmul.mubr.f32.gmra.mrb[110].mxu1 %v16079_v33 }
 0x8f1   : > { %9104 = vmatprep.mubr.f32.mxu1 %v17989_v46  ;;  %9662 = vperm.xlu0 %12970, %v9584_v43   ;;  %v18515_v43 = vld [vmem:[#allocation18_spill] sm:$0xff] }
 0x8f4   : > { %9106 = vmatmul.mubr.f32.vlgmr.msra.gmra.mrb[80].mxu1 %v18407_v30 }
 0x8f5   : > { %9111 = vmatprep.mubr.f32.mxu1 %v17989_v46 }
 0x8f8   : > { %9113 = vmatmul.mubr.f32.gmra.mrb[82].mxu1 %v18416_v44  ;;  %v18504_v44 = vld [vmem:[#allocation89_spill] sm:$0xff] }
 0x8f9   : > { %9118 = vmatprep.mubr.f32.mxu1 %v17989_v46 }
 0x8fc   : > { %9120 = vmatmul.mubr.f32.gmra.mrb[84].mxu1 %v18424_v29 }
 0x8fd   : > { %9125 = vmatprep.mubr.f32.mxu1 %v17989_v46 }
 0x900   : > { %9127 = vmatmul.mubr.f32.gmra.mrb[86].mxu1 %v18429_v7 }
 0x901   : > { %9132 = vmatprep.mubr.f32.mxu1 %v17989_v46 }
 0x904   : > { %9134 = vmatmul.mubr.f32.gmra.mrb[88].mxu1 %v18266_v0  ;;  %v18501_v0 = vld [vmem:[#allocation38_spill] sm:$0xff] }
 0x905   : > { %9139 = vmatprep.mubr.f32.mxu1 %v17989_v46 }
 0x908   : > { %9141 = vmatmul.mubr.f32.gmra.mrb[90].mxu1 %v15882_v8 }
 0x909   : > { %9146 = vmatprep.mubr.f32.mxu1 %v17989_v46 }
 0x90c   : > { %9148 = vmatmul.mubr.f32.gmra.mrb[92].mxu1 %v15896_v47 }
 0x90d   : > { %9153 = vmatprep.mubr.f32.mxu1 %v17989_v46 }
 0x910   : > { %9155 = vmatmul.mubr.f32.gmra.mrb[94].mxu1 %v15915_v42 }
 0x911   : > { %9160 = vmatprep.mubr.f32.mxu1 %v17989_v46 }
 0x914   : > { %9162 = vmatmul.mubr.f32.gmra.mrb[96].mxu1 %v15952_v35 }
 0x915   : > { %9167 = vmatprep.mubr.f32.mxu1 %v17989_v46 }
 0x918   : > { %9169 = vmatmul.mubr.f32.gmra.mrb[98].mxu1 %v15972_v54  ;;  %v18503_v54 = vld [vmem:[#allocation43_spill] sm:$0xff] }
 0x919   : > { %9174 = vmatprep.mubr.f32.mxu1 %v17989_v46 }
 0x91c   : > { %9176 = vmatmul.mubr.f32.gmra.mrb[100].mxu1 %v15990_v25  ;;  %v18502_v25 = vld [vmem:[#allocation40_spill] sm:$0xff] }
 0x91d   : > { %9181 = vmatprep.mubr.f32.mxu1 %v17989_v46 }
 0x920   : > { %9183 = vmatmul.mubr.f32.gmra.mrb[102].mxu1 %v15996_v34 }
 0x921   : > { %9188 = vmatprep.mubr.f32.mxu1 %v17989_v46 }
 0x924   : > { %9190 = vmatmul.mubr.f32.gmra.mrb[104].mxu1 %v16026_v61 }
 0x925   : > { %9195 = vmatprep.mubr.f32.mxu1 %v17989_v46 }
 0x928   : > { %9197 = vmatmul.mubr.f32.gmra.mrb[106].mxu1 %v16044_v23 }
 0x929   : > { %9202 = vmatprep.mubr.f32.mxu1 %v17989_v46 }
 0x92c   : > { %9204 = vmatmul.mubr.f32.gmra.mrb[108].mxu1 %v16062_v27 }
 0x92d   : > { %9209 = vmatprep.mubr.f32.mxu1 %v17989_v46 }
 0x930   : > { %9211 = vmatmul.mubr.f32.gmra.mrb[110].mxu1 %v16079_v33 }
 0x93f   : > { %v7725_v47 = vpop.f32.mrb[48].mxu0 }
 0x940   : > { %v9217_v8 = vmul.f32 %v18501_v0, %v7725_v47  ;;  %v7727_v42 = vpop.f32.mrb[49].mxu0 }
 0x941   : > { %v9218_v35 = vmul.f32 %v18502_v25, %v7727_v42 }
 0x943   : > { %v17286_v34 = vadd.f32 %v9218_v35, %v9217_v8  ;;  %v7732_v61 = vpop.f32.mrb[50].mxu0  ;;  %v18516_v8 = vld [vmem:[#allocation33_spill] sm:$0xff] }
 0x944   : > { %v9221_v30 = vmul.f32 %v18503_v54, %v7732_v61  ;;  %v7734_v23 = vpop.f32.mrb[51].mxu0  ;;  %v18517_v61 = vld [vmem:[#allocation95_spill] sm:$0xff] }
 0x945   : > { %v9222_v29 = vmul.f32 %v18504_v44, %v7734_v23  ;;  %v18518_v23 = vld [vmem:[#allocation20_spill] sm:$0xff] }
 0x947   : > { %v17290_v7 = vadd.f32 %v9222_v29, %v9221_v30  ;;  %v7739_v27 = vpop.f32.mrb[52].mxu0 }
 0x948   : > { %v9225_v18 = vmul.f32 %v18505_v20, %v7739_v27  ;;  %v7741_v33 = vpop.f32.mrb[53].mxu0  ;;  %v18519_v20 = vld [vmem:[#allocation25_spill] sm:$0xff] }
 0x949   : > { %v9226_v62 = vmul.f32 %v18506_v16, %v7741_v33  ;;  %v18520_v16 = vld [vmem:[#allocation35_spill] sm:$0xff] }
 0x94b   : > { %v17294_v50 = vadd.f32 %v9226_v62, %v9225_v18  ;;  %v7746_v2 = vpop.f32.mrb[54].mxu0 }
 0x94c   : > { %v9229_v41 = vmul.f32 %v18507_v63, %v7746_v2  ;;  %v7748_v12 = vpop.f32.mrb[55].mxu0 }
 0x94d   : > { %v9230_v39 = vmul.f32 %v18508_v59, %v7748_v12 }
 0x94f   : > { %v17298_v10 = vadd.f32 %v9230_v39, %v9229_v41  ;;  %v7753_v51 = vpop.f32.mrb[56].mxu0  ;;  %v18521_v41 = vld [vmem:[#allocation96_spill] sm:$0xff]  ;;  %v18522_v39 = vld [vmem:[#allocation23_spill] sm:$0xff] }
 0x950   : > { %v9233_v49 = vmul.f32 %v18509_v32, %v7753_v51  ;;  %v7755_v53 = vpop.f32.mrb[57].mxu0 }
 0x951   : > { %v9234_v4 = vmul.f32 %v18510_v9, %v7755_v53  ;;  %v18523_v53 = vld [vmem:[#allocation37_spill] sm:$0xff] }
 0x953   : > { %v17302_v37 = vadd.f32 %v9234_v4, %v9233_v49  ;;  %v7760_v1 = vpop.f32.mrb[58].mxu0 }
 0x954   : > { %v9237_v24 = vmul.f32 %v18511_v55, %v7760_v1  ;;  %v7762_v60 = vpop.f32.mrb[59].mxu0  ;;  %v18524_v1 = vld [vmem:[#allocation99_spill] sm:$0xff] }
 0x955   : > { %v9238_v21 = vmul.f32 %v18512_v3, %v7762_v60  ;;  %v18525_v3 = vld [vmem:[#allocation27_spill] sm:$0xff] }
 0x957   : > { %v17306_v31 = vadd.f32 %v9238_v21, %v9237_v24  ;;  %v7767_v40 = vpop.f32.mrb[60].mxu0 }
 0x958   : > { %v9241_v52 = vmul.f32 %v18513_v15, %v7767_v40  ;;  %v7769_v48 = vpop.f32.mrb[61].mxu0  ;;  %v18526_v15 = vld [vmem:[#allocation39_spill] sm:$0xff] }
 0x959   : > { %v9242_v58 = vmul.f32 %v18514_v5, %v7769_v48 }
 0x95b   : > { %v17310_v6 = vadd.f32 %v9242_v58, %v9241_v52  ;;  %v7774_v19 = vpop.f32.mrb[62].mxu0 }
 0x95c   : > { %v9245_v47 = vmul.f32 %v18515_v43, %v7774_v19  ;;  %v7776_v0 = vpop.f32.mrb[63].mxu0  ;;  %v18527_v43 = vld [vmem:[#allocation103_spill] sm:$0xff] }
 0x95d   : > { %v9246_v42 = vmul.f32 %v18516_v8, %v7776_v0 }
 0x95f   : > { %v17314_v25 = vadd.f32 %v9246_v42, %v9245_v47  ;;  %v7781_v35 = vpop.f32.mrb[64].mxu0  ;;  %v18528_v42 = vld [vmem:[#allocation30_spill] sm:$0xff] }
 0x960   : > { %v9249_v54 = vmul.f32 %v18517_v61, %v7781_v35  ;;  %v7783_v30 = vpop.f32.mrb[65].mxu0 }
 0x961   : > { %v9250_v44 = vmul.f32 %v18518_v23, %v7783_v30 }
 0x963   : > { %v17318_v29 = vadd.f32 %v9250_v44, %v9249_v54  ;;  %v7788_v27 = vpop.f32.mrb[66].mxu0  ;;  %v18529_v54 = vld [vmem:[#allocation41_spill] sm:$0xff] }
 0x964   : > { %v9253_v18 = vmul.f32 %v18519_v20, %v7788_v27  ;;  %v7790_v33 = vpop.f32.mrb[67].mxu0  ;;  %v18530_v27 = vld [vmem:[#allocation106_spill] sm:$0xff] }
 0x965   : > { %v9254_v62 = vmul.f32 %v18520_v16, %v7790_v33  ;;  %v18531_v33 = vld [vmem:[#allocation32_spill] sm:$0xff] }
 0x967   : > { %v17322_v2 = vadd.f32 %v9254_v62, %v9253_v18  ;;  %v7795_v63 = vpop.f32.mrb[68].mxu0  ;;  %v17353_v62 = vld [vmem:[%s618_s29] ss:$0 sm:$0xff]  ;;  %s18555_s29 = sld [smem:[#allocation6_spill]] }
 0x968   : > { %v9257_v12 = vmul.f32 %v18521_v41, %v7795_v63  ;;  %v7797_v59 = vpop.f32.mrb[69].mxu0  ;;  %v18532_v63 = vld [vmem:[#allocation36_spill] sm:$0xff]  ;;  %v13264_v41 = vmov 1.0  }
 0x969   : > { %v9258_v51 = vmul.f32 %v18522_v39, %v7797_v59  ;;  %vm9689_vm3 = vcmp.eq.s32.totalorder %v18532_v63, %v17353_v62  ;;  %v3746_v59 = vsub.s32 3, %v18532_v63  ;;  %v13164_v39 = vld [vmem:[%s18297_s30] sm:$0xf] }
 0x96a   : > { %11316 = vmatprep.mubr.msk.f32.mxu0 %vm9689_vm3, %v13264_v41 }
 0x96b   : > { %v17326_v32 = vadd.f32 %v9258_v51, %v9257_v12  ;;  %v7802_v49 = vpop.f32.mrb[70].mxu0  ;;  %v3742_v12 = vsub.s32 2, %v18532_v63 }
 0x96c   : > { %v9261_v9 = vmul.f32 %v18523_v53, %v7802_v49  ;;  %v7804_v4 = vpop.f32.mrb[71].mxu0  ;;  %v17368_v49 = vrot.slane %v13164_v39, %v3746_v59  ;;  %v9593_v53 = vpop.permute.xlu1 %9592 }
 0x96d   : > { %v9262_v55 = vmul.f32 %v18524_v1, %v7804_v4  ;;  %v17366_v51 = vrot.slane %v13164_v39, %v3742_v12  ;;  %v18533_v4 = vld [vmem:[#allocation42_spill] sm:$0xff]  ;;  %s18559_s22 = sand.u32 1, %s18555_s29  }
 0x96e   : > { %v12084_v1 = vadd.f32 %v18533_v4, %v17368_v49  ;;  %s17618_s24 = scalar_lea.sflag [#allocation3], %s18559_s22 }
 0x96f   : > { %v17330_v24 = vadd.f32 %v9262_v55, %v9261_v9  ;;  %v7809_v60 = vpop.f32.mrb[72].mxu0  ;;  %v12083_v9 = vadd.f32 %v16861_v45, %v17366_v51 }
 0x970   : > { %v9265_v21 = vmul.f32 %v18525_v3, %v7809_v60  ;;  %v7811_v40 = vpop.f32.mrb[73].mxu0 }
 0x971   : > { %v9266_v52 = vmul.f32 %v18526_v15, %v7811_v40  ;;  %v18534_v15 = vld [vmem:[#allocation108_spill] sm:$0xff] }
 0x973   : > { %v17334_v48 = vadd.f32 %v9266_v52, %v9265_v21  ;;  %v7816_v5 = vpop.f32.mrb[74].mxu0  ;;  %v9598_v21 = vpop.permute.xlu1 %9597  ;;  %v12085_v52 = vadd.f32 %v18534_v15, %v17366_v51 }
 0x974   : > { %v9269_v58 = vmul.f32 %v16715_v57, %v7816_v5  ;;  %v7818_v19 = vpop.f32.mrb[75].mxu0 }
 0x975   : > { %v9270_v47 = vmul.f32 %v18527_v43, %v7818_v19  ;;  %v9588_v43 = vpop.permute.xlu0 %9587 }
 0x977   : > { %v17338_v0 = vadd.f32 %v9270_v47, %v9269_v58  ;;  %v7823_v8 = vpop.f32.mrb[76].mxu0  ;;  %v18535_v58 = vld [vmem:[#allocation34_spill] sm:$0xff] }
 0x978   : > { %v9273_v35 = vmul.f32 %v18528_v42, %v7823_v8  ;;  %v7825_v61 = vpop.f32.mrb[77].mxu0  ;;  %v12086_v19 = vadd.f32 %v18535_v58, %v17368_v49 }
 0x979   : > { %v9274_v30 = vmul.f32 %v18529_v54, %v7825_v61  ;;  %v18536_v61 = vld [vmem:[#allocation45_spill] sm:$0xff] }
 0x97a   : > { %v12087_v54 = vadd.f32 %v18536_v61, %v17366_v51  ;;  %v18541_v61 = vld [vmem:[#allocation44_spill] sm:$0xff] }
 0x97b   : > { %v17342_v23 = vadd.f32 %v9274_v30, %v9273_v35  ;;  %v7830_v44 = vpop.f32.mrb[78].mxu0 }
 0x97c   : > { %v9277_v20 = vmul.f32 %v18530_v27, %v7830_v44  ;;  %v7832_v18 = vpop.f32.mrb[79].mxu0  ;;  %v18537_v27 = vld [vmem:[#allocation111_spill] sm:$0xff] }
 0x97d   : > { %v9278_v16 = vmul.f32 %v18531_v33, %v7832_v18  ;;  %v9603_v18 = vpop.permute.xlu1 %9602 }
 0x97f   : > { %v17346_v57 = vadd.f32 %v9278_v16, %v9277_v20  ;;  %v12088_v20 = vadd.f32 %v18537_v27, %v17368_v49 }
 0x9c7   : > { %v9107_v55 = vpop.f32.mrb[80].mxu1 }
 0x9c8   : > { %v9219_v60 = vmul.f32 %v12083_v9, %v9107_v55  ;;  %v9109_v3 = vpop.f32.mrb[81].mxu1  ;;  %v18538_v9 = vld [vmem:[#allocation49_spill] sm:$0xff] }
 0x9c9   : > { %v9220_v40 = vmul.f32 %v12084_v1, %v9109_v3  ;;  %v12089_v4 = vadd.f32 %v18538_v9, %v17366_v51  ;;  %v18539_v3 = vld [vmem:[#allocation51_spill] sm:$0xff] }
 0x9ca   : > { %v9297_v5 = vadd.f32 %v17286_v34, %v9219_v60 }
 0x9cb   : > { %v9114_v47 = vpop.f32.mrb[82].mxu1 }
 0x9cc   : > { %v9313_v8 = vadd.f32 %v9297_v5, %v9220_v40  ;;  %v9223_v45 = vmul.f32 %v12085_v52, %v9114_v47  ;;  %v9116_v42 = vpop.f32.mrb[83].mxu1  ;;  %v9608_v47 = vpop.permute.xlu1 %9607 }
 0x9cd   : > { %v9224_v35 = vmul.f32 %v12086_v19, %v9116_v42  ;;  %v18540_v19 = vld [vmem:[#allocation114_spill] sm:$0xff] }
 0x9ce   : > { %v9665_v30 = vmul.f32 %v9588_v43, %v9313_v8  ;;  %v9298_v44 = vadd.f32 %v17290_v7, %v9223_v45  ;;  %v12090_v7 = vadd.f32 %v18539_v3, %v17368_v49  ;;  %v12091_v43 = vadd.f32 %v18540_v19, %v17366_v51 }
 0x9cf   : > { %v9121_v34 = vpop.f32.mrb[84].mxu1 }
 0x9d0   : > { %v9698_v33 = vand.u32 4294901760, %v9665_v30  ;;  %v9314_v16 = vadd.f32 %v9298_v44, %v9224_v35  ;;  %v9227_v12 = vmul.f32 %v12087_v54, %v9121_v34  ;;  %v9123_v59 = vpop.f32.mrb[85].mxu1  ;;  %v12092_v54 = vadd.f32 %v18541_v61, %v17368_v49 }
 0x9d1   : > { %v9228_v39 = vmul.f32 %v12088_v20, %v9123_v59 }
 0x9d2   : > { %v9800_v1 = vsub.f32 %v9665_v30, %v9698_v33  ;;  %v9666_v55 = vmul.f32 %v9593_v53, %v9314_v16  ;;  %v9299_v60 = vadd.f32 %v17294_v50, %v9227_v12  ;;  %v18542_v12 = vld [vmem:[#allocation48_spill] sm:$0xff] }
 0x9d3   : > { %v9128_v40 = vpop.f32.mrb[86].mxu1  ;;  %v12093_v59 = vadd.f32 %v18542_v12, %v17366_v51 }
 0x9d4   : > { %v9701_v15 = vand.u32 4294901760, %v9666_v55  ;;  %v9315_v52 = vadd.f32 %v9299_v60, %v9228_v39  ;;  %v9231_v5 = vmul.f32 %v12089_v4, %v9128_v40  ;;  %v9130_v58 = vpop.f32.mrb[87].mxu1  ;;  %v9801_v45 = vand.u32 4294901760, %v9800_v1  ;;  %v18543_v60 = vld [vmem:[#allocation117_spill] sm:$0xff] }
 0x9d5   : > { %v9232_v8 = vmul.f32 %v12090_v7, %v9130_v58  ;;  %v12094_v3 = vadd.f32 %v18543_v60, %v17368_v49  ;;  %v9613_v7 = vpop.permute.xlu1 %9612 }
 0x9d6   : > { %v17391_v42 = vpack.c.bf16 %v9701_v15, %v9698_v33  ;;  %v9807_v35 = vsub.f32 %v9666_v55, %v9701_v15  ;;  %v9667_v53 = vmul.f32 %v9598_v21, %v9315_v52  ;;  %v9300_v50 = vadd.f32 %v17298_v10, %v9231_v5 }
 0x9d7   : > { %v9135_v30 = vpop.f32.mrb[88].mxu1  ;;  %v9802_v21 = vsub.f32 %v9800_v1, %v9801_v45 }
 0x9d8   : > { %v9704_v44 = vand.u32 4294901760, %v9667_v53  ;;  %v9316_v27 = vadd.f32 %v9300_v50, %v9232_v8  ;;  %v9235_v20 = vmul.f32 %v12091_v43, %v9135_v30  ;;  %v9137_v34 = vpop.f32.mrb[89].mxu1  ;;  %11796 = vmatprep.subr.bf16.mxu1 %v17391_v42  ;;  %v9808_v16 = vand.u32 4294901760, %v9807_v35 }
 0x9d9   : > { %v9236_v33 = vmul.f32 %v12092_v54, %v9137_v34  ;;  %11798 = vmatpush3.bf16.msra.mxu1 %v17391_v42  ;;  %v17400_v39 = vpack.c.bf16 %v9807_v35, %v9800_v1  ;;  %v18544_v1 = vld [vmem:[#allocation52_spill] sm:$0xff] }
 0x9da   : > { %v9814_v10 = vsub.f32 %v9667_v53, %v9704_v44  ;;  %v9668_v9 = vmul.f32 %v9603_v18, %v9316_v27  ;;  %v9301_v4 = vadd.f32 %v17302_v37, %v9235_v20  ;;  %v9809_v55 = vsub.f32 %v9807_v35, %v9808_v16  ;;  %v18546_v27 = vld [vmem:[#allocation72_spill] sm:$0xff] }
 0x9db   : > { %v9142_v40 = vpop.f32.mrb[90].mxu1  ;;  %v17405_v15 = vpack.c.bf16 %v9808_v16, %v9801_v45  ;;  %v12095_v8 = vadd.f32 %v18544_v1, %v17366_v51  ;;  %v9803_v18 = vand.u32 4294901760, %v9802_v21  ;;  %v18545_v45 = vld [vmem:[#allocation71_spill] sm:$0xff]  ;;  %v12097_v20 = vadd.f32 %v18546_v27, %v17366_v51  ;;  %v9618_v21 = vpop.permute.xlu1 %9617 }
 0x9dc   : > { %v9707_v52 = vand.u32 4294901760, %v9668_v9  ;;  %v9317_v5 = vadd.f32 %v9301_v4, %v9236_v33  ;;  %v9239_v58 = vmul.f32 %v12093_v59, %v9142_v40  ;;  %v9144_v19 = vpop.f32.mrb[91].mxu1  ;;  %v9810_v43 = vand.u32 4294901760, %v9809_v55 }
 0x9dd   : > { %v9240_v53 = vmul.f32 %v12094_v3, %v9144_v19  ;;  %v9815_v50 = vand.u32 4294901760, %v9814_v10  ;;  %v12096_v30 = vadd.f32 %v18545_v45, %v17368_v49 }
 0x9de   : > { %v17409_v37 = vpack.c.bf16 %v9707_v52, %v9704_v44  ;;  %v9821_v35 = vsub.f32 %v9668_v9, %v9707_v52  ;;  %v9669_v61 = vmul.f32 %v9608_v47, %v9317_v5  ;;  %v9302_v54 = vadd.f32 %v17306_v31, %v9239_v58  ;;  %v18547_v52 = vld [vmem:[#allocation56_spill] sm:$0xff] }
 0x9df   : > { %v9149_v34 = vpop.f32.mrb[92].mxu1  ;;  %v11827_v16 = vpack.c.bf16 %v9810_v43, %v9803_v18  ;;  %v9816_v31 = vsub.f32 %v9814_v10, %v9815_v50  ;;  %v12098_v5 = vadd.f32 %v18547_v52, %v17368_v49 }
 0x9e0   : > { %v9710_v12 = vand.u32 4294901760, %v9669_v61  ;;  %v9318_v59 = vadd.f32 %v9302_v54, %v9240_v53  ;;  %v9243_v33 = vmul.f32 %v12095_v8, %v9149_v34  ;;  %v9151_v4 = vpop.f32.mrb[93].mxu1  ;;  %11800 = vmatprep.subr.bf16.mxu1 %v17409_v37  ;;  %v9822_v44 = vand.u32 4294901760, %v9821_v35 }
 0x9e1   : > { %v9244_v9 = vmul.f32 %v12096_v30, %v9151_v4  ;;  %11828 = vmatprep.subr.bf16.mxu0 %v11827_v16  ;;  %11802 = vmatpush3.bf16.msra.mxu1 %v17409_v37  ;;  %v17418_v47 = vpack.c.bf16 %v9821_v35, %v9814_v10  ;;  %v18548_v10 = vld [vmem:[#allocation73_spill] sm:$0xff] }
 0x9e2   : > { %v9828_v55 = vsub.f32 %v9669_v61, %v9710_v12  ;;  %v9670_v60 = vmul.f32 %v9613_v7, %v9318_v59  ;;  %v9303_v3 = vadd.f32 %v17310_v6, %v9243_v33  ;;  %11830 = vmatpush3.bf16.msra.mxu0 %v11827_v16  ;;  %v9823_v40 = vsub.f32 %v9821_v35, %v9822_v44  ;;  %v18550_v16 = vld [vmem:[#allocation119_spill] sm:$0xff]  ;;  %v9623_v59 = vpop.permute.xlu1 %9622 }
 0x9e3   : > { %v9156_v58 = vpop.f32.mrb[94].mxu1  ;;  %v17423_v19 = vpack.c.bf16 %v9822_v44, %v9815_v50  ;;  %v12099_v54 = vadd.f32 %v18548_v10, %v17366_v51  ;;  %v9817_v7 = vand.u32 4294901760, %v9816_v31  ;;  %v18549_v50 = vld [vmem:[#allocation74_spill] sm:$0xff] }
 0x9e4   : > { %v9713_v43 = vand.u32 4294901760, %v9670_v60  ;;  %v9319_v1 = vadd.f32 %v9303_v3, %v9244_v9  ;;  %v9247_v8 = vmul.f32 %v12097_v20, %v9156_v58  ;;  %v9158_v53 = vpop.f32.mrb[95].mxu1  ;;  %v9824_v18 = vand.u32 4294901760, %v9823_v40 }
 0x9e5   : > { %v9248_v61 = vmul.f32 %v12098_v5, %v9158_v53  ;;  %v9829_v45 = vand.u32 4294901760, %v9828_v55  ;;  %v12100_v34 = vadd.f32 %v18549_v50, %v17368_v49  ;;  %v12101_v20 = vadd.f32 %v18550_v16, %v17366_v51 }
 0x9e6   : > { %v17427_v6 = vpack.c.bf16 %v9713_v43, %v9710_v12  ;;  %v9835_v35 = vsub.f32 %v9670_v60, %v9713_v43  ;;  %v9671_v30 = vmul.f32 %v9618_v21, %v9319_v1  ;;  %v9304_v27 = vadd.f32 %v17314_v25, %v9247_v8  ;;  %v18551_v43 = vld [vmem:[#allocation58_spill] sm:$0xff] }
 0x9e7   : > { %v9163_v33 = vpop.f32.mrb[96].mxu1  ;;  %v11831_v4 = vpack.c.bf16 %v9824_v18, %v9817_v7  ;;  %v9830_v25 = vsub.f32 %v9828_v55, %v9829_v45  ;;  %v12102_v1 = vadd.f32 %v18551_v43, %v17368_v49 }
 0x9e8   : > { %v9716_v44 = vand.u32 4294901760, %v9671_v30  ;;  %v9320_v9 = vadd.f32 %v9304_v27, %v9248_v61  ;;  %v9251_v3 = vmul.f32 %v12099_v54, %v9163_v33  ;;  %v9165_v31 = vpop.f32.mrb[97].mxu1  ;;  %11804 = vmatprep.subr.bf16.mxu1 %v17427_v6  ;;  %v9836_v12 = vand.u32 4294901760, %v9835_v35 }
 0x9e9   : > { %v9252_v60 = vmul.f32 %v12100_v34, %v9165_v31  ;;  %11832 = vmatprep.subr.bf16.mxu0 %v11831_v4  ;;  %11806 = vmatpush3.bf16.msra.mxu1 %v17427_v6  ;;  %v17436_v21 = vpack.c.bf16 %v9835_v35, %v9828_v55  ;;  %v18552_v55 = vld [vmem:[#allocation78_spill] sm:$0xff]  ;;  %v9831_v34 = vand.u32 4294901760, %v9830_v25  ;;  %v9633_v25 = vpop.permute.xlu0 %9632 }
 0x9ea   : > { %v9842_v40 = vsub.f32 %v9671_v30, %v9716_v44  ;;  %v9672_v52 = vmul.f32 %v9623_v59, %v9320_v9  ;;  %v9305_v5 = vadd.f32 %v17318_v29, %v9251_v3  ;;  %11834 = vmatpush3.bf16.msra.mxu0 %v11831_v4  ;;  %v9837_v58 = vsub.f32 %v9835_v35, %v9836_v12  ;;  %v9628_v30 = vpop.permute.xlu1 %9627 }
 0x9eb   : > { %v9170_v8 = vpop.f32.mrb[98].mxu1  ;;  %v17441_v53 = vpack.c.bf16 %v9836_v12, %v9829_v45  ;;  %v12103_v27 = vadd.f32 %v18552_v55, %v17366_v51  ;;  %v18553_v45 = vld [vmem:[#allocation79_spill] sm:$0xff] }
 0x9ec   : > { %v9719_v18 = vand.u32 4294901760, %v9672_v52  ;;  %v9321_v10 = vadd.f32 %v9305_v5, %v9252_v60  ;;  %v9255_v54 = vmul.f32 %v12101_v20, %v9170_v8  ;;  %v9172_v61 = vpop.f32.mrb[99].mxu1  ;;  %v9838_v7 = vand.u32 4294901760, %v9837_v58 }
 0x9ed   : > { %v9256_v50 = vmul.f32 %v12102_v1, %v9172_v61  ;;  %v9843_v29 = vand.u32 4294901760, %v9842_v40  ;;  %v12104_v4 = vadd.f32 %v18553_v45, %v17368_v49  ;;  %v12105_v20 = vadd.f32 %v16953_v13, %v17366_v51 }
 0x9ee   : > { %v17445_v16 = vpack.c.bf16 %v9719_v18, %v9716_v44  ;;  %v9849_v35 = vsub.f32 %v9672_v52, %v9719_v18  ;;  %v9673_v59 = vmul.f32 %v9628_v30, %v9321_v10  ;;  %v9306_v33 = vadd.f32 %v17322_v2, %v9255_v54 }
 0x9ef   : > { %v9177_v9 = vpop.f32.mrb[100].mxu1  ;;  %v11835_v3 = vpack.c.bf16 %v9838_v7, %v9831_v34  ;;  %v9844_v2 = vsub.f32 %v9842_v40, %v9843_v29  ;;  %v12106_v18 = vadd.f32 %v16959_v36, %v17368_v49 }
 0x9f0   : > { %v9722_v31 = vand.u32 4294901760, %v9673_v59  ;;  %v9322_v12 = vadd.f32 %v9306_v33, %v9256_v50  ;;  %v9259_v60 = vmul.f32 %v12103_v27, %v9177_v9  ;;  %v9179_v5 = vpop.f32.mrb[101].mxu1  ;;  %11808 = vmatprep.subr.bf16.mxu1 %v17445_v16  ;;  %v9850_v44 = vand.u32 4294901760, %v9849_v35  ;;  %v9638_v50 = vpop.permute.xlu1 %9637 }
 0x9f1   : > { %v9260_v52 = vmul.f32 %v12104_v4, %v9179_v5  ;;  %11836 = vmatprep.subr.bf16.mxu0 %v11835_v3  ;;  %11810 = vmatpush3.bf16.msra.mxu1 %v17445_v16  ;;  %v17454_v58 = vpack.c.bf16 %v9849_v35, %v9842_v40  ;;  %v12107_v40 = vadd.f32 %v16969_v11, %v17366_v51  ;;  %v9643_v5 = vpop.permute.xlu0 %9642 }
 0x9f2   : > { %v9856_v43 = vsub.f32 %v9673_v59, %v9722_v31  ;;  %v9674_v1 = vmul.f32 %v9633_v25, %v9322_v12  ;;  %v9307_v13 = vadd.f32 %v17326_v32, %v9259_v60  ;;  %11838 = vmatpush3.bf16.msra.mxu0 %v11835_v3  ;;  %v9851_v8 = vsub.f32 %v9849_v35, %v9850_v44 }
 0x9f3   : > { %v9184_v10 = vpop.f32.mrb[102].mxu1  ;;  %v17459_v54 = vpack.c.bf16 %v9850_v44, %v9843_v29  ;;  %v9845_v59 = vand.u32 4294901760, %v9844_v2  ;;  %v12108_v29 = vadd.f32 %v16975_v14, %v17368_v49  ;;  %v12109_v4 = vadd.f32 %v16985_v56, %v17366_v51 }
 0x9f4   : > { %v9725_v61 = vand.u32 4294901760, %v9674_v1  ;;  %v9323_v7 = vadd.f32 %v9307_v13, %v9260_v52  ;;  %v9263_v55 = vmul.f32 %v12105_v20, %v9184_v10  ;;  %v9186_v27 = vpop.f32.mrb[103].mxu1  ;;  %v9852_v30 = vand.u32 4294901760, %v9851_v8 }
 0x9f5   : > { %v9264_v34 = vmul.f32 %v12106_v18, %v9186_v27  ;;  %v9857_v32 = vand.u32 4294901760, %v9856_v43  ;;  %v9648_v27 = vpop.permute.xlu1 %9647 }
 0x9f6   : > { %v17463_v33 = vpack.c.bf16 %v9725_v61, %v9722_v31  ;;  %v9863_v35 = vsub.f32 %v9674_v1, %v9725_v61  ;;  %v9675_v45 = vmul.f32 %v9638_v50, %v9323_v7  ;;  %v9308_v36 = vadd.f32 %v17330_v24, %v9263_v55 }
 0x9f7   : > { %v9191_v20 = vpop.f32.mrb[104].mxu1  ;;  %v11839_v9 = vpack.c.bf16 %v9852_v30, %v9845_v59  ;;  %v9858_v24 = vsub.f32 %v9856_v43, %v9857_v32  ;;  %v12110_v1 = vadd.f32 %v16991_v17, %v17368_v49 }
 0x9f8   : > { %v9728_v3 = vand.u32 4294901760, %v9675_v45  ;;  %v9324_v11 = vadd.f32 %v9308_v36, %v9264_v34  ;;  %v9267_v12 = vmul.f32 %v12107_v40, %v9191_v20  ;;  %v9193_v60 = vpop.f32.mrb[105].mxu1  ;;  %11812 = vmatprep.subr.bf16.mxu1 %v17463_v33  ;;  %v9864_v31 = vand.u32 4294901760, %v9863_v35 }
 0x9f9   : > { %v9268_v44 = vmul.f32 %v12108_v29, %v9193_v60  ;;  %11840 = vmatprep.subr.bf16.mxu0 %v11839_v9  ;;  %11814 = vmatpush3.bf16.msra.mxu1 %v17463_v33  ;;  %v17472_v25 = vpack.c.bf16 %v9863_v35, %v9856_v43  ;;  %v12111_v43 = vadd.f32 %v17001_v26, %v17366_v51  ;;  %v9859_v40 = vand.u32 4294901760, %v9858_v24 }
 0x9fa   : > { %v9870_v14 = vsub.f32 %v9675_v45, %v9728_v3  ;;  %v9676_v52 = vmul.f32 %v9643_v5, %v9324_v11  ;;  %v9309_v56 = vadd.f32 %v17334_v48, %v9267_v12  ;;  %11842 = vmatpush3.bf16.msra.mxu0 %v11839_v9  ;;  %v9865_v2 = vsub.f32 %v9863_v35, %v9864_v31 }
 0x9fb   : > { %v9198_v13 = vpop.f32.mrb[106].mxu1  ;;  %v17477_v8 = vpack.c.bf16 %v9864_v31, %v9857_v32  ;;  %v12112_v32 = vadd.f32 %v17003_v38, %v17368_v49  ;;  %v12113_v35 = vadd.f32 %v17009_v22, %v17366_v51  ;;  %v12114_v31 = vadd.f32 %v17012_v28, %v17368_v49 }
 0x9fc   : > { %v9731_v18 = vand.u32 4294901760, %v9676_v52  ;;  %v9325_v10 = vadd.f32 %v9309_v56, %v9268_v44  ;;  %v9271_v61 = vmul.f32 %v12109_v4, %v9198_v13  ;;  %v9200_v7 = vpop.f32.mrb[107].mxu1  ;;  %v9866_v55 = vand.u32 4294901760, %v9865_v2  ;;  %v9658_v13 = vpop.permute.xlu1 %9657 }
 0x9fd   : > { %v9272_v30 = vmul.f32 %v12110_v1, %v9200_v7  ;;  %v9871_v48 = vand.u32 4294901760, %v9870_v14 }
 0x9fe   : > { %v17481_v50 = vpack.c.bf16 %v9731_v18, %v9728_v3  ;;  %v9877_v34 = vsub.f32 %v9676_v52, %v9731_v18  ;;  %v9677_v59 = vmul.f32 %v9648_v27, %v9325_v10  ;;  %v9310_v17 = vadd.f32 %v17338_v0, %v9271_v61  ;;  %v9653_v3 = vpop.permute.xlu0 %9652 }
 0x9ff   : > { %v9205_v45 = vpop.f32.mrb[108].mxu1  ;;  %v11843_v36 = vpack.c.bf16 %v9866_v55, %v9859_v40  ;;  %v9872_v0 = vsub.f32 %v9870_v14, %v9871_v48 }
 0xa00   : > { %v9734_v29 = vand.u32 4294901760, %v9677_v59  ;;  %v9326_v26 = vadd.f32 %v9310_v17, %v9272_v30  ;;  %v9275_v4 = vmul.f32 %v12111_v43, %v9205_v45  ;;  %v9207_v20 = vpop.f32.mrb[109].mxu1  ;;  %11816 = vmatprep.subr.bf16.mxu1 %v17481_v50  ;;  %v9878_v9 = vand.u32 4294901760, %v9877_v34 }
 0xa01   : > { %v9276_v11 = vmul.f32 %v12112_v32, %v9207_v20  ;;  %11844 = vmatprep.subr.bf16.mxu0 %v11843_v36  ;;  %11818 = vmatpush3.bf16.msra.mxu1 %v17481_v50  ;;  %v17490_v12 = vpack.c.bf16 %v9877_v34, %v9870_v14  ;;  %v9873_v18 = vand.u32 4294901760, %v9872_v0 }
 0xa02   : > { %v9884_v38 = vsub.f32 %v9677_v59, %v9734_v29  ;;  %v9678_v60 = vmul.f32 %v9653_v3, %v9326_v26  ;;  %v9311_v22 = vadd.f32 %v17342_v23, %v9275_v4  ;;  %11846 = vmatpush3.bf16.msra.mxu0 %v11843_v36  ;;  %v9879_v51 = vsub.f32 %v9877_v34, %v9878_v9 }
 0xa03   : > { %v9212_v5 = vpop.f32.mrb[110].mxu1  ;;  %v17495_v44 = vpack.c.bf16 %v9878_v9, %v9871_v48  ;;  %v9663_v48 = vpop.permute.xlu0 %9662 }
 0xa04   : > { %v9737_v24 = vand.u32 4294901760, %v9678_v60  ;;  %v9327_v52 = vadd.f32 %v9311_v22, %v9276_v11  ;;  %v9279_v56 = vmul.f32 %v12113_v35, %v9212_v5  ;;  %v9214_v2 = vpop.f32.mrb[111].mxu1  ;;  %v9880_v1 = vand.u32 4294901760, %v9879_v51 }
 0xa05   : > { %v9280_v14 = vmul.f32 %v12114_v31, %v9214_v2  ;;  %v9885_v10 = vand.u32 4294901760, %v9884_v38 }
 0xa06   : > { %v17497_v61 = vpack.c.bf16 %v9737_v24, %v9734_v29  ;;  %v9891_v23 = vsub.f32 %v9678_v60, %v9737_v24  ;;  %v9679_v7 = vmul.f32 %v9658_v13, %v9327_v52  ;;  %v9312_v55 = vadd.f32 %v17346_v57, %v9279_v56 }
 0xa07   : > { %v11847_v43 = vpack.c.bf16 %v9880_v1, %v9873_v18  ;;  %v9886_v28 = vsub.f32 %v9884_v38, %v9885_v10  ;;  %v17505_v57 = vadd.s32 8, %v18532_v63  ;;  %v10557_v60 = vsel %vm9689_vm3, 1.0, %v17989_v46 }
 0xa08   : > { %v9740_v49 = vand.u32 4294901760, %v9679_v7  ;;  %v9328_v27 = vadd.f32 %v9312_v55, %v9280_v14  ;;  %11820 = vmatprep.subr.bf16.mxu1 %v17497_v61  ;;  %v9892_v30 = vand.u32 4294901760, %v9891_v23  ;;  %v11883_v40 = vpack.c.bf16 %v9891_v23, %v9884_v38 }
 0xa09   : > { %11848 = vmatprep.subr.bf16.mxu0 %v11847_v43  ;;  %11822 = vmatpush3.bf16.msra.mxu1 %v17497_v61  ;;  %v9887_v45 = vand.u32 4294901760, %v9886_v28  ;;  %vm9690_vm4 = vcmp.eq.s32.totalorder %v17505_v57, %v17353_v62  ;;  %v9779_v24 = vsub.f32 %v10557_v60, %v10557_v60 }
 0xa0a   : > { %v9898_v34 = vsub.f32 %v9679_v7, %v9740_v49  ;;  %v9680_v59 = vmul.f32 %v9663_v48, %v9328_v27  ;;  %11850 = vmatpush3.bf16.msra.mxu0 %v11847_v43  ;;  %v9893_v17 = vsub.f32 %v9891_v23, %v9892_v30  ;;  %v17502_v32 = vpack.c.bf16 %v9892_v30, %v9885_v10 }
 0xa0b   : > { %v10558_v0 = vsel %vm9690_vm4, 1.0, %v17989_v46  ;;  %v9780_v2 = vand.u32 4294901760, %v9779_v24 }
 0xa0c   : > { %v9743_v35 = vand.u32 4294901760, %v9680_v59  ;;  %v9894_v36 = vand.u32 4294901760, %v9893_v17  ;;  %v9899_v29 = vand.u32 4294901760, %v9898_v34  ;;  %v9789_v51 = vsub.f32 %v10558_v0, %v10558_v0 }
 0xa0d   : > { %v9781_v13 = vsub.f32 %v9779_v24, %v9780_v2 }
 0xa0e   : > { %v17507_v26 = vpack.c.bf16 %v9743_v35, %v9740_v49  ;;  %v9905_v4 = vsub.f32 %v9680_v59, %v9743_v35  ;;  %v11851_v20 = vpack.c.bf16 %v9894_v36, %v9887_v45  ;;  %v9900_v9 = vsub.f32 %v9898_v34, %v9899_v29 }
 0xa0f   : > { %v9790_v52 = vand.u32 4294901760, %v9789_v51  ;;  %v9782_v18 = vand.u32 4294901760, %v9781_v13 }
 0xa10   : > { %11824 = vmatprep.subr.bf16.mxu1 %v17507_v26  ;;  %11852 = vmatprep.subr.bf16.mxu0 %v11851_v20  ;;  %v9906_v3 = vand.u32 4294901760, %v9905_v4  ;;  %v11887_v11 = vpack.c.bf16 %v9905_v4, %v9898_v34  ;;  %v9901_v31 = vand.u32 4294901760, %v9900_v9 }
 0xa11   : > { %11826 = vmatpush3.bf16.msra.mxu1 %v17507_v26  ;;  %11854 = vmatpush3.bf16.msra.mxu0 %v11851_v20  ;;  %v9791_v1 = vsub.f32 %v9789_v51, %v9790_v52 }
 0xa12   : > { %v9907_v38 = vsub.f32 %v9905_v4, %v9906_v3  ;;  %v17521_v22 = vpack.c.bf16 %v9906_v3, %v9899_v29  ;;  %11281 = vmatprep.mubr.f32.mxu1 %v9782_v18 }
 0xa13   : > { %v9792_v14 = vand.u32 4294901760, %v9791_v1 }
 0xa14   : > { %v9908_v5 = vand.u32 4294901760, %v9907_v38 }
 0xa15   : > { %11282 = vmatmul.mubr.f32.vlgmr.msra.gmra.mrb[112].mxu1 %v9792_v14 }
 0xa16   : > { %v11855_v56 = vpack.c.bf16 %v9908_v5, %v9901_v31 }
 0xa18   : > { %11856 = vmatprep.subr.bf16.mxu0 %v11855_v56 }
 0xa19   : > { %11858 = vmatpush3.bf16.msra.mxu0 %v11855_v56 }
 0xa1a   : > { %11860 = vmatprep.subr.bf16.mxu0 %v17400_v39 }
 0xa1c   : > { %11317 = vmatmul.mubr.msk.f32.vlgmr.msra.gmra.mrb[80].mxu0 %vm9690_vm4, %v13264_v41 }
 0xa1d   : > { %11862 = vmatpush3.bf16.msra.mxu0 %v17400_v39  ;;  %11351 = vmatprep.mubr.f32.mxu0 %v9779_v24 }
 0xa1e   : > { %11864 = vmatprep.subr.bf16.mxu0 %v17418_v47 }
 0xa21   : > { %11866 = vmatpush3.bf16.msra.mxu0 %v17418_v47 }
 0xa22   : > { %11868 = vmatprep.subr.bf16.mxu0 %v17436_v21 }
 0xa25   : > { %11870 = vmatpush3.bf16.msra.mxu0 %v17436_v21 }
 0xa26   : > { %11872 = vmatprep.subr.bf16.mxu0 %v17454_v58 }
 0xa29   : > { %11874 = vmatpush3.bf16.msra.mxu0 %v17454_v58 }
 0xa2a   : > { %11876 = vmatprep.subr.bf16.mxu0 %v17472_v25 }
 0xa2d   : > { %11878 = vmatpush3.bf16.msra.mxu0 %v17472_v25 }
 0xa2e   : > { %11880 = vmatprep.subr.bf16.mxu0 %v17490_v12 }
 0xa31   : > { %11882 = vmatpush3.bf16.msra.mxu0 %v17490_v12 }
 0xa32   : > { %11884 = vmatprep.subr.bf16.mxu0 %v11883_v40 }
 0xa35   : > { %11886 = vmatpush3.bf16.msra.mxu0 %v11883_v40 }
 0xa36   : > { %11888 = vmatprep.subr.bf16.mxu0 %v11887_v11 }
 0xa39   : > { %11890 = vmatpush3.bf16.msra.mxu0 %v11887_v11 }
 0xa3a   : > { %11892 = vmatprep.subr.bf16.mxu0 %v17391_v42 }
 0xa3c   : > { %11352 = vmatmul.mubr.f32.vlgmr.msra.gmra.mrb[80].mxu0 %v9789_v51 }
 0xa3d   : > { %11894 = vmatpush3.bf16.msra.mxu0 %v17391_v42  ;;  %11386 = vmatprep.mubr.f32.mxu0 %v9780_v2 }
 0xa3e   : > { %11896 = vmatprep.subr.bf16.mxu0 %v17409_v37 }
 0xa41   : > { %11898 = vmatpush3.bf16.msra.mxu0 %v17409_v37 }
 0xa42   : > { %11900 = vmatprep.subr.bf16.mxu0 %v17427_v6 }
 0xa45   : > { %11902 = vmatpush3.bf16.msra.mxu0 %v17427_v6 }
 0xa46   : > { %11904 = vmatprep.subr.bf16.mxu0 %v17445_v16 }
 0xa49   : > { %11906 = vmatpush3.bf16.msra.mxu0 %v17445_v16 }
 0xa4a   : > { %11908 = vmatprep.subr.bf16.mxu0 %v17463_v33 }
 0xa4d   : > { %11910 = vmatpush3.bf16.msra.mxu0 %v17463_v33 }
 0xa4e   : > { %11912 = vmatprep.subr.bf16.mxu0 %v17481_v50 }
 0xa51   : > { %11914 = vmatpush3.bf16.msra.mxu0 %v17481_v50 }
 0xa52   : > { %11916 = vmatprep.subr.bf16.mxu0 %v17497_v61 }
 0xa55   : > { %11918 = vmatpush3.bf16.msra.mxu0 %v17497_v61 }
 0xa56   : > { %11920 = vmatprep.subr.bf16.mxu0 %v17507_v26 }
 0xa59   : > { %11922 = vmatpush3.bf16.msra.mxu0 %v17507_v26 }
 0xa5a   : > { %11924 = vmatprep.subr.bf16.mxu0 %v17405_v15 }
 0xa5c   : > { %11387 = vmatmul.mubr.f32.vlgmr.msra.gmra.mrb[80].mxu0 %v9790_v52 }
 0xa5d   : > { %11926 = vmatpush3.bf16.msra.mxu0 %v17405_v15  ;;  %11421 = vmatprep.mubr.msk.f32.mxu0 %vm9689_vm3, %v13264_v41 }
 0xa5e   : > { %11928 = vmatprep.subr.bf16.mxu0 %v17423_v19 }
 0xa61   : > { %11930 = vmatpush3.bf16.msra.mxu0 %v17423_v19 }
 0xa62   : > { %11932 = vmatprep.subr.bf16.mxu0 %v17441_v53 }
 0xa65   : > { %11934 = vmatpush3.bf16.msra.mxu0 %v17441_v53 }
 0xa66   : > { %11936 = vmatprep.subr.bf16.mxu0 %v17459_v54 }
 0xa69   : > { %11938 = vmatpush3.bf16.msra.mxu0 %v17459_v54 }
 0xa6a   : > { %11940 = vmatprep.subr.bf16.mxu0 %v17477_v8 }
 0xa6d   : > { %11942 = vmatpush3.bf16.msra.mxu0 %v17477_v8 }
 0xa6e   : > { %11944 = vmatprep.subr.bf16.mxu0 %v17495_v44 }
 0xa71   : > { %11946 = vmatpush3.bf16.msra.mxu0 %v17495_v44 }
 0xa72   : > { %11948 = vmatprep.subr.bf16.mxu0 %v17502_v32 }
 0xa75   : > { %11950 = vmatpush3.bf16.msra.mxu0 %v17502_v32 }
 0xa76   : > { %11952 = vmatprep.subr.bf16.mxu0 %v17521_v22 }
 0xa79   : > { %11954 = vmatpush3.bf16.msra.mxu0 %v17521_v22 }
 0xa7a   : > { %11956 = vmatprep.subr.bf16.mxu0 %v17391_v42 }
 0xa7c   : > { %11422 = vmatmul.mubr.msk.f32.vlgmr.msra.gmra.mrb[80].mxu0 %vm9690_vm4, %v13264_v41 }
 0xa7d   : > { %11958 = vmatpush3.bf16.msra.mxu0 %v17391_v42  ;;  %11456 = vmatprep.mubr.msk.f32.mxu0 %vm9689_vm3, %v13264_v41  ;;  %v9696_v42 = vld [vmem:[%s13443_s14 + $0x8] sm:$0xff] }
 0xa7e   : > { %11960 = vmatprep.subr.bf16.mxu0 %v17409_v37 }
 0xa81   : > { %11962 = vmatpush3.bf16.msra.mxu0 %v17409_v37  ;;  %v9695_v37 = vld [vmem:[%s13443_s14] sm:$0xff] }
 0xa82   : > { %11964 = vmatprep.subr.bf16.mxu0 %v17427_v6 }
 0xa85   : > { %11966 = vmatpush3.bf16.msra.mxu0 %v17427_v6 }
 0xa86   : > { %11968 = vmatprep.subr.bf16.mxu0 %v17445_v16 }
 0xa89   : > { %11970 = vmatpush3.bf16.msra.mxu0 %v17445_v16 }
 0xa8a   : > { %11972 = vmatprep.subr.bf16.mxu0 %v17463_v33 }
 0xa8d   : > { %11974 = vmatpush3.bf16.msra.mxu0 %v17463_v33 }
 0xa8e   : > { %11976 = vmatprep.subr.bf16.mxu0 %v17481_v50 }
 0xa91   : > { %11978 = vmatpush3.bf16.msra.mxu0 %v17481_v50 }
 0xa92   : > { %11980 = vmatprep.subr.bf16.mxu0 %v17497_v61 }
 0xa95   : > { %11982 = vmatpush3.bf16.msra.mxu0 %v17497_v61 }
 0xa96   : > { %11984 = vmatprep.subr.bf16.mxu0 %v17507_v26 }
 0xa99   : > { %11986 = vmatpush3.bf16.msra.mxu0 %v17507_v26 }
 0xa9c   : > { %11457 = vmatmul.mubr.msk.f32.vlgmr.msra.gmra.mrb[80].mxu0 %vm9690_vm4, %v13264_v41 }
 0xae8   : > { %v11283_v46 = vpop.f32.mrb[112].mxu1 }
 0xae9   : > { %v9784_v63 = vpop.f32.mrb[113].mxu1 }
 0xb6f   : > { %v11458_v39 = vpop.f32.mrb[80].mxu0 }
 0xb70   : > { %v12115_v15 = vadd.f32 %v11458_v39, %v11283_v46  ;;  %v10371_v47 = vpop.f32.mrb[81].mxu0 }
 0xb71   : > { %v12116_v19 = vadd.f32 %v10371_v47, %v9784_v63 }
 0xb72   : > { %v10382_v6 = vadd.f32 %v12115_v15, %v9696_v42 }
 0xb73   : > { %v10381_v62 = vadd.f32 %v12116_v19, %v9695_v37 }
 0xb74   : > { %10384 = vst [vmem:[%s13443_s14 + $0x8] sm:$0xff] %v10382_v6 }
 0xb75   : > { %10383 = vst [vmem:[%s13443_s14] sm:$0xff] %v10381_v62 }
 0xb76   : > { %13178 = shalt.err (!%p13175_p8)
}
 0xb77   : > { %s13179_s14 = scalar_lea.hbm %s17610_s21, 256  ;;  %s13183_s18 = scalar_lea.hbm %s18558_s16, 512 }
 0xb78   : > { %p13180_p10 = scmp.ne.s32.totalorder %s17610_s21, %s13179_s14  ;;  %p13184_p13 = scmp.lt.u32.totalorder %s17610_s21, %s18558_s16 }
 0xb79   : > { %p13185_p0 = scmp.lt.u32.totalorder %s13183_s18, %s13179_s14  ;;  %p13187_p2 = scmp.lt.u32.totalorder %s13179_s14, %s17610_s21 }
 0xb7a   : > { %p13181_p11 = pnand %p13180_p10, %p13397_p3 }
 0xb7b   : > { %p13186_p1 = por %p13185_p0, %p13184_p13 }
 0xb7c   : > { %p13182_p12 = pneg %p13181_p11 }
 0xb7d   : > { %p13188_p4 = por %p13187_p2, %p13186_p1 }
 0xb7f   : > { %p13189_p5 = pnand %p13188_p4, %p13182_p12 }
 0xb81   : > { %13192 = shalt.err (!%p13189_p5)
}
 0xb82   : > { %s13266_s22 = smov 128   ;;  %s13267_s23 = smov 8  }
 0xb83   : > { %12893 = dma.vmem_to_hbm [thread:$0]  (%p13397_p3), %s17612_s20, 256, %s17610_s21, %s17618_s24, %s13266_s22, %s13266_s22, %s13267_s23  }
 0xb84 PF: > { %s18560_s27 = sld [smem:[#allocation11_spill]]  ;;  %s18561_s17 = sld [smem:[#allocation5_spill]] }
 0xb8a   : > { %p12899_p6 = scmp.ge.s32.totalorder %s18560_s27, 2  ;;  %s10414_s29 = sand.u32 1, %s18561_s17  }
 0xb8b   : > { %s10415_s14 = scalar_lea.sflag [#allocation3], %s10414_s29 }
 0xb8c   : > { %p12896_p7 = pnand %p12899_p6, %p13407_p9 }
 0xb8e   : > { %13226 = dma.done.wait (!%p12896_p7), %s10415_s14, 256  }
 0xb8f   : > { %13228 = vsyncadd (!%p12896_p7), %s10415_s14, 4294967040  ;;  %s28_s25 = sadd.s32 1, %s18560_s27   ;;  %s18563_s18 = sld [smem:[#allocation6_spill]] }
 0xb90   : > { %p25_p8 = scmp.ge.s32.totalorder %s28_s25, 8   ;;  %s18564_s19 = sld [smem:[#allocation7_spill]] }
 0xb91   : > { %s18565_s20 = sld [smem:[#allocation16_spill]]  ;;  %s18566_s21 = sld [smem:[#allocation9_spill]] }
 0xb92   : > { %s18567_s22 = sld [smem:[#allocation10_spill]]  ;;  %s18568_s23 = sld [smem:[#allocation12_spill]] }
 0xb93   : > { %s18569_s24 = sld [smem:[#allocation14_spill]]  ;;  %27 = sbr.rel (!%p25_p8) target bundleno = 9 (0x9), region = 128 }
 0xb9a   :  { %10420 = vsyncpa [#allocation3], 1 }
 0xb9b   :  { %10422 = vsyncpa [#allocation3 + $0x1], 1 }

</bundles_post_ra>
